<compile_context>
chip_gen: v6e
topology: v6e:2x2x1
jax: 0.10.0
libtpu: 0.0.40
codegen_flags: <defaults>
</compile_context>

<pallas_src>
import functools

import jax
import jax.numpy as jnp
from jax import lax
from jax.experimental import pallas as pl
from jax.experimental.pallas import tpu as pltpu

EPS = 1e-5           # PyTorch GroupNorm default eps
NUM_STEPS = 8        # fixed RK4 steps over t in [0, 1]


# ---------------------------------------------------------------------------
# Fused ODEBlock kernel: full RK4 integration of the odefunc in one kernel.
# Working layout per batch element is (C, H*W): channels on sublanes,
# pixels on lanes (lane-dense, H*W is a multiple of 128 here).
# ---------------------------------------------------------------------------
def odeblock_kernel(x_ref, w1_ref, w2_ref, tc1_ref, tc2_ref, cols_ref, out_ref,
                    *, spatial_w, num_steps):
    f32 = jnp.float32
    C = out_ref.shape[1]
    HW = out_ref.shape[2]
    Wd = spatial_w

    # ---- loop-invariant values: weights, affine params, boundary masks ----
    w1 = w1_ref[...]                       # (Cout, 9*Cin)  conv1 x-channel taps
    w2 = w2_ref[...]                       # (Cout, 9*Cin)  conv2 x-channel taps
    tc1 = tc1_ref[...]                     # (Cout, HW)     conv1 t-channel map
    tc2 = tc2_ref[...]                     # (Cout, HW)     conv2 t-channel map
    cols = cols_ref[...]                   # (C, 8) per-channel affine columns
    g1w, g1b = cols[:, 0:1], cols[:, 1:2]
    g2w, g2b = cols[:, 2:3], cols[:, 3:4]
    g3w, g3b = cols[:, 4:5], cols[:, 5:6]
    cb1, cb2 = cols[:, 6:7], cols[:, 7:8]

    # hoist the per-tap weight slices out of the time loop
    w1_taps = [w1[:, k * C:(k + 1) * C] for k in range(9)]   # 9 x (Cout, Cin)
    w2_taps = [w2[:, k * C:(k + 1) * C] for k in range(9)]

    # column (w) index of each flattened pixel -> horizontal boundary masks
    wcol = lax.broadcasted_iota(jnp.int32, (1, HW), 1) % Wd
    edge = {-1: (wcol >= 1).astype(f32),
            1: (wcol < Wd - 1).astype(f32)}

    def group_norm(h, gw, gb):
        # per-channel GroupNorm (num_groups == C): one lane-axis reduction
        mean = jnp.mean(h, axis=1, keepdims=True)
        var = jnp.mean(jnp.square(h - mean), axis=1, keepdims=True)
        return (h - mean) * lax.rsqrt(var + EPS) * gw + gb

    def shift_lanes(h, off):
        # y[:, p] = h[:, p + off] with zero fill outside [0, HW)
        if off == 0:
            return h
        pad = jnp.zeros((h.shape[0], abs(off)), h.dtype)
        if off > 0:
            return jnp.concatenate([h[:, off:], pad], axis=1)
        return jnp.concatenate([pad, h[:, :off]], axis=1)

    def concat_conv3x3(h, w_taps, tcol, bias, t):
        # ConcatConv2d([t*1, h]) == conv3x3_x(h) + t * tcol + bias
        acc = t * tcol + bias
        for k in range(9):                       # statically unrolled taps
            dh, dw = k // 3 - 1, k % 3 - 1
            tap = shift_lanes(h, dh * Wd + dw)
            if dw != 0:
                tap = tap * edge[dw]
            acc = acc + jnp.dot(w_taps[k], tap,
                                preferred_element_type=f32,
                                precision=lax.Precision.HIGHEST)
        return acc

    def odefunc(t, y):
        h = group_norm(y, g1w, g1b)
        h = jnp.maximum(h, 0.0)
        h = concat_conv3x3(h, w1_taps, tc1, cb1, t)
        h = group_norm(h, g2w, g2b)
        h = jnp.maximum(h, 0.0)
        h = concat_conv3x3(h, w2_taps, tc2, cb2, t)
        return group_norm(h, g3w, g3b)

    dt = 1.0 / num_steps

    def rk4_step(i, y):
        t = i.astype(f32) * dt
        k1 = odefunc(t, y)
        k2 = odefunc(t + 0.5 * dt, y + (0.5 * dt) * k1)
        k3 = odefunc(t + 0.5 * dt, y + (0.5 * dt) * k2)
        k4 = odefunc(t + dt, y + dt * k3)
        return y + (dt / 6.0) * (k1 + 2.0 * k2 + 2.0 * k3 + k4)

    out_ref[0] = lax.fori_loop(0, num_steps, rk4_step, x_ref[0])


# ------------------------------ pallas wrapper ------------------------------

def _pack_concat_conv(conv_w, H, W):
    """Split a (Cout, Cin+1, 3, 3) ConcatConv2d weight (channel 0 = t channel)
    into (Cout, 9*Cin) x-channel taps and a (Cout, H*W) t-channel map."""
    Cout = conv_w.shape[0]
    Cin = conv_w.shape[1] - 1
    HW = H * W
    # x-channel taps, packed so column index = (kh*3 + kw)*Cin + ci
    wp = jnp.transpose(conv_w[:, 1:], (0, 2, 3, 1)).reshape(Cout, 9 * Cin)
    # t channel is `t` inside the image and 0 in the conv zero-padding, so its
    # contribution at pixel p is t * sum_{valid taps k} wt[k]  (t-independent map).
    hh = jnp.arange(HW, dtype=jnp.int32) // W
    ww = jnp.arange(HW, dtype=jnp.int32) % W
    valid = []
    for k in range(9):
        dh, dw = k // 3 - 1, k % 3 - 1
        v = ((hh + dh >= 0) & (hh + dh < H) & (ww + dw >= 0) & (ww + dw < W))
        valid.append(v)
    valid = jnp.stack(valid).astype(jnp.float32)          # (9, HW)
    wt = conv_w[:, 0].reshape(Cout, 9)                    # (Cout, 9)
    tc = jnp.dot(wt, valid)                               # (Cout, HW)
    return wp, tc


def ode_block_forward(x_nchw, params, num_steps=NUM_STEPS):
    """ODEBlock.forward: integrate odefunc from t=0 to t=1, return y(1).

    x_nchw: (B, C, H, W) float32, PyTorch layout.  Returns same shape/layout.
    """
    (gn1_w, gn1_b, conv1_w, conv1_b,
     gn2_w, gn2_b, conv2_w, conv2_b,
     gn3_w, gn3_b) = params
    B, C, H, W = x_nchw.shape
    HW = H * W

    wp1, tc1 = _pack_concat_conv(conv1_w, H, W)
    wp2, tc2 = _pack_concat_conv(conv2_w, H, W)
    cols = jnp.stack([gn1_w, gn1_b, gn2_w, gn2_b, gn3_w, gn3_b,
                      conv1_b, conv2_b], axis=1).astype(jnp.float32)  # (C, 8)

    x = x_nchw.reshape(B, C, HW).astype(jnp.float32)      # free reshape, NCHW kept

    kernel = functools.partial(odeblock_kernel, spatial_w=W,
                               num_steps=num_steps)
    y = pl.pallas_call(
        kernel,
        out_shape=jax.ShapeDtypeStruct((B, C, HW), jnp.float32),
        grid=(B,),
        in_specs=[
            pl.BlockSpec((1, C, HW), lambda b: (b, 0, 0)),   # state y(0)
            pl.BlockSpec((C, 9 * C), lambda b: (0, 0)),      # conv1 x-taps
            pl.BlockSpec((C, 9 * C), lambda b: (0, 0)),      # conv2 x-taps
            pl.BlockSpec((C, HW), lambda b: (0, 0)),         # conv1 t-map
            pl.BlockSpec((C, HW), lambda b: (0, 0)),         # conv2 t-map
            pl.BlockSpec((C, 8), lambda b: (0, 0)),          # GN affine + conv biases
        ],
        out_specs=pl.BlockSpec((1, C, HW), lambda b: (b, 0, 0)),
        compiler_params=pltpu.CompilerParams(
            dimension_semantics=("parallel",)),   # v7x: one batch elem per TC
    )(x, wp1, wp2, tc1, tc2, cols)
    return y.reshape(B, C, H, W)


# --------------------------- pure-JAX reference ------------------------------

def ref_odefunc(t, x, params):
    (gn1_w, gn1_b, conv1_w, conv1_b,
     gn2_w, gn2_b, conv2_w, conv2_b,
     gn3_w, gn3_b) = params

    def gn(h, w, b):
        mean = jnp.mean(h, axis=(2, 3), keepdims=True)
        var = jnp.mean(jnp.square(h - mean), axis=(2, 3), keepdims=True)
        return ((h - mean) * lax.rsqrt(var + EPS) * w.reshape(1, -1, 1, 1)
                + b.reshape(1, -1, 1, 1))

    def cconv(h, w, b):
        Bn, _, Hh, Ww = h.shape
        tt = jnp.full((Bn, 1, Hh, Ww), t, h.dtype)
        hin = jnp.concatenate([tt, h], axis=1)
        out = lax.conv_general_dilated(
            hin, w, window_strides=(1, 1), padding='SAME',
            dimension_numbers=('NCHW', 'OIHW', 'NCHW'),
            precision=lax.Precision.HIGHEST)
        return out + b.reshape(1, -1, 1, 1)

    h = gn(x, gn1_w, gn1_b)
    h = jnp.maximum(h, 0.0)
    h = cconv(h, conv1_w, conv1_b)
    h = gn(h, gn2_w, gn2_b)
    h = jnp.maximum(h, 0.0)
    h = cconv(h, conv2_w, conv2_b)
    return gn(h, gn3_w, gn3_b)


def ref_ode_block_forward(x, params, num_steps=NUM_STEPS):
    dt = 1.0 / num_steps
    y = x.astype(jnp.float32)
    for i in range(num_steps):
        t = dt * i
        k1 = ref_odefunc(t, y, params)
        k2 = ref_odefunc(t + 0.5 * dt, y + 0.5 * dt * k1, params)
        k3 = ref_odefunc(t + 0.5 * dt, y + 0.5 * dt * k2, params)
        k4 = ref_odefunc(t + dt, y + dt * k3, params)
        y = y + (dt / 6.0) * (k1 + 2.0 * k2 + 2.0 * k3 + k4)
    return y


# ------------------------------ parameters ----------------------------------

def init_params(key, dim):
    """Deterministic synthetic parameters for the ODE func (dim -> dim)."""
    ks = jax.random.split(key, 10)
    s = float(1.0 / (9.0 * (dim + 1)) ** 0.5)   # ~kaiming-uniform bound
    conv1_w = jax.random.uniform(ks[0], (dim, dim + 1, 3, 3), jnp.float32, -s, s)
    conv1_b = jax.random.uniform(ks[1], (dim,), jnp.float32, -s, s)
    conv2_w = jax.random.uniform(ks[2], (dim, dim + 1, 3, 3), jnp.float32, -s, s)
    conv2_b = jax.random.uniform(ks[3], (dim,), jnp.float32, -s, s)
    gn1_w = jax.random.uniform(ks[4], (dim,), jnp.float32, 0.5, 1.5)
    gn1_b = jax.random.uniform(ks[5], (dim,), jnp.float32, -0.5, 0.5)
    gn2_w = jax.random.uniform(ks[6], (dim,), jnp.float32, 0.5, 1.5)
    gn2_b = jax.random.uniform(ks[7], (dim,), jnp.float32, -0.5, 0.5)
    gn3_w = jax.random.uniform(ks[8], (dim,), jnp.float32, 0.5, 1.5)
    gn3_b = jax.random.uniform(ks[9], (dim,), jnp.float32, -0.5, 0.5)
    return (gn1_w, gn1_b, conv1_w, conv1_b,
            gn2_w, gn2_b, conv2_w, conv2_b,
            gn3_w, gn3_b)


# ---------------------------------- main -------------------------------------

if __name__ == "__main__":
    key = jax.random.PRNGKey(0)
    kx, kp = jax.random.split(key)

    B, C, H, W = 2, 4, 16, 16                    # NCHW, PyTorch convention
    x = jax.random.normal(kx, (B, C, H, W), jnp.float32)
    params = init_params(kp, C)

    fwd = jax.jit(ode_block_forward)
    out = jax.block_until_ready(fwd(x, params))

    want = ref_ode_block_forward(x, params)
    err = float(jnp.max(jnp.abs(out - want)))
    assert out.shape == (B, C, H, W)
    assert bool(jnp.all(jnp.isfinite(out)))
    assert err < 1e-3, err

    print("KERNEL_OK")
</pallas_src>

<mosaic_0001>
module attributes {stable_mosaic.version = 11 : i64} {
  func.func @odeblock_kernel(%arg0: i32, %arg1: memref<1x4x256xf32, #tpu.memory_space<vmem>>, %arg2: memref<4x36xf32, #tpu.memory_space<vmem>>, %arg3: memref<4x36xf32, #tpu.memory_space<vmem>>, %arg4: memref<4x256xf32, #tpu.memory_space<vmem>>, %arg5: memref<4x256xf32, #tpu.memory_space<vmem>>, %arg6: memref<4x8xf32, #tpu.memory_space<vmem>>, %arg7: memref<1x4x256xf32, #tpu.memory_space<vmem>>) attributes {dimension_semantics = [#tpu.dimension_semantics<parallel>], iteration_bounds = array<i64: 2>, scalar_prefetch = 0 : i64, scratch_operands = 0 : i64, tpu.core_type = #tpu.core_type<tc>, window_params = [{transform_indices = @transform_0, window_bounds = array<i64: 1, 4, 256>}, {pipeline_mode = #tpu.pipeline_mode<synchronous>, transform_indices = @transform_1, window_bounds = array<i64: 4, 36>}, {pipeline_mode = #tpu.pipeline_mode<synchronous>, transform_indices = @transform_2, window_bounds = array<i64: 4, 36>}, {pipeline_mode = #tpu.pipeline_mode<synchronous>, transform_indices = @transform_3, window_bounds = array<i64: 4, 256>}, {pipeline_mode = #tpu.pipeline_mode<synchronous>, transform_indices = @transform_4, window_bounds = array<i64: 4, 256>}, {pipeline_mode = #tpu.pipeline_mode<synchronous>, transform_indices = @transform_5, window_bounds = array<i64: 4, 8>}, {transform_indices = @transform_6, window_bounds = array<i64: 1, 4, 256>}]} {
    %c0 = arith.constant 0 : index
    %c0_0 = arith.constant 0 : index
    %0 = vector.load %arg2[%c0, %c0_0] : memref<4x36xf32, #tpu.memory_space<vmem>>, vector<4x36xf32>
    %c0_1 = arith.constant 0 : index
    %c0_2 = arith.constant 0 : index
    %1 = vector.load %arg3[%c0_1, %c0_2] : memref<4x36xf32, #tpu.memory_space<vmem>>, vector<4x36xf32>
    %c0_3 = arith.constant 0 : index
    %c0_4 = arith.constant 0 : index
    %2 = vector.load %arg4[%c0_3, %c0_4] : memref<4x256xf32, #tpu.memory_space<vmem>>, vector<4x256xf32>
    %c0_5 = arith.constant 0 : index
    %c0_6 = arith.constant 0 : index
    %3 = vector.load %arg5[%c0_5, %c0_6] : memref<4x256xf32, #tpu.memory_space<vmem>>, vector<4x256xf32>
    %c0_7 = arith.constant 0 : index
    %c0_8 = arith.constant 0 : index
    %4 = vector.load %arg6[%c0_7, %c0_8] : memref<4x8xf32, #tpu.memory_space<vmem>>, vector<4x8xf32>
    %5 = vector.extract_strided_slice %4 {offsets = [0, 0], sizes = [4, 1], strides = [1, 1]} : vector<4x8xf32> to vector<4x1xf32>
    %6 = vector.extract_strided_slice %4 {offsets = [0, 1], sizes = [4, 1], strides = [1, 1]} : vector<4x8xf32> to vector<4x1xf32>
    %7 = vector.extract_strided_slice %4 {offsets = [0, 2], sizes = [4, 1], strides = [1, 1]} : vector<4x8xf32> to vector<4x1xf32>
    %8 = vector.extract_strided_slice %4 {offsets = [0, 3], sizes = [4, 1], strides = [1, 1]} : vector<4x8xf32> to vector<4x1xf32>
    %9 = vector.extract_strided_slice %4 {offsets = [0, 4], sizes = [4, 1], strides = [1, 1]} : vector<4x8xf32> to vector<4x1xf32>
    %10 = vector.extract_strided_slice %4 {offsets = [0, 5], sizes = [4, 1], strides = [1, 1]} : vector<4x8xf32> to vector<4x1xf32>
    %11 = vector.extract_strided_slice %4 {offsets = [0, 6], sizes = [4, 1], strides = [1, 1]} : vector<4x8xf32> to vector<4x1xf32>
    %12 = vector.extract_strided_slice %4 {offsets = [0, 7], sizes = [4, 1], strides = [1, 1]} : vector<4x8xf32> to vector<4x1xf32>
    %13 = vector.extract_strided_slice %0 {offsets = [0, 0], sizes = [4, 4], strides = [1, 1]} : vector<4x36xf32> to vector<4x4xf32>
    %14 = vector.extract_strided_slice %0 {offsets = [0, 4], sizes = [4, 4], strides = [1, 1]} : vector<4x36xf32> to vector<4x4xf32>
    %15 = vector.extract_strided_slice %0 {offsets = [0, 8], sizes = [4, 4], strides = [1, 1]} : vector<4x36xf32> to vector<4x4xf32>
    %16 = vector.extract_strided_slice %0 {offsets = [0, 12], sizes = [4, 4], strides = [1, 1]} : vector<4x36xf32> to vector<4x4xf32>
    %17 = vector.extract_strided_slice %0 {offsets = [0, 16], sizes = [4, 4], strides = [1, 1]} : vector<4x36xf32> to vector<4x4xf32>
    %18 = vector.extract_strided_slice %0 {offsets = [0, 20], sizes = [4, 4], strides = [1, 1]} : vector<4x36xf32> to vector<4x4xf32>
    %19 = vector.extract_strided_slice %0 {offsets = [0, 24], sizes = [4, 4], strides = [1, 1]} : vector<4x36xf32> to vector<4x4xf32>
    %20 = vector.extract_strided_slice %0 {offsets = [0, 28], sizes = [4, 4], strides = [1, 1]} : vector<4x36xf32> to vector<4x4xf32>
    %21 = vector.extract_strided_slice %0 {offsets = [0, 32], sizes = [4, 4], strides = [1, 1]} : vector<4x36xf32> to vector<4x4xf32>
    %22 = vector.extract_strided_slice %1 {offsets = [0, 0], sizes = [4, 4], strides = [1, 1]} : vector<4x36xf32> to vector<4x4xf32>
    %23 = vector.extract_strided_slice %1 {offsets = [0, 4], sizes = [4, 4], strides = [1, 1]} : vector<4x36xf32> to vector<4x4xf32>
    %24 = vector.extract_strided_slice %1 {offsets = [0, 8], sizes = [4, 4], strides = [1, 1]} : vector<4x36xf32> to vector<4x4xf32>
    %25 = vector.extract_strided_slice %1 {offsets = [0, 12], sizes = [4, 4], strides = [1, 1]} : vector<4x36xf32> to vector<4x4xf32>
    %26 = vector.extract_strided_slice %1 {offsets = [0, 16], sizes = [4, 4], strides = [1, 1]} : vector<4x36xf32> to vector<4x4xf32>
    %27 = vector.extract_strided_slice %1 {offsets = [0, 20], sizes = [4, 4], strides = [1, 1]} : vector<4x36xf32> to vector<4x4xf32>
    %28 = vector.extract_strided_slice %1 {offsets = [0, 24], sizes = [4, 4], strides = [1, 1]} : vector<4x36xf32> to vector<4x4xf32>
    %29 = vector.extract_strided_slice %1 {offsets = [0, 28], sizes = [4, 4], strides = [1, 1]} : vector<4x36xf32> to vector<4x4xf32>
    %30 = vector.extract_strided_slice %1 {offsets = [0, 32], sizes = [4, 4], strides = [1, 1]} : vector<4x36xf32> to vector<4x4xf32>
    %31 = tpu.iota {dimensions = array<i32: 1>} : vector<1x256xi32>
    %c16_i32 = arith.constant 16 : i32
    %c0_i32 = arith.constant 0 : i32
    %32 = arith.cmpi eq, %c16_i32, %c0_i32 : i32
    %c1_i32 = arith.constant 1 : i32
    %33 = arith.select %32, %c1_i32, %c16_i32 : i32
    %34 = vector.broadcast %33 : i32 to vector<1x256xi32>
    %35 = arith.remsi %31, %34 : vector<1x256xi32>
    %c0_i32_9 = arith.constant 0 : i32
    %36 = vector.broadcast %c0_i32_9 : i32 to vector<1x256xi32>
    %37 = arith.cmpi ne, %35, %36 : vector<1x256xi32>
    %c0_i32_10 = arith.constant 0 : i32
    %38 = vector.broadcast %c0_i32_10 : i32 to vector<1x256xi32>
    %39 = arith.cmpi slt, %35, %38 : vector<1x256xi32>
    %c0_i32_11 = arith.constant 0 : i32
    %40 = arith.cmpi slt, %33, %c0_i32_11 : i32
    %41 = vector.broadcast %40 : i1 to vector<1x256xi1>
    %42 = vector.broadcast %41 : vector<1x256xi1> to vector<1x256xi1>
    %43 = arith.xori %39, %42 : vector<1x256xi1>
    %44 = arith.andi %43, %37 : vector<1x256xi1>
    %45 = vector.broadcast %33 : i32 to vector<1x256xi32>
    %46 = arith.addi %35, %45 : vector<1x256xi32>
    %47 = arith.select %44, %46, %35 : vector<1x256xi1>, vector<1x256xi32>
    %c1_i32_12 = arith.constant 1 : i32
    %48 = vector.broadcast %c1_i32_12 : i32 to vector<1x256xi32>
    %49 = arith.cmpi sge, %47, %48 : vector<1x256xi32>
    %50 = arith.extui %49 : vector<1x256xi1> to vector<1x256xi32>
    %51 = arith.sitofp %50 : vector<1x256xi32> to vector<1x256xf32>
    %c15_i32 = arith.constant 15 : i32
    %52 = vector.broadcast %c15_i32 : i32 to vector<1x256xi32>
    %53 = arith.cmpi slt, %47, %52 : vector<1x256xi32>
    %54 = arith.extui %53 : vector<1x256xi1> to vector<1x256xi32>
    %55 = arith.sitofp %54 : vector<1x256xi32> to vector<1x256xf32>
    %c0_13 = arith.constant 0 : index
    %c0_14 = arith.constant 0 : index
    %c0_15 = arith.constant 0 : index
    %56 = vector.load %arg1[%c0_13, %c0_14, %c0_15] : memref<1x4x256xf32, #tpu.memory_space<vmem>>, vector<1x4x256xf32>
    %57 = vector.shape_cast %56 : vector<1x4x256xf32> to vector<4x256xf32>
    %c0_i32_16 = arith.constant 0 : i32
    %c8_i32 = arith.constant 8 : i32
    %58 = arith.addi %c0_i32_16, %c8_i32 : i32
    %c1_i32_17 = arith.constant 1 : i32
    %59 = scf.for %arg8 = %c0_i32_16 to %58 step %c1_i32_17 iter_args(%arg9 = %57) -> (vector<4x256xf32>)  : i32 {
      %63 = arith.sitofp %arg8 : i32 to f32
      %cst = arith.constant 1.250000e-01 : f32
      %64 = arith.mulf %63, %cst : f32
      %cst_22 = arith.constant dense<0.000000e+00> : vector<4xf32>
      %65 = vector.multi_reduction <add>, %arg9, %cst_22 [1] : vector<4x256xf32> to vector<4xf32>
      %66 = vector.shape_cast %65 : vector<4xf32> to vector<4x1xf32>
      %cst_23 = arith.constant 2.560000e+02 : f32
      %67 = vector.broadcast %cst_23 : f32 to vector<4x1xf32>
      %68 = arith.divf %66, %67 : vector<4x1xf32>
      %69 = vector.broadcast %68 : vector<4x1xf32> to vector<4x256xf32>
      %70 = arith.subf %arg9, %69 : vector<4x256xf32>
      %71 = arith.mulf %70, %70 : vector<4x256xf32>
      %cst_24 = arith.constant dense<0.000000e+00> : vector<4xf32>
      %72 = vector.multi_reduction <add>, %71, %cst_24 [1] : vector<4x256xf32> to vector<4xf32>
      %73 = vector.shape_cast %72 : vector<4xf32> to vector<4x1xf32>
      %cst_25 = arith.constant 2.560000e+02 : f32
      %74 = vector.broadcast %cst_25 : f32 to vector<4x1xf32>
      %75 = arith.divf %73, %74 : vector<4x1xf32>
      %76 = vector.broadcast %68 : vector<4x1xf32> to vector<4x256xf32>
      %77 = arith.subf %arg9, %76 : vector<4x256xf32>
      %cst_26 = arith.constant 9.99999974E-6 : f32
      %78 = vector.broadcast %cst_26 : f32 to vector<4x1xf32>
      %79 = arith.addf %75, %78 : vector<4x1xf32>
      %80 = math.rsqrt %79 : vector<4x1xf32>
      %81 = vector.broadcast %80 : vector<4x1xf32> to vector<4x256xf32>
      %82 = arith.mulf %77, %81 : vector<4x256xf32>
      %83 = vector.broadcast %5 : vector<4x1xf32> to vector<4x256xf32>
      %84 = arith.mulf %82, %83 : vector<4x256xf32>
      %85 = vector.broadcast %6 : vector<4x1xf32> to vector<4x256xf32>
      %86 = arith.addf %84, %85 : vector<4x256xf32>
      %cst_27 = arith.constant 0.000000e+00 : f32
      %87 = vector.broadcast %cst_27 : f32 to vector<4x256xf32>
      %88 = arith.maximumf %86, %87 : vector<4x256xf32>
      %89 = vector.broadcast %64 : f32 to vector<4x256xf32>
      %90 = arith.mulf %89, %2 : vector<4x256xf32>
      %91 = vector.broadcast %11 : vector<4x1xf32> to vector<4x256xf32>
      %92 = arith.addf %90, %91 : vector<4x256xf32>
      %cst_28 = arith.constant 0.000000e+00 : f32
      %93 = vector.broadcast %cst_28 : f32 to vector<4x17xf32>
      %94 = vector.extract_strided_slice %88 {offsets = [0, 0], sizes = [4, 239], strides = [1, 1]} : vector<4x256xf32> to vector<4x239xf32>
      %95 = tpu.concatenate %93, %94 in 1 : vector<4x17xf32>, vector<4x239xf32> -> vector<4x256xf32>
      %96 = vector.broadcast %51 : vector<1x256xf32> to vector<4x256xf32>
      %97 = arith.mulf %95, %96 : vector<4x256xf32>
      %cst_29 = arith.constant dense<0.000000e+00> : vector<4x256xf32>
      %98 = tpu.matmul %13, %97, %cst_29 {dimension_numbers = #tpu.dot_dimension_numbers<[1], [0], [0], [1], [0, 0, 1, 1], [], []>, precision = #tpu.contract_precision<fp32>} : vector<4x4xf32>, vector<4x256xf32>, vector<4x256xf32> -> vector<4x256xf32>
      %99 = arith.addf %92, %98 : vector<4x256xf32>
      %cst_30 = arith.constant 0.000000e+00 : f32
      %100 = vector.broadcast %cst_30 : f32 to vector<4x16xf32>
      %101 = vector.extract_strided_slice %88 {offsets = [0, 0], sizes = [4, 240], strides = [1, 1]} : vector<4x256xf32> to vector<4x240xf32>
      %102 = tpu.concatenate %100, %101 in 1 : vector<4x16xf32>, vector<4x240xf32> -> vector<4x256xf32>
      %cst_31 = arith.constant dense<0.000000e+00> : vector<4x256xf32>
      %103 = tpu.matmul %14, %102, %cst_31 {dimension_numbers = #tpu.dot_dimension_numbers<[1], [0], [0], [1], [0, 0, 1, 1], [], []>, precision = #tpu.contract_precision<fp32>} : vector<4x4xf32>, vector<4x256xf32>, vector<4x256xf32> -> vector<4x256xf32>
      %104 = arith.addf %99, %103 : vector<4x256xf32>
      %cst_32 = arith.constant 0.000000e+00 : f32
      %105 = vector.broadcast %cst_32 : f32 to vector<4x15xf32>
      %106 = vector.extract_strided_slice %88 {offsets = [0, 0], sizes = [4, 241], strides = [1, 1]} : vector<4x256xf32> to vector<4x241xf32>
      %107 = tpu.concatenate %105, %106 in 1 : vector<4x15xf32>, vector<4x241xf32> -> vector<4x256xf32>
      %108 = vector.broadcast %55 : vector<1x256xf32> to vector<4x256xf32>
      %109 = arith.mulf %107, %108 : vector<4x256xf32>
      %cst_33 = arith.constant dense<0.000000e+00> : vector<4x256xf32>
      %110 = tpu.matmul %15, %109, %cst_33 {dimension_numbers = #tpu.dot_dimension_numbers<[1], [0], [0], [1], [0, 0, 1, 1], [], []>, precision = #tpu.contract_precision<fp32>} : vector<4x4xf32>, vector<4x256xf32>, vector<4x256xf32> -> vector<4x256xf32>
      %111 = arith.addf %104, %110 : vector<4x256xf32>
      %cst_34 = arith.constant 0.000000e+00 : f32
      %112 = vector.broadcast %cst_34 : f32 to vector<4x1xf32>
      %113 = vector.extract_strided_slice %88 {offsets = [0, 0], sizes = [4, 255], strides = [1, 1]} : vector<4x256xf32> to vector<4x255xf32>
      %114 = tpu.concatenate %112, %113 in 1 : vector<4x1xf32>, vector<4x255xf32> -> vector<4x256xf32>
      %115 = vector.broadcast %51 : vector<1x256xf32> to vector<4x256xf32>
      %116 = arith.mulf %114, %115 : vector<4x256xf32>
      %cst_35 = arith.constant dense<0.000000e+00> : vector<4x256xf32>
      %117 = tpu.matmul %16, %116, %cst_35 {dimension_numbers = #tpu.dot_dimension_numbers<[1], [0], [0], [1], [0, 0, 1, 1], [], []>, precision = #tpu.contract_precision<fp32>} : vector<4x4xf32>, vector<4x256xf32>, vector<4x256xf32> -> vector<4x256xf32>
      %118 = arith.addf %111, %117 : vector<4x256xf32>
      %cst_36 = arith.constant dense<0.000000e+00> : vector<4x256xf32>
      %119 = tpu.matmul %17, %88, %cst_36 {dimension_numbers = #tpu.dot_dimension_numbers<[1], [0], [0], [1], [0, 0, 1, 1], [], []>, precision = #tpu.contract_precision<fp32>} : vector<4x4xf32>, vector<4x256xf32>, vector<4x256xf32> -> vector<4x256xf32>
      %120 = arith.addf %118, %119 : vector<4x256xf32>
      %cst_37 = arith.constant 0.000000e+00 : f32
      %121 = vector.broadcast %cst_37 : f32 to vector<4x1xf32>
      %122 = vector.extract_strided_slice %88 {offsets = [0, 1], sizes = [4, 255], strides = [1, 1]} : vector<4x256xf32> to vector<4x255xf32>
      %123 = tpu.concatenate %122, %121 in 1 : vector<4x255xf32>, vector<4x1xf32> -> vector<4x256xf32>
      %124 = vector.broadcast %55 : vector<1x256xf32> to vector<4x256xf32>
      %125 = arith.mulf %123, %124 : vector<4x256xf32>
      %cst_38 = arith.constant dense<0.000000e+00> : vector<4x256xf32>
      %126 = tpu.matmul %18, %125, %cst_38 {dimension_numbers = #tpu.dot_dimension_numbers<[1], [0], [0], [1], [0, 0, 1, 1], [], []>, precision = #tpu.contract_precision<fp32>} : vector<4x4xf32>, vector<4x256xf32>, vector<4x256xf32> -> vector<4x256xf32>
      %127 = arith.addf %120, %126 : vector<4x256xf32>
      %cst_39 = arith.constant 0.000000e+00 : f32
      %128 = vector.broadcast %cst_39 : f32 to vector<4x15xf32>
      %129 = vector.extract_strided_slice %88 {offsets = [0, 15], sizes = [4, 241], strides = [1, 1]} : vector<4x256xf32> to vector<4x241xf32>
      %130 = tpu.concatenate %129, %128 in 1 : vector<4x241xf32>, vector<4x15xf32> -> vector<4x256xf32>
      %131 = vector.broadcast %51 : vector<1x256xf32> to vector<4x256xf32>
      %132 = arith.mulf %130, %131 : vector<4x256xf32>
      %cst_40 = arith.constant dense<0.000000e+00> : vector<4x256xf32>
      %133 = tpu.matmul %19, %132, %cst_40 {dimension_numbers = #tpu.dot_dimension_numbers<[1], [0], [0], [1], [0, 0, 1, 1], [], []>, precision = #tpu.contract_precision<fp32>} : vector<4x4xf32>, vector<4x256xf32>, vector<4x256xf32> -> vector<4x256xf32>
      %134 = arith.addf %127, %133 : vector<4x256xf32>
      %cst_41 = arith.constant 0.000000e+00 : f32
      %135 = vector.broadcast %cst_41 : f32 to vector<4x16xf32>
      %136 = vector.extract_strided_slice %88 {offsets = [0, 16], sizes = [4, 240], strides = [1, 1]} : vector<4x256xf32> to vector<4x240xf32>
      %137 = tpu.concatenate %136, %135 in 1 : vector<4x240xf32>, vector<4x16xf32> -> vector<4x256xf32>
      %cst_42 = arith.constant dense<0.000000e+00> : vector<4x256xf32>
      %138 = tpu.matmul %20, %137, %cst_42 {dimension_numbers = #tpu.dot_dimension_numbers<[1], [0], [0], [1], [0, 0, 1, 1], [], []>, precision = #tpu.contract_precision<fp32>} : vector<4x4xf32>, vector<4x256xf32>, vector<4x256xf32> -> vector<4x256xf32>
      %139 = arith.addf %134, %138 : vector<4x256xf32>
      %cst_43 = arith.constant 0.000000e+00 : f32
      %140 = vector.broadcast %cst_43 : f32 to vector<4x17xf32>
      %141 = vector.extract_strided_slice %88 {offsets = [0, 17], sizes = [4, 239], strides = [1, 1]} : vector<4x256xf32> to vector<4x239xf32>
      %142 = tpu.concatenate %141, %140 in 1 : vector<4x239xf32>, vector<4x17xf32> -> vector<4x256xf32>
      %143 = vector.broadcast %55 : vector<1x256xf32> to vector<4x256xf32>
      %144 = arith.mulf %142, %143 : vector<4x256xf32>
      %cst_44 = arith.constant dense<0.000000e+00> : vector<4x256xf32>
      %145 = tpu.matmul %21, %144, %cst_44 {dimension_numbers = #tpu.dot_dimension_numbers<[1], [0], [0], [1], [0, 0, 1, 1], [], []>, precision = #tpu.contract_precision<fp32>} : vector<4x4xf32>, vector<4x256xf32>, vector<4x256xf32> -> vector<4x256xf32>
      %146 = arith.addf %139, %145 : vector<4x256xf32>
      %cst_45 = arith.constant dense<0.000000e+00> : vector<4xf32>
      %147 = vector.multi_reduction <add>, %146, %cst_45 [1] : vector<4x256xf32> to vector<4xf32>
      %148 = vector.shape_cast %147 : vector<4xf32> to vector<4x1xf32>
      %cst_46 = arith.constant 2.560000e+02 : f32
      %149 = vector.broadcast %cst_46 : f32 to vector<4x1xf32>
      %150 = arith.divf %148, %149 : vector<4x1xf32>
      %151 = vector.broadcast %150 : vector<4x1xf32> to vector<4x256xf32>
      %152 = arith.subf %146, %151 : vector<4x256xf32>
      %153 = arith.mulf %152, %152 : vector<4x256xf32>
      %cst_47 = arith.constant dense<0.000000e+00> : vector<4xf32>
      %154 = vector.multi_reduction <add>, %153, %cst_47 [1] : vector<4x256xf32> to vector<4xf32>
      %155 = vector.shape_cast %154 : vector<4xf32> to vector<4x1xf32>
      %cst_48 = arith.constant 2.560000e+02 : f32
      %156 = vector.broadcast %cst_48 : f32 to vector<4x1xf32>
      %157 = arith.divf %155, %156 : vector<4x1xf32>
      %158 = vector.broadcast %150 : vector<4x1xf32> to vector<4x256xf32>
      %159 = arith.subf %146, %158 : vector<4x256xf32>
      %cst_49 = arith.constant 9.99999974E-6 : f32
      %160 = vector.broadcast %cst_49 : f32 to vector<4x1xf32>
      %161 = arith.addf %157, %160 : vector<4x1xf32>
      %162 = math.rsqrt %161 : vector<4x1xf32>
      %163 = vector.broadcast %162 : vector<4x1xf32> to vector<4x256xf32>
      %164 = arith.mulf %159, %163 : vector<4x256xf32>
      %165 = vector.broadcast %7 : vector<4x1xf32> to vector<4x256xf32>
      %166 = arith.mulf %164, %165 : vector<4x256xf32>
      %167 = vector.broadcast %8 : vector<4x1xf32> to vector<4x256xf32>
      %168 = arith.addf %166, %167 : vector<4x256xf32>
      %cst_50 = arith.constant 0.000000e+00 : f32
      %169 = vector.broadcast %cst_50 : f32 to vector<4x256xf32>
      %170 = arith.maximumf %168, %169 : vector<4x256xf32>
      %171 = vector.broadcast %64 : f32 to vector<4x256xf32>
      %172 = arith.mulf %171, %3 : vector<4x256xf32>
      %173 = vector.broadcast %12 : vector<4x1xf32> to vector<4x256xf32>
      %174 = arith.addf %172, %173 : vector<4x256xf32>
      %cst_51 = arith.constant 0.000000e+00 : f32
      %175 = vector.broadcast %cst_51 : f32 to vector<4x17xf32>
      %176 = vector.extract_strided_slice %170 {offsets = [0, 0], sizes = [4, 239], strides = [1, 1]} : vector<4x256xf32> to vector<4x239xf32>
      %177 = tpu.concatenate %175, %176 in 1 : vector<4x17xf32>, vector<4x239xf32> -> vector<4x256xf32>
      %178 = vector.broadcast %51 : vector<1x256xf32> to vector<4x256xf32>
      %179 = arith.mulf %177, %178 : vector<4x256xf32>
      %cst_52 = arith.constant dense<0.000000e+00> : vector<4x256xf32>
      %180 = tpu.matmul %22, %179, %cst_52 {dimension_numbers = #tpu.dot_dimension_numbers<[1], [0], [0], [1], [0, 0, 1, 1], [], []>, precision = #tpu.contract_precision<fp32>} : vector<4x4xf32>, vector<4x256xf32>, vector<4x256xf32> -> vector<4x256xf32>
      %181 = arith.addf %174, %180 : vector<4x256xf32>
      %cst_53 = arith.constant 0.000000e+00 : f32
      %182 = vector.broadcast %cst_53 : f32 to vector<4x16xf32>
      %183 = vector.extract_strided_slice %170 {offsets = [0, 0], sizes = [4, 240], strides = [1, 1]} : vector<4x256xf32> to vector<4x240xf32>
      %184 = tpu.concatenate %182, %183 in 1 : vector<4x16xf32>, vector<4x240xf32> -> vector<4x256xf32>
      %cst_54 = arith.constant dense<0.000000e+00> : vector<4x256xf32>
      %185 = tpu.matmul %23, %184, %cst_54 {dimension_numbers = #tpu.dot_dimension_numbers<[1], [0], [0], [1], [0, 0, 1, 1], [], []>, precision = #tpu.contract_precision<fp32>} : vector<4x4xf32>, vector<4x256xf32>, vector<4x256xf32> -> vector<4x256xf32>
      %186 = arith.addf %181, %185 : vector<4x256xf32>
      %cst_55 = arith.constant 0.000000e+00 : f32
      %187 = vector.broadcast %cst_55 : f32 to vector<4x15xf32>
      %188 = vector.extract_strided_slice %170 {offsets = [0, 0], sizes = [4, 241], strides = [1, 1]} : vector<4x256xf32> to vector<4x241xf32>
      %189 = tpu.concatenate %187, %188 in 1 : vector<4x15xf32>, vector<4x241xf32> -> vector<4x256xf32>
      %190 = vector.broadcast %55 : vector<1x256xf32> to vector<4x256xf32>
      %191 = arith.mulf %189, %190 : vector<4x256xf32>
      %cst_56 = arith.constant dense<0.000000e+00> : vector<4x256xf32>
      %192 = tpu.matmul %24, %191, %cst_56 {dimension_numbers = #tpu.dot_dimension_numbers<[1], [0], [0], [1], [0, 0, 1, 1], [], []>, precision = #tpu.contract_precision<fp32>} : vector<4x4xf32>, vector<4x256xf32>, vector<4x256xf32> -> vector<4x256xf32>
      %193 = arith.addf %186, %192 : vector<4x256xf32>
      %cst_57 = arith.constant 0.000000e+00 : f32
      %194 = vector.broadcast %cst_57 : f32 to vector<4x1xf32>
      %195 = vector.extract_strided_slice %170 {offsets = [0, 0], sizes = [4, 255], strides = [1, 1]} : vector<4x256xf32> to vector<4x255xf32>
      %196 = tpu.concatenate %194, %195 in 1 : vector<4x1xf32>, vector<4x255xf32> -> vector<4x256xf32>
      %197 = vector.broadcast %51 : vector<1x256xf32> to vector<4x256xf32>
      %198 = arith.mulf %196, %197 : vector<4x256xf32>
      %cst_58 = arith.constant dense<0.000000e+00> : vector<4x256xf32>
      %199 = tpu.matmul %25, %198, %cst_58 {dimension_numbers = #tpu.dot_dimension_numbers<[1], [0], [0], [1], [0, 0, 1, 1], [], []>, precision = #tpu.contract_precision<fp32>} : vector<4x4xf32>, vector<4x256xf32>, vector<4x256xf32> -> vector<4x256xf32>
      %200 = arith.addf %193, %199 : vector<4x256xf32>
      %cst_59 = arith.constant dense<0.000000e+00> : vector<4x256xf32>
      %201 = tpu.matmul %26, %170, %cst_59 {dimension_numbers = #tpu.dot_dimension_numbers<[1], [0], [0], [1], [0, 0, 1, 1], [], []>, precision = #tpu.contract_precision<fp32>} : vector<4x4xf32>, vector<4x256xf32>, vector<4x256xf32> -> vector<4x256xf32>
      %202 = arith.addf %200, %201 : vector<4x256xf32>
      %cst_60 = arith.constant 0.000000e+00 : f32
      %203 = vector.broadcast %cst_60 : f32 to vector<4x1xf32>
      %204 = vector.extract_strided_slice %170 {offsets = [0, 1], sizes = [4, 255], strides = [1, 1]} : vector<4x256xf32> to vector<4x255xf32>
      %205 = tpu.concatenate %204, %203 in 1 : vector<4x255xf32>, vector<4x1xf32> -> vector<4x256xf32>
      %206 = vector.broadcast %55 : vector<1x256xf32> to vector<4x256xf32>
      %207 = arith.mulf %205, %206 : vector<4x256xf32>
      %cst_61 = arith.constant dense<0.000000e+00> : vector<4x256xf32>
      %208 = tpu.matmul %27, %207, %cst_61 {dimension_numbers = #tpu.dot_dimension_numbers<[1], [0], [0], [1], [0, 0, 1, 1], [], []>, precision = #tpu.contract_precision<fp32>} : vector<4x4xf32>, vector<4x256xf32>, vector<4x256xf32> -> vector<4x256xf32>
      %209 = arith.addf %202, %208 : vector<4x256xf32>
      %cst_62 = arith.constant 0.000000e+00 : f32
      %210 = vector.broadcast %cst_62 : f32 to vector<4x15xf32>
      %211 = vector.extract_strided_slice %170 {offsets = [0, 15], sizes = [4, 241], strides = [1, 1]} : vector<4x256xf32> to vector<4x241xf32>
      %212 = tpu.concatenate %211, %210 in 1 : vector<4x241xf32>, vector<4x15xf32> -> vector<4x256xf32>
      %213 = vector.broadcast %51 : vector<1x256xf32> to vector<4x256xf32>
      %214 = arith.mulf %212, %213 : vector<4x256xf32>
      %cst_63 = arith.constant dense<0.000000e+00> : vector<4x256xf32>
      %215 = tpu.matmul %28, %214, %cst_63 {dimension_numbers = #tpu.dot_dimension_numbers<[1], [0], [0], [1], [0, 0, 1, 1], [], []>, precision = #tpu.contract_precision<fp32>} : vector<4x4xf32>, vector<4x256xf32>, vector<4x256xf32> -> vector<4x256xf32>
      %216 = arith.addf %209, %215 : vector<4x256xf32>
      %cst_64 = arith.constant 0.000000e+00 : f32
      %217 = vector.broadcast %cst_64 : f32 to vector<4x16xf32>
      %218 = vector.extract_strided_slice %170 {offsets = [0, 16], sizes = [4, 240], strides = [1, 1]} : vector<4x256xf32> to vector<4x240xf32>
      %219 = tpu.concatenate %218, %217 in 1 : vector<4x240xf32>, vector<4x16xf32> -> vector<4x256xf32>
      %cst_65 = arith.constant dense<0.000000e+00> : vector<4x256xf32>
      %220 = tpu.matmul %29, %219, %cst_65 {dimension_numbers = #tpu.dot_dimension_numbers<[1], [0], [0], [1], [0, 0, 1, 1], [], []>, precision = #tpu.contract_precision<fp32>} : vector<4x4xf32>, vector<4x256xf32>, vector<4x256xf32> -> vector<4x256xf32>
      %221 = arith.addf %216, %220 : vector<4x256xf32>
      %cst_66 = arith.constant 0.000000e+00 : f32
      %222 = vector.broadcast %cst_66 : f32 to vector<4x17xf32>
      %223 = vector.extract_strided_slice %170 {offsets = [0, 17], sizes = [4, 239], strides = [1, 1]} : vector<4x256xf32> to vector<4x239xf32>
      %224 = tpu.concatenate %223, %222 in 1 : vector<4x239xf32>, vector<4x17xf32> -> vector<4x256xf32>
      %225 = vector.broadcast %55 : vector<1x256xf32> to vector<4x256xf32>
      %226 = arith.mulf %224, %225 : vector<4x256xf32>
      %cst_67 = arith.constant dense<0.000000e+00> : vector<4x256xf32>
      %227 = tpu.matmul %30, %226, %cst_67 {dimension_numbers = #tpu.dot_dimension_numbers<[1], [0], [0], [1], [0, 0, 1, 1], [], []>, precision = #tpu.contract_precision<fp32>} : vector<4x4xf32>, vector<4x256xf32>, vector<4x256xf32> -> vector<4x256xf32>
      %228 = arith.addf %221, %227 : vector<4x256xf32>
      %cst_68 = arith.constant dense<0.000000e+00> : vector<4xf32>
      %229 = vector.multi_reduction <add>, %228, %cst_68 [1] : vector<4x256xf32> to vector<4xf32>
      %230 = vector.shape_cast %229 : vector<4xf32> to vector<4x1xf32>
      %cst_69 = arith.constant 2.560000e+02 : f32
      %231 = vector.broadcast %cst_69 : f32 to vector<4x1xf32>
      %232 = arith.divf %230, %231 : vector<4x1xf32>
      %233 = vector.broadcast %232 : vector<4x1xf32> to vector<4x256xf32>
      %234 = arith.subf %228, %233 : vector<4x256xf32>
      %235 = arith.mulf %234, %234 : vector<4x256xf32>
      %cst_70 = arith.constant dense<0.000000e+00> : vector<4xf32>
      %236 = vector.multi_reduction <add>, %235, %cst_70 [1] : vector<4x256xf32> to vector<4xf32>
      %237 = vector.shape_cast %236 : vector<4xf32> to vector<4x1xf32>
      %cst_71 = arith.constant 2.560000e+02 : f32
      %238 = vector.broadcast %cst_71 : f32 to vector<4x1xf32>
      %239 = arith.divf %237, %238 : vector<4x1xf32>
      %240 = vector.broadcast %232 : vector<4x1xf32> to vector<4x256xf32>
      %241 = arith.subf %228, %240 : vector<4x256xf32>
      %cst_72 = arith.constant 9.99999974E-6 : f32
      %242 = vector.broadcast %cst_72 : f32 to vector<4x1xf32>
      %243 = arith.addf %239, %242 : vector<4x1xf32>
      %244 = math.rsqrt %243 : vector<4x1xf32>
      %245 = vector.broadcast %244 : vector<4x1xf32> to vector<4x256xf32>
      %246 = arith.mulf %241, %245 : vector<4x256xf32>
      %247 = vector.broadcast %9 : vector<4x1xf32> to vector<4x256xf32>
      %248 = arith.mulf %246, %247 : vector<4x256xf32>
      %249 = vector.broadcast %10 : vector<4x1xf32> to vector<4x256xf32>
      %250 = arith.addf %248, %249 : vector<4x256xf32>
      %cst_73 = arith.constant 6.250000e-02 : f32
      %251 = arith.addf %64, %cst_73 : f32
      %cst_74 = arith.constant 6.250000e-02 : f32
      %252 = vector.broadcast %cst_74 : f32 to vector<4x256xf32>
      %253 = arith.mulf %252, %250 : vector<4x256xf32>
      %254 = arith.addf %arg9, %253 : vector<4x256xf32>
      %cst_75 = arith.constant dense<0.000000e+00> : vector<4xf32>
      %255 = vector.multi_reduction <add>, %254, %cst_75 [1] : vector<4x256xf32> to vector<4xf32>
      %256 = vector.shape_cast %255 : vector<4xf32> to vector<4x1xf32>
      %cst_76 = arith.constant 2.560000e+02 : f32
      %257 = vector.broadcast %cst_76 : f32 to vector<4x1xf32>
      %258 = arith.divf %256, %257 : vector<4x1xf32>
      %259 = vector.broadcast %258 : vector<4x1xf32> to vector<4x256xf32>
      %260 = arith.subf %254, %259 : vector<4x256xf32>
      %261 = arith.mulf %260, %260 : vector<4x256xf32>
      %cst_77 = arith.constant dense<0.000000e+00> : vector<4xf32>
      %262 = vector.multi_reduction <add>, %261, %cst_77 [1] : vector<4x256xf32> to vector<4xf32>
      %263 = vector.shape_cast %262 : vector<4xf32> to vector<4x1xf32>
      %cst_78 = arith.constant 2.560000e+02 : f32
      %264 = vector.broadcast %cst_78 : f32 to vector<4x1xf32>
      %265 = arith.divf %263, %264 : vector<4x1xf32>
      %266 = vector.broadcast %258 : vector<4x1xf32> to vector<4x256xf32>
      %267 = arith.subf %254, %266 : vector<4x256xf32>
      %cst_79 = arith.constant 9.99999974E-6 : f32
      %268 = vector.broadcast %cst_79 : f32 to vector<4x1xf32>
      %269 = arith.addf %265, %268 : vector<4x1xf32>
      %270 = math.rsqrt %269 : vector<4x1xf32>
      %271 = vector.broadcast %270 : vector<4x1xf32> to vector<4x256xf32>
      %272 = arith.mulf %267, %271 : vector<4x256xf32>
      %273 = vector.broadcast %5 : vector<4x1xf32> to vector<4x256xf32>
      %274 = arith.mulf %272, %273 : vector<4x256xf32>
      %275 = vector.broadcast %6 : vector<4x1xf32> to vector<4x256xf32>
      %276 = arith.addf %274, %275 : vector<4x256xf32>
      %cst_80 = arith.constant 0.000000e+00 : f32
      %277 = vector.broadcast %cst_80 : f32 to vector<4x256xf32>
      %278 = arith.maximumf %276, %277 : vector<4x256xf32>
      %279 = vector.broadcast %251 : f32 to vector<4x256xf32>
      %280 = arith.mulf %279, %2 : vector<4x256xf32>
      %281 = vector.broadcast %11 : vector<4x1xf32> to vector<4x256xf32>
      %282 = arith.addf %280, %281 : vector<4x256xf32>
      %cst_81 = arith.constant 0.000000e+00 : f32
      %283 = vector.broadcast %cst_81 : f32 to vector<4x17xf32>
      %284 = vector.extract_strided_slice %278 {offsets = [0, 0], sizes = [4, 239], strides = [1, 1]} : vector<4x256xf32> to vector<4x239xf32>
      %285 = tpu.concatenate %283, %284 in 1 : vector<4x17xf32>, vector<4x239xf32> -> vector<4x256xf32>
      %286 = vector.broadcast %51 : vector<1x256xf32> to vector<4x256xf32>
      %287 = arith.mulf %285, %286 : vector<4x256xf32>
      %cst_82 = arith.constant dense<0.000000e+00> : vector<4x256xf32>
      %288 = tpu.matmul %13, %287, %cst_82 {dimension_numbers = #tpu.dot_dimension_numbers<[1], [0], [0], [1], [0, 0, 1, 1], [], []>, precision = #tpu.contract_precision<fp32>} : vector<4x4xf32>, vector<4x256xf32>, vector<4x256xf32> -> vector<4x256xf32>
      %289 = arith.addf %282, %288 : vector<4x256xf32>
      %cst_83 = arith.constant 0.000000e+00 : f32
      %290 = vector.broadcast %cst_83 : f32 to vector<4x16xf32>
      %291 = vector.extract_strided_slice %278 {offsets = [0, 0], sizes = [4, 240], strides = [1, 1]} : vector<4x256xf32> to vector<4x240xf32>
      %292 = tpu.concatenate %290, %291 in 1 : vector<4x16xf32>, vector<4x240xf32> -> vector<4x256xf32>
      %cst_84 = arith.constant dense<0.000000e+00> : vector<4x256xf32>
      %293 = tpu.matmul %14, %292, %cst_84 {dimension_numbers = #tpu.dot_dimension_numbers<[1], [0], [0], [1], [0, 0, 1, 1], [], []>, precision = #tpu.contract_precision<fp32>} : vector<4x4xf32>, vector<4x256xf32>, vector<4x256xf32> -> vector<4x256xf32>
      %294 = arith.addf %289, %293 : vector<4x256xf32>
      %cst_85 = arith.constant 0.000000e+00 : f32
      %295 = vector.broadcast %cst_85 : f32 to vector<4x15xf32>
      %296 = vector.extract_strided_slice %278 {offsets = [0, 0], sizes = [4, 241], strides = [1, 1]} : vector<4x256xf32> to vector<4x241xf32>
      %297 = tpu.concatenate %295, %296 in 1 : vector<4x15xf32>, vector<4x241xf32> -> vector<4x256xf32>
      %298 = vector.broadcast %55 : vector<1x256xf32> to vector<4x256xf32>
      %299 = arith.mulf %297, %298 : vector<4x256xf32>
      %cst_86 = arith.constant dense<0.000000e+00> : vector<4x256xf32>
      %300 = tpu.matmul %15, %299, %cst_86 {dimension_numbers = #tpu.dot_dimension_numbers<[1], [0], [0], [1], [0, 0, 1, 1], [], []>, precision = #tpu.contract_precision<fp32>} : vector<4x4xf32>, vector<4x256xf32>, vector<4x256xf32> -> vector<4x256xf32>
      %301 = arith.addf %294, %300 : vector<4x256xf32>
      %cst_87 = arith.constant 0.000000e+00 : f32
      %302 = vector.broadcast %cst_87 : f32 to vector<4x1xf32>
      %303 = vector.extract_strided_slice %278 {offsets = [0, 0], sizes = [4, 255], strides = [1, 1]} : vector<4x256xf32> to vector<4x255xf32>
      %304 = tpu.concatenate %302, %303 in 1 : vector<4x1xf32>, vector<4x255xf32> -> vector<4x256xf32>
      %305 = vector.broadcast %51 : vector<1x256xf32> to vector<4x256xf32>
      %306 = arith.mulf %304, %305 : vector<4x256xf32>
      %cst_88 = arith.constant dense<0.000000e+00> : vector<4x256xf32>
      %307 = tpu.matmul %16, %306, %cst_88 {dimension_numbers = #tpu.dot_dimension_numbers<[1], [0], [0], [1], [0, 0, 1, 1], [], []>, precision = #tpu.contract_precision<fp32>} : vector<4x4xf32>, vector<4x256xf32>, vector<4x256xf32> -> vector<4x256xf32>
      %308 = arith.addf %301, %307 : vector<4x256xf32>
      %cst_89 = arith.constant dense<0.000000e+00> : vector<4x256xf32>
      %309 = tpu.matmul %17, %278, %cst_89 {dimension_numbers = #tpu.dot_dimension_numbers<[1], [0], [0], [1], [0, 0, 1, 1], [], []>, precision = #tpu.contract_precision<fp32>} : vector<4x4xf32>, vector<4x256xf32>, vector<4x256xf32> -> vector<4x256xf32>
      %310 = arith.addf %308, %309 : vector<4x256xf32>
      %cst_90 = arith.constant 0.000000e+00 : f32
      %311 = vector.broadcast %cst_90 : f32 to vector<4x1xf32>
      %312 = vector.extract_strided_slice %278 {offsets = [0, 1], sizes = [4, 255], strides = [1, 1]} : vector<4x256xf32> to vector<4x255xf32>
      %313 = tpu.concatenate %312, %311 in 1 : vector<4x255xf32>, vector<4x1xf32> -> vector<4x256xf32>
      %314 = vector.broadcast %55 : vector<1x256xf32> to vector<4x256xf32>
      %315 = arith.mulf %313, %314 : vector<4x256xf32>
      %cst_91 = arith.constant dense<0.000000e+00> : vector<4x256xf32>
      %316 = tpu.matmul %18, %315, %cst_91 {dimension_numbers = #tpu.dot_dimension_numbers<[1], [0], [0], [1], [0, 0, 1, 1], [], []>, precision = #tpu.contract_precision<fp32>} : vector<4x4xf32>, vector<4x256xf32>, vector<4x256xf32> -> vector<4x256xf32>
      %317 = arith.addf %310, %316 : vector<4x256xf32>
      %cst_92 = arith.constant 0.000000e+00 : f32
      %318 = vector.broadcast %cst_92 : f32 to vector<4x15xf32>
      %319 = vector.extract_strided_slice %278 {offsets = [0, 15], sizes = [4, 241], strides = [1, 1]} : vector<4x256xf32> to vector<4x241xf32>
      %320 = tpu.concatenate %319, %318 in 1 : vector<4x241xf32>, vector<4x15xf32> -> vector<4x256xf32>
      %321 = vector.broadcast %51 : vector<1x256xf32> to vector<4x256xf32>
      %322 = arith.mulf %320, %321 : vector<4x256xf32>
      %cst_93 = arith.constant dense<0.000000e+00> : vector<4x256xf32>
      %323 = tpu.matmul %19, %322, %cst_93 {dimension_numbers = #tpu.dot_dimension_numbers<[1], [0], [0], [1], [0, 0, 1, 1], [], []>, precision = #tpu.contract_precision<fp32>} : vector<4x4xf32>, vector<4x256xf32>, vector<4x256xf32> -> vector<4x256xf32>
      %324 = arith.addf %317, %323 : vector<4x256xf32>
      %cst_94 = arith.constant 0.000000e+00 : f32
      %325 = vector.broadcast %cst_94 : f32 to vector<4x16xf32>
      %326 = vector.extract_strided_slice %278 {offsets = [0, 16], sizes = [4, 240], strides = [1, 1]} : vector<4x256xf32> to vector<4x240xf32>
      %327 = tpu.concatenate %326, %325 in 1 : vector<4x240xf32>, vector<4x16xf32> -> vector<4x256xf32>
      %cst_95 = arith.constant dense<0.000000e+00> : vector<4x256xf32>
      %328 = tpu.matmul %20, %327, %cst_95 {dimension_numbers = #tpu.dot_dimension_numbers<[1], [0], [0], [1], [0, 0, 1, 1], [], []>, precision = #tpu.contract_precision<fp32>} : vector<4x4xf32>, vector<4x256xf32>, vector<4x256xf32> -> vector<4x256xf32>
      %329 = arith.addf %324, %328 : vector<4x256xf32>
      %cst_96 = arith.constant 0.000000e+00 : f32
      %330 = vector.broadcast %cst_96 : f32 to vector<4x17xf32>
      %331 = vector.extract_strided_slice %278 {offsets = [0, 17], sizes = [4, 239], strides = [1, 1]} : vector<4x256xf32> to vector<4x239xf32>
      %332 = tpu.concatenate %331, %330 in 1 : vector<4x239xf32>, vector<4x17xf32> -> vector<4x256xf32>
      %333 = vector.broadcast %55 : vector<1x256xf32> to vector<4x256xf32>
      %334 = arith.mulf %332, %333 : vector<4x256xf32>
      %cst_97 = arith.constant dense<0.000000e+00> : vector<4x256xf32>
      %335 = tpu.matmul %21, %334, %cst_97 {dimension_numbers = #tpu.dot_dimension_numbers<[1], [0], [0], [1], [0, 0, 1, 1], [], []>, precision = #tpu.contract_precision<fp32>} : vector<4x4xf32>, vector<4x256xf32>, vector<4x256xf32> -> vector<4x256xf32>
      %336 = arith.addf %329, %335 : vector<4x256xf32>
      %cst_98 = arith.constant dense<0.000000e+00> : vector<4xf32>
      %337 = vector.multi_reduction <add>, %336, %cst_98 [1] : vector<4x256xf32> to vector<4xf32>
      %338 = vector.shape_cast %337 : vector<4xf32> to vector<4x1xf32>
      %cst_99 = arith.constant 2.560000e+02 : f32
      %339 = vector.broadcast %cst_99 : f32 to vector<4x1xf32>
      %340 = arith.divf %338, %339 : vector<4x1xf32>
      %341 = vector.broadcast %340 : vector<4x1xf32> to vector<4x256xf32>
      %342 = arith.subf %336, %341 : vector<4x256xf32>
      %343 = arith.mulf %342, %342 : vector<4x256xf32>
      %cst_100 = arith.constant dense<0.000000e+00> : vector<4xf32>
      %344 = vector.multi_reduction <add>, %343, %cst_100 [1] : vector<4x256xf32> to vector<4xf32>
      %345 = vector.shape_cast %344 : vector<4xf32> to vector<4x1xf32>
      %cst_101 = arith.constant 2.560000e+02 : f32
      %346 = vector.broadcast %cst_101 : f32 to vector<4x1xf32>
      %347 = arith.divf %345, %346 : vector<4x1xf32>
      %348 = vector.broadcast %340 : vector<4x1xf32> to vector<4x256xf32>
      %349 = arith.subf %336, %348 : vector<4x256xf32>
      %cst_102 = arith.constant 9.99999974E-6 : f32
      %350 = vector.broadcast %cst_102 : f32 to vector<4x1xf32>
      %351 = arith.addf %347, %350 : vector<4x1xf32>
      %352 = math.rsqrt %351 : vector<4x1xf32>
      %353 = vector.broadcast %352 : vector<4x1xf32> to vector<4x256xf32>
      %354 = arith.mulf %349, %353 : vector<4x256xf32>
      %355 = vector.broadcast %7 : vector<4x1xf32> to vector<4x256xf32>
      %356 = arith.mulf %354, %355 : vector<4x256xf32>
      %357 = vector.broadcast %8 : vector<4x1xf32> to vector<4x256xf32>
      %358 = arith.addf %356, %357 : vector<4x256xf32>
      %cst_103 = arith.constant 0.000000e+00 : f32
      %359 = vector.broadcast %cst_103 : f32 to vector<4x256xf32>
      %360 = arith.maximumf %358, %359 : vector<4x256xf32>
      %361 = vector.broadcast %251 : f32 to vector<4x256xf32>
      %362 = arith.mulf %361, %3 : vector<4x256xf32>
      %363 = vector.broadcast %12 : vector<4x1xf32> to vector<4x256xf32>
      %364 = arith.addf %362, %363 : vector<4x256xf32>
      %cst_104 = arith.constant 0.000000e+00 : f32
      %365 = vector.broadcast %cst_104 : f32 to vector<4x17xf32>
      %366 = vector.extract_strided_slice %360 {offsets = [0, 0], sizes = [4, 239], strides = [1, 1]} : vector<4x256xf32> to vector<4x239xf32>
      %367 = tpu.concatenate %365, %366 in 1 : vector<4x17xf32>, vector<4x239xf32> -> vector<4x256xf32>
      %368 = vector.broadcast %51 : vector<1x256xf32> to vector<4x256xf32>
      %369 = arith.mulf %367, %368 : vector<4x256xf32>
      %cst_105 = arith.constant dense<0.000000e+00> : vector<4x256xf32>
      %370 = tpu.matmul %22, %369, %cst_105 {dimension_numbers = #tpu.dot_dimension_numbers<[1], [0], [0], [1], [0, 0, 1, 1], [], []>, precision = #tpu.contract_precision<fp32>} : vector<4x4xf32>, vector<4x256xf32>, vector<4x256xf32> -> vector<4x256xf32>
      %371 = arith.addf %364, %370 : vector<4x256xf32>
      %cst_106 = arith.constant 0.000000e+00 : f32
      %372 = vector.broadcast %cst_106 : f32 to vector<4x16xf32>
      %373 = vector.extract_strided_slice %360 {offsets = [0, 0], sizes = [4, 240], strides = [1, 1]} : vector<4x256xf32> to vector<4x240xf32>
      %374 = tpu.concatenate %372, %373 in 1 : vector<4x16xf32>, vector<4x240xf32> -> vector<4x256xf32>
      %cst_107 = arith.constant dense<0.000000e+00> : vector<4x256xf32>
      %375 = tpu.matmul %23, %374, %cst_107 {dimension_numbers = #tpu.dot_dimension_numbers<[1], [0], [0], [1], [0, 0, 1, 1], [], []>, precision = #tpu.contract_precision<fp32>} : vector<4x4xf32>, vector<4x256xf32>, vector<4x256xf32> -> vector<4x256xf32>
      %376 = arith.addf %371, %375 : vector<4x256xf32>
      %cst_108 = arith.constant 0.000000e+00 : f32
      %377 = vector.broadcast %cst_108 : f32 to vector<4x15xf32>
      %378 = vector.extract_strided_slice %360 {offsets = [0, 0], sizes = [4, 241], strides = [1, 1]} : vector<4x256xf32> to vector<4x241xf32>
      %379 = tpu.concatenate %377, %378 in 1 : vector<4x15xf32>, vector<4x241xf32> -> vector<4x256xf32>
      %380 = vector.broadcast %55 : vector<1x256xf32> to vector<4x256xf32>
      %381 = arith.mulf %379, %380 : vector<4x256xf32>
      %cst_109 = arith.constant dense<0.000000e+00> : vector<4x256xf32>
      %382 = tpu.matmul %24, %381, %cst_109 {dimension_numbers = #tpu.dot_dimension_numbers<[1], [0], [0], [1], [0, 0, 1, 1], [], []>, precision = #tpu.contract_precision<fp32>} : vector<4x4xf32>, vector<4x256xf32>, vector<4x256xf32> -> vector<4x256xf32>
      %383 = arith.addf %376, %382 : vector<4x256xf32>
      %cst_110 = arith.constant 0.000000e+00 : f32
      %384 = vector.broadcast %cst_110 : f32 to vector<4x1xf32>
      %385 = vector.extract_strided_slice %360 {offsets = [0, 0], sizes = [4, 255], strides = [1, 1]} : vector<4x256xf32> to vector<4x255xf32>
      %386 = tpu.concatenate %384, %385 in 1 : vector<4x1xf32>, vector<4x255xf32> -> vector<4x256xf32>
      %387 = vector.broadcast %51 : vector<1x256xf32> to vector<4x256xf32>
      %388 = arith.mulf %386, %387 : vector<4x256xf32>
      %cst_111 = arith.constant dense<0.000000e+00> : vector<4x256xf32>
      %389 = tpu.matmul %25, %388, %cst_111 {dimension_numbers = #tpu.dot_dimension_numbers<[1], [0], [0], [1], [0, 0, 1, 1], [], []>, precision = #tpu.contract_precision<fp32>} : vector<4x4xf32>, vector<4x256xf32>, vector<4x256xf32> -> vector<4x256xf32>
      %390 = arith.addf %383, %389 : vector<4x256xf32>
      %cst_112 = arith.constant dense<0.000000e+00> : vector<4x256xf32>
      %391 = tpu.matmul %26, %360, %cst_112 {dimension_numbers = #tpu.dot_dimension_numbers<[1], [0], [0], [1], [0, 0, 1, 1], [], []>, precision = #tpu.contract_precision<fp32>} : vector<4x4xf32>, vector<4x256xf32>, vector<4x256xf32> -> vector<4x256xf32>
      %392 = arith.addf %390, %391 : vector<4x256xf32>
      %cst_113 = arith.constant 0.000000e+00 : f32
      %393 = vector.broadcast %cst_113 : f32 to vector<4x1xf32>
      %394 = vector.extract_strided_slice %360 {offsets = [0, 1], sizes = [4, 255], strides = [1, 1]} : vector<4x256xf32> to vector<4x255xf32>
      %395 = tpu.concatenate %394, %393 in 1 : vector<4x255xf32>, vector<4x1xf32> -> vector<4x256xf32>
      %396 = vector.broadcast %55 : vector<1x256xf32> to vector<4x256xf32>
      %397 = arith.mulf %395, %396 : vector<4x256xf32>
      %cst_114 = arith.constant dense<0.000000e+00> : vector<4x256xf32>
      %398 = tpu.matmul %27, %397, %cst_114 {dimension_numbers = #tpu.dot_dimension_numbers<[1], [0], [0], [1], [0, 0, 1, 1], [], []>, precision = #tpu.contract_precision<fp32>} : vector<4x4xf32>, vector<4x256xf32>, vector<4x256xf32> -> vector<4x256xf32>
      %399 = arith.addf %392, %398 : vector<4x256xf32>
      %cst_115 = arith.constant 0.000000e+00 : f32
      %400 = vector.broadcast %cst_115 : f32 to vector<4x15xf32>
      %401 = vector.extract_strided_slice %360 {offsets = [0, 15], sizes = [4, 241], strides = [1, 1]} : vector<4x256xf32> to vector<4x241xf32>
      %402 = tpu.concatenate %401, %400 in 1 : vector<4x241xf32>, vector<4x15xf32> -> vector<4x256xf32>
      %403 = vector.broadcast %51 : vector<1x256xf32> to vector<4x256xf32>
      %404 = arith.mulf %402, %403 : vector<4x256xf32>
      %cst_116 = arith.constant dense<0.000000e+00> : vector<4x256xf32>
      %405 = tpu.matmul %28, %404, %cst_116 {dimension_numbers = #tpu.dot_dimension_numbers<[1], [0], [0], [1], [0, 0, 1, 1], [], []>, precision = #tpu.contract_precision<fp32>} : vector<4x4xf32>, vector<4x256xf32>, vector<4x256xf32> -> vector<4x256xf32>
      %406 = arith.addf %399, %405 : vector<4x256xf32>
      %cst_117 = arith.constant 0.000000e+00 : f32
      %407 = vector.broadcast %cst_117 : f32 to vector<4x16xf32>
      %408 = vector.extract_strided_slice %360 {offsets = [0, 16], sizes = [4, 240], strides = [1, 1]} : vector<4x256xf32> to vector<4x240xf32>
      %409 = tpu.concatenate %408, %407 in 1 : vector<4x240xf32>, vector<4x16xf32> -> vector<4x256xf32>
      %cst_118 = arith.constant dense<0.000000e+00> : vector<4x256xf32>
      %410 = tpu.matmul %29, %409, %cst_118 {dimension_numbers = #tpu.dot_dimension_numbers<[1], [0], [0], [1], [0, 0, 1, 1], [], []>, precision = #tpu.contract_precision<fp32>} : vector<4x4xf32>, vector<4x256xf32>, vector<4x256xf32> -> vector<4x256xf32>
      %411 = arith.addf %406, %410 : vector<4x256xf32>
      %cst_119 = arith.constant 0.000000e+00 : f32
      %412 = vector.broadcast %cst_119 : f32 to vector<4x17xf32>
      %413 = vector.extract_strided_slice %360 {offsets = [0, 17], sizes = [4, 239], strides = [1, 1]} : vector<4x256xf32> to vector<4x239xf32>
      %414 = tpu.concatenate %413, %412 in 1 : vector<4x239xf32>, vector<4x17xf32> -> vector<4x256xf32>
      %415 = vector.broadcast %55 : vector<1x256xf32> to vector<4x256xf32>
      %416 = arith.mulf %414, %415 : vector<4x256xf32>
      %cst_120 = arith.constant dense<0.000000e+00> : vector<4x256xf32>
      %417 = tpu.matmul %30, %416, %cst_120 {dimension_numbers = #tpu.dot_dimension_numbers<[1], [0], [0], [1], [0, 0, 1, 1], [], []>, precision = #tpu.contract_precision<fp32>} : vector<4x4xf32>, vector<4x256xf32>, vector<4x256xf32> -> vector<4x256xf32>
      %418 = arith.addf %411, %417 : vector<4x256xf32>
      %cst_121 = arith.constant dense<0.000000e+00> : vector<4xf32>
      %419 = vector.multi_reduction <add>, %418, %cst_121 [1] : vector<4x256xf32> to vector<4xf32>
      %420 = vector.shape_cast %419 : vector<4xf32> to vector<4x1xf32>
      %cst_122 = arith.constant 2.560000e+02 : f32
      %421 = vector.broadcast %cst_122 : f32 to vector<4x1xf32>
      %422 = arith.divf %420, %421 : vector<4x1xf32>
      %423 = vector.broadcast %422 : vector<4x1xf32> to vector<4x256xf32>
      %424 = arith.subf %418, %423 : vector<4x256xf32>
      %425 = arith.mulf %424, %424 : vector<4x256xf32>
      %cst_123 = arith.constant dense<0.000000e+00> : vector<4xf32>
      %426 = vector.multi_reduction <add>, %425, %cst_123 [1] : vector<4x256xf32> to vector<4xf32>
      %427 = vector.shape_cast %426 : vector<4xf32> to vector<4x1xf32>
      %cst_124 = arith.constant 2.560000e+02 : f32
      %428 = vector.broadcast %cst_124 : f32 to vector<4x1xf32>
      %429 = arith.divf %427, %428 : vector<4x1xf32>
      %430 = vector.broadcast %422 : vector<4x1xf32> to vector<4x256xf32>
      %431 = arith.subf %418, %430 : vector<4x256xf32>
      %cst_125 = arith.constant 9.99999974E-6 : f32
      %432 = vector.broadcast %cst_125 : f32 to vector<4x1xf32>
      %433 = arith.addf %429, %432 : vector<4x1xf32>
      %434 = math.rsqrt %433 : vector<4x1xf32>
      %435 = vector.broadcast %434 : vector<4x1xf32> to vector<4x256xf32>
      %436 = arith.mulf %431, %435 : vector<4x256xf32>
      %437 = vector.broadcast %9 : vector<4x1xf32> to vector<4x256xf32>
      %438 = arith.mulf %436, %437 : vector<4x256xf32>
      %439 = vector.broadcast %10 : vector<4x1xf32> to vector<4x256xf32>
      %440 = arith.addf %438, %439 : vector<4x256xf32>
      %cst_126 = arith.constant 6.250000e-02 : f32
      %441 = arith.addf %64, %cst_126 : f32
      %cst_127 = arith.constant 6.250000e-02 : f32
      %442 = vector.broadcast %cst_127 : f32 to vector<4x256xf32>
      %443 = arith.mulf %442, %440 : vector<4x256xf32>
      %444 = arith.addf %arg9, %443 : vector<4x256xf32>
      %cst_128 = arith.constant dense<0.000000e+00> : vector<4xf32>
      %445 = vector.multi_reduction <add>, %444, %cst_128 [1] : vector<4x256xf32> to vector<4xf32>
      %446 = vector.shape_cast %445 : vector<4xf32> to vector<4x1xf32>
      %cst_129 = arith.constant 2.560000e+02 : f32
      %447 = vector.broadcast %cst_129 : f32 to vector<4x1xf32>
      %448 = arith.divf %446, %447 : vector<4x1xf32>
      %449 = vector.broadcast %448 : vector<4x1xf32> to vector<4x256xf32>
      %450 = arith.subf %444, %449 : vector<4x256xf32>
      %451 = arith.mulf %450, %450 : vector<4x256xf32>
      %cst_130 = arith.constant dense<0.000000e+00> : vector<4xf32>
      %452 = vector.multi_reduction <add>, %451, %cst_130 [1] : vector<4x256xf32> to vector<4xf32>
      %453 = vector.shape_cast %452 : vector<4xf32> to vector<4x1xf32>
      %cst_131 = arith.constant 2.560000e+02 : f32
      %454 = vector.broadcast %cst_131 : f32 to vector<4x1xf32>
      %455 = arith.divf %453, %454 : vector<4x1xf32>
      %456 = vector.broadcast %448 : vector<4x1xf32> to vector<4x256xf32>
      %457 = arith.subf %444, %456 : vector<4x256xf32>
      %cst_132 = arith.constant 9.99999974E-6 : f32
      %458 = vector.broadcast %cst_132 : f32 to vector<4x1xf32>
      %459 = arith.addf %455, %458 : vector<4x1xf32>
      %460 = math.rsqrt %459 : vector<4x1xf32>
      %461 = vector.broadcast %460 : vector<4x1xf32> to vector<4x256xf32>
      %462 = arith.mulf %457, %461 : vector<4x256xf32>
      %463 = vector.broadcast %5 : vector<4x1xf32> to vector<4x256xf32>
      %464 = arith.mulf %462, %463 : vector<4x256xf32>
      %465 = vector.broadcast %6 : vector<4x1xf32> to vector<4x256xf32>
      %466 = arith.addf %464, %465 : vector<4x256xf32>
      %cst_133 = arith.constant 0.000000e+00 : f32
      %467 = vector.broadcast %cst_133 : f32 to vector<4x256xf32>
      %468 = arith.maximumf %466, %467 : vector<4x256xf32>
      %469 = vector.broadcast %441 : f32 to vector<4x256xf32>
      %470 = arith.mulf %469, %2 : vector<4x256xf32>
      %471 = vector.broadcast %11 : vector<4x1xf32> to vector<4x256xf32>
      %472 = arith.addf %470, %471 : vector<4x256xf32>
      %cst_134 = arith.constant 0.000000e+00 : f32
      %473 = vector.broadcast %cst_134 : f32 to vector<4x17xf32>
      %474 = vector.extract_strided_slice %468 {offsets = [0, 0], sizes = [4, 239], strides = [1, 1]} : vector<4x256xf32> to vector<4x239xf32>
      %475 = tpu.concatenate %473, %474 in 1 : vector<4x17xf32>, vector<4x239xf32> -> vector<4x256xf32>
      %476 = vector.broadcast %51 : vector<1x256xf32> to vector<4x256xf32>
      %477 = arith.mulf %475, %476 : vector<4x256xf32>
      %cst_135 = arith.constant dense<0.000000e+00> : vector<4x256xf32>
      %478 = tpu.matmul %13, %477, %cst_135 {dimension_numbers = #tpu.dot_dimension_numbers<[1], [0], [0], [1], [0, 0, 1, 1], [], []>, precision = #tpu.contract_precision<fp32>} : vector<4x4xf32>, vector<4x256xf32>, vector<4x256xf32> -> vector<4x256xf32>
      %479 = arith.addf %472, %478 : vector<4x256xf32>
      %cst_136 = arith.constant 0.000000e+00 : f32
      %480 = vector.broadcast %cst_136 : f32 to vector<4x16xf32>
      %481 = vector.extract_strided_slice %468 {offsets = [0, 0], sizes = [4, 240], strides = [1, 1]} : vector<4x256xf32> to vector<4x240xf32>
      %482 = tpu.concatenate %480, %481 in 1 : vector<4x16xf32>, vector<4x240xf32> -> vector<4x256xf32>
      %cst_137 = arith.constant dense<0.000000e+00> : vector<4x256xf32>
      %483 = tpu.matmul %14, %482, %cst_137 {dimension_numbers = #tpu.dot_dimension_numbers<[1], [0], [0], [1], [0, 0, 1, 1], [], []>, precision = #tpu.contract_precision<fp32>} : vector<4x4xf32>, vector<4x256xf32>, vector<4x256xf32> -> vector<4x256xf32>
      %484 = arith.addf %479, %483 : vector<4x256xf32>
      %cst_138 = arith.constant 0.000000e+00 : f32
      %485 = vector.broadcast %cst_138 : f32 to vector<4x15xf32>
      %486 = vector.extract_strided_slice %468 {offsets = [0, 0], sizes = [4, 241], strides = [1, 1]} : vector<4x256xf32> to vector<4x241xf32>
      %487 = tpu.concatenate %485, %486 in 1 : vector<4x15xf32>, vector<4x241xf32> -> vector<4x256xf32>
      %488 = vector.broadcast %55 : vector<1x256xf32> to vector<4x256xf32>
      %489 = arith.mulf %487, %488 : vector<4x256xf32>
      %cst_139 = arith.constant dense<0.000000e+00> : vector<4x256xf32>
      %490 = tpu.matmul %15, %489, %cst_139 {dimension_numbers = #tpu.dot_dimension_numbers<[1], [0], [0], [1], [0, 0, 1, 1], [], []>, precision = #tpu.contract_precision<fp32>} : vector<4x4xf32>, vector<4x256xf32>, vector<4x256xf32> -> vector<4x256xf32>
      %491 = arith.addf %484, %490 : vector<4x256xf32>
      %cst_140 = arith.constant 0.000000e+00 : f32
      %492 = vector.broadcast %cst_140 : f32 to vector<4x1xf32>
      %493 = vector.extract_strided_slice %468 {offsets = [0, 0], sizes = [4, 255], strides = [1, 1]} : vector<4x256xf32> to vector<4x255xf32>
      %494 = tpu.concatenate %492, %493 in 1 : vector<4x1xf32>, vector<4x255xf32> -> vector<4x256xf32>
      %495 = vector.broadcast %51 : vector<1x256xf32> to vector<4x256xf32>
      %496 = arith.mulf %494, %495 : vector<4x256xf32>
      %cst_141 = arith.constant dense<0.000000e+00> : vector<4x256xf32>
      %497 = tpu.matmul %16, %496, %cst_141 {dimension_numbers = #tpu.dot_dimension_numbers<[1], [0], [0], [1], [0, 0, 1, 1], [], []>, precision = #tpu.contract_precision<fp32>} : vector<4x4xf32>, vector<4x256xf32>, vector<4x256xf32> -> vector<4x256xf32>
      %498 = arith.addf %491, %497 : vector<4x256xf32>
      %cst_142 = arith.constant dense<0.000000e+00> : vector<4x256xf32>
      %499 = tpu.matmul %17, %468, %cst_142 {dimension_numbers = #tpu.dot_dimension_numbers<[1], [0], [0], [1], [0, 0, 1, 1], [], []>, precision = #tpu.contract_precision<fp32>} : vector<4x4xf32>, vector<4x256xf32>, vector<4x256xf32> -> vector<4x256xf32>
      %500 = arith.addf %498, %499 : vector<4x256xf32>
      %cst_143 = arith.constant 0.000000e+00 : f32
      %501 = vector.broadcast %cst_143 : f32 to vector<4x1xf32>
      %502 = vector.extract_strided_slice %468 {offsets = [0, 1], sizes = [4, 255], strides = [1, 1]} : vector<4x256xf32> to vector<4x255xf32>
      %503 = tpu.concatenate %502, %501 in 1 : vector<4x255xf32>, vector<4x1xf32> -> vector<4x256xf32>
      %504 = vector.broadcast %55 : vector<1x256xf32> to vector<4x256xf32>
      %505 = arith.mulf %503, %504 : vector<4x256xf32>
      %cst_144 = arith.constant dense<0.000000e+00> : vector<4x256xf32>
      %506 = tpu.matmul %18, %505, %cst_144 {dimension_numbers = #tpu.dot_dimension_numbers<[1], [0], [0], [1], [0, 0, 1, 1], [], []>, precision = #tpu.contract_precision<fp32>} : vector<4x4xf32>, vector<4x256xf32>, vector<4x256xf32> -> vector<4x256xf32>
      %507 = arith.addf %500, %506 : vector<4x256xf32>
      %cst_145 = arith.constant 0.000000e+00 : f32
      %508 = vector.broadcast %cst_145 : f32 to vector<4x15xf32>
      %509 = vector.extract_strided_slice %468 {offsets = [0, 15], sizes = [4, 241], strides = [1, 1]} : vector<4x256xf32> to vector<4x241xf32>
      %510 = tpu.concatenate %509, %508 in 1 : vector<4x241xf32>, vector<4x15xf32> -> vector<4x256xf32>
      %511 = vector.broadcast %51 : vector<1x256xf32> to vector<4x256xf32>
      %512 = arith.mulf %510, %511 : vector<4x256xf32>
      %cst_146 = arith.constant dense<0.000000e+00> : vector<4x256xf32>
      %513 = tpu.matmul %19, %512, %cst_146 {dimension_numbers = #tpu.dot_dimension_numbers<[1], [0], [0], [1], [0, 0, 1, 1], [], []>, precision = #tpu.contract_precision<fp32>} : vector<4x4xf32>, vector<4x256xf32>, vector<4x256xf32> -> vector<4x256xf32>
      %514 = arith.addf %507, %513 : vector<4x256xf32>
      %cst_147 = arith.constant 0.000000e+00 : f32
      %515 = vector.broadcast %cst_147 : f32 to vector<4x16xf32>
      %516 = vector.extract_strided_slice %468 {offsets = [0, 16], sizes = [4, 240], strides = [1, 1]} : vector<4x256xf32> to vector<4x240xf32>
      %517 = tpu.concatenate %516, %515 in 1 : vector<4x240xf32>, vector<4x16xf32> -> vector<4x256xf32>
      %cst_148 = arith.constant dense<0.000000e+00> : vector<4x256xf32>
      %518 = tpu.matmul %20, %517, %cst_148 {dimension_numbers = #tpu.dot_dimension_numbers<[1], [0], [0], [1], [0, 0, 1, 1], [], []>, precision = #tpu.contract_precision<fp32>} : vector<4x4xf32>, vector<4x256xf32>, vector<4x256xf32> -> vector<4x256xf32>
      %519 = arith.addf %514, %518 : vector<4x256xf32>
      %cst_149 = arith.constant 0.000000e+00 : f32
      %520 = vector.broadcast %cst_149 : f32 to vector<4x17xf32>
      %521 = vector.extract_strided_slice %468 {offsets = [0, 17], sizes = [4, 239], strides = [1, 1]} : vector<4x256xf32> to vector<4x239xf32>
      %522 = tpu.concatenate %521, %520 in 1 : vector<4x239xf32>, vector<4x17xf32> -> vector<4x256xf32>
      %523 = vector.broadcast %55 : vector<1x256xf32> to vector<4x256xf32>
      %524 = arith.mulf %522, %523 : vector<4x256xf32>
      %cst_150 = arith.constant dense<0.000000e+00> : vector<4x256xf32>
      %525 = tpu.matmul %21, %524, %cst_150 {dimension_numbers = #tpu.dot_dimension_numbers<[1], [0], [0], [1], [0, 0, 1, 1], [], []>, precision = #tpu.contract_precision<fp32>} : vector<4x4xf32>, vector<4x256xf32>, vector<4x256xf32> -> vector<4x256xf32>
      %526 = arith.addf %519, %525 : vector<4x256xf32>
      %cst_151 = arith.constant dense<0.000000e+00> : vector<4xf32>
      %527 = vector.multi_reduction <add>, %526, %cst_151 [1] : vector<4x256xf32> to vector<4xf32>
      %528 = vector.shape_cast %527 : vector<4xf32> to vector<4x1xf32>
      %cst_152 = arith.constant 2.560000e+02 : f32
      %529 = vector.broadcast %cst_152 : f32 to vector<4x1xf32>
      %530 = arith.divf %528, %529 : vector<4x1xf32>
      %531 = vector.broadcast %530 : vector<4x1xf32> to vector<4x256xf32>
      %532 = arith.subf %526, %531 : vector<4x256xf32>
      %533 = arith.mulf %532, %532 : vector<4x256xf32>
      %cst_153 = arith.constant dense<0.000000e+00> : vector<4xf32>
      %534 = vector.multi_reduction <add>, %533, %cst_153 [1] : vector<4x256xf32> to vector<4xf32>
      %535 = vector.shape_cast %534 : vector<4xf32> to vector<4x1xf32>
      %cst_154 = arith.constant 2.560000e+02 : f32
      %536 = vector.broadcast %cst_154 : f32 to vector<4x1xf32>
      %537 = arith.divf %535, %536 : vector<4x1xf32>
      %538 = vector.broadcast %530 : vector<4x1xf32> to vector<4x256xf32>
      %539 = arith.subf %526, %538 : vector<4x256xf32>
      %cst_155 = arith.constant 9.99999974E-6 : f32
      %540 = vector.broadcast %cst_155 : f32 to vector<4x1xf32>
      %541 = arith.addf %537, %540 : vector<4x1xf32>
      %542 = math.rsqrt %541 : vector<4x1xf32>
      %543 = vector.broadcast %542 : vector<4x1xf32> to vector<4x256xf32>
      %544 = arith.mulf %539, %543 : vector<4x256xf32>
      %545 = vector.broadcast %7 : vector<4x1xf32> to vector<4x256xf32>
      %546 = arith.mulf %544, %545 : vector<4x256xf32>
      %547 = vector.broadcast %8 : vector<4x1xf32> to vector<4x256xf32>
      %548 = arith.addf %546, %547 : vector<4x256xf32>
      %cst_156 = arith.constant 0.000000e+00 : f32
      %549 = vector.broadcast %cst_156 : f32 to vector<4x256xf32>
      %550 = arith.maximumf %548, %549 : vector<4x256xf32>
      %551 = vector.broadcast %441 : f32 to vector<4x256xf32>
      %552 = arith.mulf %551, %3 : vector<4x256xf32>
      %553 = vector.broadcast %12 : vector<4x1xf32> to vector<4x256xf32>
      %554 = arith.addf %552, %553 : vector<4x256xf32>
      %cst_157 = arith.constant 0.000000e+00 : f32
      %555 = vector.broadcast %cst_157 : f32 to vector<4x17xf32>
      %556 = vector.extract_strided_slice %550 {offsets = [0, 0], sizes = [4, 239], strides = [1, 1]} : vector<4x256xf32> to vector<4x239xf32>
      %557 = tpu.concatenate %555, %556 in 1 : vector<4x17xf32>, vector<4x239xf32> -> vector<4x256xf32>
      %558 = vector.broadcast %51 : vector<1x256xf32> to vector<4x256xf32>
      %559 = arith.mulf %557, %558 : vector<4x256xf32>
      %cst_158 = arith.constant dense<0.000000e+00> : vector<4x256xf32>
      %560 = tpu.matmul %22, %559, %cst_158 {dimension_numbers = #tpu.dot_dimension_numbers<[1], [0], [0], [1], [0, 0, 1, 1], [], []>, precision = #tpu.contract_precision<fp32>} : vector<4x4xf32>, vector<4x256xf32>, vector<4x256xf32> -> vector<4x256xf32>
      %561 = arith.addf %554, %560 : vector<4x256xf32>
      %cst_159 = arith.constant 0.000000e+00 : f32
      %562 = vector.broadcast %cst_159 : f32 to vector<4x16xf32>
      %563 = vector.extract_strided_slice %550 {offsets = [0, 0], sizes = [4, 240], strides = [1, 1]} : vector<4x256xf32> to vector<4x240xf32>
      %564 = tpu.concatenate %562, %563 in 1 : vector<4x16xf32>, vector<4x240xf32> -> vector<4x256xf32>
      %cst_160 = arith.constant dense<0.000000e+00> : vector<4x256xf32>
      %565 = tpu.matmul %23, %564, %cst_160 {dimension_numbers = #tpu.dot_dimension_numbers<[1], [0], [0], [1], [0, 0, 1, 1], [], []>, precision = #tpu.contract_precision<fp32>} : vector<4x4xf32>, vector<4x256xf32>, vector<4x256xf32> -> vector<4x256xf32>
      %566 = arith.addf %561, %565 : vector<4x256xf32>
      %cst_161 = arith.constant 0.000000e+00 : f32
      %567 = vector.broadcast %cst_161 : f32 to vector<4x15xf32>
      %568 = vector.extract_strided_slice %550 {offsets = [0, 0], sizes = [4, 241], strides = [1, 1]} : vector<4x256xf32> to vector<4x241xf32>
      %569 = tpu.concatenate %567, %568 in 1 : vector<4x15xf32>, vector<4x241xf32> -> vector<4x256xf32>
      %570 = vector.broadcast %55 : vector<1x256xf32> to vector<4x256xf32>
      %571 = arith.mulf %569, %570 : vector<4x256xf32>
      %cst_162 = arith.constant dense<0.000000e+00> : vector<4x256xf32>
      %572 = tpu.matmul %24, %571, %cst_162 {dimension_numbers = #tpu.dot_dimension_numbers<[1], [0], [0], [1], [0, 0, 1, 1], [], []>, precision = #tpu.contract_precision<fp32>} : vector<4x4xf32>, vector<4x256xf32>, vector<4x256xf32> -> vector<4x256xf32>
      %573 = arith.addf %566, %572 : vector<4x256xf32>
      %cst_163 = arith.constant 0.000000e+00 : f32
      %574 = vector.broadcast %cst_163 : f32 to vector<4x1xf32>
      %575 = vector.extract_strided_slice %550 {offsets = [0, 0], sizes = [4, 255], strides = [1, 1]} : vector<4x256xf32> to vector<4x255xf32>
      %576 = tpu.concatenate %574, %575 in 1 : vector<4x1xf32>, vector<4x255xf32> -> vector<4x256xf32>
      %577 = vector.broadcast %51 : vector<1x256xf32> to vector<4x256xf32>
      %578 = arith.mulf %576, %577 : vector<4x256xf32>
      %cst_164 = arith.constant dense<0.000000e+00> : vector<4x256xf32>
      %579 = tpu.matmul %25, %578, %cst_164 {dimension_numbers = #tpu.dot_dimension_numbers<[1], [0], [0], [1], [0, 0, 1, 1], [], []>, precision = #tpu.contract_precision<fp32>} : vector<4x4xf32>, vector<4x256xf32>, vector<4x256xf32> -> vector<4x256xf32>
      %580 = arith.addf %573, %579 : vector<4x256xf32>
      %cst_165 = arith.constant dense<0.000000e+00> : vector<4x256xf32>
      %581 = tpu.matmul %26, %550, %cst_165 {dimension_numbers = #tpu.dot_dimension_numbers<[1], [0], [0], [1], [0, 0, 1, 1], [], []>, precision = #tpu.contract_precision<fp32>} : vector<4x4xf32>, vector<4x256xf32>, vector<4x256xf32> -> vector<4x256xf32>
      %582 = arith.addf %580, %581 : vector<4x256xf32>
      %cst_166 = arith.constant 0.000000e+00 : f32
      %583 = vector.broadcast %cst_166 : f32 to vector<4x1xf32>
      %584 = vector.extract_strided_slice %550 {offsets = [0, 1], sizes = [4, 255], strides = [1, 1]} : vector<4x256xf32> to vector<4x255xf32>
      %585 = tpu.concatenate %584, %583 in 1 : vector<4x255xf32>, vector<4x1xf32> -> vector<4x256xf32>
      %586 = vector.broadcast %55 : vector<1x256xf32> to vector<4x256xf32>
      %587 = arith.mulf %585, %586 : vector<4x256xf32>
      %cst_167 = arith.constant dense<0.000000e+00> : vector<4x256xf32>
      %588 = tpu.matmul %27, %587, %cst_167 {dimension_numbers = #tpu.dot_dimension_numbers<[1], [0], [0], [1], [0, 0, 1, 1], [], []>, precision = #tpu.contract_precision<fp32>} : vector<4x4xf32>, vector<4x256xf32>, vector<4x256xf32> -> vector<4x256xf32>
      %589 = arith.addf %582, %588 : vector<4x256xf32>
      %cst_168 = arith.constant 0.000000e+00 : f32
      %590 = vector.broadcast %cst_168 : f32 to vector<4x15xf32>
      %591 = vector.extract_strided_slice %550 {offsets = [0, 15], sizes = [4, 241], strides = [1, 1]} : vector<4x256xf32> to vector<4x241xf32>
      %592 = tpu.concatenate %591, %590 in 1 : vector<4x241xf32>, vector<4x15xf32> -> vector<4x256xf32>
      %593 = vector.broadcast %51 : vector<1x256xf32> to vector<4x256xf32>
      %594 = arith.mulf %592, %593 : vector<4x256xf32>
      %cst_169 = arith.constant dense<0.000000e+00> : vector<4x256xf32>
      %595 = tpu.matmul %28, %594, %cst_169 {dimension_numbers = #tpu.dot_dimension_numbers<[1], [0], [0], [1], [0, 0, 1, 1], [], []>, precision = #tpu.contract_precision<fp32>} : vector<4x4xf32>, vector<4x256xf32>, vector<4x256xf32> -> vector<4x256xf32>
      %596 = arith.addf %589, %595 : vector<4x256xf32>
      %cst_170 = arith.constant 0.000000e+00 : f32
      %597 = vector.broadcast %cst_170 : f32 to vector<4x16xf32>
      %598 = vector.extract_strided_slice %550 {offsets = [0, 16], sizes = [4, 240], strides = [1, 1]} : vector<4x256xf32> to vector<4x240xf32>
      %599 = tpu.concatenate %598, %597 in 1 : vector<4x240xf32>, vector<4x16xf32> -> vector<4x256xf32>
      %cst_171 = arith.constant dense<0.000000e+00> : vector<4x256xf32>
      %600 = tpu.matmul %29, %599, %cst_171 {dimension_numbers = #tpu.dot_dimension_numbers<[1], [0], [0], [1], [0, 0, 1, 1], [], []>, precision = #tpu.contract_precision<fp32>} : vector<4x4xf32>, vector<4x256xf32>, vector<4x256xf32> -> vector<4x256xf32>
      %601 = arith.addf %596, %600 : vector<4x256xf32>
      %cst_172 = arith.constant 0.000000e+00 : f32
      %602 = vector.broadcast %cst_172 : f32 to vector<4x17xf32>
      %603 = vector.extract_strided_slice %550 {offsets = [0, 17], sizes = [4, 239], strides = [1, 1]} : vector<4x256xf32> to vector<4x239xf32>
      %604 = tpu.concatenate %603, %602 in 1 : vector<4x239xf32>, vector<4x17xf32> -> vector<4x256xf32>
      %605 = vector.broadcast %55 : vector<1x256xf32> to vector<4x256xf32>
      %606 = arith.mulf %604, %605 : vector<4x256xf32>
      %cst_173 = arith.constant dense<0.000000e+00> : vector<4x256xf32>
      %607 = tpu.matmul %30, %606, %cst_173 {dimension_numbers = #tpu.dot_dimension_numbers<[1], [0], [0], [1], [0, 0, 1, 1], [], []>, precision = #tpu.contract_precision<fp32>} : vector<4x4xf32>, vector<4x256xf32>, vector<4x256xf32> -> vector<4x256xf32>
      %608 = arith.addf %601, %607 : vector<4x256xf32>
      %cst_174 = arith.constant dense<0.000000e+00> : vector<4xf32>
      %609 = vector.multi_reduction <add>, %608, %cst_174 [1] : vector<4x256xf32> to vector<4xf32>
      %610 = vector.shape_cast %609 : vector<4xf32> to vector<4x1xf32>
      %cst_175 = arith.constant 2.560000e+02 : f32
      %611 = vector.broadcast %cst_175 : f32 to vector<4x1xf32>
      %612 = arith.divf %610, %611 : vector<4x1xf32>
      %613 = vector.broadcast %612 : vector<4x1xf32> to vector<4x256xf32>
      %614 = arith.subf %608, %613 : vector<4x256xf32>
      %615 = arith.mulf %614, %614 : vector<4x256xf32>
      %cst_176 = arith.constant dense<0.000000e+00> : vector<4xf32>
      %616 = vector.multi_reduction <add>, %615, %cst_176 [1] : vector<4x256xf32> to vector<4xf32>
      %617 = vector.shape_cast %616 : vector<4xf32> to vector<4x1xf32>
      %cst_177 = arith.constant 2.560000e+02 : f32
      %618 = vector.broadcast %cst_177 : f32 to vector<4x1xf32>
      %619 = arith.divf %617, %618 : vector<4x1xf32>
      %620 = vector.broadcast %612 : vector<4x1xf32> to vector<4x256xf32>
      %621 = arith.subf %608, %620 : vector<4x256xf32>
      %cst_178 = arith.constant 9.99999974E-6 : f32
      %622 = vector.broadcast %cst_178 : f32 to vector<4x1xf32>
      %623 = arith.addf %619, %622 : vector<4x1xf32>
      %624 = math.rsqrt %623 : vector<4x1xf32>
      %625 = vector.broadcast %624 : vector<4x1xf32> to vector<4x256xf32>
      %626 = arith.mulf %621, %625 : vector<4x256xf32>
      %627 = vector.broadcast %9 : vector<4x1xf32> to vector<4x256xf32>
      %628 = arith.mulf %626, %627 : vector<4x256xf32>
      %629 = vector.broadcast %10 : vector<4x1xf32> to vector<4x256xf32>
      %630 = arith.addf %628, %629 : vector<4x256xf32>
      %cst_179 = arith.constant 1.250000e-01 : f32
      %631 = arith.addf %64, %cst_179 : f32
      %cst_180 = arith.constant 1.250000e-01 : f32
      %632 = vector.broadcast %cst_180 : f32 to vector<4x256xf32>
      %633 = arith.mulf %632, %630 : vector<4x256xf32>
      %634 = arith.addf %arg9, %633 : vector<4x256xf32>
      %cst_181 = arith.constant dense<0.000000e+00> : vector<4xf32>
      %635 = vector.multi_reduction <add>, %634, %cst_181 [1] : vector<4x256xf32> to vector<4xf32>
      %636 = vector.shape_cast %635 : vector<4xf32> to vector<4x1xf32>
      %cst_182 = arith.constant 2.560000e+02 : f32
      %637 = vector.broadcast %cst_182 : f32 to vector<4x1xf32>
      %638 = arith.divf %636, %637 : vector<4x1xf32>
      %639 = vector.broadcast %638 : vector<4x1xf32> to vector<4x256xf32>
      %640 = arith.subf %634, %639 : vector<4x256xf32>
      %641 = arith.mulf %640, %640 : vector<4x256xf32>
      %cst_183 = arith.constant dense<0.000000e+00> : vector<4xf32>
      %642 = vector.multi_reduction <add>, %641, %cst_183 [1] : vector<4x256xf32> to vector<4xf32>
      %643 = vector.shape_cast %642 : vector<4xf32> to vector<4x1xf32>
      %cst_184 = arith.constant 2.560000e+02 : f32
      %644 = vector.broadcast %cst_184 : f32 to vector<4x1xf32>
      %645 = arith.divf %643, %644 : vector<4x1xf32>
      %646 = vector.broadcast %638 : vector<4x1xf32> to vector<4x256xf32>
      %647 = arith.subf %634, %646 : vector<4x256xf32>
      %cst_185 = arith.constant 9.99999974E-6 : f32
      %648 = vector.broadcast %cst_185 : f32 to vector<4x1xf32>
      %649 = arith.addf %645, %648 : vector<4x1xf32>
      %650 = math.rsqrt %649 : vector<4x1xf32>
      %651 = vector.broadcast %650 : vector<4x1xf32> to vector<4x256xf32>
      %652 = arith.mulf %647, %651 : vector<4x256xf32>
      %653 = vector.broadcast %5 : vector<4x1xf32> to vector<4x256xf32>
      %654 = arith.mulf %652, %653 : vector<4x256xf32>
      %655 = vector.broadcast %6 : vector<4x1xf32> to vector<4x256xf32>
      %656 = arith.addf %654, %655 : vector<4x256xf32>
      %cst_186 = arith.constant 0.000000e+00 : f32
      %657 = vector.broadcast %cst_186 : f32 to vector<4x256xf32>
      %658 = arith.maximumf %656, %657 : vector<4x256xf32>
      %659 = vector.broadcast %631 : f32 to vector<4x256xf32>
      %660 = arith.mulf %659, %2 : vector<4x256xf32>
      %661 = vector.broadcast %11 : vector<4x1xf32> to vector<4x256xf32>
      %662 = arith.addf %660, %661 : vector<4x256xf32>
      %cst_187 = arith.constant 0.000000e+00 : f32
      %663 = vector.broadcast %cst_187 : f32 to vector<4x17xf32>
      %664 = vector.extract_strided_slice %658 {offsets = [0, 0], sizes = [4, 239], strides = [1, 1]} : vector<4x256xf32> to vector<4x239xf32>
      %665 = tpu.concatenate %663, %664 in 1 : vector<4x17xf32>, vector<4x239xf32> -> vector<4x256xf32>
      %666 = vector.broadcast %51 : vector<1x256xf32> to vector<4x256xf32>
      %667 = arith.mulf %665, %666 : vector<4x256xf32>
      %cst_188 = arith.constant dense<0.000000e+00> : vector<4x256xf32>
      %668 = tpu.matmul %13, %667, %cst_188 {dimension_numbers = #tpu.dot_dimension_numbers<[1], [0], [0], [1], [0, 0, 1, 1], [], []>, precision = #tpu.contract_precision<fp32>} : vector<4x4xf32>, vector<4x256xf32>, vector<4x256xf32> -> vector<4x256xf32>
      %669 = arith.addf %662, %668 : vector<4x256xf32>
      %cst_189 = arith.constant 0.000000e+00 : f32
      %670 = vector.broadcast %cst_189 : f32 to vector<4x16xf32>
      %671 = vector.extract_strided_slice %658 {offsets = [0, 0], sizes = [4, 240], strides = [1, 1]} : vector<4x256xf32> to vector<4x240xf32>
      %672 = tpu.concatenate %670, %671 in 1 : vector<4x16xf32>, vector<4x240xf32> -> vector<4x256xf32>
      %cst_190 = arith.constant dense<0.000000e+00> : vector<4x256xf32>
      %673 = tpu.matmul %14, %672, %cst_190 {dimension_numbers = #tpu.dot_dimension_numbers<[1], [0], [0], [1], [0, 0, 1, 1], [], []>, precision = #tpu.contract_precision<fp32>} : vector<4x4xf32>, vector<4x256xf32>, vector<4x256xf32> -> vector<4x256xf32>
      %674 = arith.addf %669, %673 : vector<4x256xf32>
      %cst_191 = arith.constant 0.000000e+00 : f32
      %675 = vector.broadcast %cst_191 : f32 to vector<4x15xf32>
      %676 = vector.extract_strided_slice %658 {offsets = [0, 0], sizes = [4, 241], strides = [1, 1]} : vector<4x256xf32> to vector<4x241xf32>
      %677 = tpu.concatenate %675, %676 in 1 : vector<4x15xf32>, vector<4x241xf32> -> vector<4x256xf32>
      %678 = vector.broadcast %55 : vector<1x256xf32> to vector<4x256xf32>
      %679 = arith.mulf %677, %678 : vector<4x256xf32>
      %cst_192 = arith.constant dense<0.000000e+00> : vector<4x256xf32>
      %680 = tpu.matmul %15, %679, %cst_192 {dimension_numbers = #tpu.dot_dimension_numbers<[1], [0], [0], [1], [0, 0, 1, 1], [], []>, precision = #tpu.contract_precision<fp32>} : vector<4x4xf32>, vector<4x256xf32>, vector<4x256xf32> -> vector<4x256xf32>
      %681 = arith.addf %674, %680 : vector<4x256xf32>
      %cst_193 = arith.constant 0.000000e+00 : f32
      %682 = vector.broadcast %cst_193 : f32 to vector<4x1xf32>
      %683 = vector.extract_strided_slice %658 {offsets = [0, 0], sizes = [4, 255], strides = [1, 1]} : vector<4x256xf32> to vector<4x255xf32>
      %684 = tpu.concatenate %682, %683 in 1 : vector<4x1xf32>, vector<4x255xf32> -> vector<4x256xf32>
      %685 = vector.broadcast %51 : vector<1x256xf32> to vector<4x256xf32>
      %686 = arith.mulf %684, %685 : vector<4x256xf32>
      %cst_194 = arith.constant dense<0.000000e+00> : vector<4x256xf32>
      %687 = tpu.matmul %16, %686, %cst_194 {dimension_numbers = #tpu.dot_dimension_numbers<[1], [0], [0], [1], [0, 0, 1, 1], [], []>, precision = #tpu.contract_precision<fp32>} : vector<4x4xf32>, vector<4x256xf32>, vector<4x256xf32> -> vector<4x256xf32>
      %688 = arith.addf %681, %687 : vector<4x256xf32>
      %cst_195 = arith.constant dense<0.000000e+00> : vector<4x256xf32>
      %689 = tpu.matmul %17, %658, %cst_195 {dimension_numbers = #tpu.dot_dimension_numbers<[1], [0], [0], [1], [0, 0, 1, 1], [], []>, precision = #tpu.contract_precision<fp32>} : vector<4x4xf32>, vector<4x256xf32>, vector<4x256xf32> -> vector<4x256xf32>
      %690 = arith.addf %688, %689 : vector<4x256xf32>
      %cst_196 = arith.constant 0.000000e+00 : f32
      %691 = vector.broadcast %cst_196 : f32 to vector<4x1xf32>
      %692 = vector.extract_strided_slice %658 {offsets = [0, 1], sizes = [4, 255], strides = [1, 1]} : vector<4x256xf32> to vector<4x255xf32>
      %693 = tpu.concatenate %692, %691 in 1 : vector<4x255xf32>, vector<4x1xf32> -> vector<4x256xf32>
      %694 = vector.broadcast %55 : vector<1x256xf32> to vector<4x256xf32>
      %695 = arith.mulf %693, %694 : vector<4x256xf32>
      %cst_197 = arith.constant dense<0.000000e+00> : vector<4x256xf32>
      %696 = tpu.matmul %18, %695, %cst_197 {dimension_numbers = #tpu.dot_dimension_numbers<[1], [0], [0], [1], [0, 0, 1, 1], [], []>, precision = #tpu.contract_precision<fp32>} : vector<4x4xf32>, vector<4x256xf32>, vector<4x256xf32> -> vector<4x256xf32>
      %697 = arith.addf %690, %696 : vector<4x256xf32>
      %cst_198 = arith.constant 0.000000e+00 : f32
      %698 = vector.broadcast %cst_198 : f32 to vector<4x15xf32>
      %699 = vector.extract_strided_slice %658 {offsets = [0, 15], sizes = [4, 241], strides = [1, 1]} : vector<4x256xf32> to vector<4x241xf32>
      %700 = tpu.concatenate %699, %698 in 1 : vector<4x241xf32>, vector<4x15xf32> -> vector<4x256xf32>
      %701 = vector.broadcast %51 : vector<1x256xf32> to vector<4x256xf32>
      %702 = arith.mulf %700, %701 : vector<4x256xf32>
      %cst_199 = arith.constant dense<0.000000e+00> : vector<4x256xf32>
      %703 = tpu.matmul %19, %702, %cst_199 {dimension_numbers = #tpu.dot_dimension_numbers<[1], [0], [0], [1], [0, 0, 1, 1], [], []>, precision = #tpu.contract_precision<fp32>} : vector<4x4xf32>, vector<4x256xf32>, vector<4x256xf32> -> vector<4x256xf32>
      %704 = arith.addf %697, %703 : vector<4x256xf32>
      %cst_200 = arith.constant 0.000000e+00 : f32
      %705 = vector.broadcast %cst_200 : f32 to vector<4x16xf32>
      %706 = vector.extract_strided_slice %658 {offsets = [0, 16], sizes = [4, 240], strides = [1, 1]} : vector<4x256xf32> to vector<4x240xf32>
      %707 = tpu.concatenate %706, %705 in 1 : vector<4x240xf32>, vector<4x16xf32> -> vector<4x256xf32>
      %cst_201 = arith.constant dense<0.000000e+00> : vector<4x256xf32>
      %708 = tpu.matmul %20, %707, %cst_201 {dimension_numbers = #tpu.dot_dimension_numbers<[1], [0], [0], [1], [0, 0, 1, 1], [], []>, precision = #tpu.contract_precision<fp32>} : vector<4x4xf32>, vector<4x256xf32>, vector<4x256xf32> -> vector<4x256xf32>
      %709 = arith.addf %704, %708 : vector<4x256xf32>
      %cst_202 = arith.constant 0.000000e+00 : f32
      %710 = vector.broadcast %cst_202 : f32 to vector<4x17xf32>
      %711 = vector.extract_strided_slice %658 {offsets = [0, 17], sizes = [4, 239], strides = [1, 1]} : vector<4x256xf32> to vector<4x239xf32>
      %712 = tpu.concatenate %711, %710 in 1 : vector<4x239xf32>, vector<4x17xf32> -> vector<4x256xf32>
      %713 = vector.broadcast %55 : vector<1x256xf32> to vector<4x256xf32>
      %714 = arith.mulf %712, %713 : vector<4x256xf32>
      %cst_203 = arith.constant dense<0.000000e+00> : vector<4x256xf32>
      %715 = tpu.matmul %21, %714, %cst_203 {dimension_numbers = #tpu.dot_dimension_numbers<[1], [0], [0], [1], [0, 0, 1, 1], [], []>, precision = #tpu.contract_precision<fp32>} : vector<4x4xf32>, vector<4x256xf32>, vector<4x256xf32> -> vector<4x256xf32>
      %716 = arith.addf %709, %715 : vector<4x256xf32>
      %cst_204 = arith.constant dense<0.000000e+00> : vector<4xf32>
      %717 = vector.multi_reduction <add>, %716, %cst_204 [1] : vector<4x256xf32> to vector<4xf32>
      %718 = vector.shape_cast %717 : vector<4xf32> to vector<4x1xf32>
      %cst_205 = arith.constant 2.560000e+02 : f32
      %719 = vector.broadcast %cst_205 : f32 to vector<4x1xf32>
      %720 = arith.divf %718, %719 : vector<4x1xf32>
      %721 = vector.broadcast %720 : vector<4x1xf32> to vector<4x256xf32>
      %722 = arith.subf %716, %721 : vector<4x256xf32>
      %723 = arith.mulf %722, %722 : vector<4x256xf32>
      %cst_206 = arith.constant dense<0.000000e+00> : vector<4xf32>
      %724 = vector.multi_reduction <add>, %723, %cst_206 [1] : vector<4x256xf32> to vector<4xf32>
      %725 = vector.shape_cast %724 : vector<4xf32> to vector<4x1xf32>
      %cst_207 = arith.constant 2.560000e+02 : f32
      %726 = vector.broadcast %cst_207 : f32 to vector<4x1xf32>
      %727 = arith.divf %725, %726 : vector<4x1xf32>
      %728 = vector.broadcast %720 : vector<4x1xf32> to vector<4x256xf32>
      %729 = arith.subf %716, %728 : vector<4x256xf32>
      %cst_208 = arith.constant 9.99999974E-6 : f32
      %730 = vector.broadcast %cst_208 : f32 to vector<4x1xf32>
      %731 = arith.addf %727, %730 : vector<4x1xf32>
      %732 = math.rsqrt %731 : vector<4x1xf32>
      %733 = vector.broadcast %732 : vector<4x1xf32> to vector<4x256xf32>
      %734 = arith.mulf %729, %733 : vector<4x256xf32>
      %735 = vector.broadcast %7 : vector<4x1xf32> to vector<4x256xf32>
      %736 = arith.mulf %734, %735 : vector<4x256xf32>
      %737 = vector.broadcast %8 : vector<4x1xf32> to vector<4x256xf32>
      %738 = arith.addf %736, %737 : vector<4x256xf32>
      %cst_209 = arith.constant 0.000000e+00 : f32
      %739 = vector.broadcast %cst_209 : f32 to vector<4x256xf32>
      %740 = arith.maximumf %738, %739 : vector<4x256xf32>
      %741 = vector.broadcast %631 : f32 to vector<4x256xf32>
      %742 = arith.mulf %741, %3 : vector<4x256xf32>
      %743 = vector.broadcast %12 : vector<4x1xf32> to vector<4x256xf32>
      %744 = arith.addf %742, %743 : vector<4x256xf32>
      %cst_210 = arith.constant 0.000000e+00 : f32
      %745 = vector.broadcast %cst_210 : f32 to vector<4x17xf32>
      %746 = vector.extract_strided_slice %740 {offsets = [0, 0], sizes = [4, 239], strides = [1, 1]} : vector<4x256xf32> to vector<4x239xf32>
      %747 = tpu.concatenate %745, %746 in 1 : vector<4x17xf32>, vector<4x239xf32> -> vector<4x256xf32>
      %748 = vector.broadcast %51 : vector<1x256xf32> to vector<4x256xf32>
      %749 = arith.mulf %747, %748 : vector<4x256xf32>
      %cst_211 = arith.constant dense<0.000000e+00> : vector<4x256xf32>
      %750 = tpu.matmul %22, %749, %cst_211 {dimension_numbers = #tpu.dot_dimension_numbers<[1], [0], [0], [1], [0, 0, 1, 1], [], []>, precision = #tpu.contract_precision<fp32>} : vector<4x4xf32>, vector<4x256xf32>, vector<4x256xf32> -> vector<4x256xf32>
      %751 = arith.addf %744, %750 : vector<4x256xf32>
      %cst_212 = arith.constant 0.000000e+00 : f32
      %752 = vector.broadcast %cst_212 : f32 to vector<4x16xf32>
      %753 = vector.extract_strided_slice %740 {offsets = [0, 0], sizes = [4, 240], strides = [1, 1]} : vector<4x256xf32> to vector<4x240xf32>
      %754 = tpu.concatenate %752, %753 in 1 : vector<4x16xf32>, vector<4x240xf32> -> vector<4x256xf32>
      %cst_213 = arith.constant dense<0.000000e+00> : vector<4x256xf32>
      %755 = tpu.matmul %23, %754, %cst_213 {dimension_numbers = #tpu.dot_dimension_numbers<[1], [0], [0], [1], [0, 0, 1, 1], [], []>, precision = #tpu.contract_precision<fp32>} : vector<4x4xf32>, vector<4x256xf32>, vector<4x256xf32> -> vector<4x256xf32>
      %756 = arith.addf %751, %755 : vector<4x256xf32>
      %cst_214 = arith.constant 0.000000e+00 : f32
      %757 = vector.broadcast %cst_214 : f32 to vector<4x15xf32>
      %758 = vector.extract_strided_slice %740 {offsets = [0, 0], sizes = [4, 241], strides = [1, 1]} : vector<4x256xf32> to vector<4x241xf32>
      %759 = tpu.concatenate %757, %758 in 1 : vector<4x15xf32>, vector<4x241xf32> -> vector<4x256xf32>
      %760 = vector.broadcast %55 : vector<1x256xf32> to vector<4x256xf32>
      %761 = arith.mulf %759, %760 : vector<4x256xf32>
      %cst_215 = arith.constant dense<0.000000e+00> : vector<4x256xf32>
      %762 = tpu.matmul %24, %761, %cst_215 {dimension_numbers = #tpu.dot_dimension_numbers<[1], [0], [0], [1], [0, 0, 1, 1], [], []>, precision = #tpu.contract_precision<fp32>} : vector<4x4xf32>, vector<4x256xf32>, vector<4x256xf32> -> vector<4x256xf32>
      %763 = arith.addf %756, %762 : vector<4x256xf32>
      %cst_216 = arith.constant 0.000000e+00 : f32
      %764 = vector.broadcast %cst_216 : f32 to vector<4x1xf32>
      %765 = vector.extract_strided_slice %740 {offsets = [0, 0], sizes = [4, 255], strides = [1, 1]} : vector<4x256xf32> to vector<4x255xf32>
      %766 = tpu.concatenate %764, %765 in 1 : vector<4x1xf32>, vector<4x255xf32> -> vector<4x256xf32>
      %767 = vector.broadcast %51 : vector<1x256xf32> to vector<4x256xf32>
      %768 = arith.mulf %766, %767 : vector<4x256xf32>
      %cst_217 = arith.constant dense<0.000000e+00> : vector<4x256xf32>
      %769 = tpu.matmul %25, %768, %cst_217 {dimension_numbers = #tpu.dot_dimension_numbers<[1], [0], [0], [1], [0, 0, 1, 1], [], []>, precision = #tpu.contract_precision<fp32>} : vector<4x4xf32>, vector<4x256xf32>, vector<4x256xf32> -> vector<4x256xf32>
      %770 = arith.addf %763, %769 : vector<4x256xf32>
      %cst_218 = arith.constant dense<0.000000e+00> : vector<4x256xf32>
      %771 = tpu.matmul %26, %740, %cst_218 {dimension_numbers = #tpu.dot_dimension_numbers<[1], [0], [0], [1], [0, 0, 1, 1], [], []>, precision = #tpu.contract_precision<fp32>} : vector<4x4xf32>, vector<4x256xf32>, vector<4x256xf32> -> vector<4x256xf32>
      %772 = arith.addf %770, %771 : vector<4x256xf32>
      %cst_219 = arith.constant 0.000000e+00 : f32
      %773 = vector.broadcast %cst_219 : f32 to vector<4x1xf32>
      %774 = vector.extract_strided_slice %740 {offsets = [0, 1], sizes = [4, 255], strides = [1, 1]} : vector<4x256xf32> to vector<4x255xf32>
      %775 = tpu.concatenate %774, %773 in 1 : vector<4x255xf32>, vector<4x1xf32> -> vector<4x256xf32>
      %776 = vector.broadcast %55 : vector<1x256xf32> to vector<4x256xf32>
      %777 = arith.mulf %775, %776 : vector<4x256xf32>
      %cst_220 = arith.constant dense<0.000000e+00> : vector<4x256xf32>
      %778 = tpu.matmul %27, %777, %cst_220 {dimension_numbers = #tpu.dot_dimension_numbers<[1], [0], [0], [1], [0, 0, 1, 1], [], []>, precision = #tpu.contract_precision<fp32>} : vector<4x4xf32>, vector<4x256xf32>, vector<4x256xf32> -> vector<4x256xf32>
      %779 = arith.addf %772, %778 : vector<4x256xf32>
      %cst_221 = arith.constant 0.000000e+00 : f32
      %780 = vector.broadcast %cst_221 : f32 to vector<4x15xf32>
      %781 = vector.extract_strided_slice %740 {offsets = [0, 15], sizes = [4, 241], strides = [1, 1]} : vector<4x256xf32> to vector<4x241xf32>
      %782 = tpu.concatenate %781, %780 in 1 : vector<4x241xf32>, vector<4x15xf32> -> vector<4x256xf32>
      %783 = vector.broadcast %51 : vector<1x256xf32> to vector<4x256xf32>
      %784 = arith.mulf %782, %783 : vector<4x256xf32>
      %cst_222 = arith.constant dense<0.000000e+00> : vector<4x256xf32>
      %785 = tpu.matmul %28, %784, %cst_222 {dimension_numbers = #tpu.dot_dimension_numbers<[1], [0], [0], [1], [0, 0, 1, 1], [], []>, precision = #tpu.contract_precision<fp32>} : vector<4x4xf32>, vector<4x256xf32>, vector<4x256xf32> -> vector<4x256xf32>
      %786 = arith.addf %779, %785 : vector<4x256xf32>
      %cst_223 = arith.constant 0.000000e+00 : f32
      %787 = vector.broadcast %cst_223 : f32 to vector<4x16xf32>
      %788 = vector.extract_strided_slice %740 {offsets = [0, 16], sizes = [4, 240], strides = [1, 1]} : vector<4x256xf32> to vector<4x240xf32>
      %789 = tpu.concatenate %788, %787 in 1 : vector<4x240xf32>, vector<4x16xf32> -> vector<4x256xf32>
      %cst_224 = arith.constant dense<0.000000e+00> : vector<4x256xf32>
      %790 = tpu.matmul %29, %789, %cst_224 {dimension_numbers = #tpu.dot_dimension_numbers<[1], [0], [0], [1], [0, 0, 1, 1], [], []>, precision = #tpu.contract_precision<fp32>} : vector<4x4xf32>, vector<4x256xf32>, vector<4x256xf32> -> vector<4x256xf32>
      %791 = arith.addf %786, %790 : vector<4x256xf32>
      %cst_225 = arith.constant 0.000000e+00 : f32
      %792 = vector.broadcast %cst_225 : f32 to vector<4x17xf32>
      %793 = vector.extract_strided_slice %740 {offsets = [0, 17], sizes = [4, 239], strides = [1, 1]} : vector<4x256xf32> to vector<4x239xf32>
      %794 = tpu.concatenate %793, %792 in 1 : vector<4x239xf32>, vector<4x17xf32> -> vector<4x256xf32>
      %795 = vector.broadcast %55 : vector<1x256xf32> to vector<4x256xf32>
      %796 = arith.mulf %794, %795 : vector<4x256xf32>
      %cst_226 = arith.constant dense<0.000000e+00> : vector<4x256xf32>
      %797 = tpu.matmul %30, %796, %cst_226 {dimension_numbers = #tpu.dot_dimension_numbers<[1], [0], [0], [1], [0, 0, 1, 1], [], []>, precision = #tpu.contract_precision<fp32>} : vector<4x4xf32>, vector<4x256xf32>, vector<4x256xf32> -> vector<4x256xf32>
      %798 = arith.addf %791, %797 : vector<4x256xf32>
      %cst_227 = arith.constant dense<0.000000e+00> : vector<4xf32>
      %799 = vector.multi_reduction <add>, %798, %cst_227 [1] : vector<4x256xf32> to vector<4xf32>
      %800 = vector.shape_cast %799 : vector<4xf32> to vector<4x1xf32>
      %cst_228 = arith.constant 2.560000e+02 : f32
      %801 = vector.broadcast %cst_228 : f32 to vector<4x1xf32>
      %802 = arith.divf %800, %801 : vector<4x1xf32>
      %803 = vector.broadcast %802 : vector<4x1xf32> to vector<4x256xf32>
      %804 = arith.subf %798, %803 : vector<4x256xf32>
      %805 = arith.mulf %804, %804 : vector<4x256xf32>
      %cst_229 = arith.constant dense<0.000000e+00> : vector<4xf32>
      %806 = vector.multi_reduction <add>, %805, %cst_229 [1] : vector<4x256xf32> to vector<4xf32>
      %807 = vector.shape_cast %806 : vector<4xf32> to vector<4x1xf32>
      %cst_230 = arith.constant 2.560000e+02 : f32
      %808 = vector.broadcast %cst_230 : f32 to vector<4x1xf32>
      %809 = arith.divf %807, %808 : vector<4x1xf32>
      %810 = vector.broadcast %802 : vector<4x1xf32> to vector<4x256xf32>
      %811 = arith.subf %798, %810 : vector<4x256xf32>
      %cst_231 = arith.constant 9.99999974E-6 : f32
      %812 = vector.broadcast %cst_231 : f32 to vector<4x1xf32>
      %813 = arith.addf %809, %812 : vector<4x1xf32>
      %814 = math.rsqrt %813 : vector<4x1xf32>
      %815 = vector.broadcast %814 : vector<4x1xf32> to vector<4x256xf32>
      %816 = arith.mulf %811, %815 : vector<4x256xf32>
      %817 = vector.broadcast %9 : vector<4x1xf32> to vector<4x256xf32>
      %818 = arith.mulf %816, %817 : vector<4x256xf32>
      %819 = vector.broadcast %10 : vector<4x1xf32> to vector<4x256xf32>
      %820 = arith.addf %818, %819 : vector<4x256xf32>
      %cst_232 = arith.constant 2.000000e+00 : f32
      %821 = vector.broadcast %cst_232 : f32 to vector<4x256xf32>
      %822 = arith.mulf %821, %440 : vector<4x256xf32>
      %823 = arith.addf %250, %822 : vector<4x256xf32>
      %cst_233 = arith.constant 2.000000e+00 : f32
      %824 = vector.broadcast %cst_233 : f32 to vector<4x256xf32>
      %825 = arith.mulf %824, %630 : vector<4x256xf32>
      %826 = arith.addf %823, %825 : vector<4x256xf32>
      %827 = arith.addf %826, %820 : vector<4x256xf32>
      %cst_234 = arith.constant 0.020833334 : f32
      %828 = vector.broadcast %cst_234 : f32 to vector<4x256xf32>
      %829 = arith.mulf %828, %827 : vector<4x256xf32>
      %830 = arith.addf %arg9, %829 : vector<4x256xf32>
      scf.yield %830 : vector<4x256xf32>
    }
    %c8_i32_18 = arith.constant 8 : i32
    %c0_19 = arith.constant 0 : index
    %c0_20 = arith.constant 0 : index
    %c0_21 = arith.constant 0 : index
    %60 = vector.load %arg7[%c0_19, %c0_20, %c0_21] : memref<1x4x256xf32, #tpu.memory_space<vmem>>, vector<1x4x256xf32>
    %61 = vector.shape_cast %60 : vector<1x4x256xf32> to vector<4x256xf32>
    %62 = vector.shape_cast %59 : vector<4x256xf32> to vector<1x4x256xf32>
    tpu.vector_store %arg7[%c0_19, %c0_20, %c0_21], %62 {strides = array<i32>} : memref<1x4x256xf32, #tpu.memory_space<vmem>>, vector<1x4x256xf32>,
    return
  }
  func.func @transform_0(%arg0: i32) -> (i32, i32, i32) {
    %c0_i32 = arith.constant 0 : i32
    %c0_i32_0 = arith.constant 0 : i32
    %c0_i32_1 = arith.constant 0 : i32
    return %arg0, %c0_i32, %c0_i32_0 : i32, i32, i32
  }
  func.func @transform_1(%arg0: i32) -> (i32, i32) {
    %c0_i32 = arith.constant 0 : i32
    %c0_i32_0 = arith.constant 0 : i32
    %c0_i32_1 = arith.constant 0 : i32
    return %c0_i32, %c0_i32_0 : i32, i32
  }
  func.func @transform_2(%arg0: i32) -> (i32, i32) {
    %c0_i32 = arith.constant 0 : i32
    %c0_i32_0 = arith.constant 0 : i32
    %c0_i32_1 = arith.constant 0 : i32
    return %c0_i32, %c0_i32_0 : i32, i32
  }
  func.func @transform_3(%arg0: i32) -> (i32, i32) {
    %c0_i32 = arith.constant 0 : i32
    %c0_i32_0 = arith.constant 0 : i32
    %c0_i32_1 = arith.constant 0 : i32
    return %c0_i32, %c0_i32_0 : i32, i32
  }
  func.func @transform_4(%arg0: i32) -> (i32, i32) {
    %c0_i32 = arith.constant 0 : i32
    %c0_i32_0 = arith.constant 0 : i32
    %c0_i32_1 = arith.constant 0 : i32
    return %c0_i32, %c0_i32_0 : i32, i32
  }
  func.func @transform_5(%arg0: i32) -> (i32, i32) {
    %c0_i32 = arith.constant 0 : i32
    %c0_i32_0 = arith.constant 0 : i32
    %c0_i32_1 = arith.constant 0 : i32
    return %c0_i32, %c0_i32_0 : i32, i32
  }
  func.func @transform_6(%arg0: i32) -> (i32, i32, i32) {
    %c0_i32 = arith.constant 0 : i32
    %c0_i32_0 = arith.constant 0 : i32
    %c0_i32_1 = arith.constant 0 : i32
    return %arg0, %c0_i32, %c0_i32_0 : i32, i32, i32
  }
}

</mosaic_0001>

<bundles_post_ra>
// kernel: ode_block_forward.1
= control target key start
LH: loop header
LB: loop body
LE: loop exit
PB: predicated region body
PF: predicated region fallthrough
CT: control target
= control target key end

     0   :  { %s36127_s21 = smov 0   ;;  %s39414_s0 = inlined_call_operand.vmem [shape: f32[2,4,256], index: 0, kind: input, shape index: {}]   ;;  %s39415_s1 = inlined_call_operand.vmem [shape: f32[4,36], index: 1, kind: input, shape index: {}]   ;;  %s39416_s2 = inlined_call_operand.vmem [shape: f32[4,36], index: 2, kind: input, shape index: {}]   ;;  %s39417_s3 = inlined_call_operand.vmem [shape: f32[4,256], index: 3, kind: input, shape index: {}]   ;;  %s39418_s4 = inlined_call_operand.vmem [shape: f32[4,256], index: 4, kind: input, shape index: {}]   ;;  %s39419_s5 = inlined_call_operand.vmem [shape: f32[4,8], index: 5, kind: input, shape index: {}]   ;;  %s39420_s6 = inlined_call_operand.vmem [shape: f32[2,4,256], index: 6, kind: output, shape index: {}]  }
   0x1 LB: > { %s35942_s22 = sadd.s32 4294967295, %s36056_s21   ;;  %p35946_p0 = scmp.ge.s32.totalorder %s36056_s21, 1  ;;  %s36056_s21 = sphi %s36127_s21, %s16_s21  }
   0x2   : > { %p212_p1 = scmp.lt.s32.totalorder %s36056_s21, 3 }
   0x4   : > { %p213_p2 = pnand %p35946_p0, %p212_p1 }
   0x6   : > { %216 = sbr.rel (%p213_p2) target bundleno = 7403 (0x1ceb), region = 44 }
   0xb   : > { %p242_p3 = scmp.lt.s32.totalorder %s35942_s22, 1  ;;  %v36138_v0 = vld [vmem:[%s39415_s1] sm:$0xf]  ;;  %v39421_v3 = vlaneseq  ;;  %v36066_v11 = vmov 0.0   ;;  %s36179_s16 = smov 0  }
   0xc   : > { %39685 = vst [vmem:[#allocation2_spill] sm:$0xff] %v36138_v0  ;;  %v36143_v1 = vld [vmem:[%s39416_s2] sm:$0xf] }
   0xd   : > { %39686 = vst [vmem:[#allocation3_spill] sm:$0xff] %v36143_v1  ;;  %v36148_v2 = vld [vmem:[%s39417_s3] sm:$0xff]  ;;  %s40107_s22 = smov (!%p242_p3, %s35942_s22), 1  ;;  %v258_v6 = vand.u32 127, %v39421_v3 }
   0xe   : > { %39687 = vst [vmem:[#allocation4_spill] sm:$0xff] %v36148_v2  ;;  %v36153_v4 = vld [vmem:[%s39418_s4] sm:$0xff]  ;;  %s35957_s9 = sshll.u32 %s40107_s22, 3 }
   0xf   : > { %39688 = vst [vmem:[#allocation5_spill] sm:$0xff] %v36153_v4  ;;  %v36158_v5 = vld [vmem:[%s39419_s5] sm:$0xf]  ;;  %v259_v7 = vadd.s32 128, %v258_v6  ;;  %v264_v8 = vand.u32 15, %v258_v6  ;;  %s246_s12 = scalar_lea.vmem %s39414_s0, %s35957_s9  ;;  %s36167_s15 = scalar_lea.vmem %s39420_s6, %s35957_s9 }
  0x10   : > { %39689 = vst [vmem:[#allocation6_spill] sm:$0xff] %v36158_v5  ;;  %v296_v10 = vld [vmem:[%s246_s12] sm:$0xff]  }
  0x11   : > { %v271_v9 = vand.u32 15, %v259_v7  ;;  %vm284_vm0 = vcmp.ge.s32.totalorder %v264_v8, 1  ;;  %vm290_vm1 = vcmp.lt.s32.totalorder %v264_v8, 15 }
  0x12   : > { %v36169_v12 = vsel %vm284_vm0, 1.0, %v36066_v11  ;;  %v36171_v13 = vsel %vm290_vm1, 1.0, %v36066_v11 }
  0x13   : > { %39690 = vst [vmem:[#allocation7_spill] sm:$0xff] %v36169_v12  ;;  %39691 = vst [vmem:[#allocation8_spill] sm:$0xff] %v36171_v13  ;;  %vm285_vm2 = vcmp.ge.s32.totalorder %v271_v9, 1  ;;  %vm291_vm3 = vcmp.lt.s32.totalorder %v271_v9, 15 }
  0x14   : > { %v36173_v14 = vsel %vm285_vm2, 1.0, %v36066_v11  ;;  %v36175_v15 = vsel %vm291_vm3, 1.0, %v36066_v11 }
  0x15   : > { %39692 = vst [vmem:[#allocation9_spill] sm:$0xff] %v36173_v14  ;;  %39693 = vst [vmem:[#allocation10_spill] sm:$0xff] %v36175_v15 }
  0x16 LB: >> { %v39699_v0 = vld [vmem:[#allocation2_spill] sm:$0xff]  ;;  %39700 = vst [vmem:[#allocation11_spill] sm:$0xff] %v36060_v10  ;;  %vm309_vm4 = vcmask 1043456   ;;  %v307_v16 = vcombine.high %v36060_v10, %v36060_v10  ;;  %v36067_v20 = vmov 0   ;;  %v36068_v21 = vmov 1   ;;  %s36071_s17 = smov 17   ;;  %s304_s9 = scvt.s32.f32 %s36064_s16  ;;  %s36064_s16 = sphi %s36179_s16, %s302_s16   ;;  %v36060_v10 = vphi %v296_v10, %v40105_v10  }
  0x17   : >> { %v39694_v5 = vld [vmem:[#allocation6_spill] sm:$0xff]  ;;  %v310_v17 = vsel %vm309_vm4, %v36060_v10, 0.0  ;;  %36009 = vset.pattern.permute.xlu1 %v36067_v20  ;;  %v36069_v22 = vmov 839922192   ;;  %v39701_v3 = vlaneseq  ;;  %v39423_v48 = vmov 0.0   ;;  %s36072_s18 = smov 120  }
  0x18   : >> { %v311_v18 = vsel %vm309_vm4, %v307_v16, 0.0  ;;  %351 = vperm.xlu1 %36009, %v39694_v5   ;;  %v319_v23 = vunpack.c.l.s4 %v36069_v22  ;;  %478 = vmatprep.mubr.f32.mxu0 %v39423_v48  ;;  %s36073_s19 = smov 16   ;;  %s36074_s20 = smov 1   ;;  %v36086_v51 = vmov 6   ;;  %vm402_vm5 = vcmask 31744   ;;  %v39743_v2 = vld [vmem:[#allocation4_spill] sm:$0xff] }
  0x19   : >> { %v312_v19 = vadd.f32 %v311_v18, %v310_v17  ;;  %v322_v25 = vshrl.u32 %v39701_v3, 7  ;;  %564 = vmatprep.mubr.f32.mxu1 %v39423_v48  ;;  %s36075_s22 = smov 112   ;;  %s36076_s23 = smov 124   ;;  %v404_v52 = vsel %vm402_vm5, %v39699_v0, 0  ;;  %vm395_vm6 = vcmask 138240  }
  0x1a   : >> { %v39695_v12 = vld [vmem:[#allocation7_spill] sm:$0xff]  ;;  %v39697_v13 = vld [vmem:[#allocation8_spill] sm:$0xff]  ;;  %v320_v24 = vunpack.c.0.s8 %v319_v23  ;;  %s36077_s24 = smov 127   ;;  %s36078_s25 = smov 15   ;;  %v36269_v53 = vand.u32 4294901760, %v404_v52  ;;  %vm886_vm7 = vcmask 130048  }
  0x1b   : >> { %313 = vadd.xlane.f32.xlu0 %v312_v19  ;;  %s36079_s26 = smov 113   ;;  %s36080_s27 = smov 104   ;;  %vm1373_vm8 = vcmask 121856   ;;  %vm1864_vm9 = vcmask 7168   ;;  %vm2833_vm10 = vcmask 1039360   ;;  %vm3324_vm11 = vcmask 924672  }
  0x1c   : >> { %v39696_v14 = vld [vmem:[#allocation9_spill] sm:$0xff]  ;;  %v39698_v15 = vld [vmem:[#allocation10_spill] sm:$0xff]  ;;  %36010 = vset.pattern.permute.xlu1 %v36068_v21  ;;  %v36195_v26 = vsub.s32 %v320_v24, %v322_v25  ;;  %s36081_s28 = smov 116   ;;  %s36082_s29 = smov 111   ;;  %39705 = vst [vmem:[#allocation15_spill] sm:$0xff] %v36269_v53  ;;  %v36272_v54 = vsub.f32 %v404_v52, %v36269_v53  ;;  %vm3815_vm12 = vcmask 916480  }
  0x1d   : >> { %363 = vperm.xlu1 %36010, %v39694_v5   ;;  %s36083_s30 = smov 96   ;;  %s36084_s7 = smov 108   ;;  %vm4302_vm13 = vcmask 908288  }
  0x1e   : >> { %39702 = vst [vmem:[#allocation12_spill] sm:$0xff] %v36195_v26  ;;  %s36085_s8 = smov 100   ;;  %39706 = vst [vmem:[#allocation16_spill] sm:$0xff] %v36272_v54  ;;  %v36275_v55 = vand.u32 4294901760, %v36272_v54  ;;  %s36694_s10 = smul.f32 0.125, %s304_s9 }
  0x1f   : >> { %s302_s16 = sadd.s32 1, %s36064_s16  }
  0x20   : >> { %39707 = vst [vmem:[#allocation17_spill] sm:$0xff] %v36275_v55  ;;  %v482_v61 = vsub.f32 %v36272_v54, %v36275_v55  ;;  %s9324_s11 = sadd.f32 0.0625, %s36694_s10  ;;  %p299_p4 = scmp.ge.s32.totalorder %s302_s16, 8  }
  0x21   : >> { %36011 = vset.pattern.permute.xlu1 %v36086_v51  ;;  %s27020_s12 = sadd.f32 0.125, %s36694_s10 }
  0x22   : >> { %v36289_v17 = vand.u32 4294901760, %v482_v61 }
  0x24   : >> { %39708 = vst [vmem:[#allocation18_spill] sm:$0xff] %v36289_v17 }
  0x93   : >> { %v352_v39 = vpop.permute.xlu1 %351 }
  0x94   : >> { %v36203_v44 = vrot.slane %v352_v39, %v36195_v26 }
  0x96   : >> { %39703 = vst [vmem:[#allocation13_spill] sm:$0xff] %v36203_v44 }
  0x98   : >> { %v364_v41 = vpop.permute.xlu1 %363 }
  0x99   : >> { %v36206_v45 = vrot.slane %v364_v41, %v36195_v26 }
  0x9b   : >> { %39704 = vst [vmem:[#allocation14_spill] sm:$0xff] %v36206_v45 }
  0xa4   : >> { %v314_v27 = vpop.xlane.xlu0 %313 }
  0xa5   : >> { %v316_v28 = vmul.f32 0.00390625, %v314_v27 }
  0xa7   : >> { %v324_v29 = vrot.slane %v316_v28, %v36195_v26 }
  0xa9   : >> { %v326_v30 = vsub.f32 %v36060_v10, %v324_v29 }
  0xab   : >> { %v327_v31 = vmul.f32 %v326_v30, %v326_v30 }
  0xad   : >> { %v329_v32 = vcombine.high %v327_v31, %v327_v31  ;;  %v331_v33 = vsel %vm309_vm4, %v327_v31, 0.0 }
  0xaf   : >> { %v332_v34 = vsel %vm309_vm4, %v329_v32, 0.0 }
  0xb0   : >> { %v333_v35 = vadd.f32 %v332_v34, %v331_v33 }
  0xb2   : >> { %334 = vadd.xlane.f32.xlu0 %v333_v35 }
 0x13b   : >> { %v335_v36 = vpop.xlane.xlu0 %334 }
 0x13c   : >> { %v336_v37 = vmul.f32 0.00390625, %v335_v36 }
 0x13e   : >> { %v337_v38 = vadd.f32 1e-05, %v336_v37 }
 0x140   : >> { %36018 = vrsqrt.f32 %v337_v38 }
 0x14d   : >> { %v36019_v40 = vpop.eup %36018 }
 0x14e   : >> { %v346_v42 = vrot.slane %v36019_v40, %v36195_v26 }
 0x150   : >> { %v348_v43 = vmul.f32 %v346_v42, %v326_v30 }
 0x152   : >> { %v361_v46 = vmul.f32 %v36203_v44, %v348_v43 }
 0x154   : >> { %v373_v47 = vadd.f32 %v36206_v45, %v361_v46 }
 0x156   : >> { %v36212_v49 = vmax.f32 %v373_v47, 0.0 }
 0x158   : >> { %391 = vrot.lane.b32.xlu0 %v36212_v49, %s36071_s17  ;;  %v36218_v50 = vcombine.high %v36212_v49, %v36212_v49 }
 0x15a   : >> { %393 = vrot.lane.b32.xlu1 %v36218_v50, %s36071_s17 }
 0x15c   : >> { %1380 = vrot.lane.b32.xlu0 %v39699_v0, %s36072_s18 }
 0x15e   : >> { %882 = vrot.lane.b32.xlu1 %v36212_v49, %s36073_s19 }
 0x160   : >> { %1862 = vrot.lane.b32.xlu0 %v36218_v50, %s36074_s20 }
 0x162   : >> { %884 = vrot.lane.b32.xlu1 %v36218_v50, %s36073_s19 }
 0x164   : >> { %2351 = vrot.lane.b32.xlu0 %v39699_v0, %s36075_s22 }
 0x166   : >> { %890 = vrot.lane.b32.xlu1 %v39699_v0, %s36076_s23 }
 0x168   : >> { %2829 = vrot.lane.b32.xlu0 %v36212_v49, %s36077_s24 }
 0x16a   : >> { %1369 = vrot.lane.b32.xlu1 %v36212_v49, %s36078_s25 }
 0x16c   : >> { %3322 = vrot.lane.b32.xlu0 %v36218_v50, %s36079_s26 }
 0x16e   : >> { %1371 = vrot.lane.b32.xlu1 %v36218_v50, %s36078_s25 }
 0x170   : >> { %3331 = vrot.lane.b32.xlu0 %v39699_v0, %s36080_s27 }
 0x172   : >> { %1860 = vrot.lane.b32.xlu1 %v36212_v49, %s36074_s20 }
 0x174   : >> { %3811 = vrot.lane.b32.xlu0 %v36212_v49, %s36075_s22 }
 0x176   : >> { %1871 = vrot.lane.b32.xlu1 %v39699_v0, %s36081_s28 }
 0x178   : >> { %4300 = vrot.lane.b32.xlu0 %v36218_v50, %s36082_s29 }
 0x17a   : >> { %2831 = vrot.lane.b32.xlu1 %v36218_v50, %s36077_s24 }
 0x17c   : >> { %4309 = vrot.lane.b32.xlu0 %v39699_v0, %s36083_s30 }
 0x17e   : >> { %2840 = vrot.lane.b32.xlu1 %v39699_v0, %s36084_s7 }
 0x182   : >> { %3320 = vrot.lane.b32.xlu1 %v36212_v49, %s36079_s26 }
 0x186   : >> { %3813 = vrot.lane.b32.xlu1 %v36218_v50, %s36075_s22 }
 0x18a   : >> { %3819 = vrot.lane.b32.xlu1 %v39699_v0, %s36085_s8 }
 0x18e   : >> { %4298 = vrot.lane.b32.xlu1 %v36212_v49, %s36082_s29 }
 0x192   : >> { %378 = vperm.xlu1 %36011, %v39694_v5  }
 0x1ca   : >> { %v392_v56 = vpop.permute.xlu0 %391 }
 0x1cb   : >> { %v399_v57 = vsel %vm395_vm6, 0.0, %v392_v56 }
 0x1cc   : >> { %v400_v58 = vmul.f32 %v39695_v12, %v399_v57  ;;  %v394_v59 = vpop.permute.xlu1 %393 }
 0x1cd   : >> { %v396_v60 = vsel %vm395_vm6, %v392_v56, %v394_v59 }
 0x1ce   : >> { %v407_v62 = vsel %vm309_vm4, %v400_v58, 0  ;;  %v401_v63 = vmul.f32 %v39696_v14, %v396_v60  ;;  %v1381_v30 = vpop.permute.xlu0 %1380 }
 0x1cf   : >> { %v36284_v6 = vand.u32 4294901760, %v407_v62  ;;  %v1382_v33 = vsel %vm402_vm5, %v1381_v30, 0 }
 0x1d0   : >> { %v410_v7 = vsel %vm309_vm4, %v401_v63, 0  ;;  %v883_v8 = vpop.permute.xlu1 %882  ;;  %v36312_v40 = vand.u32 4294901760, %v1382_v33 }
 0x1d1   : >> { %v527_v9 = vsub.f32 %v407_v62, %v36284_v6  ;;  %v442_v11 = vand.u32 4294901760, %v410_v7  ;;  %v889_v16 = vsel %vm886_vm7, 0.0, %v883_v8 }
 0x1d2   : >> { %v895_v18 = vsel %vm309_vm4, %v889_v16, 0  ;;  %39710 = vst [vmem:[#allocation20_spill] sm:$0xff] %v36312_v40  ;;  %v36328_v57 = vsub.f32 %v1382_v33, %v36312_v40 }
 0x1d3   : >> { %443 = vmatprep.subr.mxu0 %v442_v11  ;;  %v521_v19 = vsub.f32 %v410_v7, %v442_v11  ;;  %v528_v20 = vand.u32 4294901760, %v527_v9  ;;  %v36292_v21 = vand.u32 4294901760, %v895_v18 }
 0x1d4   : >> { %445 = vmatpush1.msra.mxu0 %v36284_v6  ;;  %v885_v22 = vpop.permute.xlu1 %884  ;;  %39713 = vst [vmem:[#allocation23_spill] sm:$0xff] %v36328_v57 }
 0x1d5   : >> { %v887_v23 = vsel %vm886_vm7, %v883_v8, %v885_v22  ;;  %484 = vmatmul.mubr.f32.vlgmr.msra.gmra.mxu0 %v36289_v17  ;;  %604 = vmatprep.subr.mxu0 %v521_v19  ;;  %v522_v24 = vand.u32 4294901760, %v521_v19  ;;  %v529_v27 = vsub.f32 %v527_v9, %v528_v20  ;;  %v36302_v31 = vsub.f32 %v895_v18, %v36292_v21 }
 0x1d6   : >> { %v897_v25 = vsel %vm309_vm4, %v887_v23, 0  ;;  %607 = vmatpush1.msra.mxu0 %v527_v9  ;;  %640 = vmatprep.mubr.f32.mxu0 %v39423_v48  ;;  %v1863_v9 = vpop.permute.xlu0 %1862 }
 0x1d7   : >> { %v36299_v28 = vand.u32 4294901760, %v897_v25  ;;  %758 = vmatprep.subr.mxu0 %v522_v24  ;;  %v523_v29 = vsub.f32 %v521_v19, %v522_v24  ;;  %v530_v38 = vand.u32 4294901760, %v529_v27  ;;  %v1015_v43 = vand.u32 4294901760, %v36302_v31 }
 0x1d8   : >> { %v891_v32 = vpop.permute.xlu1 %890 }
 0x1d9   : >> { %v1008_v34 = vsub.f32 %v897_v25, %v36299_v28  ;;  %v892_v35 = vsel %vm402_vm5, %v891_v32, 0  ;;  %643 = vmatmul.mubr.f32.vlgmr.msra.gmra.mxu0 %v36272_v54  ;;  %v524_v36 = vand.u32 4294901760, %v523_v29  ;;  %v1016_v61 = vsub.f32 %v36302_v31, %v1015_v43 }
 0x1da   : >> { %v36308_v37 = vand.u32 4294901760, %v892_v35  ;;  %762 = vmatpush1.msra.mxu0 %v528_v20  ;;  %795 = vmatprep.mubr.f32.mxu0 %v39423_v48  ;;  %v36351_v20 = vand.u32 4294901760, %v36328_v57 }
 0x1db   : >> { %930 = vmatprep.subr.mxu0 %v36299_v28  ;;  %525 = vmatprep.subr.mxu1 %v524_v36  ;;  %v1009_v39 = vand.u32 4294901760, %v1008_v34  ;;  %v1017_v19 = vand.u32 4294901760, %v1016_v61 }
 0x1dc   : >> { %39709 = vst [vmem:[#allocation19_spill] sm:$0xff] %v36308_v37  ;;  %v36315_v41 = vsub.f32 %v892_v35, %v36308_v37  ;;  %531 = vmatpush1.msra.mxu1 %v530_v38  ;;  %v1370_v42 = vpop.permute.xlu1 %1369  ;;  %39715 = vst [vmem:[#allocation25_spill] sm:$0xff] %v36351_v20 }
 0x1dd   : >> { %v1377_v46 = vsel %vm1373_vm8, 0.0, %v1370_v42  ;;  %566 = vmatmul.mubr.f32.vlgmr.msra.gmra.mxu1 %v36269_v53  ;;  %680 = vmatprep.subr.mxu1 %v442_v11  ;;  %v1010_v47 = vsub.f32 %v1008_v34, %v1009_v39 }
 0x1de   : >> { %39711 = vst [vmem:[#allocation21_spill] sm:$0xff] %v36315_v41  ;;  %v1378_v51 = vmul.f32 %v39697_v13, %v1377_v46  ;;  %797 = vmatmul.mubr.f32.vlgmr.msra.gmra.mxu0 %v36269_v53  ;;  %682 = vmatpush1.msra.mxu1 %v36284_v6  ;;  %v36324_v52 = vand.u32 4294901760, %v36315_v41 }
 0x1df   : >> { %932 = vmatpush1.msra.mxu0 %v36292_v21  ;;  %834 = vmatprep.subr.mxu1 %v442_v11  ;;  %v1011_v56 = vand.u32 4294901760, %v1010_v47 }
 0x1e0   : >> { %39712 = vst [vmem:[#allocation22_spill] sm:$0xff] %v36324_v52  ;;  %v1385_v58 = vsel %vm309_vm4, %v1378_v51, 0  ;;  %1091 = vmatprep.subr.mxu0 %v1008_v34  ;;  %715 = vmatprep.mubr.f32.mxu1 %v39423_v48  ;;  %v1372_v59 = vpop.permute.xlu1 %1371  ;;  %v969_v60 = vsub.f32 %v36315_v41, %v36324_v52 }
 0x1e1   : >> { %v36335_v62 = vand.u32 4294901760, %v1385_v58  ;;  %v1374_v63 = vsel %vm1373_vm8, %v1370_v42, %v1372_v59  ;;  %719 = vmatmul.mubr.f32.vlgmr.msra.gmra.mxu1 %v36275_v55  ;;  %965 = vmatprep.mubr.f32.mxu0 %v39423_v48 }
 0x1e2   : >> { %v1379_v7 = vmul.f32 %v39698_v15, %v1374_v63  ;;  %836 = vmatpush1.msra.mxu1 %v36284_v6  ;;  %869 = vmatprep.mubr.f32.mxu1 %v39423_v48  ;;  %v36343_v8 = vand.u32 4294901760, %v969_v60  ;;  %v2357_v63 = vsel %vm309_vm4, %v36218_v50, 0 }
 0x1e3   : >> { %1012 = vmatprep.subr.mxu1 %v1011_v56  ;;  %v36346_v11 = vsub.f32 %v1385_v58, %v36335_v62  ;;  %v2352_v56 = vpop.permute.xlu0 %2351 }
 0x1e4   : >> { %39714 = vst [vmem:[#allocation24_spill] sm:$0xff] %v36343_v8  ;;  %v1388_v16 = vsel %vm309_vm4, %v1379_v7, 0  ;;  %971 = vmatmul.mubr.f32.vlgmr.msra.gmra.mxu0 %v36343_v8  ;;  %v1861_v18 = vpop.permute.xlu1 %1860  ;;  %v2353_v61 = vsel %vm402_vm5, %v2352_v56, 0 }
 0x1e5   : >> { %v36353_v6 = vand.u32 4294901760, %v1388_v16  ;;  %1094 = vmatpush1.msra.mxu0 %v36302_v31  ;;  %v1865_v22 = vsel %vm1864_vm9, %v1861_v18, %v1863_v9  ;;  %v1868_v23 = vsel %vm1864_vm9, 0.0, %v1861_v18  ;;  %871 = vmatmul.mubr.f32.vlgmr.msra.gmra.mxu1 %v36269_v53  ;;  %v1460_v31 = vsub.f32 %v36328_v57, %v36351_v20 }
 0x1e6   : >> { %v1869_v24 = vmul.f32 %v39695_v12, %v1868_v23  ;;  %v1870_v25 = vmul.f32 %v39696_v14, %v1865_v22  ;;  %1018 = vmatpush1.msra.mxu1 %v1017_v19  ;;  %1245 = vmatprep.subr.mxu0 %v1009_v39  ;;  %v1506_v32 = vand.u32 4294901760, %v36346_v11  ;;  %v36414_v7 = vand.u32 4294901760, %v2353_v61 }
 0x1e7   : >> { %1167 = vmatprep.subr.mxu1 %v36299_v28  ;;  %1127 = vmatprep.mubr.f32.mxu0 %v39423_v48  ;;  %v1499_v27 = vsub.f32 %v1388_v16, %v36353_v6  ;;  %v36388_v46 = vand.u32 4294901760, %v1460_v31  ;;  %v36423_v18 = vand.u32 4294901760, %v2357_v63  ;;  %v2355_v19 = vsel %vm309_vm4, %v36212_v49, 0 }
 0x1e8   : >> { %v1879_v29 = vsel %vm309_vm4, %v1870_v25, 0  ;;  %1051 = vmatprep.mubr.f32.mxu1 %v39423_v48  ;;  %1130 = vmatmul.mubr.f32.vlgmr.msra.gmra.mxu0 %v36315_v41  ;;  %v1872_v30 = vpop.permute.xlu1 %1871  ;;  %v1876_v33 = vsel %vm309_vm4, %v1869_v24, 0  ;;  %v1507_v47 = vsub.f32 %v36346_v11, %v1506_v32  ;;  %39720 = vst [vmem:[#allocation30_spill] sm:$0xff] %v36414_v7  ;;  %v36433_v23 = vsub.f32 %v2353_v61, %v36414_v7 }
 0x1e9   : >> { %v36371_v34 = vand.u32 4294901760, %v1879_v29  ;;  %1249 = vmatpush1.msra.mxu0 %v1015_v43  ;;  %v1873_v35 = vsel %vm402_vm5, %v1872_v30, 0  ;;  %1053 = vmatmul.mubr.f32.vlgmr.msra.gmra.mxu1 %v36308_v37  ;;  %v1500_v36 = vand.u32 4294901760, %v1499_v27  ;;  %v36381_v42 = vand.u32 4294901760, %v1876_v33  ;;  %39718 = vst [vmem:[#allocation28_spill] sm:$0xff] %v36388_v46 }
 0x1ea   : >> { %v36375_v38 = vand.u32 4294901760, %v1873_v35  ;;  %1169 = vmatpush1.msra.mxu1 %v36292_v21  ;;  %1421 = vmatprep.subr.mxu0 %v36353_v6  ;;  %v1508_v59 = vand.u32 4294901760, %v1507_v47  ;;  %39721 = vst [vmem:[#allocation31_spill] sm:$0xff] %v36433_v23  ;;  %v36440_v25 = vand.u32 4294901760, %v2355_v19 }
 0x1eb   : >> { %1321 = vmatprep.subr.mxu1 %v36299_v28  ;;  %1282 = vmatprep.mubr.f32.mxu0 %v39423_v48  ;;  %v1501_v39 = vsub.f32 %v1499_v27, %v1500_v36  ;;  %v36394_v51 = vsub.f32 %v1879_v29, %v36371_v34  ;;  %v36399_v58 = vsub.f32 %v1876_v33, %v36381_v42 }
 0x1ec   : >> { %39716 = vst [vmem:[#allocation26_spill] sm:$0xff] %v36375_v38  ;;  %v36384_v43 = vsub.f32 %v1873_v35, %v36375_v38  ;;  %1202 = vmatprep.mubr.f32.mxu1 %v39423_v48  ;;  %1284 = vmatmul.mubr.f32.vlgmr.msra.gmra.mxu0 %v36308_v37  ;;  %v2832_v9 = vpop.permute.xlu1 %2831  ;;  %v36445_v29 = vsub.f32 %v2357_v63, %v36423_v18  ;;  %v36455_v35 = vand.u32 4294901760, %v36433_v23 }
 0x1ed   : >> { %1423 = vmatpush1.msra.mxu0 %v36335_v62  ;;  %1206 = vmatmul.mubr.f32.vlgmr.msra.gmra.mxu1 %v36324_v52  ;;  %v1502_v28 = vand.u32 4294901760, %v1501_v39  ;;  %v1997_v16 = vand.u32 4294901760, %v36399_v58  ;;  %v2837_v22 = vsel %vm2833_vm10, %v2832_v9, 0.0 }
 0x1ee   : >> { %39717 = vst [vmem:[#allocation27_spill] sm:$0xff] %v36384_v43  ;;  %1323 = vmatpush1.msra.mxu1 %v36292_v21  ;;  %1582 = vmatprep.subr.mxu0 %v1499_v27  ;;  %v36404_v60 = vand.u32 4294901760, %v36384_v43  ;;  %v1991_v21 = vand.u32 4294901760, %v36394_v51  ;;  %v2830_v27 = vpop.permute.xlu0 %2829  ;;  %v2839_v31 = vmul.f32 %v39698_v15, %v2837_v22  ;;  %39723 = vst [vmem:[#allocation33_spill] sm:$0xff] %v36455_v35  ;;  %v2469_v47 = vand.u32 4294901760, %v36445_v29 }
 0x1ef   : >> { %1456 = vmatprep.mubr.f32.mxu0 %v39423_v48  ;;  %1503 = vmatprep.subr.mxu1 %v1502_v28  ;;  %v1998_v49 = vsub.f32 %v36399_v58, %v1997_v16  ;;  %v2834_v30 = vsel %vm2833_vm10, %v2830_v27, %v2832_v9 }
 0x1f0   : >> { %1356 = vmatprep.mubr.f32.mxu1 %v39423_v48  ;;  %1462 = vmatmul.mubr.f32.vlgmr.msra.gmra.mxu0 %v36388_v46  ;;  %39719 = vst [vmem:[#allocation29_spill] sm:$0xff] %v36404_v60  ;;  %v1992_v50 = vsub.f32 %v36394_v51, %v1991_v21  ;;  %v2838_v39 = vmul.f32 %v39697_v13, %v2834_v30  ;;  %v2848_v28 = vsel %vm309_vm4, %v2839_v31, 0 }
 0x1f1   : >> { %1585 = vmatpush1.msra.mxu0 %v36346_v11  ;;  %1358 = vmatmul.mubr.f32.vlgmr.msra.gmra.mxu1 %v36308_v37  ;;  %v1951_v11 = vsub.f32 %v36384_v43, %v36404_v60  ;;  %v1999_v33 = vand.u32 4294901760, %v1998_v49  ;;  %v2470_v63 = vsub.f32 %v36445_v29, %v2469_v47 }
 0x1f2   : >> { %1509 = vmatpush1.msra.mxu1 %v1508_v59  ;;  %1736 = vmatprep.subr.mxu0 %v1500_v36  ;;  %v36458_v36 = vsub.f32 %v2355_v19, %v36440_v25  ;;  %v2845_v61 = vsel %vm309_vm4, %v2838_v39, 0 }
 0x1f3   : >> { %1658 = vmatprep.subr.mxu1 %v36353_v6  ;;  %1618 = vmatprep.mubr.f32.mxu0 %v39423_v48  ;;  %v36437_v24 = vand.u32 4294901760, %v1951_v11 }
 0x1f4   : >> { %1542 = vmatprep.mubr.f32.mxu1 %v39423_v48  ;;  %1621 = vmatmul.mubr.f32.vlgmr.msra.gmra.mxu0 %v36328_v57  ;;  %v2475_v59 = vand.u32 4294901760, %v36458_v36 }
 0x1f5   : >> { %1740 = vmatpush1.msra.mxu0 %v1506_v32  ;;  %1544 = vmatmul.mubr.f32.vlgmr.msra.gmra.mxu1 %v36312_v40  ;;  %39722 = vst [vmem:[#allocation32_spill] sm:$0xff] %v36437_v24  ;;  %v2841_v32 = vpop.permute.xlu1 %2840 }
 0x1f6   : >> { %1660 = vmatpush1.msra.mxu1 %v36335_v62  ;;  %1912 = vmatprep.subr.mxu0 %v36371_v34  ;;  %v2476_v22 = vsub.f32 %v36458_v36, %v2475_v59 }
 0x1f7   : >> { %1812 = vmatprep.subr.mxu1 %v36353_v6  ;;  %1773 = vmatprep.mubr.f32.mxu0 %v39423_v48  ;;  %v1993_v6 = vand.u32 4294901760, %v1992_v50  ;;  %v36485_v50 = vand.u32 4294901760, %v2845_v61 }
 0x1f8   : >> { %1693 = vmatprep.mubr.f32.mxu1 %v39423_v48  ;;  %1775 = vmatmul.mubr.f32.vlgmr.msra.gmra.mxu0 %v36312_v40 }
 0x1f9   : >> { %1914 = vmatpush1.msra.mxu0 %v36381_v42  ;;  %1697 = vmatmul.mubr.f32.vlgmr.msra.gmra.mxu1 %v36351_v20  ;;  %v3321_v11 = vpop.permute.xlu1 %3320  ;;  %v36506_v31 = vsub.f32 %v2845_v61, %v36485_v50 }
 0x1fa   : >> { %1814 = vmatpush1.msra.mxu1 %v36335_v62  ;;  %2073 = vmatprep.subr.mxu0 %v36394_v51  ;;  %v2842_v62 = vsel %vm402_vm5, %v2841_v32, 0  ;;  %v3323_v51 = vpop.permute.xlu0 %3322  ;;  %v2477_v32 = vand.u32 4294901760, %v2476_v22 }
 0x1fb   : >> { %1994 = vmatprep.subr.mxu1 %v1993_v6  ;;  %1947 = vmatprep.mubr.f32.mxu0 %v39423_v48  ;;  %v36468_v56 = vand.u32 4294901760, %v2842_v62  ;;  %v3328_v9 = vsel %vm3324_vm11, %v3323_v51, 0.0  ;;  %v3325_v6 = vsel %vm3324_vm11, %v3321_v11, %v3323_v51  ;;  %v2966_v51 = vand.u32 4294901760, %v36506_v31 }
 0x1fc   : >> { %1847 = vmatprep.mubr.f32.mxu1 %v39423_v48  ;;  %1953 = vmatmul.mubr.f32.vlgmr.msra.gmra.mxu0 %v36437_v24  ;;  %v3330_v27 = vmul.f32 %v39696_v14, %v3328_v9 }
 0x1fd   : >> { %2076 = vmatpush1.msra.mxu0 %v36399_v58  ;;  %1849 = vmatmul.mubr.f32.vlgmr.msra.gmra.mxu1 %v36312_v40  ;;  %39724 = vst [vmem:[#allocation34_spill] sm:$0xff] %v36468_v56  ;;  %v2429_v58 = vsub.f32 %v36433_v23, %v36455_v35  ;;  %v36488_v19 = vsub.f32 %v2842_v62, %v36468_v56 }
 0x1fe   : >> { %2000 = vmatpush1.msra.mxu1 %v1999_v33  ;;  %2227 = vmatprep.subr.mxu0 %v1991_v21  ;;  %v36476_v21 = vand.u32 4294901760, %v2848_v28  ;;  %v3332_v30 = vpop.permute.xlu0 %3331  ;;  %v3339_v62 = vsel %vm309_vm4, %v3330_v27, 0  ;;  %v2967_v22 = vsub.f32 %v36506_v31, %v2966_v51 }
 0x1ff   : >> { %2149 = vmatprep.subr.mxu1 %v36371_v34  ;;  %2109 = vmatprep.mubr.f32.mxu0 %v39423_v48  ;;  %39725 = vst [vmem:[#allocation35_spill] sm:$0xff] %v36488_v19  ;;  %v36511_v33 = vand.u32 4294901760, %v36488_v19  ;;  %v3333_v39 = vsel %vm402_vm5, %v3332_v30, 0 }
 0x200   : >> { %2033 = vmatprep.mubr.f32.mxu1 %v39423_v48  ;;  %2112 = vmatmul.mubr.f32.vlgmr.msra.gmra.mxu0 %v36384_v43  ;;  %v36498_v49 = vsub.f32 %v2848_v28, %v36476_v21  ;;  %v36521_v28 = vand.u32 4294901760, %v3333_v39 }
 0x201   : >> { %2231 = vmatpush1.msra.mxu0 %v1997_v16  ;;  %2035 = vmatmul.mubr.f32.vlgmr.msra.gmra.mxu1 %v36375_v38  ;;  %v36492_v16 = vand.u32 4294901760, %v2429_v58  ;;  %39727 = vst [vmem:[#allocation37_spill] sm:$0xff] %v36511_v33  ;;  %v36528_v58 = vand.u32 4294901760, %v3339_v62 }
 0x202   : >> { %2151 = vmatpush1.msra.mxu1 %v36381_v42  ;;  %2390 = vmatprep.subr.mxu0 %v36423_v18  ;;  %39728 = vst [vmem:[#allocation38_spill] sm:$0xff] %v36521_v28  ;;  %v36538_v9 = vsub.f32 %v3333_v39, %v36521_v28  ;;  %v3812_v27 = vpop.permute.xlu0 %3811  ;;  %v2968_v39 = vand.u32 4294901760, %v2967_v22 }
 0x203   : >> { %2303 = vmatprep.subr.mxu1 %v36371_v34  ;;  %2264 = vmatprep.mubr.f32.mxu0 %v39423_v48  ;;  %39726 = vst [vmem:[#allocation36_spill] sm:$0xff] %v36492_v16  ;;  %v2471_v34 = vand.u32 4294901760, %v2470_v63  ;;  %v3814_v63 = vpop.permute.xlu1 %3813 }
 0x204   : >> { %2184 = vmatprep.mubr.f32.mxu1 %v39423_v48  ;;  %2266 = vmatmul.mubr.f32.vlgmr.msra.gmra.mxu0 %v36375_v38  ;;  %39729 = vst [vmem:[#allocation39_spill] sm:$0xff] %v36538_v9 }
 0x205   : >> { %2392 = vmatpush1.msra.mxu0 %v36440_v25  ;;  %2188 = vmatmul.mubr.f32.vlgmr.msra.gmra.mxu1 %v36404_v60 }
 0x206   : >> { %2305 = vmatpush1.msra.mxu1 %v36381_v42  ;;  %2551 = vmatprep.subr.mxu0 %v36445_v29  ;;  %v3329_v42 = vmul.f32 %v39695_v12, %v3325_v6  ;;  %v2960_v29 = vand.u32 4294901760, %v36498_v49  ;;  %v3818_v6 = vsel %vm3815_vm12, %v3814_v63, 0.0 }
 0x207   : >> { %2472 = vmatprep.subr.mxu1 %v2471_v34  ;;  %2425 = vmatprep.mubr.f32.mxu0 %v39423_v48  ;;  %v36550_v34 = vsub.f32 %v3339_v62, %v36528_v58  ;;  %v3816_v62 = vsel %vm3815_vm12, %v3812_v27, %v3814_v63 }
 0x208   : >> { %2338 = vmatprep.mubr.f32.mxu1 %v39423_v48  ;;  %2431 = vmatmul.mubr.f32.vlgmr.msra.gmra.mxu0 %v36492_v16  ;;  %v3336_v61 = vsel %vm309_vm4, %v3329_v42, 0  ;;  %v36562_v42 = vand.u32 4294901760, %v36538_v9  ;;  %v3823_v63 = vsel %vm309_vm4, %v3816_v62, 0 }
 0x209   : >> { %2554 = vmatpush1.msra.mxu0 %v36458_v36  ;;  %2340 = vmatmul.mubr.f32.vlgmr.msra.gmra.mxu1 %v36375_v38  ;;  %v2920_v36 = vsub.f32 %v36488_v19, %v36511_v33  ;;  %v36540_v11 = vand.u32 4294901760, %v3336_v61 }
 0x20a   : >> { %2478 = vmatpush1.msra.mxu1 %v2477_v32  ;;  %2705 = vmatprep.subr.mxu0 %v2469_v47  ;;  %v2961_v47 = vsub.f32 %v36498_v49, %v2960_v29  ;;  %v3820_v32 = vpop.permute.xlu1 %3819  ;;  %39731 = vst [vmem:[#allocation41_spill] sm:$0xff] %v36562_v42 }
 0x20b   : >> { %2627 = vmatprep.subr.mxu1 %v36423_v18  ;;  %2587 = vmatprep.mubr.f32.mxu0 %v39423_v48  ;;  %v36557_v30 = vsub.f32 %v3336_v61, %v36540_v11  ;;  %v4301_v61 = vpop.permute.xlu0 %4300 }
 0x20c   : >> { %2511 = vmatprep.mubr.f32.mxu1 %v39423_v48  ;;  %2590 = vmatmul.mubr.f32.vlgmr.msra.gmra.mxu0 %v36433_v23  ;;  %v4306_v27 = vsel %vm4302_vm13, %v4301_v61, 0.0 }
 0x20d   : >> { %2709 = vmatpush1.msra.mxu0 %v2475_v59  ;;  %2513 = vmatmul.mubr.f32.vlgmr.msra.gmra.mxu1 %v36414_v7  ;;  %v36544_v59 = vand.u32 4294901760, %v2920_v36  ;;  %v3826_v36 = vsel %vm309_vm4, %v3818_v6, 0  ;;  %v4308_v0 = vmul.f32 %v39698_v15, %v4306_v27 }
 0x20e   : >> { %2629 = vmatpush1.msra.mxu1 %v36440_v25  ;;  %2881 = vmatprep.subr.mxu0 %v36476_v21  ;;  %v4299_v6 = vpop.permute.xlu1 %4298 }
 0x20f   : >> { %2781 = vmatprep.subr.mxu1 %v36423_v18  ;;  %2742 = vmatprep.mubr.f32.mxu0 %v39423_v48  ;;  %39730 = vst [vmem:[#allocation40_spill] sm:$0xff] %v36544_v59  ;;  %v2962_v18 = vand.u32 4294901760, %v2961_v47  ;;  %v3457_v47 = vand.u32 4294901760, %v36557_v30  ;;  %v4317_v27 = vsel %vm309_vm4, %v4308_v0, 0 }
 0x210   : >> { %2662 = vmatprep.mubr.f32.mxu1 %v39423_v48  ;;  %2744 = vmatmul.mubr.f32.vlgmr.msra.gmra.mxu0 %v36414_v7 }
 0x211   : >> { %2883 = vmatpush1.msra.mxu0 %v36485_v50  ;;  %2666 = vmatmul.mubr.f32.vlgmr.msra.gmra.mxu1 %v36455_v35  ;;  %v3458_v62 = vsub.f32 %v36557_v30, %v3457_v47 }
 0x212   : >> { %2783 = vmatpush1.msra.mxu1 %v36440_v25  ;;  %3042 = vmatprep.subr.mxu0 %v36498_v49  ;;  %v3821_v25 = vsel %vm402_vm5, %v3820_v32, 0  ;;  %v3451_v49 = vand.u32 4294901760, %v36550_v34  ;;  %v36589_v32 = vand.u32 4294901760, %v3823_v63 }
 0x213   : >> { %2963 = vmatprep.subr.mxu1 %v2962_v18  ;;  %2916 = vmatprep.mubr.f32.mxu0 %v39423_v48  ;;  %v36573_v22 = vand.u32 4294901760, %v3821_v25 }
 0x214   : >> { %2816 = vmatprep.mubr.f32.mxu1 %v39423_v48  ;;  %2922 = vmatmul.mubr.f32.vlgmr.msra.gmra.mxu0 %v36544_v59  ;;  %v3452_v18 = vsub.f32 %v36550_v34, %v3451_v49 }
 0x215   : >> { %3045 = vmatpush1.msra.mxu0 %v36506_v31  ;;  %2818 = vmatmul.mubr.f32.vlgmr.msra.gmra.mxu1 %v36414_v7  ;;  %39732 = vst [vmem:[#allocation42_spill] sm:$0xff] %v36573_v22  ;;  %v3411_v31 = vsub.f32 %v36538_v9, %v36562_v42 }
 0x216   : >> { %2969 = vmatpush1.msra.mxu1 %v2968_v39  ;;  %3196 = vmatprep.subr.mxu0 %v2960_v29  ;;  %v36580_v29 = vand.u32 4294901760, %v3826_v36  ;;  %v36592_v39 = vsub.f32 %v3821_v25, %v36573_v22  ;;  %v4303_v25 = vsel %vm4302_vm13, %v4299_v6, %v4301_v61 }
 0x217   : >> { %3118 = vmatprep.subr.mxu1 %v36476_v21  ;;  %3078 = vmatprep.mubr.f32.mxu0 %v39423_v48  ;;  %v4307_v61 = vmul.f32 %v39697_v13, %v4303_v25 }
 0x218   : >> { %3002 = vmatprep.mubr.f32.mxu1 %v39423_v48  ;;  %3081 = vmatmul.mubr.f32.vlgmr.msra.gmra.mxu0 %v36488_v19  ;;  %39733 = vst [vmem:[#allocation43_spill] sm:$0xff] %v36592_v39  ;;  %v3937_v3 = vsub.f32 %v3826_v36, %v36580_v29  ;;  %v3943_v19 = vsub.f32 %v3823_v63, %v36589_v32  ;;  %v36611_v36 = vand.u32 4294901760, %v36592_v39 }
 0x219   : >> { %3200 = vmatpush1.msra.mxu0 %v2966_v51  ;;  %3004 = vmatmul.mubr.f32.vlgmr.msra.gmra.mxu1 %v36468_v56  ;;  %v36596_v51 = vand.u32 4294901760, %v3411_v31  ;;  %v39735_v31 = vmov 0.0   ;;  %v4314_v0 = vsel %vm309_vm4, %v4307_v61, 0 }
 0x21a   : >> { %3120 = vmatpush1.msra.mxu1 %v36485_v50  ;;  %3372 = vmatprep.subr.mxu0 %v36528_v58  ;;  %39736 = vst [vmem:[#allocation45_spill] sm:$0xff] %v36611_v36  ;;  %v3944_v6 = vand.u32 4294901760, %v3943_v19 }
 0x21b   : >> { %3272 = vmatprep.subr.mxu1 %v36476_v21  ;;  %3233 = vmatprep.mubr.f32.mxu0 %v39423_v48  ;;  %39734 = vst [vmem:[#allocation44_spill] sm:$0xff] %v36596_v51  ;;  %v3453_v21 = vand.u32 4294901760, %v3452_v18  ;;  %v3459_v18 = vand.u32 4294901760, %v3458_v62  ;;  %v36626_v62 = vand.u32 4294901760, %v4317_v27 }
 0x21c   : >> { %3153 = vmatprep.mubr.f32.mxu1 %v39423_v48  ;;  %3235 = vmatmul.mubr.f32.vlgmr.msra.gmra.mxu0 %v36468_v56  ;;  %v4310_v48 = vpop.permute.xlu0 %4309  ;;  %v3945_v25 = vsub.f32 %v3943_v19, %v3944_v6 }
 0x21d   : >> { %3374 = vmatpush1.msra.mxu0 %v36540_v11  ;;  %3157 = vmatmul.mubr.f32.vlgmr.msra.gmra.mxu1 %v36511_v33 }
 0x21e   : >> { %3274 = vmatpush1.msra.mxu1 %v36485_v50  ;;  %3533 = vmatprep.subr.mxu0 %v36550_v34  ;;  %v3938_v50 = vand.u32 4294901760, %v3937_v3  ;;  %v4311_v34 = vsel %vm402_vm5, %v4310_v48, 0 }
 0x21f   : >> { %3454 = vmatprep.subr.mxu1 %v3453_v21  ;;  %3407 = vmatprep.mubr.f32.mxu0 %v39735_v31  ;;  %v36622_v63 = vand.u32 4294901760, %v4311_v34 }
 0x220   : >> { %3307 = vmatprep.mubr.f32.mxu1 %v39735_v31  ;;  %3413 = vmatmul.mubr.f32.vlgmr.msra.gmra.mxu0 %v36596_v51  ;;  %v3939_v48 = vsub.f32 %v3937_v3, %v3938_v50 }
 0x221   : >> { %3536 = vmatpush1.msra.mxu0 %v36557_v30  ;;  %3309 = vmatmul.mubr.f32.vlgmr.msra.gmra.mxu1 %v36468_v56  ;;  %39737 = vst [vmem:[#allocation46_spill] sm:$0xff] %v36622_v63  ;;  %v3898_v30 = vsub.f32 %v36592_v39, %v36611_v36  ;;  %v36639_v21 = vsub.f32 %v4311_v34, %v36622_v63  ;;  %v3946_v34 = vand.u32 4294901760, %v3945_v25 }
 0x222   : >> { %3460 = vmatpush1.msra.mxu1 %v3459_v18  ;;  %3687 = vmatprep.subr.mxu0 %v3451_v49  ;;  %v36634_v49 = vand.u32 4294901760, %v4314_v0  ;;  %v3940_v18 = vand.u32 4294901760, %v3939_v48 }
 0x223   : >> { %3609 = vmatprep.subr.mxu1 %v36528_v58  ;;  %3569 = vmatprep.mubr.f32.mxu0 %v39735_v31  ;;  %39738 = vst [vmem:[#allocation47_spill] sm:$0xff] %v36639_v21 }
 0x224   : >> { %3493 = vmatprep.mubr.f32.mxu1 %v39735_v31  ;;  %3572 = vmatmul.mubr.f32.vlgmr.msra.gmra.mxu0 %v36538_v9  ;;  %v4434_v61 = vsub.f32 %v4314_v0, %v36634_v49 }
 0x225   : >> { %3691 = vmatpush1.msra.mxu0 %v3457_v47  ;;  %3495 = vmatmul.mubr.f32.vlgmr.msra.gmra.mxu1 %v36521_v28  ;;  %v36641_v47 = vand.u32 4294901760, %v3898_v30  ;;  %v36652_v30 = vand.u32 4294901760, %v36639_v21 }
 0x226   : >> { %3611 = vmatpush1.msra.mxu1 %v36540_v11  ;;  %3859 = vmatprep.subr.mxu0 %v36580_v29 }
 0x227   : >> { %3763 = vmatprep.subr.mxu1 %v36528_v58  ;;  %3724 = vmatprep.mubr.f32.mxu0 %v39735_v31  ;;  %39739 = vst [vmem:[#allocation48_spill] sm:$0xff] %v36641_v47  ;;  %v4428_v58 = vsub.f32 %v4317_v27, %v36626_v62  ;;  %39740 = vst [vmem:[#allocation49_spill] sm:$0xff] %v36652_v30 }
 0x228   : >> { %3644 = vmatprep.mubr.f32.mxu1 %v39735_v31  ;;  %3726 = vmatmul.mubr.f32.vlgmr.msra.gmra.mxu0 %v36521_v28 }
 0x229   : >> { %3861 = vmatpush1.msra.mxu0 %v36589_v32  ;;  %3648 = vmatmul.mubr.f32.vlgmr.msra.gmra.mxu1 %v36562_v42  ;;  %v4429_v27 = vand.u32 4294901760, %v4428_v58 }
 0x22a   : >> { %3765 = vmatpush1.msra.mxu1 %v36540_v11  ;;  %4020 = vmatprep.subr.mxu0 %v3937_v3  ;;  %v4435_v3 = vand.u32 4294901760, %v4434_v61  ;;  %v4389_v11 = vsub.f32 %v36639_v21, %v36652_v30 }
 0x22b   : >> { %3941 = vmatprep.subr.mxu1 %v3940_v18  ;;  %3894 = vmatprep.mubr.f32.mxu0 %v39735_v31 }
 0x22c   : >> { %3798 = vmatprep.mubr.f32.mxu1 %v39735_v31  ;;  %3900 = vmatmul.mubr.f32.vlgmr.msra.gmra.mxu0 %v36641_v47  ;;  %v4436_v0 = vsub.f32 %v4434_v61, %v4435_v3 }
 0x22d   : >> { %4023 = vmatpush1.msra.mxu0 %v3943_v19  ;;  %3800 = vmatmul.mubr.f32.vlgmr.msra.gmra.mxu1 %v36521_v28  ;;  %v4430_v19 = vsub.f32 %v4428_v58, %v4429_v27 }
 0x22e   : >> { %3947 = vmatpush1.msra.mxu1 %v3946_v34  ;;  %4174 = vmatprep.subr.mxu0 %v3938_v50  ;;  %v36668_v50 = vand.u32 4294901760, %v4389_v11 }
 0x22f   : >> { %4096 = vmatprep.subr.mxu1 %v36580_v29  ;;  %4056 = vmatprep.mubr.f32.mxu0 %v39735_v31 }
 0x230   : >> { %3980 = vmatprep.mubr.f32.mxu1 %v39735_v31  ;;  %4059 = vmatmul.mubr.f32.vlgmr.msra.gmra.mxu0 %v36592_v39  ;;  %39741 = vst [vmem:[#allocation50_spill] sm:$0xff] %v36668_v50 }
 0x231   : >> { %4178 = vmatpush1.msra.mxu0 %v3944_v6  ;;  %3982 = vmatmul.mubr.f32.vlgmr.msra.gmra.mxu1 %v36573_v22  ;;  %v4431_v6 = vand.u32 4294901760, %v4430_v19 }
 0x232   : >> { %4098 = vmatpush1.msra.mxu1 %v36589_v32  ;;  %4350 = vmatprep.subr.mxu0 %v36626_v62 }
 0x233   : >> { %4250 = vmatprep.subr.mxu1 %v36580_v29  ;;  %4211 = vmatprep.mubr.f32.mxu0 %v39735_v31  ;;  %v4437_v29 = vand.u32 4294901760, %v4436_v0 }
 0x234   : >> { %4131 = vmatprep.mubr.f32.mxu1 %v39735_v31  ;;  %4213 = vmatmul.mubr.f32.vlgmr.msra.gmra.mxu0 %v36573_v22 }
 0x235   : >> { %4352 = vmatpush1.msra.mxu0 %v36634_v49  ;;  %4135 = vmatmul.mubr.f32.vlgmr.msra.gmra.mxu1 %v36611_v36 }
 0x236   : >> { %4252 = vmatpush1.msra.mxu1 %v36589_v32  ;;  %4511 = vmatprep.subr.mxu0 %v4428_v58 }
 0x237   : >> { %4432 = vmatprep.subr.mxu1 %v4431_v6  ;;  %4385 = vmatprep.mubr.f32.mxu0 %v39735_v31 }
 0x238   : >> { %4285 = vmatprep.mubr.f32.mxu1 %v39735_v31  ;;  %4391 = vmatmul.mubr.f32.vlgmr.msra.gmra.mxu0 %v36668_v50 }
 0x239   : >> { %4514 = vmatpush1.msra.mxu0 %v4434_v61  ;;  %4287 = vmatmul.mubr.f32.vlgmr.msra.gmra.mxu1 %v36573_v22 }
 0x23a   : >> { %4438 = vmatpush1.msra.mxu1 %v4437_v29  ;;  %4665 = vmatprep.subr.mxu0 %v4429_v27 }
 0x23b   : >> { %4587 = vmatprep.subr.mxu1 %v36626_v62  ;;  %4547 = vmatprep.mubr.f32.mxu0 %v39735_v31 }
 0x23c   : >> { %4471 = vmatprep.mubr.f32.mxu1 %v39735_v31  ;;  %4550 = vmatmul.mubr.f32.vlgmr.msra.gmra.mxu0 %v36639_v21 }
 0x23d   : >> { %4669 = vmatpush1.msra.mxu0 %v4435_v3  ;;  %4473 = vmatmul.mubr.f32.vlgmr.msra.gmra.mxu1 %v36622_v63 }
 0x23e   : >> { %4589 = vmatpush1.msra.mxu1 %v36634_v49  ;;  %4702 = vmatprep.mubr.f32.mxu0 %v39735_v31 }
 0x23f   : >> { %4741 = vmatprep.subr.mxu1 %v36626_v62  ;;  %4622 = vmatprep.mubr.f32.mxu1 %v39735_v31 }
 0x240   : >> { %4704 = vmatmul.mubr.f32.vlgmr.msra.gmra.mxu0 %v36622_v63 }
 0x241   : >> { %4626 = vmatmul.mubr.f32.vlgmr.msra.gmra.mxu1 %v36652_v30  ;;  %4955 = vmatprep.mubr.f32.mxu0 %v39735_v31 }
 0x242   : >> { %4743 = vmatpush1.msra.mxu1 %v36634_v49  ;;  %4776 = vmatprep.mubr.f32.mxu1 %v39735_v31 }
 0x245   : >> { %4778 = vmatmul.mubr.f32.vlgmr.msra.gmra.mxu1 %v36622_v63 }
 0x246   : >> { %5041 = vmatprep.mubr.f32.mxu1 %v39735_v31 }
 0x295   : >> { %v485_v32 = vpop.f32.mrf.mxu0 }
 0x297   : >> { %v487_v48 = vpop.f32.mrf.mxu0 }
 0x299   : >> { %v644_v62 = vpop.f32.mrf.mxu0 }
 0x29b   : >> { %v646_v25 = vpop.f32.mrf.mxu0 }
 0x29d   : >> { %v567_v18 = vpop.f32.mrf.mxu1 }
 0x29e   : >> { %v568_v58 = vadd.f32 %v567_v18, %v485_v32  ;;  %v798_v61 = vpop.f32.mrf.mxu0  ;;  %v379_v18 = vpop.permute.xlu1 %378 }
 0x29f   : >> { %v569_v34 = vpop.f32.mrf.mxu1 }
 0x2a0   : >> { %v570_v27 = vadd.f32 %v569_v34, %v487_v48  ;;  %v645_v3 = vadd.f32 %v644_v62, %v568_v58  ;;  %v800_v11 = vpop.f32.mrf.mxu0 }
 0x2a1   : >> { %v720_v19 = vpop.f32.mrf.mxu1 }
 0x2a2   : >> { %v721_v49 = vadd.f32 %v720_v19, %v645_v3  ;;  %v647_v0 = vadd.f32 %v646_v25, %v570_v27  ;;  %v39451_v25 = vstv %s36694_s10 }
 0x2a3   : >> { %v722_v6 = vpop.f32.mrf.mxu1 }
 0x2a4   : >> { %v972_v29 = vpop.f32.mrf.mxu0  ;;  %v799_v30 = vadd.f32 %v798_v61, %v721_v49  ;;  %v723_v21 = vadd.f32 %v722_v6, %v647_v0  ;;  %v36698_v49 = vrot.slane %v379_v18, %v36195_v26  ;;  %v376_v0 = vmul.f32 %v39451_v25, %v39743_v2 }
 0x2a5   : >> { %v872_v63 = vpop.f32.mrf.mxu1 }
 0x2a6   : >> { %v873_v50 = vadd.f32 %v872_v63, %v799_v30  ;;  %v974_v36 = vpop.f32.mrf.mxu0  ;;  %v801_v62 = vadd.f32 %v800_v11, %v723_v21  ;;  %39742 = vst [vmem:[#allocation51_spill] sm:$0xff] %v36698_v49 }
 0x2a7   : >> { %v874_v22 = vpop.f32.mrf.mxu1 }
 0x2a8   : >> { %v1131_v32 = vpop.f32.mrf.mxu0  ;;  %v875_v30 = vadd.f32 %v874_v22, %v801_v62 }
 0x2a9   : >> { %v1054_v48 = vpop.f32.mrf.mxu1 }
 0x2aa   : >> { %v1055_v58 = vadd.f32 %v1054_v48, %v972_v29  ;;  %v1133_v34 = vpop.f32.mrf.mxu0  ;;  %v879_v28 = vcombine.low %v873_v50, %v875_v30 }
 0x2ab   : >> { %v1056_v27 = vpop.f32.mrf.mxu1 }
 0x2ac   : >> { %v1057_v3 = vadd.f32 %v1056_v27, %v974_v36  ;;  %v1285_v19 = vpop.f32.mrf.mxu0  ;;  %v1132_v61 = vadd.f32 %v1131_v32, %v1055_v58  ;;  %v388_v36 = vadd.f32 %v36698_v49, %v376_v0 }
 0x2ad   : >> { %v1207_v63 = vpop.f32.mrf.mxu1 }
 0x2ae   : >> { %v1208_v6 = vadd.f32 %v1207_v63, %v1132_v61  ;;  %v1287_v39 = vpop.f32.mrf.mxu0  ;;  %v1134_v47 = vadd.f32 %v1133_v34, %v1057_v3  ;;  %v881_v51 = vadd.f32 %v879_v28, %v388_v36 }
 0x2af   : >> { %v1209_v21 = vpop.f32.mrf.mxu1 }
 0x2b0   : >> { %v1210_v11 = vadd.f32 %v1209_v21, %v1134_v47  ;;  %v1463_v29 = vpop.f32.mrf.mxu0  ;;  %v1286_v48 = vadd.f32 %v1285_v19, %v1208_v6 }
 0x2b1   : >> { %v1359_v42 = vpop.f32.mrf.mxu1 }
 0x2b2   : >> { %v1360_v32 = vadd.f32 %v1359_v42, %v1286_v48  ;;  %v1465_v58 = vpop.f32.mrf.mxu0  ;;  %v1288_v18 = vadd.f32 %v1287_v39, %v1210_v11 }
 0x2b3   : >> { %v1361_v27 = vpop.f32.mrf.mxu1 }
 0x2b4   : >> { %v1362_v9 = vadd.f32 %v1361_v27, %v1288_v18  ;;  %v1622_v22 = vpop.f32.mrf.mxu0 }
 0x2b5   : >> { %v1545_v62 = vpop.f32.mrf.mxu1 }
 0x2b6   : >> { %v1366_v25 = vcombine.low %v1360_v32, %v1362_v9  ;;  %v1546_v61 = vadd.f32 %v1545_v62, %v1463_v29  ;;  %v1624_v63 = vpop.f32.mrf.mxu0 }
 0x2b7   : >> { %v1547_v34 = vpop.f32.mrf.mxu1 }
 0x2b8   : >> { %v1368_v3 = vadd.f32 %v1366_v25, %v881_v51  ;;  %v1548_v47 = vadd.f32 %v1547_v34, %v1465_v58  ;;  %v1776_v21 = vpop.f32.mrf.mxu0  ;;  %v1623_v19 = vadd.f32 %v1622_v22, %v1546_v61 }
 0x2b9   : >> { %v1698_v6 = vpop.f32.mrf.mxu1 }
 0x2ba   : >> { %v1699_v50 = vadd.f32 %v1698_v6, %v1623_v19  ;;  %v1778_v30 = vpop.f32.mrf.mxu0  ;;  %v1625_v0 = vadd.f32 %v1624_v63, %v1548_v47 }
 0x2bb   : >> { %v1700_v42 = vpop.f32.mrf.mxu1 }
 0x2bc   : >> { %v1701_v48 = vadd.f32 %v1700_v42, %v1625_v0  ;;  %v1954_v39 = vpop.f32.mrf.mxu0  ;;  %v1777_v11 = vadd.f32 %v1776_v21, %v1699_v50 }
 0x2bd   : >> { %v1850_v18 = vpop.f32.mrf.mxu1 }
 0x2be   : >> { %v1956_v27 = vpop.f32.mrf.mxu0  ;;  %v1779_v49 = vadd.f32 %v1778_v30, %v1701_v48  ;;  %v1851_v9 = vadd.f32 %v1850_v18, %v1777_v11 }
 0x2bf   : >> { %v1852_v28 = vpop.f32.mrf.mxu1 }
 0x2c0   : >> { %v1853_v29 = vadd.f32 %v1852_v28, %v1779_v49  ;;  %v2113_v36 = vpop.f32.mrf.mxu0 }
 0x2c1   : >> { %v2036_v32 = vpop.f32.mrf.mxu1 }
 0x2c2   : >> { %v1857_v51 = vcombine.low %v1851_v9, %v1853_v29  ;;  %v2115_v25 = vpop.f32.mrf.mxu0  ;;  %v2037_v8 = vadd.f32 %v2036_v32, %v1954_v39 }
 0x2c3   : >> { %v2038_v58 = vpop.f32.mrf.mxu1 }
 0x2c4   : >> { %v36704_v22 = vadd.f32 %v1857_v51, %v1368_v3  ;;  %v36706_v62 = vpop.f32.mrf.mxu0  ;;  %v2039_v52 = vadd.f32 %v2038_v58, %v1956_v27  ;;  %v2114_v15 = vadd.f32 %v2113_v36, %v2037_v8 }
 0x2c5   : >> { %v2189_v61 = vpop.f32.mrf.mxu1 }
 0x2c6   : >> { %v36708_v63 = vpop.f32.mrf.mxu0  ;;  %v2116_v17 = vadd.f32 %v2115_v25, %v2039_v52 }
 0x2c7   : >> { %v2191_v34 = vpop.f32.mrf.mxu1 }
 0x2c8   : >> { %v2432_v47 = vpop.f32.mrf.mxu0  ;;  %v2192_v26 = vadd.f32 %v2191_v34, %v2116_v17 }
 0x2c9   : >> { %v36710_v21 = vpop.f32.mrf.mxu1 }
 0x2ca   : >> { %v2434_v19 = vpop.f32.mrf.mxu0 }
 0x2cb   : >> { %v36712_v6 = vpop.f32.mrf.mxu1 }
 0x2cc   : >> { %v2591_v49 = vpop.f32.mrf.mxu0 }
 0x2cd   : >> { %v2514_v50 = vpop.f32.mrf.mxu1 }
 0x2ce   : >> { %v2593_v30 = vpop.f32.mrf.mxu0  ;;  %v2515_v45 = vadd.f32 %v2514_v50, %v2432_v47 }
 0x2cf   : >> { %v2516_v0 = vpop.f32.mrf.mxu1 }
 0x2d0   : >> { %v36714_v42 = vpop.f32.mrf.mxu0  ;;  %v2517_v55 = vadd.f32 %v2516_v0, %v2434_v19  ;;  %v2592_v27 = vadd.f32 %v2591_v49, %v2515_v45  ;;  %v2190_v19 = vadd.f32 %v2189_v61, %v2114_v15 }
 0x2d1   : >> { %v2667_v3 = vpop.f32.mrf.mxu1 }
 0x2d2   : >> { %v36716_v48 = vpop.f32.mrf.mxu0  ;;  %v2594_v13 = vadd.f32 %v2593_v30, %v2517_v55  ;;  %v2270_v55 = vadd.f32 %v36708_v63, %v2192_v26 }
 0x2d3   : >> { %v2669_v11 = vpop.f32.mrf.mxu1 }
 0x2d4   : >> { %v2923_v18 = vpop.f32.mrf.mxu0  ;;  %v2670_v0 = vadd.f32 %v2669_v11, %v2594_v13 }
 0x2d5   : >> { %v36718_v28 = vpop.f32.mrf.mxu1 }
 0x2d6   : >> { %v2925_v9 = vpop.f32.mrf.mxu0 }
 0x2d7   : >> { %v36720_v29 = vpop.f32.mrf.mxu1 }
 0x2d8   : >> { %v3082_v51 = vpop.f32.mrf.mxu0 }
 0x2d9   : >> { %v3005_v2 = vpop.f32.mrf.mxu1 }
 0x2da   : >> { %v3084_v33 = vpop.f32.mrf.mxu0  ;;  %v3006_v31 = vadd.f32 %v3005_v2, %v2923_v18  ;;  %v2668_v2 = vadd.f32 %v2667_v3, %v2592_v27 }
 0x2db   : >> { %v3007_v56 = vpop.f32.mrf.mxu1 }
 0x2dc   : >> { %v36722_v59 = vpop.f32.mrf.mxu0  ;;  %v3008_v44 = vadd.f32 %v3007_v56, %v2925_v9  ;;  %v3083_v52 = vadd.f32 %v3082_v51, %v3006_v31 }
 0x2dd   : >> { %v3158_v35 = vpop.f32.mrf.mxu1 }
 0x2de   : >> { %v3238_v7 = vpop.f32.mrf.mxu0  ;;  %v3085_v58 = vadd.f32 %v3084_v33, %v3008_v44  ;;  %v2268_v44 = vadd.f32 %v36706_v62, %v2190_v19  ;;  %v3159_v15 = vadd.f32 %v3158_v35, %v3083_v52 }
 0x2df   : >> { %v3160_v23 = vpop.f32.mrf.mxu1 }
 0x2e0   : >> { %v3414_v16 = vpop.f32.mrf.mxu0  ;;  %v3161_v8 = vadd.f32 %v3160_v23, %v3085_v58  ;;  %v2342_v31 = vadd.f32 %v36710_v21, %v2268_v44  ;;  %v3237_v62 = vadd.f32 %v36722_v59, %v3159_v15  ;;  %v36087_v15 = vmov 2  }
 0x2e1   : >> { %v36724_v60 = vpop.f32.mrf.mxu1  ;;  %36012 = vset.pattern.permute.xlu0 %v36087_v15  ;;  %v39756_v15 = vld [vmem:[#allocation8_spill] sm:$0xff] }
 0x2e2   : >> { %v3416_v38 = vpop.f32.mrf.mxu0  ;;  %v3239_v26 = vadd.f32 %v3238_v7, %v3161_v8  ;;  %v3311_v3 = vadd.f32 %v36724_v60, %v3237_v62 }
 0x2e3   : >> { %v36726_v43 = vpop.f32.mrf.mxu1 }
 0x2e4   : >> { %v3573_v24 = vpop.f32.mrf.mxu0 }
 0x2e5   : >> { %v3496_v20 = vpop.f32.mrf.mxu1 }
 0x2e6   : >> { %v3575_v40 = vpop.f32.mrf.mxu0  ;;  %v3497_v39 = vadd.f32 %v3496_v20, %v3414_v16  ;;  %v2748_v20 = vadd.f32 %v36716_v48, %v2670_v0 }
 0x2e7   : >> { %v3498_v57 = vpop.f32.mrf.mxu1 }
 0x2e8   : >> { %v36728_v46 = vpop.f32.mrf.mxu0  ;;  %v3499_v12 = vadd.f32 %v3498_v57, %v3416_v38  ;;  %v3574_v38 = vadd.f32 %v3573_v24, %v3497_v39  ;;  %v2822_v36 = vadd.f32 %v36720_v29, %v2748_v20 }
 0x2e9   : >> { %v3649_v37 = vpop.f32.mrf.mxu1 }
 0x2ea   : >> { %v3729_v41 = vpop.f32.mrf.mxu0  ;;  %v3576_v56 = vadd.f32 %v3575_v40, %v3499_v12  ;;  %v3650_v40 = vadd.f32 %v3649_v37, %v3574_v38 }
 0x2eb   : >> { %v3651_v53 = vpop.f32.mrf.mxu1 }
 0x2ec   : >> { %v3901_v54 = vpop.f32.mrf.mxu0  ;;  %v3652_v16 = vadd.f32 %v3651_v53, %v3576_v56  ;;  %v3728_v37 = vadd.f32 %v36728_v46, %v3650_v40 }
 0x2ed   : >> { %v36730_v10 = vpop.f32.mrf.mxu1 }
 0x2ee   : >> { %v3903_v4 = vpop.f32.mrf.mxu0  ;;  %v3730_v61 = vadd.f32 %v3729_v41, %v3652_v16  ;;  %v39744_v16 = vld [vmem:[#allocation6_spill] sm:$0xff] }
 0x2ef   : >> { %v3803_v14 = vpop.f32.mrf.mxu1 }
 0x2f0   : >> { %v4060_v1 = vpop.f32.mrf.mxu0  ;;  %v3804_v59 = vadd.f32 %v3803_v14, %v3730_v61 }
 0x2f1   : >> { %v3983_v5 = vpop.f32.mrf.mxu1 }
 0x2f2   : >> { %v4062_v32 = vpop.f32.mrf.mxu0  ;;  %v3984_v47 = vadd.f32 %v3983_v5, %v3901_v54  ;;  %v2746_v5 = vadd.f32 %v36714_v42, %v2668_v2 }
 0x2f3   : >> { %v3985_v25 = vpop.f32.mrf.mxu1 }
 0x2f4   : >> { %v3986_v50 = vadd.f32 %v3985_v25, %v3903_v4  ;;  %v4214_v9 = vpop.f32.mrf.mxu0  ;;  %v4061_v33 = vadd.f32 %v4060_v1, %v3984_v47  ;;  %v2344_v4 = vadd.f32 %v36712_v6, %v2270_v55  ;;  %v2820_v34 = vadd.f32 %v36718_v28, %v2746_v5 }
 0x2f5   : >> { %v4136_v57 = vpop.f32.mrf.mxu1  ;;  %v3313_v6 = vadd.f32 %v36726_v43, %v3239_v26  ;;  %v3802_v43 = vadd.f32 %v36730_v10, %v3728_v37 }
 0x2f6   : >> { %v4216_v17 = vpop.f32.mrf.mxu0  ;;  %v4063_v45 = vadd.f32 %v4062_v32, %v3986_v50  ;;  %v4137_v53 = vadd.f32 %v4136_v57, %v4061_v33  ;;  %v2348_v63 = vcombine.low %v2342_v31, %v2344_v4  ;;  %v2826_v21 = vcombine.low %v2820_v34, %v2822_v36  ;;  %v39745_v4 = vld [vmem:[#allocation12_spill] sm:$0xff] }
 0x2f7   : >> { %v4138_v13 = vpop.f32.mrf.mxu1  ;;  %v3317_v51 = vcombine.low %v3311_v3, %v3313_v6  ;;  %v3808_v0 = vcombine.low %v3802_v43, %v3804_v59  ;;  %v36089_v3 = vmov 7  }
 0x2f8   : >> { %v4392_v12 = vpop.f32.mrf.mxu0  ;;  %v4139_v23 = vadd.f32 %v4138_v13, %v4063_v45  ;;  %v4215_v11 = vadd.f32 %v4214_v9, %v4137_v53  ;;  %v2350_v29 = vadd.f32 %v2348_v63, %v36704_v22  ;;  %v36088_v13 = vmov 3  }
 0x2f9   : >> { %v4288_v54 = vpop.f32.mrf.mxu1  ;;  %36013 = vset.pattern.permute.xlu1 %v36088_v13 }
 0x2fa   : >> { %v4394_v24 = vpop.f32.mrf.mxu0  ;;  %v4217_v49 = vadd.f32 %v4216_v17, %v4139_v23  ;;  %v2828_v32 = vadd.f32 %v2826_v21, %v2350_v29  ;;  %v4289_v52 = vadd.f32 %v4288_v54, %v4215_v11  ;;  %v39748_v21 = vld [vmem:[#allocation3_spill] sm:$0xff] }
 0x2fb   : >> { %v4290_v35 = vpop.f32.mrf.mxu1 }
 0x2fc   : >> { %v4551_v1 = vpop.f32.mrf.mxu0  ;;  %v4291_v58 = vadd.f32 %v4290_v35, %v4217_v49  ;;  %v3319_v47 = vadd.f32 %v3317_v51, %v2828_v32  ;;  %v39752_v51 = vld [vmem:[#allocation7_spill] sm:$0xff]  ;;  %v39753_v32 = vld [vmem:[#allocation9_spill] sm:$0xff] }
 0x2fd   : >> { %v4474_v7 = vpop.f32.mrf.mxu1 }
 0x2fe   : >> { %v4475_v30 = vadd.f32 %v4474_v7, %v4392_v12  ;;  %v4553_v42 = vpop.f32.mrf.mxu0  ;;  %v4295_v50 = vcombine.low %v4289_v52, %v4291_v58  ;;  %v3810_v55 = vadd.f32 %v3808_v0, %v3319_v47 }
 0x2ff   : >> { %v4476_v48 = vpop.f32.mrf.mxu1 }
 0x300   : >> { %v4477_v41 = vadd.f32 %v4476_v48, %v4394_v24  ;;  %v4552_v18 = vadd.f32 %v4551_v1, %v4475_v30  ;;  %v4705_v28 = vpop.f32.mrf.mxu0  ;;  %v4297_v57 = vadd.f32 %v4295_v50, %v3810_v55  ;;  %v4881_v48 = vsel %vm402_vm5, %v39748_v21, 0 }
 0x301   : >> { %v4627_v27 = vpop.f32.mrf.mxu1  ;;  %v36819_v59 = vand.u32 4294901760, %v4881_v48 }
 0x302   : >> { %v4628_v46 = vadd.f32 %v4627_v27, %v4552_v18  ;;  %v4554_v39 = vadd.f32 %v4553_v42, %v4477_v41  ;;  %v4707_v14 = vpop.f32.mrf.mxu0 }
 0x303   : >> { %v4629_v19 = vpop.f32.mrf.mxu1  ;;  %39749 = vst [vmem:[#allocation54_spill] sm:$0xff] %v36819_v59  ;;  %v36822_v11 = vsub.f32 %v4881_v48, %v36819_v59 }
 0x304   : >> { %v4630_v60 = vadd.f32 %v4629_v19, %v4554_v39  ;;  %v4706_v25 = vadd.f32 %v4705_v28, %v4628_v46 }
 0x305   : >> { %v4779_v56 = vpop.f32.mrf.mxu1  ;;  %39750 = vst [vmem:[#allocation55_spill] sm:$0xff] %v36822_v11  ;;  %v36826_v29 = vand.u32 4294901760, %v36822_v11 }
 0x306   : >> { %v4708_v9 = vadd.f32 %v4707_v14, %v4630_v60  ;;  %v4780_v2 = vadd.f32 %v4779_v56, %v4706_v25 }
 0x307   : >> { %v4781_v22 = vpop.f32.mrf.mxu1  ;;  %39751 = vst [vmem:[#allocation56_spill] sm:$0xff] %v36826_v29  ;;  %v4959_v39 = vsub.f32 %v36822_v11, %v36826_v29 }
 0x308   : >> { %v4782_v8 = vadd.f32 %v4781_v22, %v4708_v9 }
 0x309   : >> { %v36839_v56 = vand.u32 4294901760, %v4959_v39 }
 0x30a   : >> { %v4786_v10 = vcombine.low %v4780_v2, %v4782_v8 }
 0x30b   : >> { %39754 = vst [vmem:[#allocation57_spill] sm:$0xff] %v36839_v56 }
 0x30c   : >> { %v4788_v38 = vadd.f32 %v4786_v10, %v4297_v57 }
 0x30e   : >> { %v4790_v17 = vcombine.high %v4788_v38, %v4788_v38  ;;  %v4792_v45 = vsel %vm309_vm4, %v4788_v38, 0.0 }
 0x310   : >> { %v4793_v44 = vsel %vm309_vm4, %v4790_v17, 0.0  ;;  %v39755_v17 = vmov 0.0  }
 0x311   : >> { %v4794_v20 = vadd.f32 %v4793_v44, %v4792_v45 }
 0x313   : >> { %4795 = vadd.xlane.f32.xlu0 %v4794_v20 }
 0x329   : >> { %4831 = vperm.xlu0 %36012, %v39744_v16  }
 0x39c   : >> { %v4796_v33 = vpop.xlane.xlu0 %4795 }
 0x39d   : >> { %v4797_v12 = vmul.f32 0.00390625, %v4796_v33 }
 0x39f   : >> { %v4805_v5 = vrot.slane %v4797_v12, %v39745_v4 }
 0x3a1   : >> { %v4807_v26 = vsub.f32 %v4788_v38, %v4805_v5 }
 0x3a3   : >> { %v4808_v54 = vmul.f32 %v4807_v26, %v4807_v26 }
 0x3a4   : >> { %v4832_v61 = vpop.permute.xlu0 %4831 }
 0x3a5   : >> { %v4810_v40 = vcombine.high %v4808_v54, %v4808_v54  ;;  %v4812_v23 = vsel %vm309_vm4, %v4808_v54, 0.0  ;;  %v36755_v34 = vrot.slane %v4832_v61, %v39745_v4 }
 0x3a7   : >> { %v4813_v24 = vsel %vm309_vm4, %v4810_v40, 0.0  ;;  %39746 = vst [vmem:[#allocation52_spill] sm:$0xff] %v36755_v34 }
 0x3a8   : >> { %v4814_v31 = vadd.f32 %v4813_v24, %v4812_v23 }
 0x3aa   : >> { %4815 = vadd.xlane.f32.xlu1 %v4814_v31 }
 0x3bb   : >> { %4843 = vperm.xlu1 %36013, %v39744_v16  }
 0x3bf   : >> { %36014 = vset.pattern.permute.xlu1 %v36089_v3 }
 0x433   : >> { %v4816_v36 = vpop.xlane.xlu1 %4815 }
 0x434   : >> { %v4817_v62 = vmul.f32 0.00390625, %v4816_v36 }
 0x436   : >> { %v4818_v35 = vadd.f32 1e-05, %v4817_v62 }
 0x437   : >> { %v4844_v1 = vpop.permute.xlu1 %4843 }
 0x438   : >> { %36020 = vrsqrt.f32 %v4818_v35  ;;  %v36758_v7 = vrot.slane %v4844_v1, %v39745_v4 }
 0x43a   : >> { %39747 = vst [vmem:[#allocation53_spill] sm:$0xff] %v36758_v7 }
 0x445   : >> { %v36021_v53 = vpop.eup %36020 }
 0x446   : >> { %v4827_v63 = vrot.slane %v36021_v53, %v39745_v4 }
 0x448   : >> { %v4829_v6 = vmul.f32 %v4827_v63, %v4807_v26 }
 0x44a   : >> { %v4841_v37 = vmul.f32 %v36755_v34, %v4829_v6 }
 0x44c   : >> { %v4853_v49 = vadd.f32 %v36758_v7, %v4841_v37  ;;  %v39760_v37 = vld [vmem:[#allocation10_spill] sm:$0xff] }
 0x44e   : >> { %v36762_v30 = vmax.f32 %v4853_v49, 0.0 }
 0x450   : >> { %5845 = vrot.lane.b32.xlu0 %v36762_v30, %s36078_s25  ;;  %4870 = vrot.lane.b32.xlu1 %v36762_v30, %s36071_s17  ;;  %v36770_v42 = vcombine.high %v36762_v30, %v36762_v30 }
 0x454   : >> { %5855 = vrot.lane.b32.xlu0 %v39748_v21, %s36072_s18  ;;  %4872 = vrot.lane.b32.xlu1 %v36770_v42, %s36071_s17 }
 0x458   : >> { %6337 = vrot.lane.b32.xlu0 %v36770_v42, %s36074_s20  ;;  %5359 = vrot.lane.b32.xlu1 %v36762_v30, %s36073_s19 }
 0x45c   : >> { %6825 = vrot.lane.b32.xlu0 %v39748_v21, %s36075_s22  ;;  %5361 = vrot.lane.b32.xlu1 %v36770_v42, %s36073_s19 }
 0x460   : >> { %7303 = vrot.lane.b32.xlu0 %v36762_v30, %s36077_s24  ;;  %5366 = vrot.lane.b32.xlu1 %v39748_v21, %s36076_s23 }
 0x464   : >> { %7795 = vrot.lane.b32.xlu0 %v36770_v42, %s36079_s26  ;;  %5847 = vrot.lane.b32.xlu1 %v36770_v42, %s36078_s25 }
 0x468   : >> { %7803 = vrot.lane.b32.xlu0 %v39748_v21, %s36080_s27  ;;  %6335 = vrot.lane.b32.xlu1 %v36762_v30, %s36074_s20 }
 0x46c   : >> { %8283 = vrot.lane.b32.xlu0 %v36762_v30, %s36075_s22  ;;  %6345 = vrot.lane.b32.xlu1 %v39748_v21, %s36081_s28 }
 0x470   : >> { %8771 = vrot.lane.b32.xlu0 %v36770_v42, %s36082_s29  ;;  %7305 = vrot.lane.b32.xlu1 %v36770_v42, %s36077_s24 }
 0x474   : >> { %7313 = vrot.lane.b32.xlu1 %v39748_v21, %s36084_s7  ;;  %8779 = vrot.lane.b32.xlu0 %v39748_v21, %s36083_s30 }
 0x478   : >> { %7793 = vrot.lane.b32.xlu1 %v36762_v30, %s36079_s26 }
 0x47c   : >> { %8285 = vrot.lane.b32.xlu1 %v36770_v42, %s36075_s22 }
 0x480   : >> { %8290 = vrot.lane.b32.xlu1 %v39748_v21, %s36085_s8 }
 0x484   : >> { %8769 = vrot.lane.b32.xlu1 %v36762_v30, %s36082_s29 }
 0x488   : >> { %4857 = vperm.xlu1 %36014, %v39744_v16  }
 0x4c2   : >> { %v4871_v41 = vpop.permute.xlu1 %4870  ;;  %v5846_v47 = vpop.permute.xlu0 %5845 }
 0x4c3   : >> { %v4877_v18 = vsel %vm395_vm6, 0.0, %v4871_v41  ;;  %v5852_v8 = vsel %vm1373_vm8, 0.0, %v5846_v47 }
 0x4c4   : >> { %v4878_v28 = vmul.f32 %v39752_v51, %v4877_v18  ;;  %v5853_v13 = vmul.f32 %v39756_v15, %v5852_v8 }
 0x4c6   : >> { %v4884_v27 = vsel %vm309_vm4, %v4878_v28, 0  ;;  %v4873_v43 = vpop.permute.xlu1 %4872  ;;  %v5856_v33 = vpop.permute.xlu0 %5855  ;;  %v5860_v62 = vsel %vm309_vm4, %v5853_v13, 0 }
 0x4c7   : >> { %v36830_v58 = vand.u32 4294901760, %v4884_v27  ;;  %v4874_v46 = vsel %vm395_vm6, %v4871_v41, %v4873_v43  ;;  %v5857_v26 = vsel %vm402_vm5, %v5856_v33, 0  ;;  %v36879_v48 = vand.u32 4294901760, %v5860_v62 }
 0x4c8   : >> { %v4879_v19 = vmul.f32 %v39753_v32, %v4874_v46  ;;  %v36865_v35 = vand.u32 4294901760, %v5857_v26 }
 0x4c9   : >> { %v5004_v0 = vsub.f32 %v4884_v27, %v36830_v58 }
 0x4ca   : >> { %v4887_v52 = vsel %vm309_vm4, %v4879_v19, 0  ;;  %v5360_v60 = vpop.permute.xlu1 %5359  ;;  %39758 = vst [vmem:[#allocation59_spill] sm:$0xff] %v36865_v35  ;;  %v36883_v18 = vsub.f32 %v5857_v26, %v36865_v35  ;;  %v6338_v28 = vpop.permute.xlu0 %6337 }
 0x4cb   : >> { %v4919_v25 = vand.u32 4294901760, %v4887_v52  ;;  %v5365_v14 = vsel %vm886_vm7, 0.0, %v5360_v60  ;;  %v5005_v9 = vand.u32 4294901760, %v5004_v0 }
 0x4cc   : >> { %v5371_v50 = vsel %vm309_vm4, %v5365_v14, 0  ;;  %39762 = vst [vmem:[#allocation62_spill] sm:$0xff] %v36883_v18 }
 0x4cd   : >> { %4920 = vmatprep.subr.mxu0 %v4919_v25  ;;  %v4998_v22 = vsub.f32 %v4887_v52, %v4919_v25  ;;  %v36842_v55 = vand.u32 4294901760, %v5371_v50  ;;  %v5006_v45 = vsub.f32 %v5004_v0, %v5005_v9 }
 0x4ce   : >> { %4922 = vmatpush1.msra.mxu0 %v36830_v58  ;;  %v5362_v2 = vpop.permute.xlu1 %5361 }
 0x4cf   : >> { %v5363_v57 = vsel %vm886_vm7, %v5360_v60, %v5362_v2  ;;  %4961 = vmatmul.mubr.f32.vlgmr.msra.gmra.mxu0 %v36839_v56  ;;  %5081 = vmatprep.subr.mxu0 %v4998_v22  ;;  %v4999_v10 = vand.u32 4294901760, %v4998_v22  ;;  %v36854_v12 = vsub.f32 %v5371_v50, %v36842_v55  ;;  %v5007_v31 = vand.u32 4294901760, %v5006_v45 }
 0x4d0   : >> { %v5373_v38 = vsel %vm309_vm4, %v5363_v57, 0  ;;  %5084 = vmatpush1.msra.mxu0 %v5004_v0  ;;  %5117 = vmatprep.mubr.f32.mxu0 %v39755_v17 }
 0x4d1   : >> { %v36850_v44 = vand.u32 4294901760, %v5373_v38  ;;  %5235 = vmatprep.subr.mxu0 %v4999_v10  ;;  %v5000_v20 = vsub.f32 %v4998_v22, %v4999_v10  ;;  %v5491_v1 = vand.u32 4294901760, %v36854_v12  ;;  %v36907_v22 = vand.u32 4294901760, %v36883_v18 }
 0x4d2   : >> { %v5367_v5 = vpop.permute.xlu1 %5366 }
 0x4d3   : >> { %v5484_v54 = vsub.f32 %v5373_v38, %v36850_v44  ;;  %v5368_v40 = vsel %vm402_vm5, %v5367_v5, 0  ;;  %5120 = vmatmul.mubr.f32.vlgmr.msra.gmra.mxu0 %v36822_v11  ;;  %v5001_v23 = vand.u32 4294901760, %v5000_v20  ;;  %v5492_v39 = vsub.f32 %v36854_v12, %v5491_v1  ;;  %39764 = vst [vmem:[#allocation64_spill] sm:$0xff] %v36907_v22 }
 0x4d4   : >> { %v36860_v24 = vand.u32 4294901760, %v5368_v40  ;;  %5239 = vmatpush1.msra.mxu0 %v5005_v9  ;;  %5272 = vmatprep.mubr.f32.mxu0 %v39755_v17  ;;  %v5935_v38 = vsub.f32 %v36883_v18, %v36907_v22 }
 0x4d5   : >> { %5406 = vmatprep.subr.mxu0 %v36850_v44  ;;  %5002 = vmatprep.subr.mxu1 %v5001_v23  ;;  %v5485_v36 = vand.u32 4294901760, %v5484_v54  ;;  %v5493_v9 = vand.u32 4294901760, %v5492_v39  ;;  %v6826_v23 = vpop.permute.xlu0 %6825 }
 0x4d6   : >> { %39757 = vst [vmem:[#allocation58_spill] sm:$0xff] %v36860_v24  ;;  %v36868_v61 = vsub.f32 %v5368_v40, %v36860_v24  ;;  %5008 = vmatpush1.msra.mxu1 %v5007_v31  ;;  %v5848_v53 = vpop.permute.xlu1 %5847  ;;  %v36938_v26 = vand.u32 4294901760, %v5935_v38 }
 0x4d7   : >> { %v5849_v63 = vsel %vm1373_vm8, %v5846_v47, %v5848_v53  ;;  %5043 = vmatmul.mubr.f32.vlgmr.msra.gmra.mxu1 %v36819_v59  ;;  %5157 = vmatprep.subr.mxu1 %v4919_v25  ;;  %v5486_v6 = vsub.f32 %v5484_v54, %v5485_v36  ;;  %v36903_v47 = vsub.f32 %v5860_v62, %v36879_v48  ;;  %v6827_v53 = vsel %vm402_vm5, %v6826_v23, 0 }
 0x4d8   : >> { %39759 = vst [vmem:[#allocation60_spill] sm:$0xff] %v36868_v61  ;;  %v5854_v49 = vmul.f32 %v39760_v37, %v5849_v63  ;;  %5274 = vmatmul.mubr.f32.vlgmr.msra.gmra.mxu0 %v36819_v59  ;;  %5159 = vmatpush1.msra.mxu1 %v36830_v58  ;;  %v36877_v3 = vand.u32 4294901760, %v36868_v61  ;;  %39767 = vst [vmem:[#allocation67_spill] sm:$0xff] %v36938_v26  ;;  %v36964_v63 = vand.u32 4294901760, %v6827_v53 }
 0x4d9   : >> { %5408 = vmatpush1.msra.mxu0 %v36842_v55  ;;  %5311 = vmatprep.subr.mxu1 %v4919_v25  ;;  %v5487_v41 = vand.u32 4294901760, %v5486_v6  ;;  %v5981_v45 = vand.u32 4294901760, %v36903_v47 }
 0x4da   : >> { %39761 = vst [vmem:[#allocation61_spill] sm:$0xff] %v36877_v3  ;;  %v5863_v27 = vsel %vm309_vm4, %v5854_v49, 0  ;;  %5567 = vmatprep.subr.mxu0 %v5484_v54  ;;  %5192 = vmatprep.mubr.f32.mxu1 %v39755_v17  ;;  %v6336_v43 = vpop.permute.xlu1 %6335  ;;  %v5445_v46 = vsub.f32 %v36868_v61, %v36877_v3  ;;  %39769 = vst [vmem:[#allocation69_spill] sm:$0xff] %v36964_v63 }
 0x4db   : >> { %v36890_v19 = vand.u32 4294901760, %v5863_v27  ;;  %v6339_v0 = vsel %vm1864_vm9, %v6336_v43, %v6338_v28  ;;  %5196 = vmatmul.mubr.f32.vlgmr.msra.gmra.mxu1 %v36826_v29  ;;  %5441 = vmatprep.mubr.f32.mxu0 %v39755_v17  ;;  %v6342_v52 = vsel %vm1864_vm9, 0.0, %v6336_v43  ;;  %v5982_v54 = vsub.f32 %v36903_v47, %v5981_v45 }
 0x4dc   : >> { %v6344_v60 = vmul.f32 %v39753_v32, %v6339_v0  ;;  %5313 = vmatpush1.msra.mxu1 %v36830_v58  ;;  %5346 = vmatprep.mubr.f32.mxu1 %v39755_v17  ;;  %v36899_v25 = vand.u32 4294901760, %v5445_v46  ;;  %v6343_v2 = vmul.f32 %v39752_v51, %v6342_v52  ;;  %v36983_v46 = vsub.f32 %v6827_v53, %v36964_v63  ;;  %v7304_v52 = vpop.permute.xlu0 %7303 }
 0x4dd   : >> { %5488 = vmatprep.subr.mxu1 %v5487_v41  ;;  %v5974_v14 = vsub.f32 %v5863_v27, %v36890_v19  ;;  %v6829_v27 = vsel %vm309_vm4, %v36762_v30, 0 }
 0x4de   : >> { %39763 = vst [vmem:[#allocation63_spill] sm:$0xff] %v36899_v25  ;;  %5447 = vmatmul.mubr.f32.vlgmr.msra.gmra.mxu0 %v36899_v25  ;;  %v6346_v50 = vpop.permute.xlu1 %6345  ;;  %v6353_v57 = vsel %vm309_vm4, %v6344_v60, 0  ;;  %v6350_v20 = vsel %vm309_vm4, %v6343_v2, 0  ;;  %39770 = vst [vmem:[#allocation70_spill] sm:$0xff] %v36983_v46  ;;  %v36990_v0 = vand.u32 4294901760, %v6829_v27  ;;  %v37005_v2 = vand.u32 4294901760, %v36983_v46 }
 0x4df   : >> { %5570 = vmatpush1.msra.mxu0 %v36854_v12  ;;  %v6347_v58 = vsel %vm402_vm5, %v6346_v50, 0  ;;  %5348 = vmatmul.mubr.f32.vlgmr.msra.gmra.mxu1 %v36819_v59  ;;  %v5975_v8 = vand.u32 4294901760, %v5974_v14  ;;  %v36924_v13 = vand.u32 4294901760, %v6353_v57  ;;  %v36931_v12 = vand.u32 4294901760, %v6350_v20 }
 0x4e0   : >> { %5494 = vmatpush1.msra.mxu1 %v5493_v9  ;;  %5721 = vmatprep.subr.mxu0 %v5485_v36  ;;  %v36916_v10 = vand.u32 4294901760, %v6347_v58  ;;  %v5983_v36 = vand.u32 4294901760, %v5982_v54  ;;  %39772 = vst [vmem:[#allocation72_spill] sm:$0xff] %v37005_v2 }
 0x4e1   : >> { %5643 = vmatprep.subr.mxu1 %v36850_v44  ;;  %5603 = vmatprep.mubr.f32.mxu0 %v39755_v17  ;;  %v5976_v33 = vsub.f32 %v5974_v14, %v5975_v8  ;;  %v36944_v40 = vsub.f32 %v6353_v57, %v36924_v13  ;;  %v36949_v31 = vsub.f32 %v6350_v20, %v36931_v12 }
 0x4e2   : >> { %39765 = vst [vmem:[#allocation65_spill] sm:$0xff] %v36916_v10  ;;  %5527 = vmatprep.mubr.f32.mxu1 %v39755_v17  ;;  %5606 = vmatmul.mubr.f32.vlgmr.msra.gmra.mxu0 %v36868_v61  ;;  %v36934_v5 = vsub.f32 %v6347_v58, %v36916_v10  ;;  %v7306_v6 = vpop.permute.xlu1 %7305  ;;  %v37008_v58 = vsub.f32 %v6829_v27, %v36990_v0 }
 0x4e3   : >> { %5725 = vmatpush1.msra.mxu0 %v5491_v1  ;;  %5529 = vmatmul.mubr.f32.vlgmr.msra.gmra.mxu1 %v36860_v24  ;;  %v6831_v1 = vsel %vm309_vm4, %v36770_v42, 0  ;;  %v6471_v41 = vand.u32 4294901760, %v36949_v31  ;;  %v7310_v43 = vsel %vm2833_vm10, %v7306_v6, 0.0 }
 0x4e4   : >> { %5645 = vmatpush1.msra.mxu1 %v36842_v55  ;;  %5896 = vmatprep.subr.mxu0 %v36890_v19  ;;  %39766 = vst [vmem:[#allocation66_spill] sm:$0xff] %v36934_v5  ;;  %v36954_v62 = vand.u32 4294901760, %v36934_v5  ;;  %v36973_v28 = vand.u32 4294901760, %v6831_v1  ;;  %v6949_v54 = vand.u32 4294901760, %v37008_v58 }
 0x4e5   : >> { %5797 = vmatprep.subr.mxu1 %v36850_v44  ;;  %5758 = vmatprep.mubr.f32.mxu0 %v39755_v17  ;;  %v5977_v44 = vand.u32 4294901760, %v5976_v33  ;;  %v6472_v30 = vsub.f32 %v36949_v31, %v6471_v41  ;;  %v6903_v33 = vsub.f32 %v36983_v46, %v37005_v2 }
 0x4e6   : >> { %5678 = vmatprep.mubr.f32.mxu1 %v39755_v17  ;;  %5760 = vmatmul.mubr.f32.vlgmr.msra.gmra.mxu0 %v36860_v24  ;;  %39768 = vst [vmem:[#allocation68_spill] sm:$0xff] %v36954_v62  ;;  %v6425_v49 = vsub.f32 %v36934_v5, %v36954_v62  ;;  %v36995_v60 = vsub.f32 %v6831_v1, %v36973_v28  ;;  %v7314_v50 = vpop.permute.xlu1 %7313 }
 0x4e7   : >> { %5898 = vmatpush1.msra.mxu0 %v36879_v48  ;;  %5682 = vmatmul.mubr.f32.vlgmr.msra.gmra.mxu1 %v36877_v3  ;;  %v6473_v9 = vand.u32 4294901760, %v6472_v30  ;;  %v37042_v1 = vand.u32 4294901760, %v6903_v33 }
 0x4e8   : >> { %5799 = vmatpush1.msra.mxu1 %v36842_v55  ;;  %6057 = vmatprep.subr.mxu0 %v5974_v14  ;;  %v6465_v55 = vand.u32 4294901760, %v36944_v40  ;;  %v36987_v39 = vand.u32 4294901760, %v6425_v49  ;;  %v7307_v14 = vsel %vm2833_vm10, %v7304_v52, %v7306_v6  ;;  %v6943_v57 = vand.u32 4294901760, %v36995_v60 }
 0x4e9   : >> { %5978 = vmatprep.subr.mxu1 %v5977_v44  ;;  %5931 = vmatprep.mubr.f32.mxu0 %v39755_v17  ;;  %39775 = vst [vmem:[#allocation75_spill] sm:$0xff] %v37042_v1  ;;  %v6950_v6 = vsub.f32 %v37008_v58, %v6949_v54 }
 0x4ea   : >> { %5832 = vmatprep.mubr.f32.mxu1 %v39755_v17  ;;  %5937 = vmatmul.mubr.f32.vlgmr.msra.gmra.mxu0 %v36938_v26  ;;  %v6466_v42 = vsub.f32 %v36944_v40, %v6465_v55  ;;  %39771 = vst [vmem:[#allocation71_spill] sm:$0xff] %v36987_v39  ;;  %v6944_v23 = vsub.f32 %v36995_v60, %v6943_v57 }
 0x4eb   : >> { %6060 = vmatpush1.msra.mxu0 %v36903_v47  ;;  %5834 = vmatmul.mubr.f32.vlgmr.msra.gmra.mxu1 %v36860_v24  ;;  %v7312_v47 = vmul.f32 %v39760_v37, %v7310_v43  ;;  %v6951_v30 = vand.u32 4294901760, %v6950_v6 }
 0x4ec   : >> { %5984 = vmatpush1.msra.mxu1 %v5983_v36  ;;  %6211 = vmatprep.subr.mxu0 %v5975_v8  ;;  %v7311_v8 = vmul.f32 %v39756_v15, %v7307_v14  ;;  %v7794_v36 = vpop.permute.xlu1 %7793 }
 0x4ed   : >> { %6133 = vmatprep.subr.mxu1 %v36890_v19  ;;  %6093 = vmatprep.mubr.f32.mxu0 %v39755_v17  ;;  %v7321_v38 = vsel %vm309_vm4, %v7312_v47, 0 }
 0x4ee   : >> { %6017 = vmatprep.mubr.f32.mxu1 %v39755_v17  ;;  %6096 = vmatmul.mubr.f32.vlgmr.msra.gmra.mxu0 %v36883_v18  ;;  %v7318_v44 = vsel %vm309_vm4, %v7311_v8, 0 }
 0x4ef   : >> { %6215 = vmatpush1.msra.mxu0 %v5981_v45  ;;  %6019 = vmatmul.mubr.f32.vlgmr.msra.gmra.mxu1 %v36865_v35  ;;  %v7796_v45 = vpop.permute.xlu0 %7795  ;;  %v37035_v53 = vand.u32 4294901760, %v7318_v44 }
 0x4f0   : >> { %6135 = vmatpush1.msra.mxu1 %v36879_v48  ;;  %6386 = vmatprep.subr.mxu0 %v36924_v13 }
 0x4f1   : >> { %6287 = vmatprep.subr.mxu1 %v36890_v19  ;;  %6248 = vmatprep.mubr.f32.mxu0 %v39755_v17  ;;  %v6467_v19 = vand.u32 4294901760, %v6466_v42  ;;  %v7797_v42 = vsel %vm3324_vm11, %v7794_v36, %v7796_v45  ;;  %v37056_v43 = vsub.f32 %v7318_v44, %v37035_v53 }
 0x4f2   : >> { %6168 = vmatprep.mubr.f32.mxu1 %v39755_v17  ;;  %6250 = vmatmul.mubr.f32.vlgmr.msra.gmra.mxu0 %v36865_v35 }
 0x4f3   : >> { %6388 = vmatpush1.msra.mxu0 %v36931_v12  ;;  %6172 = vmatmul.mubr.f32.vlgmr.msra.gmra.mxu1 %v36907_v22  ;;  %v7804_v27 = vpop.permute.xlu0 %7803 }
 0x4f4   : >> { %6289 = vmatpush1.msra.mxu1 %v36879_v48  ;;  %6547 = vmatprep.subr.mxu0 %v36944_v40  ;;  %v7315_v48 = vsel %vm402_vm5, %v7314_v50, 0  ;;  %v37026_v40 = vand.u32 4294901760, %v7321_v38 }
 0x4f5   : >> { %6468 = vmatprep.subr.mxu1 %v6467_v19  ;;  %6421 = vmatprep.mubr.f32.mxu0 %v39755_v17  ;;  %v37018_v20 = vand.u32 4294901760, %v7315_v48  ;;  %v7805_v19 = vsel %vm402_vm5, %v7804_v27, 0 }
 0x4f6   : >> { %6322 = vmatprep.mubr.f32.mxu1 %v39755_v17  ;;  %6427 = vmatmul.mubr.f32.vlgmr.msra.gmra.mxu0 %v36987_v39  ;;  %v37048_v49 = vsub.f32 %v7321_v38, %v37026_v40  ;;  %v37071_v47 = vand.u32 4294901760, %v7805_v19 }
 0x4f7   : >> { %6550 = vmatpush1.msra.mxu0 %v36949_v31  ;;  %6324 = vmatmul.mubr.f32.vlgmr.msra.gmra.mxu1 %v36865_v35  ;;  %39773 = vst [vmem:[#allocation73_spill] sm:$0xff] %v37018_v20  ;;  %v7800_v31 = vsel %vm3324_vm11, %v7796_v45, 0.0 }
 0x4f8   : >> { %6474 = vmatpush1.msra.mxu1 %v6473_v9  ;;  %6701 = vmatprep.subr.mxu0 %v6465_v55  ;;  %v37038_v55 = vsub.f32 %v7315_v48, %v37018_v20  ;;  %39777 = vst [vmem:[#allocation77_spill] sm:$0xff] %v37071_v47  ;;  %v7439_v9 = vand.u32 4294901760, %v37056_v43  ;;  %v37088_v38 = vsub.f32 %v7805_v19, %v37071_v47 }
 0x4f9   : >> { %6623 = vmatprep.subr.mxu1 %v36924_v13  ;;  %6583 = vmatprep.mubr.f32.mxu0 %v39755_v17 }
 0x4fa   : >> { %6507 = vmatprep.mubr.f32.mxu1 %v39755_v17  ;;  %6586 = vmatmul.mubr.f32.vlgmr.msra.gmra.mxu0 %v36934_v5  ;;  %39774 = vst [vmem:[#allocation74_spill] sm:$0xff] %v37038_v55  ;;  %v37061_v52 = vand.u32 4294901760, %v37038_v55  ;;  %39778 = vst [vmem:[#allocation78_spill] sm:$0xff] %v37088_v38 }
 0x4fb   : >> { %6705 = vmatpush1.msra.mxu0 %v6471_v41  ;;  %6509 = vmatmul.mubr.f32.vlgmr.msra.gmra.mxu1 %v36916_v10  ;;  %v7802_v41 = vmul.f32 %v39753_v32, %v7800_v31 }
 0x4fc   : >> { %6625 = vmatpush1.msra.mxu1 %v36931_v12  ;;  %6864 = vmatprep.subr.mxu0 %v36973_v28  ;;  %39776 = vst [vmem:[#allocation76_spill] sm:$0xff] %v37061_v52  ;;  %v7393_v50 = vsub.f32 %v37038_v55, %v37061_v52 }
 0x4fd   : >> { %6777 = vmatprep.subr.mxu1 %v36924_v13  ;;  %6738 = vmatprep.mubr.f32.mxu0 %v39755_v17  ;;  %v6945_v13 = vand.u32 4294901760, %v6944_v23  ;;  %v7811_v14 = vsel %vm309_vm4, %v7802_v41, 0  ;;  %v8284_v23 = vpop.permute.xlu0 %8283  ;;  %v37112_v41 = vand.u32 4294901760, %v37088_v38 }
 0x4fe   : >> { %6658 = vmatprep.mubr.f32.mxu1 %v39755_v17  ;;  %6740 = vmatmul.mubr.f32.vlgmr.msra.gmra.mxu0 %v36916_v10  ;;  %v37094_v33 = vand.u32 4294901760, %v7393_v50 }
 0x4ff   : >> { %6866 = vmatpush1.msra.mxu0 %v36990_v0  ;;  %6662 = vmatmul.mubr.f32.vlgmr.msra.gmra.mxu1 %v36954_v62  ;;  %39780 = vst [vmem:[#allocation80_spill] sm:$0xff] %v37112_v41 }
 0x500   : >> { %6779 = vmatpush1.msra.mxu1 %v36931_v12  ;;  %7025 = vmatprep.subr.mxu0 %v36995_v60  ;;  %v7801_v12 = vmul.f32 %v39752_v51, %v7797_v42  ;;  %v7433_v60 = vand.u32 4294901760, %v37048_v49  ;;  %39779 = vst [vmem:[#allocation79_spill] sm:$0xff] %v37094_v33 }
 0x501   : >> { %6946 = vmatprep.subr.mxu1 %v6945_v13  ;;  %6899 = vmatprep.mubr.f32.mxu0 %v39755_v17 }
 0x502   : >> { %6812 = vmatprep.mubr.f32.mxu1 %v39755_v17  ;;  %6905 = vmatmul.mubr.f32.vlgmr.msra.gmra.mxu0 %v37042_v1  ;;  %v7808_v8 = vsel %vm309_vm4, %v7801_v12, 0  ;;  %v7434_v48 = vsub.f32 %v37048_v49, %v7433_v60 }
 0x503   : >> { %7028 = vmatpush1.msra.mxu0 %v37008_v58  ;;  %6814 = vmatmul.mubr.f32.vlgmr.msra.gmra.mxu1 %v36916_v10  ;;  %v37078_v58 = vand.u32 4294901760, %v7811_v14  ;;  %v37090_v45 = vand.u32 4294901760, %v7808_v8 }
 0x504   : >> { %6952 = vmatpush1.msra.mxu1 %v6951_v30  ;;  %7179 = vmatprep.subr.mxu0 %v6943_v57  ;;  %v8286_v57 = vpop.permute.xlu1 %8285  ;;  %v8772_v30 = vpop.permute.xlu0 %8771 }
 0x505   : >> { %7101 = vmatprep.subr.mxu1 %v36973_v28  ;;  %7061 = vmatprep.mubr.f32.mxu0 %v39755_v17  ;;  %v37100_v44 = vsub.f32 %v7811_v14, %v37078_v58  ;;  %v8289_v31 = vsel %vm3815_vm12, %v8286_v57, 0.0  ;;  %v37107_v36 = vsub.f32 %v7808_v8, %v37090_v45  ;;  %v8287_v42 = vsel %vm3815_vm12, %v8284_v23, %v8286_v57 }
 0x506   : >> { %6985 = vmatprep.mubr.f32.mxu1 %v39755_v17  ;;  %7064 = vmatmul.mubr.f32.vlgmr.msra.gmra.mxu0 %v36983_v46  ;;  %v8297_v27 = vsel %vm309_vm4, %v8289_v31, 0  ;;  %v8294_v14 = vsel %vm309_vm4, %v8287_v42, 0  ;;  %v8776_v8 = vsel %vm4302_vm13, %v8772_v30, 0.0 }
 0x507   : >> { %7183 = vmatpush1.msra.mxu0 %v6949_v54  ;;  %6987 = vmatmul.mubr.f32.vlgmr.msra.gmra.mxu1 %v36964_v63  ;;  %v7440_v54 = vsub.f32 %v37056_v43, %v7439_v9  ;;  %v7929_v19 = vand.u32 4294901760, %v37107_v36  ;;  %v37130_v50 = vand.u32 4294901760, %v8297_v27  ;;  %v37139_v57 = vand.u32 4294901760, %v8294_v14 }
 0x508   : >> { %7103 = vmatpush1.msra.mxu1 %v36990_v0  ;;  %7354 = vmatprep.subr.mxu0 %v37026_v40  ;;  %v8291_v6 = vpop.permute.xlu1 %8290  ;;  %v8778_v31 = vmul.f32 %v39760_v37, %v8776_v8 }
 0x509   : >> { %7255 = vmatprep.subr.mxu1 %v36973_v28  ;;  %7216 = vmatprep.mubr.f32.mxu0 %v39755_v17  ;;  %v7435_v28 = vand.u32 4294901760, %v7434_v48  ;;  %v7441_v13 = vand.u32 4294901760, %v7440_v54  ;;  %v8408_v23 = vsub.f32 %v8297_v27, %v37130_v50 }
 0x50a   : >> { %7136 = vmatprep.mubr.f32.mxu1 %v39755_v17  ;;  %7218 = vmatmul.mubr.f32.vlgmr.msra.gmra.mxu0 %v36964_v63 }
 0x50b   : >> { %7356 = vmatpush1.msra.mxu0 %v37035_v53  ;;  %7140 = vmatmul.mubr.f32.vlgmr.msra.gmra.mxu1 %v37005_v2 }
 0x50c   : >> { %7257 = vmatpush1.msra.mxu1 %v36990_v0  ;;  %7515 = vmatprep.subr.mxu0 %v37048_v49  ;;  %v8292_v0 = vsel %vm402_vm5, %v8291_v6, 0  ;;  %v7923_v49 = vand.u32 4294901760, %v37100_v44  ;;  %v8770_v48 = vpop.permute.xlu1 %8769 }
 0x50d   : >> { %7436 = vmatprep.subr.mxu1 %v7435_v28  ;;  %7389 = vmatprep.mubr.f32.mxu0 %v39755_v17  ;;  %v37123_v12 = vand.u32 4294901760, %v8292_v0  ;;  %v7930_v28 = vsub.f32 %v37107_v36, %v7929_v19  ;;  %v8773_v6 = vsel %vm4302_vm13, %v8770_v48, %v8772_v30 }
 0x50e   : >> { %7290 = vmatprep.mubr.f32.mxu1 %v39755_v17  ;;  %7395 = vmatmul.mubr.f32.vlgmr.msra.gmra.mxu0 %v37094_v33  ;;  %v8777_v30 = vmul.f32 %v39756_v15, %v8773_v6 }
 0x50f   : >> { %7518 = vmatpush1.msra.mxu0 %v37056_v43  ;;  %7292 = vmatmul.mubr.f32.vlgmr.msra.gmra.mxu1 %v36964_v63  ;;  %39781 = vst [vmem:[#allocation81_spill] sm:$0xff] %v37123_v12  ;;  %v7883_v43 = vsub.f32 %v37088_v38, %v37112_v41  ;;  %v37142_v54 = vsub.f32 %v8292_v0, %v37123_v12  ;;  %v7931_v42 = vand.u32 4294901760, %v7930_v28 }
 0x510   : >> { %7442 = vmatpush1.msra.mxu1 %v7441_v13  ;;  %7669 = vmatprep.subr.mxu0 %v7433_v60  ;;  %v7924_v60 = vsub.f32 %v37100_v44, %v7923_v49  ;;  %v8780_v13 = vpop.permute.xlu0 %8779  ;;  %v8414_v0 = vsub.f32 %v8294_v14, %v37139_v57  ;;  %v8784_v48 = vsel %vm309_vm4, %v8777_v30, 0 }
 0x511   : >> { %7591 = vmatprep.subr.mxu1 %v37026_v40  ;;  %7551 = vmatprep.mubr.f32.mxu0 %v39755_v17  ;;  %39782 = vst [vmem:[#allocation82_spill] sm:$0xff] %v37142_v54  ;;  %v37161_v27 = vand.u32 4294901760, %v37142_v54  ;;  %v37184_v28 = vand.u32 4294901760, %v8784_v48 }
 0x512   : >> { %7475 = vmatprep.mubr.f32.mxu1 %v39755_v17  ;;  %7554 = vmatmul.mubr.f32.vlgmr.msra.gmra.mxu0 %v37038_v55 }
 0x513   : >> { %7673 = vmatpush1.msra.mxu0 %v7439_v9  ;;  %7477 = vmatmul.mubr.f32.vlgmr.msra.gmra.mxu1 %v37018_v20  ;;  %v37146_v9 = vand.u32 4294901760, %v7883_v43  ;;  %39784 = vst [vmem:[#allocation84_spill] sm:$0xff] %v37161_v27  ;;  %v8787_v43 = vsel %vm309_vm4, %v8778_v31, 0 }
 0x514   : >> { %7593 = vmatpush1.msra.mxu1 %v37035_v53  ;;  %7844 = vmatprep.subr.mxu0 %v37078_v58  ;;  %v37176_v8 = vand.u32 4294901760, %v8787_v43 }
 0x515   : >> { %7745 = vmatprep.subr.mxu1 %v37026_v40  ;;  %7706 = vmatprep.mubr.f32.mxu0 %v39755_v17  ;;  %39783 = vst [vmem:[#allocation83_spill] sm:$0xff] %v37146_v9  ;;  %v7925_v40 = vand.u32 4294901760, %v7924_v60  ;;  %v8415_v60 = vand.u32 4294901760, %v8414_v0 }
 0x516   : >> { %7626 = vmatprep.mubr.f32.mxu1 %v39755_v17  ;;  %7708 = vmatmul.mubr.f32.vlgmr.msra.gmra.mxu0 %v37018_v20 }
 0x517   : >> { %7846 = vmatpush1.msra.mxu0 %v37090_v45  ;;  %7630 = vmatmul.mubr.f32.vlgmr.msra.gmra.mxu1 %v37061_v52  ;;  %v8416_v31 = vsub.f32 %v8414_v0, %v8415_v60 }
 0x518   : >> { %7747 = vmatpush1.msra.mxu1 %v37035_v53  ;;  %8005 = vmatprep.subr.mxu0 %v37100_v44  ;;  %v8409_v53 = vand.u32 4294901760, %v8408_v23  ;;  %v8781_v44 = vsel %vm402_vm5, %v8780_v13, 0  ;;  %v8904_v13 = vsub.f32 %v8784_v48, %v37184_v28 }
 0x519   : >> { %7926 = vmatprep.subr.mxu1 %v7925_v40  ;;  %7879 = vmatprep.mubr.f32.mxu0 %v39755_v17  ;;  %v37172_v14 = vand.u32 4294901760, %v8781_v44 }
 0x51a   : >> { %7780 = vmatprep.mubr.f32.mxu1 %v39755_v17  ;;  %7885 = vmatmul.mubr.f32.vlgmr.msra.gmra.mxu0 %v37146_v9 }
 0x51b   : >> { %8008 = vmatpush1.msra.mxu0 %v37107_v36  ;;  %7782 = vmatmul.mubr.f32.vlgmr.msra.gmra.mxu1 %v37018_v20  ;;  %39785 = vst [vmem:[#allocation85_spill] sm:$0xff] %v37172_v14  ;;  %v8369_v36 = vsub.f32 %v37142_v54, %v37161_v27  ;;  %v37189_v40 = vsub.f32 %v8781_v44, %v37172_v14 }
 0x51c   : >> { %7932 = vmatpush1.msra.mxu1 %v7931_v42  ;;  %8159 = vmatprep.subr.mxu0 %v7923_v49  ;;  %v8410_v49 = vsub.f32 %v8408_v23, %v8409_v53  ;;  %v8417_v42 = vand.u32 4294901760, %v8416_v31 }
 0x51d   : >> { %8081 = vmatprep.subr.mxu1 %v37078_v58  ;;  %8041 = vmatprep.mubr.f32.mxu0 %v39755_v17  ;;  %39786 = vst [vmem:[#allocation86_spill] sm:$0xff] %v37189_v40  ;;  %v37202_v30 = vand.u32 4294901760, %v37189_v40 }
 0x51e   : >> { %7965 = vmatprep.mubr.f32.mxu1 %v39755_v17  ;;  %8044 = vmatmul.mubr.f32.vlgmr.msra.gmra.mxu0 %v37088_v38  ;;  %v8411_v6 = vand.u32 4294901760, %v8410_v49 }
 0x51f   : >> { %8163 = vmatpush1.msra.mxu0 %v7929_v19  ;;  %7967 = vmatmul.mubr.f32.vlgmr.msra.gmra.mxu1 %v37071_v47  ;;  %v37191_v19 = vand.u32 4294901760, %v8369_v36  ;;  %39788 = vst [vmem:[#allocation88_spill] sm:$0xff] %v37202_v30 }
 0x520   : >> { %8083 = vmatpush1.msra.mxu1 %v37090_v45  ;;  %8330 = vmatprep.subr.mxu0 %v37130_v50 }
 0x521   : >> { %8235 = vmatprep.subr.mxu1 %v37078_v58  ;;  %8196 = vmatprep.mubr.f32.mxu0 %v39755_v17  ;;  %39787 = vst [vmem:[#allocation87_spill] sm:$0xff] %v37191_v19  ;;  %v8898_v58 = vsub.f32 %v8787_v43, %v37176_v8 }
 0x522   : >> { %8116 = vmatprep.mubr.f32.mxu1 %v39755_v17  ;;  %8198 = vmatmul.mubr.f32.vlgmr.msra.gmra.mxu0 %v37071_v47 }
 0x523   : >> { %8332 = vmatpush1.msra.mxu0 %v37139_v57  ;;  %8120 = vmatmul.mubr.f32.vlgmr.msra.gmra.mxu1 %v37112_v41  ;;  %v8899_v44 = vand.u32 4294901760, %v8898_v58 }
 0x524   : >> { %8237 = vmatpush1.msra.mxu1 %v37090_v45  ;;  %8491 = vmatprep.subr.mxu0 %v8408_v23  ;;  %v8905_v45 = vand.u32 4294901760, %v8904_v13  ;;  %v8859_v23 = vsub.f32 %v37189_v40, %v37202_v30 }
 0x525   : >> { %8412 = vmatprep.subr.mxu1 %v8411_v6  ;;  %8365 = vmatprep.mubr.f32.mxu0 %v39755_v17 }
 0x526   : >> { %8270 = vmatprep.mubr.f32.mxu1 %v39755_v17  ;;  %8371 = vmatmul.mubr.f32.vlgmr.msra.gmra.mxu0 %v37191_v19  ;;  %v8906_v43 = vsub.f32 %v8904_v13, %v8905_v45 }
 0x527   : >> { %8494 = vmatpush1.msra.mxu0 %v8414_v0  ;;  %8272 = vmatmul.mubr.f32.vlgmr.msra.gmra.mxu1 %v37071_v47  ;;  %v8900_v0 = vsub.f32 %v8898_v58, %v8899_v44 }
 0x528   : >> { %8418 = vmatpush1.msra.mxu1 %v8417_v42  ;;  %8645 = vmatprep.subr.mxu0 %v8409_v53  ;;  %v37218_v53 = vand.u32 4294901760, %v8859_v23 }
 0x529   : >> { %8567 = vmatprep.subr.mxu1 %v37130_v50  ;;  %8527 = vmatprep.mubr.f32.mxu0 %v39755_v17  ;;  %v8901_v36 = vand.u32 4294901760, %v8900_v0 }
 0x52a   : >> { %8451 = vmatprep.mubr.f32.mxu1 %v39755_v17  ;;  %8530 = vmatmul.mubr.f32.vlgmr.msra.gmra.mxu0 %v37142_v54  ;;  %39789 = vst [vmem:[#allocation89_spill] sm:$0xff] %v37218_v53 }
 0x52b   : >> { %8649 = vmatpush1.msra.mxu0 %v8415_v60  ;;  %8453 = vmatmul.mubr.f32.vlgmr.msra.gmra.mxu1 %v37123_v12 }
 0x52c   : >> { %8569 = vmatpush1.msra.mxu1 %v37139_v57  ;;  %8820 = vmatprep.subr.mxu0 %v37176_v8 }
 0x52d   : >> { %8721 = vmatprep.subr.mxu1 %v37130_v50  ;;  %8682 = vmatprep.mubr.f32.mxu0 %v39755_v17  ;;  %v8907_v50 = vand.u32 4294901760, %v8906_v43 }
 0x52e   : >> { %8602 = vmatprep.mubr.f32.mxu1 %v39755_v17  ;;  %8684 = vmatmul.mubr.f32.vlgmr.msra.gmra.mxu0 %v37123_v12 }
 0x52f   : >> { %8822 = vmatpush1.msra.mxu0 %v37184_v28  ;;  %8606 = vmatmul.mubr.f32.vlgmr.msra.gmra.mxu1 %v37161_v27 }
 0x530   : >> { %8723 = vmatpush1.msra.mxu1 %v37139_v57  ;;  %8981 = vmatprep.subr.mxu0 %v8898_v58 }
 0x531   : >> { %8902 = vmatprep.subr.mxu1 %v8901_v36  ;;  %8855 = vmatprep.mubr.f32.mxu0 %v39755_v17 }
 0x532   : >> { %8756 = vmatprep.mubr.f32.mxu1 %v39755_v17  ;;  %8861 = vmatmul.mubr.f32.vlgmr.msra.gmra.mxu0 %v37218_v53 }
 0x533   : >> { %8984 = vmatpush1.msra.mxu0 %v8904_v13  ;;  %8758 = vmatmul.mubr.f32.vlgmr.msra.gmra.mxu1 %v37123_v12 }
 0x534   : >> { %8908 = vmatpush1.msra.mxu1 %v8907_v50  ;;  %9135 = vmatprep.subr.mxu0 %v8899_v44 }
 0x535   : >> { %9057 = vmatprep.subr.mxu1 %v37176_v8  ;;  %9017 = vmatprep.mubr.f32.mxu0 %v39755_v17 }
 0x536   : >> { %8941 = vmatprep.mubr.f32.mxu1 %v39755_v17  ;;  %9020 = vmatmul.mubr.f32.vlgmr.msra.gmra.mxu0 %v37189_v40 }
 0x537   : >> { %9139 = vmatpush1.msra.mxu0 %v8905_v45  ;;  %8943 = vmatmul.mubr.f32.vlgmr.msra.gmra.mxu1 %v37172_v14 }
 0x538   : >> { %9059 = vmatpush1.msra.mxu1 %v37184_v28  ;;  %9172 = vmatprep.mubr.f32.mxu0 %v39755_v17 }
 0x539   : >> { %9211 = vmatprep.subr.mxu1 %v37176_v8  ;;  %9092 = vmatprep.mubr.f32.mxu1 %v39755_v17 }
 0x53a   : >> { %9174 = vmatmul.mubr.f32.vlgmr.msra.gmra.mxu0 %v37172_v14 }
 0x53b   : >> { %9096 = vmatmul.mubr.f32.vlgmr.msra.gmra.mxu1 %v37202_v30  ;;  %9458 = vmatprep.mubr.f32.mxu0 %v39755_v17 }
 0x53c   : >> { %9213 = vmatpush1.msra.mxu1 %v37184_v28  ;;  %9246 = vmatprep.mubr.f32.mxu1 %v39755_v17 }
 0x53f   : >> { %9248 = vmatmul.mubr.f32.vlgmr.msra.gmra.mxu1 %v37172_v14 }
 0x540   : >> { %9544 = vmatprep.mubr.f32.mxu1 %v39755_v17 }
 0x58f   : >> { %v4962_v57 = vpop.f32.mrf.mxu0 }
 0x591   : >> { %v4964_v60 = vpop.f32.mrf.mxu0 }
 0x593   : >> { %v5121_v48 = vpop.f32.mrf.mxu0 }
 0x595   : >> { %v5123_v8 = vpop.f32.mrf.mxu0 }
 0x597   : >> { %v5044_v49 = vpop.f32.mrf.mxu1 }
 0x598   : >> { %v5045_v31 = vadd.f32 %v5044_v49, %v4962_v57  ;;  %v5275_v6 = vpop.f32.mrf.mxu0 }
 0x599   : >> { %v5046_v58 = vpop.f32.mrf.mxu1 }
 0x59a   : >> { %v5047_v13 = vadd.f32 %v5046_v58, %v4964_v60  ;;  %v5122_v42 = vadd.f32 %v5121_v48, %v5045_v31  ;;  %v5277_v44 = vpop.f32.mrf.mxu0  ;;  %v4858_v60 = vpop.permute.xlu1 %4857 }
 0x59b   : >> { %v5197_v45 = vpop.f32.mrf.mxu1 }
 0x59c   : >> { %v5198_v23 = vadd.f32 %v5197_v45, %v5122_v42  ;;  %v5124_v28 = vadd.f32 %v5123_v8, %v5047_v13  ;;  %v39790_v8 = vld [vmem:[#allocation5_spill] sm:$0xff]  ;;  %v39791_v13 = vstv %s36694_s10 }
 0x59d   : >> { %v5199_v0 = vpop.f32.mrf.mxu1  ;;  %v4855_v45 = vmul.f32 %v39791_v13, %v39790_v8 }
 0x59e   : >> { %v5448_v43 = vpop.f32.mrf.mxu0  ;;  %v5276_v36 = vadd.f32 %v5275_v6, %v5198_v23  ;;  %v5200_v21 = vadd.f32 %v5199_v0, %v5124_v28  ;;  %v37247_v28 = vrot.slane %v4858_v60, %v39745_v4 }
 0x59f   : >> { %v5349_v50 = vpop.f32.mrf.mxu1 }
 0x5a0   : >> { %v5350_v30 = vadd.f32 %v5349_v50, %v5276_v36  ;;  %v5450_v14 = vpop.f32.mrf.mxu0  ;;  %v5278_v57 = vadd.f32 %v5277_v44, %v5200_v21  ;;  %39792 = vst [vmem:[#allocation90_spill] sm:$0xff] %v37247_v28 }
 0x5a1   : >> { %v5351_v40 = vpop.f32.mrf.mxu1 }
 0x5a2   : >> { %v5607_v53 = vpop.f32.mrf.mxu0  ;;  %v5352_v23 = vadd.f32 %v5351_v40, %v5278_v57 }
 0x5a3   : >> { %v5530_v27 = vpop.f32.mrf.mxu1 }
 0x5a4   : >> { %v5531_v49 = vadd.f32 %v5530_v27, %v5448_v43  ;;  %v5609_v12 = vpop.f32.mrf.mxu0  ;;  %v5356_v19 = vcombine.low %v5350_v30, %v5352_v23 }
 0x5a5   : >> { %v5532_v48 = vpop.f32.mrf.mxu1 }
 0x5a6   : >> { %v5533_v31 = vadd.f32 %v5532_v48, %v5450_v14  ;;  %v5761_v58 = vpop.f32.mrf.mxu0  ;;  %v5608_v42 = vadd.f32 %v5607_v53, %v5531_v49  ;;  %v4867_v14 = vadd.f32 %v37247_v28, %v4855_v45 }
 0x5a7   : >> { %v5683_v6 = vpop.f32.mrf.mxu1 }
 0x5a8   : >> { %v5684_v0 = vadd.f32 %v5683_v6, %v5608_v42  ;;  %v5763_v36 = vpop.f32.mrf.mxu0  ;;  %v5610_v50 = vadd.f32 %v5609_v12, %v5533_v31  ;;  %v5358_v60 = vadd.f32 %v5356_v19, %v4867_v14 }
 0x5a9   : >> { %v5685_v54 = vpop.f32.mrf.mxu1 }
 0x5aa   : >> { %v5686_v21 = vadd.f32 %v5685_v54, %v5610_v50  ;;  %v5938_v27 = vpop.f32.mrf.mxu0  ;;  %v5762_v44 = vadd.f32 %v5761_v58, %v5684_v0 }
 0x5ab   : >> { %v5835_v43 = vpop.f32.mrf.mxu1 }
 0x5ac   : >> { %v5836_v53 = vadd.f32 %v5835_v43, %v5762_v44  ;;  %v5940_v49 = vpop.f32.mrf.mxu0  ;;  %v5764_v48 = vadd.f32 %v5763_v36, %v5686_v21 }
 0x5ad   : >> { %v5837_v13 = vpop.f32.mrf.mxu1 }
 0x5ae   : >> { %v5838_v8 = vadd.f32 %v5837_v13, %v5764_v48  ;;  %v6097_v40 = vpop.f32.mrf.mxu0 }
 0x5af   : >> { %v6020_v57 = vpop.f32.mrf.mxu1 }
 0x5b0   : >> { %v5842_v41 = vcombine.low %v5836_v53, %v5838_v8  ;;  %v6021_v42 = vadd.f32 %v6020_v57, %v5938_v27  ;;  %v6099_v6 = vpop.f32.mrf.mxu0 }
 0x5b1   : >> { %v6022_v12 = vpop.f32.mrf.mxu1 }
 0x5b2   : >> { %v5844_v31 = vadd.f32 %v5842_v41, %v5358_v60  ;;  %v6023_v54 = vadd.f32 %v6022_v12, %v5940_v49  ;;  %v6251_v50 = vpop.f32.mrf.mxu0  ;;  %v6098_v58 = vadd.f32 %v6097_v40, %v6021_v42 }
 0x5b3   : >> { %v6173_v0 = vpop.f32.mrf.mxu1 }
 0x5b4   : >> { %v6174_v30 = vadd.f32 %v6173_v0, %v6098_v58  ;;  %v6253_v23 = vpop.f32.mrf.mxu0  ;;  %v6100_v45 = vadd.f32 %v6099_v6, %v6023_v54 }
 0x5b5   : >> { %v6175_v44 = vpop.f32.mrf.mxu1 }
 0x5b6   : >> { %v6176_v43 = vadd.f32 %v6175_v44, %v6100_v45  ;;  %v6428_v36 = vpop.f32.mrf.mxu0  ;;  %v6252_v21 = vadd.f32 %v6251_v50, %v6174_v30 }
 0x5b7   : >> { %v6325_v48 = vpop.f32.mrf.mxu1 }
 0x5b8   : >> { %v6430_v13 = vpop.f32.mrf.mxu0  ;;  %v6254_v28 = vadd.f32 %v6253_v23, %v6176_v43  ;;  %v6326_v8 = vadd.f32 %v6325_v48, %v6252_v21 }
 0x5b9   : >> { %v6327_v19 = vpop.f32.mrf.mxu1 }
 0x5ba   : >> { %v6328_v27 = vadd.f32 %v6327_v19, %v6254_v28  ;;  %v6587_v14 = vpop.f32.mrf.mxu0 }
 0x5bb   : >> { %v6510_v53 = vpop.f32.mrf.mxu1 }
 0x5bc   : >> { %v6332_v41 = vcombine.low %v6326_v8, %v6328_v27  ;;  %v6589_v49 = vpop.f32.mrf.mxu0  ;;  %v6511_v3 = vadd.f32 %v6510_v53, %v6428_v36 }
 0x5bd   : >> { %v6512_v57 = vpop.f32.mrf.mxu1 }
 0x5be   : >> { %v37250_v40 = vadd.f32 %v6332_v41, %v5844_v31  ;;  %v37252_v60 = vpop.f32.mrf.mxu0  ;;  %v6513_v35 = vadd.f32 %v6512_v57, %v6430_v13  ;;  %v6588_v34 = vadd.f32 %v6587_v14, %v6511_v3 }
 0x5bf   : >> { %v6663_v42 = vpop.f32.mrf.mxu1 }
 0x5c0   : >> { %v37254_v6 = vpop.f32.mrf.mxu0  ;;  %v6590_v29 = vadd.f32 %v6589_v49, %v6513_v35 }
 0x5c1   : >> { %v6665_v12 = vpop.f32.mrf.mxu1 }
 0x5c2   : >> { %v6906_v54 = vpop.f32.mrf.mxu0  ;;  %v6666_v4 = vadd.f32 %v6665_v12, %v6590_v29 }
 0x5c3   : >> { %v37256_v50 = vpop.f32.mrf.mxu1 }
 0x5c4   : >> { %v6908_v58 = vpop.f32.mrf.mxu0 }
 0x5c5   : >> { %v37258_v0 = vpop.f32.mrf.mxu1 }
 0x5c6   : >> { %v7065_v28 = vpop.f32.mrf.mxu0 }
 0x5c7   : >> { %v6988_v30 = vpop.f32.mrf.mxu1 }
 0x5c8   : >> { %v7067_v23 = vpop.f32.mrf.mxu0  ;;  %v6989_v59 = vadd.f32 %v6988_v30, %v6906_v54 }
 0x5c9   : >> { %v6990_v45 = vpop.f32.mrf.mxu1 }
 0x5ca   : >> { %v37260_v44 = vpop.f32.mrf.mxu0  ;;  %v6991_v24 = vadd.f32 %v6990_v45, %v6908_v58  ;;  %v7066_v13 = vadd.f32 %v7065_v28, %v6989_v59  ;;  %v6664_v58 = vadd.f32 %v6663_v42, %v6588_v34 }
 0x5cb   : >> { %v7141_v31 = vpop.f32.mrf.mxu1 }
 0x5cc   : >> { %v37262_v43 = vpop.f32.mrf.mxu0  ;;  %v7068_v37 = vadd.f32 %v7067_v23, %v6991_v24  ;;  %v6744_v24 = vadd.f32 %v37254_v6, %v6666_v4  ;;  %v7142_v3 = vadd.f32 %v7141_v31, %v7066_v13 }
 0x5cd   : >> { %v7143_v21 = vpop.f32.mrf.mxu1 }
 0x5ce   : >> { %v7396_v48 = vpop.f32.mrf.mxu0  ;;  %v7144_v45 = vadd.f32 %v7143_v21, %v7068_v37 }
 0x5cf   : >> { %v37264_v19 = vpop.f32.mrf.mxu1 }
 0x5d0   : >> { %v7398_v8 = vpop.f32.mrf.mxu0 }
 0x5d1   : >> { %v37266_v27 = vpop.f32.mrf.mxu1 }
 0x5d2   : >> { %v7555_v41 = vpop.f32.mrf.mxu0 }
 0x5d3   : >> { %v7478_v47 = vpop.f32.mrf.mxu1 }
 0x5d4   : >> { %v7557_v38 = vpop.f32.mrf.mxu0  ;;  %v7479_v15 = vadd.f32 %v7478_v47, %v7396_v48 }
 0x5d5   : >> { %v7480_v9 = vpop.f32.mrf.mxu1 }
 0x5d6   : >> { %v37268_v52 = vpop.f32.mrf.mxu0  ;;  %v7481_v11 = vadd.f32 %v7480_v9, %v7398_v8  ;;  %v7556_v35 = vadd.f32 %v7555_v41, %v7479_v15 }
 0x5d7   : >> { %v7631_v20 = vpop.f32.mrf.mxu1 }
 0x5d8   : >> { %v7711_v55 = vpop.f32.mrf.mxu0  ;;  %v7558_v57 = vadd.f32 %v7557_v38, %v7481_v11  ;;  %v6742_v11 = vadd.f32 %v37252_v60, %v6664_v58  ;;  %v7632_v34 = vadd.f32 %v7631_v20, %v7556_v35 }
 0x5d9   : >> { %v7633_v33 = vpop.f32.mrf.mxu1 }
 0x5da   : >> { %v7886_v2 = vpop.f32.mrf.mxu0  ;;  %v7634_v47 = vadd.f32 %v7633_v33, %v7558_v57  ;;  %v6816_v33 = vadd.f32 %v37256_v50, %v6742_v11  ;;  %v7710_v60 = vadd.f32 %v37268_v52, %v7632_v34  ;;  %v36090_v34 = vmov 4  }
 0x5db   : >> { %v37270_v63 = vpop.f32.mrf.mxu1  ;;  %36015 = vset.pattern.permute.xlu0 %v36090_v34 }
 0x5dc   : >> { %v7888_v46 = vpop.f32.mrf.mxu0  ;;  %v7712_v4 = vadd.f32 %v7711_v55, %v7634_v47  ;;  %v7784_v31 = vadd.f32 %v37270_v63, %v7710_v60 }
 0x5dd   : >> { %v37272_v1 = vpop.f32.mrf.mxu1 }
 0x5de   : >> { %v8045_v62 = vpop.f32.mrf.mxu0 }
 0x5df   : >> { %v7968_v10 = vpop.f32.mrf.mxu1 }
 0x5e0   : >> { %v8047_v5 = vpop.f32.mrf.mxu0  ;;  %v7969_v36 = vadd.f32 %v7968_v10, %v7886_v2  ;;  %v7222_v10 = vadd.f32 %v37262_v43, %v7144_v45 }
 0x5e1   : >> { %v7970_v39 = vpop.f32.mrf.mxu1 }
 0x5e2   : >> { %v37274_v22 = vpop.f32.mrf.mxu0  ;;  %v7971_v32 = vadd.f32 %v7970_v39, %v7888_v46  ;;  %v8046_v39 = vadd.f32 %v8045_v62, %v7969_v36  ;;  %v7296_v14 = vadd.f32 %v37266_v27, %v7222_v10 }
 0x5e3   : >> { %v8121_v18 = vpop.f32.mrf.mxu1 }
 0x5e4   : >> { %v8201_v26 = vpop.f32.mrf.mxu0  ;;  %v8048_v9 = vadd.f32 %v8047_v5, %v7971_v32  ;;  %v8122_v5 = vadd.f32 %v8121_v18, %v8046_v39 }
 0x5e5   : >> { %v8123_v61 = vpop.f32.mrf.mxu1 }
 0x5e6   : >> { %v8372_v25 = vpop.f32.mrf.mxu0  ;;  %v8124_v15 = vadd.f32 %v8123_v61, %v8048_v9  ;;  %v8200_v18 = vadd.f32 %v37274_v22, %v8122_v5 }
 0x5e7   : >> { %v37276_v56 = vpop.f32.mrf.mxu1 }
 0x5e8   : >> { %v8374_v7 = vpop.f32.mrf.mxu0  ;;  %v8202_v42 = vadd.f32 %v8201_v26, %v8124_v15  ;;  %v39793_v15 = vld [vmem:[#allocation6_spill] sm:$0xff] }
 0x5e9   : >> { %v8275_v17 = vpop.f32.mrf.mxu1 }
 0x5ea   : >> { %v8531_v51 = vpop.f32.mrf.mxu0  ;;  %v8276_v52 = vadd.f32 %v8275_v17, %v8202_v42 }
 0x5eb   : >> { %v8454_v16 = vpop.f32.mrf.mxu1 }
 0x5ec   : >> { %v8533_v53 = vpop.f32.mrf.mxu0  ;;  %v8455_v54 = vadd.f32 %v8454_v16, %v8372_v25  ;;  %v6818_v16 = vadd.f32 %v37258_v0, %v6744_v24  ;;  %v7786_v0 = vadd.f32 %v37272_v1, %v7712_v4  ;;  %v8274_v1 = vadd.f32 %v37276_v56, %v8200_v18 }
 0x5ed   : >> { %v8456_v49 = vpop.f32.mrf.mxu1 }
 0x5ee   : >> { %v8457_v30 = vadd.f32 %v8456_v49, %v8374_v7  ;;  %v8685_v8 = vpop.f32.mrf.mxu0  ;;  %v8532_v2 = vadd.f32 %v8531_v51, %v8455_v54  ;;  %v7220_v7 = vadd.f32 %v37260_v44, %v7142_v3  ;;  %v6822_v6 = vcombine.low %v6816_v33, %v6818_v16  ;;  %v39794_v16 = vld [vmem:[#allocation12_spill] sm:$0xff] }
 0x5ef   : >> { %v8607_v46 = vpop.f32.mrf.mxu1  ;;  %v7790_v41 = vcombine.low %v7784_v31, %v7786_v0  ;;  %v8280_v45 = vcombine.low %v8274_v1, %v8276_v52 }
 0x5f0   : >> { %v8687_v29 = vpop.f32.mrf.mxu0  ;;  %v8534_v59 = vadd.f32 %v8533_v53, %v8457_v30  ;;  %v8608_v61 = vadd.f32 %v8607_v46, %v8532_v2  ;;  %v7294_v12 = vadd.f32 %v37264_v19, %v7220_v7  ;;  %v6824_v27 = vadd.f32 %v6822_v6, %v37250_v40 }
 0x5f1   : >> { %v8609_v37 = vpop.f32.mrf.mxu1 }
 0x5f2   : >> { %v8862_v32 = vpop.f32.mrf.mxu0  ;;  %v8610_v38 = vadd.f32 %v8609_v37, %v8534_v59  ;;  %v7300_v50 = vcombine.low %v7294_v12, %v7296_v14  ;;  %v8686_v21 = vadd.f32 %v8685_v8, %v8608_v61  ;;  %v36091_v37 = vmov 5  }
 0x5f3   : >> { %v8759_v25 = vpop.f32.mrf.mxu1  ;;  %36016 = vset.pattern.permute.xlu1 %v36091_v37 }
 0x5f4   : >> { %v8864_v62 = vpop.f32.mrf.mxu0  ;;  %v8688_v28 = vadd.f32 %v8687_v29, %v8610_v38  ;;  %v7302_v53 = vadd.f32 %v7300_v50, %v6824_v27  ;;  %v8760_v35 = vadd.f32 %v8759_v25, %v8686_v21 }
 0x5f5   : >> { %v8761_v20 = vpop.f32.mrf.mxu1 }
 0x5f6   : >> { %v9021_v51 = vpop.f32.mrf.mxu0  ;;  %v8762_v57 = vadd.f32 %v8761_v20, %v8688_v28  ;;  %v7792_v54 = vadd.f32 %v7790_v41, %v7302_v53 }
 0x5f7   : >> { %v8944_v55 = vpop.f32.mrf.mxu1 }
 0x5f8   : >> { %v8945_v23 = vadd.f32 %v8944_v55, %v8862_v32  ;;  %v9023_v44 = vpop.f32.mrf.mxu0  ;;  %v8766_v30 = vcombine.low %v8760_v35, %v8762_v57  ;;  %v8282_v24 = vadd.f32 %v8280_v45, %v7792_v54 }
 0x5f9   : >> { %v8946_v43 = vpop.f32.mrf.mxu1 }
 0x5fa   : >> { %v8947_v26 = vadd.f32 %v8946_v43, %v8864_v62  ;;  %v9022_v48 = vadd.f32 %v9021_v51, %v8945_v23  ;;  %v9175_v19 = vpop.f32.mrf.mxu0  ;;  %v8768_v46 = vadd.f32 %v8766_v30, %v8282_v24 }
 0x5fb   : >> { %v9097_v13 = vpop.f32.mrf.mxu1 }
 0x5fc   : >> { %v9098_v22 = vadd.f32 %v9097_v13, %v9022_v48  ;;  %v9024_v36 = vadd.f32 %v9023_v44, %v8947_v26  ;;  %v9177_v17 = vpop.f32.mrf.mxu0  ;;  %v39798_v44 = vld [vmem:[#allocation11_spill] sm:$0xff] }
 0x5fd   : >> { %v9099_v58 = vpop.f32.mrf.mxu1 }
 0x5fe   : >> { %v9100_v63 = vadd.f32 %v9099_v58, %v9024_v36  ;;  %v9176_v49 = vadd.f32 %v9175_v19, %v9098_v22 }
 0x5ff   : >> { %v9249_v9 = vpop.f32.mrf.mxu1 }
 0x600   : >> { %v9178_v8 = vadd.f32 %v9177_v17, %v9100_v63  ;;  %v9250_v3 = vadd.f32 %v9249_v9, %v9176_v49  ;;  %v39799_v49 = vld [vmem:[#allocation13_spill] sm:$0xff]  ;;  %v39800_v9 = vld [vmem:[#allocation14_spill] sm:$0xff] }
 0x601   : >> { %v9251_v40 = vpop.f32.mrf.mxu1 }
 0x602   : >> { %v9252_v47 = vadd.f32 %v9251_v40, %v9178_v8 }
 0x604   : >> { %v9256_v56 = vcombine.low %v9250_v3, %v9252_v47  ;;  %v39801_v3 = vld [vmem:[#allocation7_spill] sm:$0xff] }
 0x606   : >> { %v9258_v39 = vadd.f32 %v9256_v56, %v8768_v46 }
 0x608   : >> { %v9260_v29 = vcombine.high %v9258_v39, %v9258_v39  ;;  %v9262_v59 = vsel %vm309_vm4, %v9258_v39, 0.0 }
 0x60a   : >> { %v9263_v11 = vsel %vm309_vm4, %v9260_v29, 0.0  ;;  %v39802_v29 = vld [vmem:[#allocation9_spill] sm:$0xff] }
 0x60b   : >> { %v9264_v10 = vadd.f32 %v9263_v11, %v9262_v59 }
 0x60d   : >> { %9265 = vadd.xlane.f32.xlu0 %v9264_v10 }
 0x623   : >> { %9301 = vperm.xlu0 %36015, %v39793_v15  }
 0x627   : >> { %36017 = vset.pattern.permute.xlu0 %v36091_v37 }
 0x696   : >> { %v9266_v2 = vpop.xlane.xlu0 %9265 }
 0x697   : >> { %v9267_v32 = vmul.f32 0.00390625, %v9266_v2 }
 0x699   : >> { %v9275_v7 = vrot.slane %v9267_v32, %v39794_v16 }
 0x69b   : >> { %v9277_v4 = vsub.f32 %v9258_v39, %v9275_v7 }
 0x69d   : >> { %v9278_v25 = vmul.f32 %v9277_v4, %v9277_v4 }
 0x69e   : >> { %v9302_v42 = vpop.permute.xlu0 %9301 }
 0x69f   : >> { %v9280_v5 = vcombine.high %v9278_v25, %v9278_v25  ;;  %v9282_v38 = vsel %vm309_vm4, %v9278_v25, 0.0  ;;  %v37301_v12 = vrot.slane %v9302_v42, %v39794_v16  ;;  %v39804_v42 = vmov 0.0  }
 0x6a1   : >> { %v9283_v62 = vsel %vm309_vm4, %v9280_v5, 0.0  ;;  %39795 = vst [vmem:[#allocation91_spill] sm:$0xff] %v37301_v12 }
 0x6a2   : >> { %v9284_v33 = vadd.f32 %v9283_v62, %v9282_v38 }
 0x6a4   : >> { %9285 = vadd.xlane.f32.xlu1 %v9284_v33 }
 0x6b5   : >> { %9313 = vperm.xlu1 %36016, %v39793_v15  }
 0x72d   : >> { %v9286_v14 = vpop.xlane.xlu1 %9285 }
 0x72e   : >> { %v9287_v60 = vmul.f32 0.00390625, %v9286_v14  ;;  %v39803_v14 = vld [vmem:[#allocation18_spill] sm:$0xff] }
 0x730   : >> { %v9288_v20 = vadd.f32 1e-05, %v9287_v60 }
 0x731   : >> { %v9314_v51 = vpop.permute.xlu1 %9313 }
 0x732   : >> { %36022 = vrsqrt.f32 %v9288_v20  ;;  %v37304_v55 = vrot.slane %v9314_v51, %v39794_v16 }
 0x734   : >> { %39796 = vst [vmem:[#allocation92_spill] sm:$0xff] %v37304_v55 }
 0x73f   : >> { %v36023_v61 = vpop.eup %36022 }
 0x740   : >> { %v9297_v6 = vrot.slane %v36023_v61, %v39794_v16 }
 0x742   : >> { %v9299_v0 = vmul.f32 %v9297_v6, %v9277_v4 }
 0x744   : >> { %v9311_v18 = vmul.f32 %v37301_v12, %v9299_v0 }
 0x746   : >> { %v37308_v28 = vadd.f32 %v37304_v55, %v9311_v18 }
 0x748   : >> { %39797 = vst [vmem:[#allocation93_spill] sm:$0xff] %v37308_v28  ;;  %v9325_v23 = vmul.f32 0.0625, %v37308_v28 }
 0x74a   : >> { %v9326_v50 = vadd.f32 %v39798_v44, %v9325_v23  ;;  %v39805_v23 = vld [vmem:[#allocation8_spill] sm:$0xff] }
 0x74c   : >> { %v9328_v31 = vcombine.high %v9326_v50, %v9326_v50  ;;  %v9330_v43 = vsel %vm309_vm4, %v9326_v50, 0.0 }
 0x74e   : >> { %v9331_v52 = vsel %vm309_vm4, %v9328_v31, 0.0  ;;  %v39806_v31 = vld [vmem:[#allocation16_spill] sm:$0xff] }
 0x74f   : >> { %v9332_v21 = vadd.f32 %v9331_v52, %v9330_v43 }
 0x751   : >> { %9333 = vadd.xlane.f32.xlu1 %v9332_v21 }
 0x7da   : >> { %v9334_v26 = vpop.xlane.xlu1 %9333 }
 0x7db   : >> { %v9335_v48 = vmul.f32 0.00390625, %v9334_v26 }
 0x7dd   : >> { %v9343_v27 = vrot.slane %v9335_v48, %v39794_v16 }
 0x7df   : >> { %v9345_v41 = vsub.f32 %v9326_v50, %v9343_v27  ;;  %v39807_v27 = vld [vmem:[#allocation10_spill] sm:$0xff] }
 0x7e1   : >> { %v9346_v19 = vmul.f32 %v9345_v41, %v9345_v41 }
 0x7e3   : >> { %v9348_v13 = vcombine.high %v9346_v19, %v9346_v19  ;;  %v9350_v1 = vsel %vm309_vm4, %v9346_v19, 0.0 }
 0x7e5   : >> { %v9351_v57 = vsel %vm309_vm4, %v9348_v13, 0.0 }
 0x7e6   : >> { %v9352_v22 = vadd.f32 %v9351_v57, %v9350_v1  ;;  %v39808_v1 = vld [vmem:[#allocation15_spill] sm:$0xff] }
 0x7e8   : >> { %9353 = vadd.xlane.f32.xlu0 %v9352_v22 }
 0x871   : >> { %v9354_v36 = vpop.xlane.xlu0 %9353 }
 0x872   : >> { %v9355_v53 = vmul.f32 0.00390625, %v9354_v36 }
 0x874   : >> { %v9356_v58 = vadd.f32 1e-05, %v9355_v53 }
 0x876   : >> { %36024 = vrsqrt.f32 %v9356_v58 }
 0x883   : >> { %v36025_v45 = vpop.eup %36024 }
 0x884   : >> { %v9365_v35 = vrot.slane %v36025_v45, %v39794_v16 }
 0x886   : >> { %v9367_v63 = vmul.f32 %v9365_v35, %v9345_v41  ;;  %v39809_v35 = vld [vmem:[#allocation17_spill] sm:$0xff] }
 0x888   : >> { %v9368_v17 = vmul.f32 %v9367_v63, %v39799_v49 }
 0x88a   : >> { %v9369_v54 = vadd.f32 %v9368_v17, %v39800_v9 }
 0x88c   : >> { %v37320_v30 = vmax.f32 %v9369_v54, 0.0 }
 0x88e   : >> { %9376 = vrot.lane.b32.xlu1 %v37320_v30, %s36071_s17  ;;  %v37326_v8 = vcombine.high %v37320_v30, %v37320_v30 }
 0x890   : >> { %9378 = vrot.lane.b32.xlu0 %v37326_v8, %s36071_s17 }
 0x892   : >> { %9862 = vrot.lane.b32.xlu1 %v37320_v30, %s36073_s19 }
 0x894   : >> { %11792 = vrot.lane.b32.xlu0 %v37326_v8, %s36077_s24 }
 0x896   : >> { %9864 = vrot.lane.b32.xlu1 %v37326_v8, %s36073_s19 }
 0x898   : >> { %12278 = vrot.lane.b32.xlu0 %v37326_v8, %s36079_s26 }
 0x89a   : >> { %10344 = vrot.lane.b32.xlu1 %v37320_v30, %s36078_s25 }
 0x89c   : >> { %12764 = vrot.lane.b32.xlu0 %v37326_v8, %s36075_s22 }
 0x89e   : >> { %10346 = vrot.lane.b32.xlu1 %v37326_v8, %s36078_s25 }
 0x8a0   : >> { %13246 = vrot.lane.b32.xlu0 %v37326_v8, %s36082_s29 }
 0x8a2   : >> { %10830 = vrot.lane.b32.xlu1 %v37320_v30, %s36074_s20 }
 0x8a6   : >> { %10832 = vrot.lane.b32.xlu1 %v37326_v8, %s36074_s20 }
 0x8aa   : >> { %11790 = vrot.lane.b32.xlu1 %v37320_v30, %s36077_s24 }
 0x8ae   : >> { %12276 = vrot.lane.b32.xlu1 %v37320_v30, %s36079_s26 }
 0x8b2   : >> { %12762 = vrot.lane.b32.xlu1 %v37320_v30, %s36075_s22 }
 0x8b6   : >> { %13244 = vrot.lane.b32.xlu1 %v37320_v30, %s36082_s29 }
 0x900   : >> { %v9377_v40 = vpop.permute.xlu1 %9376 }
 0x901   : >> { %v9383_v24 = vsel %vm395_vm6, 0.0, %v9377_v40 }
 0x902   : >> { %v9384_v47 = vmul.f32 %v39801_v3, %v9383_v24  ;;  %v9379_v46 = vpop.permute.xlu0 %9378 }
 0x903   : >> { %v9380_v56 = vsel %vm395_vm6, %v9377_v40, %v9379_v46  ;;  %v39810_v40 = vld [vmem:[#allocation24_spill] sm:$0xff] }
 0x904   : >> { %v9387_v39 = vsel %vm309_vm4, %v9384_v47, 0  ;;  %v9385_v59 = vmul.f32 %v39802_v29, %v9380_v56  ;;  %v9863_v11 = vpop.permute.xlu1 %9862 }
 0x905   : >> { %v9424_v10 = vand.u32 4294901760, %v9387_v39  ;;  %v9868_v34 = vsel %vm886_vm7, 0.0, %v9863_v11 }
 0x906   : >> { %v9390_v37 = vsel %vm309_vm4, %v9385_v59, 0  ;;  %v9870_v32 = vsel %vm309_vm4, %v9868_v34, 0  ;;  %v39811_v34 = vld [vmem:[#allocation21_spill] sm:$0xff] }
 0x907   : >> { %v9507_v15 = vsub.f32 %v9387_v39, %v9424_v10  ;;  %v9422_v2 = vand.u32 4294901760, %v9390_v37  ;;  %v37367_v38 = vand.u32 4294901760, %v9870_v32 }
 0x908   : >> { %v9865_v7 = vpop.permute.xlu1 %9864 }
 0x909   : >> { %v9866_v4 = vsel %vm886_vm7, %v9863_v11, %v9865_v7  ;;  %9423 = vmatprep.subr.mxu0 %v9422_v2  ;;  %v9501_v25 = vsub.f32 %v9390_v37, %v9422_v2  ;;  %v9508_v5 = vand.u32 4294901760, %v9507_v15  ;;  %v9989_v18 = vsub.f32 %v9870_v32, %v37367_v38  ;;  %v39812_v32 = vld [vmem:[#allocation19_spill] sm:$0xff] }
 0x90a   : >> { %v9872_v62 = vsel %vm309_vm4, %v9866_v4, 0  ;;  %9425 = vmatpush1.msra.mxu0 %v9424_v10 }
 0x90b   : >> { %v37370_v33 = vand.u32 4294901760, %v9872_v62  ;;  %9464 = vmatmul.mubr.f32.vlgmr.msra.gmra.mxu0 %v39803_v14  ;;  %9584 = vmatprep.subr.mxu0 %v9501_v25  ;;  %v9502_v60 = vand.u32 4294901760, %v9501_v25  ;;  %v9509_v61 = vsub.f32 %v9507_v15, %v9508_v5  ;;  %v9990_v19 = vand.u32 4294901760, %v9989_v18 }
 0x90c   : >> { %v10345_v20 = vpop.permute.xlu1 %10344  ;;  %9587 = vmatpush1.msra.mxu0 %v9507_v15  ;;  %9620 = vmatprep.mubr.f32.mxu0 %v39804_v42 }
 0x90d   : >> { %v9983_v51 = vsub.f32 %v9872_v62, %v37370_v33  ;;  %v10351_v6 = vsel %vm1373_vm8, 0.0, %v10345_v20  ;;  %9738 = vmatprep.subr.mxu0 %v9502_v60  ;;  %v9503_v0 = vsub.f32 %v9501_v25, %v9502_v60  ;;  %v9510_v26 = vand.u32 4294901760, %v9509_v61 }
 0x90e   : >> { %v10352_v50 = vmul.f32 %v39805_v23, %v10351_v6  ;;  %v9991_v45 = vsub.f32 %v9989_v18, %v9990_v19  ;;  %v39815_v6 = vld [vmem:[#allocation23_spill] sm:$0xff] }
 0x90f   : >> { %9623 = vmatmul.mubr.f32.vlgmr.msra.gmra.mxu0 %v39806_v31  ;;  %v9504_v43 = vand.u32 4294901760, %v9503_v0  ;;  %v9984_v52 = vand.u32 4294901760, %v9983_v51  ;;  %v11793_v0 = vpop.permute.xlu0 %11792 }
 0x910   : >> { %9742 = vmatpush1.msra.mxu0 %v9508_v5  ;;  %v10347_v21 = vpop.permute.xlu1 %10346  ;;  %9775 = vmatprep.mubr.f32.mxu0 %v39804_v42  ;;  %v10355_v13 = vsel %vm309_vm4, %v10352_v50, 0  ;;  %v9992_v39 = vand.u32 4294901760, %v9991_v45  ;;  %v39813_v5 = vld [vmem:[#allocation22_spill] sm:$0xff]  ;;  %v39816_v50 = vld [vmem:[#allocation20_spill] sm:$0xff] }
 0x911   : >> { %v10348_v48 = vsel %vm1373_vm8, %v10345_v20, %v10347_v21  ;;  %9905 = vmatprep.subr.mxu0 %v37370_v33  ;;  %9505 = vmatprep.subr.mxu1 %v9504_v43  ;;  %v9985_v57 = vsub.f32 %v9983_v51, %v9984_v52  ;;  %v37390_v58 = vand.u32 4294901760, %v10355_v13  ;;  %v39814_v20 = vld [vmem:[#allocation28_spill] sm:$0xff]  ;;  %v11316_v21 = vsel %vm309_vm4, %v37320_v30, 0  ;;  %v39817_v30 = vld [vmem:[#allocation25_spill] sm:$0xff] }
 0x912   : >> { %v10353_v41 = vmul.f32 %v39807_v27, %v10348_v48  ;;  %9511 = vmatpush1.msra.mxu1 %v9510_v26 }
 0x913   : >> { %9546 = vmatmul.mubr.f32.vlgmr.msra.gmra.mxu1 %v39808_v1  ;;  %9660 = vmatprep.subr.mxu1 %v9422_v2  ;;  %v9986_v63 = vand.u32 4294901760, %v9985_v57  ;;  %v10475_v46 = vsub.f32 %v10355_v13, %v37390_v58 }
 0x914   : >> { %v10358_v22 = vsel %vm309_vm4, %v10353_v41, 0  ;;  %9777 = vmatmul.mubr.f32.vlgmr.msra.gmra.mxu0 %v39808_v1  ;;  %v10831_v36 = vpop.permute.xlu1 %10830  ;;  %9662 = vmatpush1.msra.mxu1 %v9424_v10  ;;  %v37449_v41 = vand.u32 4294901760, %v11316_v21 }
 0x915   : >> { %v37387_v53 = vand.u32 4294901760, %v10358_v22  ;;  %9907 = vmatpush1.msra.mxu0 %v37367_v38  ;;  %9814 = vmatprep.subr.mxu1 %v9422_v2  ;;  %v10837_v54 = vsel %vm1864_vm9, 0.0, %v10831_v36  ;;  %v10476_v37 = vand.u32 4294901760, %v10475_v46 }
 0x916   : >> { %10066 = vmatprep.subr.mxu0 %v9983_v51  ;;  %9695 = vmatprep.mubr.f32.mxu1 %v39804_v42  ;;  %v10838_v59 = vmul.f32 %v39801_v3, %v10837_v54  ;;  %v11435_v45 = vsub.f32 %v11316_v21, %v37449_v41 }
 0x917   : >> { %9940 = vmatprep.mubr.f32.mxu0 %v39804_v42  ;;  %9699 = vmatmul.mubr.f32.vlgmr.msra.gmra.mxu1 %v39809_v35  ;;  %v10469_v17 = vsub.f32 %v10358_v22, %v37387_v53  ;;  %v10477_v25 = vsub.f32 %v10475_v46, %v10476_v37 }
 0x918   : >> { %9816 = vmatpush1.msra.mxu1 %v9424_v10  ;;  %9946 = vmatmul.mubr.f32.vlgmr.msra.gmra.mxu0 %v39810_v40  ;;  %v10833_v24 = vpop.permute.xlu1 %10832  ;;  %v10841_v15 = vsel %vm309_vm4, %v10838_v59, 0 }
 0x919   : >> { %10069 = vmatpush1.msra.mxu0 %v9989_v18  ;;  %v10834_v47 = vsel %vm1864_vm9, %v10831_v36, %v10833_v24  ;;  %9987 = vmatprep.subr.mxu1 %v9986_v63  ;;  %v10470_v11 = vand.u32 4294901760, %v10469_v17  ;;  %v37419_v4 = vand.u32 4294901760, %v10841_v15  ;;  %v10478_v61 = vand.u32 4294901760, %v10477_v25  ;;  %v39818_v36 = vld [vmem:[#allocation32_spill] sm:$0xff]  ;;  %v12279_v24 = vpop.permute.xlu0 %12278 }
 0x91a   : >> { %v10839_v56 = vmul.f32 %v39802_v29, %v10834_v47  ;;  %10220 = vmatprep.subr.mxu0 %v9984_v52  ;;  %9849 = vmatprep.mubr.f32.mxu1 %v39804_v42  ;;  %v11436_v47 = vand.u32 4294901760, %v11435_v45 }
 0x91b   : >> { %10102 = vmatprep.mubr.f32.mxu0 %v39804_v42  ;;  %9851 = vmatmul.mubr.f32.vlgmr.msra.gmra.mxu1 %v39808_v1  ;;  %v10471_v7 = vsub.f32 %v10469_v17, %v10470_v11 }
 0x91c   : >> { %v10844_v10 = vsel %vm309_vm4, %v10839_v56, 0  ;;  %9993 = vmatpush1.msra.mxu1 %v9992_v39  ;;  %10105 = vmatmul.mubr.f32.vlgmr.msra.gmra.mxu0 %v39811_v34  ;;  %v11791_v26 = vpop.permute.xlu1 %11790  ;;  %v39820_v39 = vld [vmem:[#allocation26_spill] sm:$0xff] }
 0x91d   : >> { %10224 = vmatpush1.msra.mxu0 %v9990_v19  ;;  %10142 = vmatprep.subr.mxu1 %v37370_v33  ;;  %v37411_v2 = vand.u32 4294901760, %v10844_v10  ;;  %v10472_v62 = vand.u32 4294901760, %v10471_v7  ;;  %v11794_v22 = vsel %vm2833_vm10, %v11791_v26, %v11793_v0  ;;  %v39821_v7 = vld [vmem:[#allocation29_spill] sm:$0xff]  ;;  %v39824_v26 = vld [vmem:[#allocation30_spill] sm:$0xff] }
 0x91e   : >> { %10391 = vmatprep.subr.mxu0 %v37387_v53  ;;  %10026 = vmatprep.mubr.f32.mxu1 %v39804_v42  ;;  %v11798_v63 = vmul.f32 %v39805_v23, %v11794_v22  ;;  %v39825_v22 = vld [vmem:[#allocation33_spill] sm:$0xff] }
 0x91f   : >> { %10257 = vmatprep.mubr.f32.mxu0 %v39804_v42  ;;  %10028 = vmatmul.mubr.f32.vlgmr.msra.gmra.mxu1 %v39812_v32  ;;  %v10955_v60 = vsub.f32 %v10844_v10, %v37411_v2 }
 0x920   : >> { %10144 = vmatpush1.msra.mxu1 %v37367_v38  ;;  %10259 = vmatmul.mubr.f32.vlgmr.msra.gmra.mxu0 %v39812_v32  ;;  %v11801_v56 = vsel %vm309_vm4, %v11798_v63, 0  ;;  %v12277_v10 = vpop.permute.xlu1 %12276  ;;  %v39826_v63 = vld [vmem:[#allocation40_spill] sm:$0xff] }
 0x921   : >> { %10393 = vmatpush1.msra.mxu0 %v37390_v58  ;;  %10296 = vmatprep.subr.mxu1 %v37370_v33  ;;  %v10961_v33 = vsub.f32 %v10841_v15, %v37419_v4  ;;  %v10956_v51 = vand.u32 4294901760, %v10955_v60  ;;  %v11437_v15 = vsub.f32 %v11435_v45, %v11436_v47 }
 0x922   : >> { %10552 = vmatprep.subr.mxu0 %v10469_v17  ;;  %10177 = vmatprep.mubr.f32.mxu1 %v39804_v42 }
 0x923   : >> { %10426 = vmatprep.mubr.f32.mxu0 %v39804_v42  ;;  %10181 = vmatmul.mubr.f32.vlgmr.msra.gmra.mxu1 %v39813_v5  ;;  %v10962_v18 = vand.u32 4294901760, %v10961_v33  ;;  %v10957_v43 = vsub.f32 %v10955_v60, %v10956_v51 }
 0x924   : >> { %10298 = vmatpush1.msra.mxu1 %v37367_v38  ;;  %10432 = vmatmul.mubr.f32.vlgmr.msra.gmra.mxu0 %v39814_v20  ;;  %v11318_v38 = vsel %vm309_vm4, %v37326_v8, 0  ;;  %v11797_v8 = vsel %vm2833_vm10, %v11793_v0, 0.0 }
 0x925   : >> { %10555 = vmatpush1.msra.mxu0 %v10475_v46  ;;  %10473 = vmatprep.subr.mxu1 %v10472_v62  ;;  %v37439_v52 = vand.u32 4294901760, %v11318_v38  ;;  %v10963_v48 = vsub.f32 %v10961_v33, %v10962_v18  ;;  %v10958_v19 = vand.u32 4294901760, %v10957_v43  ;;  %v11799_v57 = vmul.f32 %v39807_v27, %v11797_v8 }
 0x926   : >> { %10706 = vmatprep.subr.mxu0 %v10470_v11  ;;  %10331 = vmatprep.mubr.f32.mxu1 %v39804_v42  ;;  %v12283_v11 = vsel %vm3324_vm11, %v12279_v24, 0.0 }
 0x927   : >> { %10588 = vmatprep.mubr.f32.mxu0 %v39804_v42  ;;  %10333 = vmatmul.mubr.f32.vlgmr.msra.gmra.mxu1 %v39812_v32  ;;  %v11429_v13 = vsub.f32 %v11318_v38, %v37439_v52  ;;  %v11804_v54 = vsel %vm309_vm4, %v11799_v57, 0 }
 0x928   : >> { %10479 = vmatpush1.msra.mxu1 %v10478_v61  ;;  %10591 = vmatmul.mubr.f32.vlgmr.msra.gmra.mxu0 %v39815_v6  ;;  %v37468_v46 = vand.u32 4294901760, %v11804_v54 }
 0x929   : >> { %10710 = vmatpush1.msra.mxu0 %v10476_v37  ;;  %10628 = vmatprep.subr.mxu1 %v37387_v53  ;;  %v11430_v17 = vand.u32 4294901760, %v11429_v13  ;;  %v37478_v37 = vand.u32 4294901760, %v11801_v56 }
 0x92a   : >> { %10877 = vmatprep.subr.mxu0 %v37411_v2  ;;  %10512 = vmatprep.mubr.f32.mxu1 %v39804_v42  ;;  %v11915_v62 = vsub.f32 %v11804_v54, %v37468_v46 }
 0x92b   : >> { %10743 = vmatprep.mubr.f32.mxu0 %v39804_v42  ;;  %10514 = vmatmul.mubr.f32.vlgmr.msra.gmra.mxu1 %v39816_v50  ;;  %v11431_v59 = vsub.f32 %v11429_v13, %v11430_v17  ;;  %v11921_v61 = vsub.f32 %v11801_v56, %v37478_v37 }
 0x92c   : >> { %10630 = vmatpush1.msra.mxu1 %v37390_v58  ;;  %10745 = vmatmul.mubr.f32.vlgmr.msra.gmra.mxu0 %v39816_v50  ;;  %v11916_v0 = vand.u32 4294901760, %v11915_v62 }
 0x92d   : >> { %10879 = vmatpush1.msra.mxu0 %v37419_v4  ;;  %10782 = vmatprep.subr.mxu1 %v37387_v53  ;;  %v10964_v53 = vand.u32 4294901760, %v10963_v48  ;;  %v11432_v25 = vand.u32 4294901760, %v11431_v59  ;;  %v11922_v43 = vand.u32 4294901760, %v11921_v61  ;;  %v39827_v59 = vld [vmem:[#allocation35_spill] sm:$0xff] }
 0x92e   : >> { %11038 = vmatprep.subr.mxu0 %v10955_v60  ;;  %10663 = vmatprep.mubr.f32.mxu1 %v39804_v42  ;;  %v12285_v60 = vmul.f32 %v39802_v29, %v12283_v11  ;;  %v11917_v48 = vsub.f32 %v11915_v62, %v11916_v0 }
 0x92f   : >> { %10912 = vmatprep.mubr.f32.mxu0 %v39804_v42  ;;  %10667 = vmatmul.mubr.f32.vlgmr.msra.gmra.mxu1 %v39817_v30  ;;  %v11923_v57 = vsub.f32 %v11921_v61, %v11922_v43 }
 0x930   : >> { %10784 = vmatpush1.msra.mxu1 %v37390_v58  ;;  %10918 = vmatmul.mubr.f32.vlgmr.msra.gmra.mxu0 %v39818_v36  ;;  %v39819_v58 = vld [vmem:[#allocation27_spill] sm:$0xff] }
 0x931   : >> { %11041 = vmatpush1.msra.mxu0 %v10961_v33  ;;  %10959 = vmatprep.subr.mxu1 %v10958_v19  ;;  %v12280_v33 = vsel %vm3324_vm11, %v12277_v10, %v12279_v24  ;;  %v12765_v19 = vpop.permute.xlu0 %12764  ;;  %v11924_v24 = vand.u32 4294901760, %v11923_v57 }
 0x932   : >> { %11192 = vmatprep.subr.mxu0 %v10956_v51  ;;  %10817 = vmatprep.mubr.f32.mxu1 %v39804_v42  ;;  %v11438_v51 = vand.u32 4294901760, %v11437_v15  ;;  %v12284_v38 = vmul.f32 %v39801_v3, %v12280_v33 }
 0x933   : >> { %11074 = vmatprep.mubr.f32.mxu0 %v39804_v42  ;;  %10819 = vmatmul.mubr.f32.vlgmr.msra.gmra.mxu1 %v39816_v50 }
 0x934   : >> { %10965 = vmatpush1.msra.mxu1 %v10964_v53  ;;  %11077 = vmatmul.mubr.f32.vlgmr.msra.gmra.mxu0 %v39819_v58  ;;  %v12287_v8 = vsel %vm309_vm4, %v12284_v38, 0  ;;  %v11918_v53 = vand.u32 4294901760, %v11917_v48 }
 0x935   : >> { %11196 = vmatpush1.msra.mxu0 %v10962_v18  ;;  %11114 = vmatprep.subr.mxu1 %v37411_v2  ;;  %v12290_v18 = vsel %vm309_vm4, %v12285_v60, 0  ;;  %v13247_v11 = vpop.permute.xlu0 %13246 }
 0x936   : >> { %11351 = vmatprep.subr.mxu0 %v37439_v52  ;;  %10998 = vmatprep.mubr.f32.mxu1 %v39804_v42  ;;  %v37498_v21 = vand.u32 4294901760, %v12290_v18  ;;  %v13251_v33 = vsel %vm4302_vm13, %v13247_v11, 0.0 }
 0x937   : >> { %11229 = vmatprep.mubr.f32.mxu0 %v39804_v42  ;;  %11000 = vmatmul.mubr.f32.vlgmr.msra.gmra.mxu1 %v39820_v39 }
 0x938   : >> { %11116 = vmatpush1.msra.mxu1 %v37419_v4  ;;  %11231 = vmatmul.mubr.f32.vlgmr.msra.gmra.mxu0 %v39820_v39 }
 0x939   : >> { %11353 = vmatpush1.msra.mxu0 %v37449_v41  ;;  %11268 = vmatprep.subr.mxu1 %v37411_v2  ;;  %v39822_v2 = vld [vmem:[#allocation36_spill] sm:$0xff] }
 0x93a   : >> { %11512 = vmatprep.subr.mxu0 %v11429_v13  ;;  %11149 = vmatprep.mubr.f32.mxu1 %v39804_v42  ;;  %v37507_v13 = vand.u32 4294901760, %v12287_v8 }
 0x93b   : >> { %11386 = vmatprep.mubr.f32.mxu0 %v39804_v42  ;;  %11153 = vmatmul.mubr.f32.vlgmr.msra.gmra.mxu1 %v39821_v7 }
 0x93c   : >> { %11270 = vmatpush1.msra.mxu1 %v37419_v4  ;;  %11392 = vmatmul.mubr.f32.vlgmr.msra.gmra.mxu0 %v39822_v2  ;;  %v39823_v4 = vld [vmem:[#allocation31_spill] sm:$0xff]  ;;  %v12407_v54 = vsub.f32 %v12287_v8, %v37507_v13  ;;  %v13253_v8 = vmul.f32 %v39807_v27, %v13251_v33  ;;  %v39834_v33 = vld [vmem:[#allocation48_spill] sm:$0xff] }
 0x93d   : >> { %11515 = vmatpush1.msra.mxu0 %v11435_v45  ;;  %11433 = vmatprep.subr.mxu1 %v11432_v25  ;;  %v12401_v45 = vsub.f32 %v12290_v18, %v37498_v21 }
 0x93e   : >> { %11666 = vmatprep.subr.mxu0 %v11430_v17  ;;  %11303 = vmatprep.mubr.f32.mxu1 %v39804_v42  ;;  %v12763_v17 = vpop.permute.xlu1 %12762  ;;  %v12408_v10 = vand.u32 4294901760, %v12407_v54 }
 0x93f   : >> { %11548 = vmatprep.mubr.f32.mxu0 %v39804_v42  ;;  %11305 = vmatmul.mubr.f32.vlgmr.msra.gmra.mxu1 %v39820_v39  ;;  %v12766_v56 = vsel %vm3815_vm12, %v12763_v17, %v12765_v19 }
 0x940   : >> { %11439 = vmatpush1.msra.mxu1 %v11438_v51  ;;  %11551 = vmatmul.mubr.f32.vlgmr.msra.gmra.mxu0 %v39823_v4  ;;  %v12769_v25 = vsel %vm309_vm4, %v12766_v56, 0  ;;  %v12409_v38 = vsub.f32 %v12407_v54, %v12408_v10 }
 0x941   : >> { %11670 = vmatpush1.msra.mxu0 %v11436_v47  ;;  %11588 = vmatprep.subr.mxu1 %v37439_v52  ;;  %v12402_v47 = vand.u32 4294901760, %v12401_v45  ;;  %v37536_v51 = vand.u32 4294901760, %v12769_v25 }
 0x942   : >> { %11837 = vmatprep.subr.mxu0 %v37468_v46  ;;  %11472 = vmatprep.mubr.f32.mxu1 %v39804_v42  ;;  %v12410_v57 = vand.u32 4294901760, %v12409_v38 }
 0x943   : >> { %11703 = vmatprep.mubr.f32.mxu0 %v39804_v42  ;;  %11474 = vmatmul.mubr.f32.vlgmr.msra.gmra.mxu1 %v39824_v26  ;;  %v12403_v60 = vsub.f32 %v12401_v45, %v12402_v47 }
 0x944   : >> { %11590 = vmatpush1.msra.mxu1 %v37449_v41  ;;  %11705 = vmatmul.mubr.f32.vlgmr.msra.gmra.mxu0 %v39824_v26 }
 0x945   : >> { %11839 = vmatpush1.msra.mxu0 %v37478_v37  ;;  %11742 = vmatprep.subr.mxu1 %v37439_v52  ;;  %v12768_v52 = vsel %vm3815_vm12, %v12765_v19, 0.0  ;;  %v12404_v18 = vand.u32 4294901760, %v12403_v60  ;;  %v12889_v19 = vsub.f32 %v12769_v25, %v37536_v51 }
 0x946   : >> { %11998 = vmatprep.subr.mxu0 %v11915_v62  ;;  %11623 = vmatprep.mubr.f32.mxu1 %v39804_v42  ;;  %v39828_v62 = vld [vmem:[#allocation34_spill] sm:$0xff] }
 0x947   : >> { %11872 = vmatprep.mubr.f32.mxu0 %v39804_v42  ;;  %11627 = vmatmul.mubr.f32.vlgmr.msra.gmra.mxu1 %v39825_v22  ;;  %v12890_v17 = vand.u32 4294901760, %v12889_v19 }
 0x948   : >> { %11744 = vmatpush1.msra.mxu1 %v37449_v41  ;;  %11878 = vmatmul.mubr.f32.vlgmr.msra.gmra.mxu0 %v39826_v63  ;;  %v12772_v41 = vsel %vm309_vm4, %v12768_v52, 0  ;;  %v13258_v52 = vsel %vm309_vm4, %v13253_v8, 0 }
 0x949   : >> { %12001 = vmatpush1.msra.mxu0 %v11921_v61  ;;  %11919 = vmatprep.subr.mxu1 %v11918_v53  ;;  %v37526_v15 = vand.u32 4294901760, %v12772_v41  ;;  %v13245_v61 = vpop.permute.xlu1 %13244 }
 0x94a   : >> { %12152 = vmatprep.subr.mxu0 %v11916_v0  ;;  %11777 = vmatprep.mubr.f32.mxu1 %v39804_v42  ;;  %v39829_v0 = vld [vmem:[#allocation37_spill] sm:$0xff]  ;;  %v13248_v48 = vsel %vm4302_vm13, %v13245_v61, %v13247_v11  ;;  %v12891_v11 = vsub.f32 %v12889_v19, %v12890_v17 }
 0x94b   : >> { %12034 = vmatprep.mubr.f32.mxu0 %v39804_v42  ;;  %11779 = vmatmul.mubr.f32.vlgmr.msra.gmra.mxu1 %v39824_v26  ;;  %v13252_v53 = vmul.f32 %v39805_v23, %v13248_v48 }
 0x94c   : >> { %11925 = vmatpush1.msra.mxu1 %v11924_v24  ;;  %12037 = vmatmul.mubr.f32.vlgmr.msra.gmra.mxu0 %v39827_v59 }
 0x94d   : >> { %12156 = vmatpush1.msra.mxu0 %v11922_v43  ;;  %12074 = vmatprep.subr.mxu1 %v37468_v46  ;;  %v12883_v43 = vsub.f32 %v12772_v41, %v37526_v15  ;;  %v13255_v24 = vsel %vm309_vm4, %v13252_v53, 0  ;;  %v39838_v53 = vld [vmem:[#allocation50_spill] sm:$0xff] }
 0x94e   : >> { %12323 = vmatprep.subr.mxu0 %v37498_v21  ;;  %11958 = vmatprep.mubr.f32.mxu1 %v39804_v42  ;;  %v13292_v56 = vand.u32 4294901760, %v13255_v24 }
 0x94f   : >> { %12189 = vmatprep.mubr.f32.mxu0 %v39804_v42  ;;  %11960 = vmatmul.mubr.f32.vlgmr.msra.gmra.mxu1 %v39828_v62 }
 0x950   : >> { %12076 = vmatpush1.msra.mxu1 %v37478_v37  ;;  %12191 = vmatmul.mubr.f32.vlgmr.msra.gmra.mxu0 %v39828_v62  ;;  %v13375_v61 = vsub.f32 %v13255_v24, %v13292_v56 }
 0x951   : >> { %12325 = vmatpush1.msra.mxu0 %v37507_v13  ;;  %12228 = vmatprep.subr.mxu1 %v37468_v46  ;;  %v39830_v46 = vld [vmem:[#allocation44_spill] sm:$0xff] }
 0x952   : >> { %12484 = vmatprep.subr.mxu0 %v12401_v45  ;;  %12109 = vmatprep.mubr.f32.mxu1 %v39804_v42  ;;  %v12884_v45 = vand.u32 4294901760, %v12883_v43 }
 0x953   : >> { %12358 = vmatprep.mubr.f32.mxu0 %v39804_v42  ;;  %12113 = vmatmul.mubr.f32.vlgmr.msra.gmra.mxu1 %v39829_v0 }
 0x954   : >> { %12230 = vmatpush1.msra.mxu1 %v37478_v37  ;;  %12364 = vmatmul.mubr.f32.vlgmr.msra.gmra.mxu0 %v39830_v46  ;;  %v39831_v37 = vld [vmem:[#allocation39_spill] sm:$0xff]  ;;  %v12885_v41 = vsub.f32 %v12883_v43, %v12884_v45 }
 0x955   : >> { %12487 = vmatpush1.msra.mxu0 %v12407_v54  ;;  %12405 = vmatprep.subr.mxu1 %v12404_v18  ;;  %v37556_v54 = vand.u32 4294901760, %v13258_v52  ;;  %v39835_v18 = vld [vmem:[#allocation43_spill] sm:$0xff] }
 0x956   : >> { %12638 = vmatprep.subr.mxu0 %v12402_v47  ;;  %12263 = vmatprep.mubr.f32.mxu1 %v39804_v42  ;;  %v39832_v47 = vld [vmem:[#allocation38_spill] sm:$0xff]  ;;  %v12886_v25 = vand.u32 4294901760, %v12885_v41 }
 0x957   : >> { %12520 = vmatprep.mubr.f32.mxu0 %v39804_v42  ;;  %12265 = vmatmul.mubr.f32.vlgmr.msra.gmra.mxu1 %v39828_v62  ;;  %v13369_v60 = vsub.f32 %v13258_v52, %v37556_v54  ;;  %v39841_v52 = vld [vmem:[#allocation49_spill] sm:$0xff] }
 0x958   : >> { %12411 = vmatpush1.msra.mxu1 %v12410_v57  ;;  %12523 = vmatmul.mubr.f32.vlgmr.msra.gmra.mxu0 %v39831_v37 }
 0x959   : >> { %12642 = vmatpush1.msra.mxu0 %v12408_v10  ;;  %12560 = vmatprep.subr.mxu1 %v37498_v21  ;;  %v39833_v10 = vld [vmem:[#allocation41_spill] sm:$0xff]  ;;  %v13370_v38 = vand.u32 4294901760, %v13369_v60 }
 0x95a   : >> { %12805 = vmatprep.subr.mxu0 %v37526_v15  ;;  %12444 = vmatprep.mubr.f32.mxu1 %v39804_v42 }
 0x95b   : >> { %12675 = vmatprep.mubr.f32.mxu0 %v39804_v42  ;;  %12446 = vmatmul.mubr.f32.vlgmr.msra.gmra.mxu1 %v39832_v47  ;;  %v13371_v8 = vsub.f32 %v13369_v60, %v13370_v38 }
 0x95c   : >> { %12562 = vmatpush1.msra.mxu1 %v37507_v13  ;;  %12677 = vmatmul.mubr.f32.vlgmr.msra.gmra.mxu0 %v39832_v47 }
 0x95d   : >> { %12807 = vmatpush1.msra.mxu0 %v37536_v51  ;;  %12714 = vmatprep.subr.mxu1 %v37498_v21  ;;  %v12892_v21 = vand.u32 4294901760, %v12891_v11  ;;  %v13372_v57 = vand.u32 4294901760, %v13371_v8 }
 0x95e   : >> { %12966 = vmatprep.subr.mxu0 %v12883_v43  ;;  %12595 = vmatprep.mubr.f32.mxu1 %v39804_v42  ;;  %v39836_v43 = vld [vmem:[#allocation42_spill] sm:$0xff] }
 0x95f   : >> { %12840 = vmatprep.mubr.f32.mxu0 %v39804_v42  ;;  %12599 = vmatmul.mubr.f32.vlgmr.msra.gmra.mxu1 %v39833_v10 }
 0x960   : >> { %12716 = vmatpush1.msra.mxu1 %v37507_v13  ;;  %12846 = vmatmul.mubr.f32.vlgmr.msra.gmra.mxu0 %v39834_v33  ;;  %v13376_v13 = vand.u32 4294901760, %v13375_v61 }
 0x961   : >> { %12969 = vmatpush1.msra.mxu0 %v12889_v19  ;;  %12887 = vmatprep.subr.mxu1 %v12886_v25  ;;  %v39837_v19 = vld [vmem:[#allocation45_spill] sm:$0xff] }
 0x962   : >> { %13120 = vmatprep.subr.mxu0 %v12884_v45  ;;  %12749 = vmatprep.mubr.f32.mxu1 %v39804_v42  ;;  %v13377_v48 = vsub.f32 %v13375_v61, %v13376_v13 }
 0x963   : >> { %13002 = vmatprep.mubr.f32.mxu0 %v39804_v42  ;;  %12751 = vmatmul.mubr.f32.vlgmr.msra.gmra.mxu1 %v39832_v47 }
 0x964   : >> { %12893 = vmatpush1.msra.mxu1 %v12892_v21  ;;  %13005 = vmatmul.mubr.f32.vlgmr.msra.gmra.mxu0 %v39835_v18  ;;  %v13378_v45 = vand.u32 4294901760, %v13377_v48 }
 0x965   : >> { %13124 = vmatpush1.msra.mxu0 %v12890_v17  ;;  %13042 = vmatprep.subr.mxu1 %v37526_v15 }
 0x966   : >> { %13291 = vmatprep.subr.mxu0 %v37556_v54  ;;  %12926 = vmatprep.mubr.f32.mxu1 %v39804_v42 }
 0x967   : >> { %13157 = vmatprep.mubr.f32.mxu0 %v39804_v42  ;;  %12928 = vmatmul.mubr.f32.vlgmr.msra.gmra.mxu1 %v39836_v43 }
 0x968   : >> { %13044 = vmatpush1.msra.mxu1 %v37536_v51  ;;  %13159 = vmatmul.mubr.f32.vlgmr.msra.gmra.mxu0 %v39836_v43 }
 0x969   : >> { %13293 = vmatpush1.msra.mxu0 %v13292_v56  ;;  %13196 = vmatprep.subr.mxu1 %v37526_v15  ;;  %v39839_v15 = vld [vmem:[#allocation47_spill] sm:$0xff] }
 0x96a   : >> { %13452 = vmatprep.subr.mxu0 %v13369_v60  ;;  %13077 = vmatprep.mubr.f32.mxu1 %v39804_v42 }
 0x96b   : >> { %13326 = vmatprep.mubr.f32.mxu0 %v39804_v42  ;;  %13081 = vmatmul.mubr.f32.vlgmr.msra.gmra.mxu1 %v39837_v19 }
 0x96c   : >> { %13198 = vmatpush1.msra.mxu1 %v37536_v51  ;;  %13332 = vmatmul.mubr.f32.vlgmr.msra.gmra.mxu0 %v39838_v53  ;;  %v39840_v51 = vld [vmem:[#allocation46_spill] sm:$0xff] }
 0x96d   : >> { %13455 = vmatpush1.msra.mxu0 %v13375_v61  ;;  %13373 = vmatprep.subr.mxu1 %v13372_v57 }
 0x96e   : >> { %13606 = vmatprep.subr.mxu0 %v13370_v38  ;;  %13231 = vmatprep.mubr.f32.mxu1 %v39804_v42 }
 0x96f   : >> { %13488 = vmatprep.mubr.f32.mxu0 %v39804_v42  ;;  %13233 = vmatmul.mubr.f32.vlgmr.msra.gmra.mxu1 %v39836_v43 }
 0x970   : >> { %13379 = vmatpush1.msra.mxu1 %v13378_v45  ;;  %13491 = vmatmul.mubr.f32.vlgmr.msra.gmra.mxu0 %v39839_v15 }
 0x971   : >> { %13610 = vmatpush1.msra.mxu0 %v13376_v13  ;;  %13528 = vmatprep.subr.mxu1 %v37556_v54 }
 0x972   : >> { %13412 = vmatprep.mubr.f32.mxu1 %v39804_v42  ;;  %13643 = vmatprep.mubr.f32.mxu0 %v39804_v42 }
 0x973   : >> { %13414 = vmatmul.mubr.f32.vlgmr.msra.gmra.mxu1 %v39840_v51 }
 0x974   : >> { %13530 = vmatpush1.msra.mxu1 %v13292_v56  ;;  %13645 = vmatmul.mubr.f32.vlgmr.msra.gmra.mxu0 %v39840_v51 }
 0x975   : >> { %13682 = vmatprep.subr.mxu1 %v37556_v54  ;;  %13563 = vmatprep.mubr.f32.mxu1 %v39804_v42 }
 0x976   : >> { %13860 = vmatprep.mubr.f32.mxu0 %v39804_v42 }
 0x977   : >> { %13567 = vmatmul.mubr.f32.vlgmr.msra.gmra.mxu1 %v39841_v52 }
 0x978   : >> { %13684 = vmatpush1.msra.mxu1 %v13292_v56  ;;  %13717 = vmatprep.mubr.f32.mxu1 %v39804_v42 }
 0x97b   : >> { %13719 = vmatmul.mubr.f32.vlgmr.msra.gmra.mxu1 %v39840_v51 }
 0x97c   : >> { %13946 = vmatprep.mubr.f32.mxu1 %v39804_v42 }
 0x9cb   : >> { %v9465_v17 = vpop.f32.mrf.mxu0 }
 0x9cd   : >> { %v9467_v24 = vpop.f32.mrf.mxu0 }
 0x9cf   : >> { %v9624_v41 = vpop.f32.mrf.mxu0 }
 0x9d1   : >> { %v9626_v11 = vpop.f32.mrf.mxu0 }
 0x9d3   : >> { %v9547_v25 = vpop.f32.mrf.mxu1 }
 0x9d4   : >> { %v9548_v60 = vadd.f32 %v9547_v25, %v9465_v17  ;;  %v9778_v54 = vpop.f32.mrf.mxu0 }
 0x9d5   : >> { %v9549_v61 = vpop.f32.mrf.mxu1 }
 0x9d6   : >> { %v9550_v21 = vadd.f32 %v9549_v61, %v9467_v24  ;;  %v9780_v38 = vpop.f32.mrf.mxu0  ;;  %v9625_v13 = vadd.f32 %v9624_v41, %v9548_v60 }
 0x9d7   : >> { %v9700_v8 = vpop.f32.mrf.mxu1 }
 0x9d8   : >> { %v9701_v56 = vadd.f32 %v9700_v8, %v9625_v13  ;;  %v9947_v48 = vpop.f32.mrf.mxu0  ;;  %v9627_v57 = vadd.f32 %v9626_v11, %v9550_v21  ;;  %v37605_v8 = vstv %s9324_s11 }
 0x9d9   : >> { %v9702_v45 = vpop.f32.mrf.mxu1  ;;  %39842 = vst [vmem:[#allocation94_spill] sm:$0xff] %v37605_v8 }
 0x9da   : >> { %v9949_v28 = vpop.f32.mrf.mxu0  ;;  %v9779_v52 = vadd.f32 %v9778_v54, %v9701_v56  ;;  %v9703_v15 = vadd.f32 %v9702_v45, %v9627_v57 }
 0x9db   : >> { %v9852_v51 = vpop.f32.mrf.mxu1 }
 0x9dc   : >> { %v9853_v53 = vadd.f32 %v9852_v51, %v9779_v52  ;;  %v10106_v19 = vpop.f32.mrf.mxu0  ;;  %v9781_v25 = vadd.f32 %v9780_v38, %v9703_v15  ;;  %v39843_v52 = vld [vmem:[#allocation4_spill] sm:$0xff] }
 0x9dd   : >> { %v9854_v43 = vpop.f32.mrf.mxu1  ;;  %v9372_v45 = vmul.f32 %v37605_v8, %v39843_v52 }
 0x9de   : >> { %v10108_v18 = vpop.f32.mrf.mxu0  ;;  %v9855_v21 = vadd.f32 %v9854_v43, %v9781_v25 }
 0x9df   : >> { %v10029_v17 = vpop.f32.mrf.mxu1 }
 0x9e0   : >> { %v10030_v24 = vadd.f32 %v10029_v17, %v9947_v48  ;;  %v10260_v61 = vpop.f32.mrf.mxu0  ;;  %v9859_v48 = vcombine.low %v9853_v53, %v9855_v21 }
 0x9e1   : >> { %v10031_v33 = vpop.f32.mrf.mxu1 }
 0x9e2   : >> { %v10032_v41 = vadd.f32 %v10031_v33, %v9949_v28  ;;  %v10262_v60 = vpop.f32.mrf.mxu0  ;;  %v10107_v13 = vadd.f32 %v10106_v19, %v10030_v24  ;;  %v39844_v24 = vld [vmem:[#allocation51_spill] sm:$0xff] }
 0x9e3   : >> { %v10182_v11 = vpop.f32.mrf.mxu1  ;;  %v37610_v37 = vadd.f32 %v9372_v45, %v39844_v24 }
 0x9e4   : >> { %v10183_v54 = vadd.f32 %v10182_v11, %v10107_v13  ;;  %v10433_v56 = vpop.f32.mrf.mxu0  ;;  %v10109_v57 = vadd.f32 %v10108_v18, %v10032_v41 }
 0x9e5   : >> { %v10184_v51 = vpop.f32.mrf.mxu1  ;;  %39845 = vst [vmem:[#allocation95_spill] sm:$0xff] %v37610_v37  ;;  %v9861_v18 = vadd.f32 %v9859_v48, %v37610_v37 }
 0x9e6   : >> { %v10185_v10 = vadd.f32 %v10184_v51, %v10109_v57  ;;  %v10435_v47 = vpop.f32.mrf.mxu0  ;;  %v10261_v15 = vadd.f32 %v10260_v61, %v10183_v54 }
 0x9e7   : >> { %v10334_v38 = vpop.f32.mrf.mxu1 }
 0x9e8   : >> { %v10335_v17 = vadd.f32 %v10334_v38, %v10261_v15  ;;  %v10592_v28 = vpop.f32.mrf.mxu0  ;;  %v10263_v33 = vadd.f32 %v10262_v60, %v10185_v10 }
 0x9e9   : >> { %v10336_v19 = vpop.f32.mrf.mxu1 }
 0x9ea   : >> { %v10337_v43 = vadd.f32 %v10336_v19, %v10263_v33  ;;  %v10594_v25 = vpop.f32.mrf.mxu0 }
 0x9eb   : >> { %v10515_v13 = vpop.f32.mrf.mxu1 }
 0x9ec   : >> { %v10341_v41 = vcombine.low %v10335_v17, %v10337_v43  ;;  %v10516_v11 = vadd.f32 %v10515_v13, %v10433_v56  ;;  %v10746_v52 = vpop.f32.mrf.mxu0 }
 0x9ed   : >> { %v10517_v57 = vpop.f32.mrf.mxu1 }
 0x9ee   : >> { %v10343_v51 = vadd.f32 %v10341_v41, %v9861_v18  ;;  %v10518_v61 = vadd.f32 %v10517_v57, %v10435_v47  ;;  %v10748_v54 = vpop.f32.mrf.mxu0  ;;  %v10593_v53 = vadd.f32 %v10592_v28, %v10516_v11 }
 0x9ef   : >> { %v10668_v21 = vpop.f32.mrf.mxu1 }
 0x9f0   : >> { %v10669_v15 = vadd.f32 %v10668_v21, %v10593_v53  ;;  %v10919_v10 = vpop.f32.mrf.mxu0  ;;  %v10595_v60 = vadd.f32 %v10594_v25, %v10518_v61 }
 0x9f1   : >> { %v10670_v38 = vpop.f32.mrf.mxu1 }
 0x9f2   : >> { %v10671_v45 = vadd.f32 %v10670_v38, %v10595_v60  ;;  %v10921_v24 = vpop.f32.mrf.mxu0  ;;  %v10747_v33 = vadd.f32 %v10746_v52, %v10669_v15 }
 0x9f3   : >> { %v10820_v19 = vpop.f32.mrf.mxu1 }
 0x9f4   : >> { %v11078_v46 = vpop.f32.mrf.mxu0  ;;  %v10749_v0 = vadd.f32 %v10748_v54, %v10671_v45  ;;  %v10821_v17 = vadd.f32 %v10820_v19, %v10747_v33 }
 0x9f5   : >> { %v10822_v48 = vpop.f32.mrf.mxu1 }
 0x9f6   : >> { %v10823_v56 = vadd.f32 %v10822_v48, %v10749_v0  ;;  %v11080_v43 = vpop.f32.mrf.mxu0 }
 0x9f7   : >> { %v11001_v13 = vpop.f32.mrf.mxu1 }
 0x9f8   : >> { %v10827_v18 = vcombine.low %v10821_v17, %v10823_v56  ;;  %v37613_v47 = vpop.f32.mrf.mxu0  ;;  %v11002_v35 = vadd.f32 %v11001_v13, %v10919_v10 }
 0x9f9   : >> { %v11003_v28 = vpop.f32.mrf.mxu1 }
 0x9fa   : >> { %v37615_v41 = vadd.f32 %v10827_v18, %v10343_v51  ;;  %v37617_v11 = vpop.f32.mrf.mxu0  ;;  %v11004_v32 = vadd.f32 %v11003_v28, %v10921_v24  ;;  %v11079_v8 = vadd.f32 %v11078_v46, %v11002_v35 }
 0x9fb   : >> { %v11154_v25 = vpop.f32.mrf.mxu1 }
 0x9fc   : >> { %39846 = vst [vmem:[#allocation96_spill] sm:$0xff] %v37615_v41  ;;  %v11393_v57 = vpop.f32.mrf.mxu0  ;;  %v11081_v9 = vadd.f32 %v11080_v43, %v11004_v32 }
 0x9fd   : >> { %v11156_v61 = vpop.f32.mrf.mxu1 }
 0x9fe   : >> { %v11395_v52 = vpop.f32.mrf.mxu0  ;;  %v11157_v16 = vadd.f32 %v11156_v61, %v11081_v9 }
 0x9ff   : >> { %v37619_v53 = vpop.f32.mrf.mxu1 }
 0xa00   : >> { %v11552_v54 = vpop.f32.mrf.mxu0 }
 0xa01   : >> { %v37621_v21 = vpop.f32.mrf.mxu1 }
 0xa02   : >> { %v11554_v0 = vpop.f32.mrf.mxu0 }
 0xa03   : >> { %v11475_v15 = vpop.f32.mrf.mxu1 }
 0xa04   : >> { %v37623_v60 = vpop.f32.mrf.mxu0  ;;  %v11476_v49 = vadd.f32 %v11475_v15, %v11393_v57 }
 0xa05   : >> { %v11477_v38 = vpop.f32.mrf.mxu1 }
 0xa06   : >> { %v37625_v45 = vpop.f32.mrf.mxu0  ;;  %v11478_v1 = vadd.f32 %v11477_v38, %v11395_v52  ;;  %v11553_v24 = vadd.f32 %v11552_v54, %v11476_v49  ;;  %v11155_v52 = vadd.f32 %v11154_v25, %v11079_v8 }
 0xa07   : >> { %v11628_v51 = vpop.f32.mrf.mxu1 }
 0xa08   : >> { %v11879_v33 = vpop.f32.mrf.mxu0  ;;  %v11555_v23 = vadd.f32 %v11554_v0, %v11478_v1  ;;  %v11235_v1 = vadd.f32 %v37617_v11, %v11157_v16  ;;  %v11629_v35 = vadd.f32 %v11628_v51, %v11553_v24 }
 0xa09   : >> { %v11630_v19 = vpop.f32.mrf.mxu1 }
 0xa0a   : >> { %v11881_v48 = vpop.f32.mrf.mxu0  ;;  %v11631_v38 = vadd.f32 %v11630_v19, %v11555_v23 }
 0xa0b   : >> { %v37627_v17 = vpop.f32.mrf.mxu1 }
 0xa0c   : >> { %v12038_v56 = vpop.f32.mrf.mxu0 }
 0xa0d   : >> { %v37629_v18 = vpop.f32.mrf.mxu1 }
 0xa0e   : >> { %v12040_v37 = vpop.f32.mrf.mxu0 }
 0xa0f   : >> { %v11961_v62 = vpop.f32.mrf.mxu1 }
 0xa10   : >> { %v37631_v59 = vpop.f32.mrf.mxu0  ;;  %v11962_v42 = vadd.f32 %v11961_v62, %v11879_v33  ;;  %v39847_v33 = vld [vmem:[#allocation96_spill] sm:$0xff] }
 0xa11   : >> { %v11963_v63 = vpop.f32.mrf.mxu1 }
 0xa12   : >> { %v12194_v22 = vpop.f32.mrf.mxu0  ;;  %v11964_v44 = vadd.f32 %v11963_v63, %v11881_v48  ;;  %v12039_v32 = vadd.f32 %v12038_v56, %v11962_v42 }
 0xa13   : >> { %v12114_v26 = vpop.f32.mrf.mxu1 }
 0xa14   : >> { %v12365_v4 = vpop.f32.mrf.mxu0  ;;  %v12041_v28 = vadd.f32 %v12040_v37, %v11964_v44  ;;  %v11233_v44 = vadd.f32 %v37613_v47, %v11155_v52 }
 0xa15   : >> { %v12116_v2 = vpop.f32.mrf.mxu1 }
 0xa16   : >> { %v12367_v7 = vpop.f32.mrf.mxu0  ;;  %v12117_v62 = vadd.f32 %v12116_v2, %v12041_v28 }
 0xa17   : >> { %v37633_v39 = vpop.f32.mrf.mxu1 }
 0xa18   : >> { %v12524_v58 = vpop.f32.mrf.mxu0  ;;  %v12195_v16 = vadd.f32 %v12194_v22, %v12117_v62 }
 0xa19   : >> { %v37635_v36 = vpop.f32.mrf.mxu1 }
 0xa1a   : >> { %v12526_v30 = vpop.f32.mrf.mxu0  ;;  %v12269_v25 = vadd.f32 %v37635_v36, %v12195_v16 }
 0xa1b   : >> { %v12447_v50 = vpop.f32.mrf.mxu1 }
 0xa1c   : >> { %v37637_v6 = vpop.f32.mrf.mxu0  ;;  %v12448_v10 = vadd.f32 %v12447_v50, %v12365_v4  ;;  %v11709_v50 = vadd.f32 %v37625_v45, %v11631_v38  ;;  %v12115_v4 = vadd.f32 %v12114_v26, %v12039_v32 }
 0xa1d   : >> { %v12449_v20 = vpop.f32.mrf.mxu1 }
 0xa1e   : >> { %v12680_v5 = vpop.f32.mrf.mxu0  ;;  %v12450_v29 = vadd.f32 %v12449_v20, %v12367_v7  ;;  %v12525_v7 = vadd.f32 %v12524_v58, %v12448_v10  ;;  %v11783_v8 = vadd.f32 %v37629_v18, %v11709_v50  ;;  %v12193_v47 = vadd.f32 %v37631_v59, %v12115_v4 }
 0xa1f   : >> { %v12600_v34 = vpop.f32.mrf.mxu1 }
 0xa20   : >> { %v12847_v40 = vpop.f32.mrf.mxu0  ;;  %v12527_v63 = vadd.f32 %v12526_v30, %v12450_v29  ;;  %v12601_v2 = vadd.f32 %v12600_v34, %v12525_v7 }
 0xa21   : >> { %v12602_v31 = vpop.f32.mrf.mxu1 }
 0xa22   : >> { %v12849_v14 = vpop.f32.mrf.mxu0  ;;  %v12603_v42 = vadd.f32 %v12602_v31, %v12527_v63  ;;  %v12679_v34 = vadd.f32 %v37637_v6, %v12601_v2 }
 0xa23   : >> { %v37639_v55 = vpop.f32.mrf.mxu1 }
 0xa24   : >> { %v13006_v12 = vpop.f32.mrf.mxu0  ;;  %v12753_v36 = vadd.f32 %v37639_v55, %v12679_v34 }
 0xa25   : >> { %v12754_v27 = vpop.f32.mrf.mxu1 }
 0xa26   : >> { %v13008_v3 = vpop.f32.mrf.mxu0 }
 0xa27   : >> { %v12929_v41 = vpop.f32.mrf.mxu1 }
 0xa28   : >> { %v13160_v13 = vpop.f32.mrf.mxu0  ;;  %v12930_v57 = vadd.f32 %v12929_v41, %v12847_v40  ;;  %v11707_v40 = vadd.f32 %v37623_v60, %v11629_v35  ;;  %v12681_v41 = vadd.f32 %v12680_v5, %v12603_v42  ;;  %v39848_v42 = vld [vmem:[#allocation12_spill] sm:$0xff] }
 0xa29   : >> { %v12931_v43 = vpop.f32.mrf.mxu1 }
 0xa2a   : >> { %v12932_v15 = vadd.f32 %v12931_v43, %v12849_v14  ;;  %v13162_v48 = vpop.f32.mrf.mxu0  ;;  %v13007_v46 = vadd.f32 %v13006_v12, %v12930_v57  ;;  %v11309_v14 = vadd.f32 %v37621_v21, %v11235_v1  ;;  %v11781_v11 = vadd.f32 %v37627_v17, %v11707_v40 }
 0xa2b   : >> { %v13082_v20 = vpop.f32.mrf.mxu1  ;;  %v12755_v45 = vadd.f32 %v12754_v27, %v12681_v41  ;;  %v39849_v41 = vld [vmem:[#allocation52_spill] sm:$0xff] }
 0xa2c   : >> { %v13333_v9 = vpop.f32.mrf.mxu0  ;;  %v13009_v49 = vadd.f32 %v13008_v3, %v12932_v15  ;;  %v11307_v3 = vadd.f32 %v37619_v53, %v11233_v44  ;;  %v13083_v31 = vadd.f32 %v13082_v20, %v13007_v46  ;;  %v11787_v0 = vcombine.low %v11781_v11, %v11783_v8 }
 0xa2d   : >> { %v13084_v23 = vpop.f32.mrf.mxu1  ;;  %v12267_v53 = vadd.f32 %v37633_v39, %v12193_v47  ;;  %v12759_v38 = vcombine.low %v12753_v36, %v12755_v45  ;;  %v39852_v45 = vld [vmem:[#allocation9_spill] sm:$0xff] }
 0xa2e   : >> { %v13335_v29 = vpop.f32.mrf.mxu0  ;;  %v13085_v37 = vadd.f32 %v13084_v23, %v13009_v49  ;;  %v11313_v12 = vcombine.low %v11307_v3, %v11309_v14  ;;  %v13161_v59 = vadd.f32 %v13160_v13, %v13083_v31 }
 0xa2f   : >> { %v13234_v30 = vpop.f32.mrf.mxu1  ;;  %v12273_v56 = vcombine.low %v12267_v53, %v12269_v25 }
 0xa30   : >> { %v13492_v58 = vpop.f32.mrf.mxu0  ;;  %v13163_v54 = vadd.f32 %v13162_v48, %v13085_v37  ;;  %v11315_v19 = vadd.f32 %v11313_v12, %v39847_v33  ;;  %v13235_v32 = vadd.f32 %v13234_v30, %v13161_v59  ;;  %v39850_v12 = vld [vmem:[#allocation53_spill] sm:$0xff] }
 0xa31   : >> { %v13236_v26 = vpop.f32.mrf.mxu1 }
 0xa32   : >> { %v13494_v61 = vpop.f32.mrf.mxu0  ;;  %v13237_v24 = vadd.f32 %v13236_v26, %v13163_v54  ;;  %v11789_v10 = vadd.f32 %v11787_v0, %v11315_v19  ;;  %v39851_v54 = vld [vmem:[#allocation7_spill] sm:$0xff] }
 0xa33   : >> { %v13415_v22 = vpop.f32.mrf.mxu1 }
 0xa34   : >> { %v13416_v21 = vadd.f32 %v13415_v22, %v13333_v9  ;;  %v13646_v17 = vpop.f32.mrf.mxu0  ;;  %v12275_v63 = vadd.f32 %v12273_v56, %v11789_v10  ;;  %v13241_v57 = vcombine.low %v13235_v32, %v13237_v24 }
 0xa35   : >> { %v13417_v60 = vpop.f32.mrf.mxu1 }
 0xa36   : >> { %v13418_v51 = vadd.f32 %v13417_v60, %v13335_v29  ;;  %v13493_v5 = vadd.f32 %v13492_v58, %v13416_v21  ;;  %v13648_v27 = vpop.f32.mrf.mxu0  ;;  %v12761_v1 = vadd.f32 %v12759_v38, %v12275_v63 }
 0xa37   : >> { %v13568_v18 = vpop.f32.mrf.mxu1 }
 0xa38   : >> { %v13569_v28 = vadd.f32 %v13568_v18, %v13493_v5  ;;  %v13495_v6 = vadd.f32 %v13494_v61, %v13418_v51  ;;  %v13243_v20 = vadd.f32 %v13241_v57, %v12761_v1  ;;  %v39855_v1 = vmov 0.0  }
 0xa39   : >> { %v13570_v52 = vpop.f32.mrf.mxu1 }
 0xa3a   : >> { %v13571_v39 = vadd.f32 %v13570_v52, %v13495_v6  ;;  %v13647_v43 = vadd.f32 %v13646_v17, %v13569_v28 }
 0xa3b   : >> { %v13720_v13 = vpop.f32.mrf.mxu1 }
 0xa3c   : >> { %v13649_v15 = vadd.f32 %v13648_v27, %v13571_v39  ;;  %v13721_v35 = vadd.f32 %v13720_v13, %v13647_v43  ;;  %v39853_v13 = vld [vmem:[#allocation57_spill] sm:$0xff] }
 0xa3d   : >> { %v13722_v48 = vpop.f32.mrf.mxu1 }
 0xa3e   : >> { %v13723_v62 = vadd.f32 %v13722_v48, %v13649_v15  ;;  %v39854_v15 = vld [vmem:[#allocation10_spill] sm:$0xff] }
 0xa40   : >> { %v13727_v55 = vcombine.low %v13721_v35, %v13723_v62 }
 0xa42   : >> { %v13729_v7 = vadd.f32 %v13727_v55, %v13243_v20  ;;  %v39856_v55 = vld [vmem:[#allocation8_spill] sm:$0xff] }
 0xa44   : >> { %v13731_v9 = vcombine.high %v13729_v7, %v13729_v7  ;;  %v13733_v49 = vsel %vm309_vm4, %v13729_v7, 0.0 }
 0xa46   : >> { %v13734_v44 = vsel %vm309_vm4, %v13731_v9, 0.0  ;;  %v39857_v9 = vld [vmem:[#allocation55_spill] sm:$0xff] }
 0xa47   : >> { %v13735_v50 = vadd.f32 %v13734_v44, %v13733_v49 }
 0xa49   : >> { %13736 = vadd.xlane.f32.xlu0 %v13735_v50 }
 0xad2   : >> { %v13737_v4 = vpop.xlane.xlu0 %13736 }
 0xad3   : >> { %v13738_v23 = vmul.f32 0.00390625, %v13737_v4 }
 0xad5   : >> { %v13746_v46 = vrot.slane %v13738_v23, %v39848_v42 }
 0xad7   : >> { %v13748_v29 = vsub.f32 %v13729_v7, %v13746_v46 }
 0xad9   : >> { %v13749_v14 = vmul.f32 %v13748_v29, %v13748_v29 }
 0xadb   : >> { %v13751_v40 = vcombine.high %v13749_v14, %v13749_v14  ;;  %v13753_v16 = vsel %vm309_vm4, %v13749_v14, 0.0 }
 0xadd   : >> { %v13754_v30 = vsel %vm309_vm4, %v13751_v40, 0.0  ;;  %v39858_v40 = vld [vmem:[#allocation54_spill] sm:$0xff] }
 0xade   : >> { %v13755_v2 = vadd.f32 %v13754_v30, %v13753_v16 }
 0xae0   : >> { %13756 = vadd.xlane.f32.xlu1 %v13755_v2 }
 0xb69   : >> { %v13757_v37 = vpop.xlane.xlu1 %13756 }
 0xb6a   : >> { %v13758_v58 = vmul.f32 0.00390625, %v13757_v37 }
 0xb6c   : >> { %v13759_v3 = vadd.f32 1e-05, %v13758_v58 }
 0xb6e   : >> { %36026 = vrsqrt.f32 %v13759_v3  ;;  %v39859_v3 = vld [vmem:[#allocation56_spill] sm:$0xff] }
 0xb7b   : >> { %v36027_v8 = vpop.eup %36026 }
 0xb7c   : >> { %v13768_v47 = vrot.slane %v36027_v8, %v39848_v42 }
 0xb7e   : >> { %v13770_v26 = vmul.f32 %v13768_v47, %v13748_v29 }
 0xb80   : >> { %v13771_v31 = vmul.f32 %v13770_v26, %v39849_v41 }
 0xb82   : >> { %v13772_v11 = vadd.f32 %v13771_v31, %v39850_v12 }
 0xb84   : >> { %v37663_v25 = vmax.f32 %v13772_v11, 0.0  ;;  %v39860_v11 = vld [vmem:[#allocation63_spill] sm:$0xff] }
 0xb86   : >> { %13778 = vrot.lane.b32.xlu0 %v37663_v25, %s36071_s17  ;;  %v37669_v61 = vcombine.high %v37663_v25, %v37663_v25 }
 0xb88   : >> { %13780 = vrot.lane.b32.xlu1 %v37669_v61, %s36071_s17 }
 0xb8a   : >> { %14264 = vrot.lane.b32.xlu0 %v37663_v25, %s36073_s19 }
 0xb8c   : >> { %14266 = vrot.lane.b32.xlu1 %v37669_v61, %s36073_s19 }
 0xb8e   : >> { %14746 = vrot.lane.b32.xlu0 %v37663_v25, %s36078_s25 }
 0xb90   : >> { %14748 = vrot.lane.b32.xlu1 %v37669_v61, %s36078_s25 }
 0xb92   : >> { %15232 = vrot.lane.b32.xlu0 %v37663_v25, %s36074_s20 }
 0xb94   : >> { %15234 = vrot.lane.b32.xlu1 %v37669_v61, %s36074_s20 }
 0xb96   : >> { %16194 = vrot.lane.b32.xlu0 %v37669_v61, %s36077_s24 }
 0xb98   : >> { %16192 = vrot.lane.b32.xlu1 %v37663_v25, %s36077_s24 }
 0xb9a   : >> { %16680 = vrot.lane.b32.xlu0 %v37669_v61, %s36079_s26 }
 0xb9c   : >> { %16678 = vrot.lane.b32.xlu1 %v37663_v25, %s36079_s26 }
 0xb9e   : >> { %17166 = vrot.lane.b32.xlu0 %v37669_v61, %s36075_s22 }
 0xba0   : >> { %17164 = vrot.lane.b32.xlu1 %v37663_v25, %s36075_s22 }
 0xba2   : >> { %17648 = vrot.lane.b32.xlu0 %v37669_v61, %s36082_s29 }
 0xba4   : >> { %17646 = vrot.lane.b32.xlu1 %v37663_v25, %s36082_s29 }
 0xbf8   : >> { %v13779_v22 = vpop.permute.xlu0 %13778 }
 0xbf9   : >> { %v13785_v34 = vsel %vm395_vm6, 0.0, %v13779_v22 }
 0xbfa   : >> { %v13786_v21 = vmul.f32 %v39851_v54, %v13785_v34  ;;  %v13781_v0 = vpop.permute.xlu1 %13780 }
 0xbfb   : >> { %v13782_v53 = vsel %vm395_vm6, %v13779_v22, %v13781_v0 }
 0xbfc   : >> { %v13789_v60 = vsel %vm309_vm4, %v13786_v21, 0  ;;  %v13787_v59 = vmul.f32 %v39852_v45, %v13782_v53  ;;  %v14265_v51 = vpop.permute.xlu0 %14264 }
 0xbfd   : >> { %v37706_v5 = vand.u32 4294901760, %v13789_v60  ;;  %v14270_v33 = vsel %vm886_vm7, 0.0, %v14265_v51 }
 0xbfe   : >> { %v13792_v19 = vsel %vm309_vm4, %v13787_v59, 0  ;;  %v14267_v56 = vpop.permute.xlu1 %14266  ;;  %v14272_v36 = vsel %vm309_vm4, %v14270_v33, 0  ;;  %v39862_v33 = vld [vmem:[#allocation58_spill] sm:$0xff] }
 0xbff   : >> { %v13909_v17 = vsub.f32 %v13789_v60, %v37706_v5  ;;  %v13824_v18 = vand.u32 4294901760, %v13792_v19  ;;  %v14268_v24 = vsel %vm886_vm7, %v14265_v51, %v14267_v56  ;;  %v37716_v38 = vand.u32 4294901760, %v14272_v36  ;;  %v39861_v60 = vld [vmem:[#allocation60_spill] sm:$0xff] }
 0xc00   : >> { %v14274_v28 = vsel %vm309_vm4, %v14268_v24, 0  ;;  %v14747_v10 = vpop.permute.xlu0 %14746 }
 0xc01   : >> { %v37714_v6 = vand.u32 4294901760, %v14274_v28  ;;  %13825 = vmatprep.subr.mxu0 %v13824_v18  ;;  %v13903_v52 = vsub.f32 %v13792_v19, %v13824_v18  ;;  %v13910_v39 = vand.u32 4294901760, %v13909_v17  ;;  %v14753_v57 = vsel %vm1373_vm8, 0.0, %v14747_v10 }
 0xc02   : >> { %13827 = vmatpush1.msra.mxu0 %v37706_v5  ;;  %v14749_v32 = vpop.permute.xlu1 %14748  ;;  %v14391_v20 = vsub.f32 %v14272_v36, %v37716_v38  ;;  %v14754_v7 = vmul.f32 %v39856_v55, %v14753_v57 }
 0xc03   : >> { %v14385_v43 = vsub.f32 %v14274_v28, %v37714_v6  ;;  %v14750_v27 = vsel %vm1373_vm8, %v14747_v10, %v14749_v32  ;;  %13866 = vmatmul.mubr.f32.vlgmr.msra.gmra.mxu0 %v39853_v13  ;;  %13986 = vmatprep.subr.mxu0 %v13903_v52  ;;  %v13904_v63 = vand.u32 4294901760, %v13903_v52  ;;  %v13911_v35 = vsub.f32 %v13909_v17, %v13910_v39  ;;  %v39864_v28 = vld [vmem:[#allocation67_spill] sm:$0xff]  ;;  %v39865_v32 = vld [vmem:[#allocation62_spill] sm:$0xff] }
 0xc04   : >> { %v14755_v48 = vmul.f32 %v39854_v15, %v14750_v27  ;;  %13989 = vmatpush1.msra.mxu0 %v13909_v17  ;;  %14022 = vmatprep.mubr.f32.mxu0 %v39855_v1  ;;  %v14392_v23 = vand.u32 4294901760, %v14391_v20  ;;  %v14757_v29 = vsel %vm309_vm4, %v14754_v7, 0  ;;  %v15233_v30 = vpop.permute.xlu0 %15232  ;;  %v39866_v27 = vld [vmem:[#allocation59_spill] sm:$0xff] }
 0xc05   : >> { %14140 = vmatprep.subr.mxu0 %v13904_v63  ;;  %v13905_v62 = vsub.f32 %v13903_v52, %v13904_v63  ;;  %v14386_v44 = vand.u32 4294901760, %v14385_v43  ;;  %v13912_v4 = vand.u32 4294901760, %v13911_v35  ;;  %v37739_v37 = vand.u32 4294901760, %v14757_v29 }
 0xc06   : >> { %v14760_v50 = vsel %vm309_vm4, %v14755_v48, 0  ;;  %v15235_v46 = vpop.permute.xlu1 %15234  ;;  %v14393_v58 = vsub.f32 %v14391_v20, %v14392_v23  ;;  %v15239_v26 = vsel %vm1864_vm9, 0.0, %v15233_v30  ;;  %v15718_v48 = vsel %vm309_vm4, %v37663_v25, 0  ;;  %v39867_v25 = vld [vmem:[#allocation64_spill] sm:$0xff] }
 0xc07   : >> { %14025 = vmatmul.mubr.f32.vlgmr.msra.gmra.mxu0 %v39857_v9  ;;  %v13906_v49 = vand.u32 4294901760, %v13905_v62  ;;  %v37732_v14 = vand.u32 4294901760, %v14760_v50  ;;  %v14387_v16 = vsub.f32 %v14385_v43, %v14386_v44  ;;  %v15236_v2 = vsel %vm1864_vm9, %v15233_v30, %v15235_v46  ;;  %v39869_v30 = vld [vmem:[#allocation66_spill] sm:$0xff] }
 0xc08   : >> { %14144 = vmatpush1.msra.mxu0 %v13910_v39  ;;  %14177 = vmatprep.mubr.f32.mxu0 %v39855_v1  ;;  %v15241_v31 = vmul.f32 %v39852_v45, %v15236_v2  ;;  %v14877_v22 = vsub.f32 %v14757_v29, %v37739_v37  ;;  %v14394_v34 = vand.u32 4294901760, %v14393_v58  ;;  %v15240_v21 = vmul.f32 %v39851_v54, %v15239_v26 }
 0xc09   : >> { %14307 = vmatprep.subr.mxu0 %v37714_v6  ;;  %13907 = vmatprep.subr.mxu1 %v13906_v49  ;;  %v14388_v8 = vand.u32 4294901760, %v14387_v16  ;;  %v14871_v47 = vsub.f32 %v14760_v50, %v37732_v14 }
 0xc0a   : >> { %13913 = vmatpush1.msra.mxu1 %v13912_v4  ;;  %v15246_v53 = vsel %vm309_vm4, %v15241_v31, 0  ;;  %v14878_v59 = vand.u32 4294901760, %v14877_v22  ;;  %v15243_v51 = vsel %vm309_vm4, %v15240_v21, 0  ;;  %v16193_v35 = vpop.permute.xlu1 %16192  ;;  %v39868_v4 = vld [vmem:[#allocation71_spill] sm:$0xff] }
 0xc0b   : >> { %13948 = vmatmul.mubr.f32.vlgmr.msra.gmra.mxu1 %v39858_v40  ;;  %14062 = vmatprep.subr.mxu1 %v13824_v18  ;;  %v14872_v0 = vand.u32 4294901760, %v14871_v47  ;;  %v37768_v56 = vand.u32 4294901760, %v15243_v51 }
 0xc0c   : >> { %14179 = vmatmul.mubr.f32.vlgmr.msra.gmra.mxu0 %v39858_v40  ;;  %14064 = vmatpush1.msra.mxu1 %v37706_v5  ;;  %v14879_v17 = vsub.f32 %v14877_v22, %v14878_v59 }
 0xc0d   : >> { %14309 = vmatpush1.msra.mxu0 %v37716_v38  ;;  %14216 = vmatprep.subr.mxu1 %v13824_v18  ;;  %v14873_v19 = vsub.f32 %v14871_v47, %v14872_v0  ;;  %v39863_v18 = vld [vmem:[#allocation61_spill] sm:$0xff] }
 0xc0e   : >> { %14468 = vmatprep.subr.mxu0 %v14385_v43  ;;  %14097 = vmatprep.mubr.f32.mxu1 %v39855_v1  ;;  %v14880_v10 = vand.u32 4294901760, %v14879_v17  ;;  %v16195_v43 = vpop.permute.xlu0 %16194 }
 0xc0f   : >> { %14342 = vmatprep.mubr.f32.mxu0 %v39855_v1  ;;  %14101 = vmatmul.mubr.f32.vlgmr.msra.gmra.mxu1 %v39859_v3  ;;  %v14874_v36 = vand.u32 4294901760, %v14873_v19  ;;  %v16196_v50 = vsel %vm2833_vm10, %v16193_v35, %v16195_v43 }
 0xc10   : >> { %14218 = vmatpush1.msra.mxu1 %v37706_v5  ;;  %14348 = vmatmul.mubr.f32.vlgmr.msra.gmra.mxu0 %v39860_v11  ;;  %v37760_v5 = vand.u32 4294901760, %v15246_v53  ;;  %v16200_v29 = vmul.f32 %v39856_v55, %v16196_v50 }
 0xc11   : >> { %14471 = vmatpush1.msra.mxu0 %v14391_v20  ;;  %14389 = vmatprep.subr.mxu1 %v14388_v8  ;;  %v37798_v20 = vand.u32 4294901760, %v15718_v48 }
 0xc12   : >> { %14622 = vmatprep.subr.mxu0 %v14386_v44  ;;  %14251 = vmatprep.mubr.f32.mxu1 %v39855_v1  ;;  %v15357_v24 = vsub.f32 %v15246_v53, %v37760_v5  ;;  %v16681_v2 = vpop.permute.xlu0 %16680  ;;  %v16203_v8 = vsel %vm309_vm4, %v16200_v29, 0 }
 0xc13   : >> { %14504 = vmatprep.mubr.f32.mxu0 %v39855_v1  ;;  %14253 = vmatmul.mubr.f32.vlgmr.msra.gmra.mxu1 %v39858_v40  ;;  %v15837_v46 = vsub.f32 %v15718_v48, %v37798_v20  ;;  %v16685_v31 = vsel %vm3324_vm11, %v16681_v2, 0.0 }
 0xc14   : >> { %14395 = vmatpush1.msra.mxu1 %v14394_v34  ;;  %14507 = vmatmul.mubr.f32.vlgmr.msra.gmra.mxu0 %v39861_v60  ;;  %v15358_v52 = vand.u32 4294901760, %v15357_v24  ;;  %v37827_v34 = vand.u32 4294901760, %v16203_v8 }
 0xc15   : >> { %14626 = vmatpush1.msra.mxu0 %v14392_v23  ;;  %14544 = vmatprep.subr.mxu1 %v37714_v6 }
 0xc16   : >> { %14793 = vmatprep.subr.mxu0 %v37732_v14  ;;  %14428 = vmatprep.mubr.f32.mxu1 %v39855_v1  ;;  %v15359_v63 = vsub.f32 %v15357_v24, %v15358_v52  ;;  %v16323_v17 = vsub.f32 %v16203_v8, %v37827_v34 }
 0xc17   : >> { %14659 = vmatprep.mubr.f32.mxu0 %v39855_v1  ;;  %14430 = vmatmul.mubr.f32.vlgmr.msra.gmra.mxu1 %v39862_v33 }
 0xc18   : >> { %14546 = vmatpush1.msra.mxu1 %v37716_v38  ;;  %14661 = vmatmul.mubr.f32.vlgmr.msra.gmra.mxu0 %v39862_v33  ;;  %v15360_v7 = vand.u32 4294901760, %v15359_v63 }
 0xc19   : >> { %14795 = vmatpush1.msra.mxu0 %v37739_v37  ;;  %14698 = vmatprep.subr.mxu1 %v37714_v6  ;;  %v15363_v6 = vsub.f32 %v15243_v51, %v37768_v56  ;;  %v16687_v51 = vmul.f32 %v39852_v45, %v16685_v31  ;;  %v39878_v31 = vld [vmem:[#allocation73_spill] sm:$0xff] }
 0xc1a   : >> { %14954 = vmatprep.subr.mxu0 %v14871_v47  ;;  %14579 = vmatprep.mubr.f32.mxu1 %v39855_v1  ;;  %v39870_v47 = vld [vmem:[#allocation65_spill] sm:$0xff] }
 0xc1b   : >> { %14828 = vmatprep.mubr.f32.mxu0 %v39855_v1  ;;  %14583 = vmatmul.mubr.f32.vlgmr.msra.gmra.mxu1 %v39863_v18  ;;  %v15364_v39 = vand.u32 4294901760, %v15363_v6 }
 0xc1c   : >> { %14700 = vmatpush1.msra.mxu1 %v37716_v38  ;;  %14834 = vmatmul.mubr.f32.vlgmr.msra.gmra.mxu0 %v39864_v28  ;;  %v15720_v38 = vsel %vm309_vm4, %v37669_v61, 0  ;;  %v16199_v61 = vsel %vm2833_vm10, %v16195_v43, 0.0  ;;  %v39874_v43 = vld [vmem:[#allocation69_spill] sm:$0xff] }
 0xc1d   : >> { %14957 = vmatpush1.msra.mxu0 %v14877_v22  ;;  %14875 = vmatprep.subr.mxu1 %v14874_v36  ;;  %v37788_v57 = vand.u32 4294901760, %v15720_v38  ;;  %v15365_v62 = vsub.f32 %v15363_v6, %v15364_v39  ;;  %v16201_v44 = vmul.f32 %v39854_v15, %v16199_v61  ;;  %v16679_v22 = vpop.permute.xlu1 %16678  ;;  %v17167_v61 = vpop.permute.xlu0 %17166 }
 0xc1e   : >> { %15108 = vmatprep.subr.mxu0 %v14872_v0  ;;  %14733 = vmatprep.mubr.f32.mxu1 %v39855_v1  ;;  %v39871_v0 = vld [vmem:[#allocation68_spill] sm:$0xff]  ;;  %v16682_v19 = vsel %vm3324_vm11, %v16679_v22, %v16681_v2 }
 0xc1f   : >> { %14990 = vmatprep.mubr.f32.mxu0 %v39855_v1  ;;  %14735 = vmatmul.mubr.f32.vlgmr.msra.gmra.mxu1 %v39862_v33  ;;  %v15831_v49 = vsub.f32 %v15720_v38, %v37788_v57  ;;  %v15366_v23 = vand.u32 4294901760, %v15365_v62  ;;  %v16206_v16 = vsel %vm309_vm4, %v16201_v44, 0  ;;  %v39875_v62 = vld [vmem:[#allocation72_spill] sm:$0xff]  ;;  %v39876_v44 = vld [vmem:[#allocation79_spill] sm:$0xff] }
 0xc20   : >> { %14881 = vmatpush1.msra.mxu1 %v14880_v10  ;;  %14993 = vmatmul.mubr.f32.vlgmr.msra.gmra.mxu0 %v39865_v32  ;;  %v37817_v58 = vand.u32 4294901760, %v16206_v16  ;;  %v16692_v10 = vsel %vm309_vm4, %v16687_v51, 0 }
 0xc21   : >> { %15112 = vmatpush1.msra.mxu0 %v14878_v59  ;;  %15030 = vmatprep.subr.mxu1 %v37732_v14  ;;  %v37847_v38 = vand.u32 4294901760, %v16692_v10  ;;  %v17165_v50 = vpop.permute.xlu1 %17164 }
 0xc22   : >> { %15279 = vmatprep.subr.mxu0 %v37760_v5  ;;  %14914 = vmatprep.mubr.f32.mxu1 %v39855_v1  ;;  %v16317_v59 = vsub.f32 %v16206_v16, %v37817_v58  ;;  %v39877_v16 = vld [vmem:[#allocation74_spill] sm:$0xff] }
 0xc23   : >> { %15145 = vmatprep.mubr.f32.mxu0 %v39855_v1  ;;  %14916 = vmatmul.mubr.f32.vlgmr.msra.gmra.mxu1 %v39866_v27 }
 0xc24   : >> { %15032 = vmatpush1.msra.mxu1 %v37739_v37  ;;  %15147 = vmatmul.mubr.f32.vlgmr.msra.gmra.mxu0 %v39866_v27 }
 0xc25   : >> { %15281 = vmatpush1.msra.mxu0 %v37768_v56  ;;  %15184 = vmatprep.subr.mxu1 %v37732_v14  ;;  %v15832_v14 = vand.u32 4294901760, %v15831_v49 }
 0xc26   : >> { %15440 = vmatprep.subr.mxu0 %v15357_v24  ;;  %15065 = vmatprep.mubr.f32.mxu1 %v39855_v1  ;;  %v16686_v24 = vmul.f32 %v39851_v54, %v16682_v19 }
 0xc27   : >> { %15314 = vmatprep.mubr.f32.mxu0 %v39855_v1  ;;  %15069 = vmatmul.mubr.f32.vlgmr.msra.gmra.mxu1 %v39867_v25  ;;  %v15833_v26 = vsub.f32 %v15831_v49, %v15832_v14 }
 0xc28   : >> { %15186 = vmatpush1.msra.mxu1 %v37739_v37  ;;  %15320 = vmatmul.mubr.f32.vlgmr.msra.gmra.mxu0 %v39868_v4  ;;  %v15838_v37 = vand.u32 4294901760, %v15837_v46 }
 0xc29   : >> { %15443 = vmatpush1.msra.mxu0 %v15363_v6  ;;  %15361 = vmatprep.subr.mxu1 %v15360_v7  ;;  %v15834_v53 = vand.u32 4294901760, %v15833_v26  ;;  %v16318_v6 = vand.u32 4294901760, %v16317_v59 }
 0xc2a   : >> { %15594 = vmatprep.subr.mxu0 %v15358_v52  ;;  %15219 = vmatprep.mubr.f32.mxu1 %v39855_v1  ;;  %v15839_v21 = vsub.f32 %v15837_v46, %v15838_v37  ;;  %v16324_v52 = vand.u32 4294901760, %v16323_v17 }
 0xc2b   : >> { %15476 = vmatprep.mubr.f32.mxu0 %v39855_v1  ;;  %15221 = vmatmul.mubr.f32.vlgmr.msra.gmra.mxu1 %v39866_v27  ;;  %v16319_v63 = vsub.f32 %v16317_v59, %v16318_v6 }
 0xc2c   : >> { %15367 = vmatpush1.msra.mxu1 %v15366_v23  ;;  %15479 = vmatmul.mubr.f32.vlgmr.msra.gmra.mxu0 %v39869_v30  ;;  %v15840_v36 = vand.u32 4294901760, %v15839_v21  ;;  %v16325_v35 = vsub.f32 %v16323_v17, %v16324_v52 }
 0xc2d   : >> { %15598 = vmatpush1.msra.mxu0 %v15364_v39  ;;  %15516 = vmatprep.subr.mxu1 %v37760_v5  ;;  %v16689_v39 = vsel %vm309_vm4, %v16686_v24, 0  ;;  %v16320_v7 = vand.u32 4294901760, %v16319_v63 }
 0xc2e   : >> { %15753 = vmatprep.subr.mxu0 %v37788_v57  ;;  %15400 = vmatprep.mubr.f32.mxu1 %v39855_v1  ;;  %v37856_v48 = vand.u32 4294901760, %v16689_v39 }
 0xc2f   : >> { %15631 = vmatprep.mubr.f32.mxu0 %v39855_v1  ;;  %15402 = vmatmul.mubr.f32.vlgmr.msra.gmra.mxu1 %v39870_v47 }
 0xc30   : >> { %15518 = vmatpush1.msra.mxu1 %v37768_v56  ;;  %15633 = vmatmul.mubr.f32.vlgmr.msra.gmra.mxu0 %v39870_v47  ;;  %v16809_v23 = vsub.f32 %v16689_v39, %v37856_v48 }
 0xc31   : >> { %15755 = vmatpush1.msra.mxu0 %v37798_v20  ;;  %15670 = vmatprep.subr.mxu1 %v37760_v5  ;;  %v39872_v5 = vld [vmem:[#allocation75_spill] sm:$0xff] }
 0xc32   : >> { %15914 = vmatprep.subr.mxu0 %v15831_v49  ;;  %15551 = vmatprep.mubr.f32.mxu1 %v39855_v1  ;;  %v16803_v49 = vsub.f32 %v16692_v10, %v37847_v38  ;;  %v16810_v2 = vand.u32 4294901760, %v16809_v23 }
 0xc33   : >> { %15788 = vmatprep.mubr.f32.mxu0 %v39855_v1  ;;  %15555 = vmatmul.mubr.f32.vlgmr.msra.gmra.mxu1 %v39871_v0 }
 0xc34   : >> { %15672 = vmatpush1.msra.mxu1 %v37768_v56  ;;  %15794 = vmatmul.mubr.f32.vlgmr.msra.gmra.mxu0 %v39872_v5  ;;  %v39873_v56 = vld [vmem:[#allocation70_spill] sm:$0xff]  ;;  %v16804_v29 = vand.u32 4294901760, %v16803_v49  ;;  %v16811_v51 = vsub.f32 %v16809_v23, %v16810_v2 }
 0xc35   : >> { %15917 = vmatpush1.msra.mxu0 %v15837_v46  ;;  %15835 = vmatprep.subr.mxu1 %v15834_v53  ;;  %v16326_v46 = vand.u32 4294901760, %v16325_v35  ;;  %v17647_v53 = vpop.permute.xlu1 %17646 }
 0xc36   : >> { %16068 = vmatprep.subr.mxu0 %v15832_v14  ;;  %15705 = vmatprep.mubr.f32.mxu1 %v39855_v1  ;;  %v17168_v14 = vsel %vm3815_vm12, %v17165_v50, %v17167_v61  ;;  %v16805_v22 = vsub.f32 %v16803_v49, %v16804_v29 }
 0xc37   : >> { %15950 = vmatprep.mubr.f32.mxu0 %v39855_v1  ;;  %15707 = vmatmul.mubr.f32.vlgmr.msra.gmra.mxu1 %v39870_v47  ;;  %v17171_v26 = vsel %vm309_vm4, %v17168_v14, 0 }
 0xc38   : >> { %15841 = vmatpush1.msra.mxu1 %v15840_v36  ;;  %15953 = vmatmul.mubr.f32.vlgmr.msra.gmra.mxu0 %v39873_v56  ;;  %v16806_v36 = vand.u32 4294901760, %v16805_v22  ;;  %v39885_v22 = vld [vmem:[#allocation82_spill] sm:$0xff] }
 0xc39   : >> { %16072 = vmatpush1.msra.mxu0 %v15838_v37  ;;  %15990 = vmatprep.subr.mxu1 %v37788_v57  ;;  %v17649_v37 = vpop.permute.xlu0 %17648 }
 0xc3a   : >> { %16239 = vmatprep.subr.mxu0 %v37817_v58  ;;  %15874 = vmatprep.mubr.f32.mxu1 %v39855_v1  ;;  %v17653_v21 = vsel %vm4302_vm13, %v17649_v37, 0.0 }
 0xc3b   : >> { %16105 = vmatprep.mubr.f32.mxu0 %v39855_v1  ;;  %15876 = vmatmul.mubr.f32.vlgmr.msra.gmra.mxu1 %v39874_v43  ;;  %v17655_v24 = vmul.f32 %v39854_v15, %v17653_v21  ;;  %v39886_v21 = vld [vmem:[#allocation81_spill] sm:$0xff] }
 0xc3c   : >> { %15992 = vmatpush1.msra.mxu1 %v37798_v20  ;;  %16107 = vmatmul.mubr.f32.vlgmr.msra.gmra.mxu0 %v39874_v43 }
 0xc3d   : >> { %16241 = vmatpush1.msra.mxu0 %v37827_v34  ;;  %16144 = vmatprep.subr.mxu1 %v37788_v57  ;;  %v17170_v57 = vsel %vm3815_vm12, %v17167_v61, 0.0  ;;  %v17660_v61 = vsel %vm309_vm4, %v17655_v24, 0  ;;  %v39888_v24 = vld [vmem:[#allocation89_spill] sm:$0xff] }
 0xc3e   : >> { %16400 = vmatprep.subr.mxu0 %v16317_v59  ;;  %16025 = vmatprep.mubr.f32.mxu1 %v39855_v1  ;;  %v37885_v59 = vand.u32 4294901760, %v17171_v26 }
 0xc3f   : >> { %16274 = vmatprep.mubr.f32.mxu0 %v39855_v1  ;;  %16029 = vmatmul.mubr.f32.vlgmr.msra.gmra.mxu1 %v39875_v62 }
 0xc40   : >> { %16146 = vmatpush1.msra.mxu1 %v37798_v20  ;;  %16280 = vmatmul.mubr.f32.vlgmr.msra.gmra.mxu0 %v39876_v44  ;;  %v17174_v20 = vsel %vm309_vm4, %v17170_v57, 0  ;;  %v17291_v10 = vsub.f32 %v17171_v26, %v37885_v59  ;;  %v39882_v57 = vld [vmem:[#allocation77_spill] sm:$0xff] }
 0xc41   : >> { %16403 = vmatpush1.msra.mxu0 %v16323_v17  ;;  %16321 = vmatprep.subr.mxu1 %v16320_v7  ;;  %v37875_v8 = vand.u32 4294901760, %v17174_v20  ;;  %v39879_v17 = vld [vmem:[#allocation76_spill] sm:$0xff]  ;;  %v37905_v7 = vand.u32 4294901760, %v17660_v61 }
 0xc42   : >> { %16554 = vmatprep.subr.mxu0 %v16318_v6  ;;  %16179 = vmatprep.mubr.f32.mxu1 %v39855_v1  ;;  %v17650_v6 = vsel %vm4302_vm13, %v17647_v53, %v17649_v37  ;;  %v17292_v35 = vand.u32 4294901760, %v17291_v10 }
 0xc43   : >> { %16436 = vmatprep.mubr.f32.mxu0 %v39855_v1  ;;  %16181 = vmatmul.mubr.f32.vlgmr.msra.gmra.mxu1 %v39874_v43  ;;  %v17285_v19 = vsub.f32 %v17174_v20, %v37875_v8  ;;  %v17654_v39 = vmul.f32 %v39856_v55, %v17650_v6  ;;  %v17771_v14 = vsub.f32 %v17660_v61, %v37905_v7 }
 0xc44   : >> { %16327 = vmatpush1.msra.mxu1 %v16326_v46  ;;  %16439 = vmatmul.mubr.f32.vlgmr.msra.gmra.mxu0 %v39877_v16  ;;  %v17293_v46 = vsub.f32 %v17291_v10, %v17292_v35 }
 0xc45   : >> { %16558 = vmatpush1.msra.mxu0 %v16324_v52  ;;  %16476 = vmatprep.subr.mxu1 %v37817_v58  ;;  %v16812_v52 = vand.u32 4294901760, %v16811_v51  ;;  %v17286_v63 = vand.u32 4294901760, %v17285_v19  ;;  %v17772_v26 = vand.u32 4294901760, %v17771_v14 }
 0xc46   : >> { %16725 = vmatprep.subr.mxu0 %v37847_v38  ;;  %16360 = vmatprep.mubr.f32.mxu1 %v39855_v1 }
 0xc47   : >> { %16591 = vmatprep.mubr.f32.mxu0 %v39855_v1  ;;  %16362 = vmatmul.mubr.f32.vlgmr.msra.gmra.mxu1 %v39878_v31  ;;  %v17287_v50 = vsub.f32 %v17285_v19, %v17286_v63  ;;  %v17773_v53 = vsub.f32 %v17771_v14, %v17772_v26 }
 0xc48   : >> { %16478 = vmatpush1.msra.mxu1 %v37827_v34  ;;  %16593 = vmatmul.mubr.f32.vlgmr.msra.gmra.mxu0 %v39878_v31 }
 0xc49   : >> { %16727 = vmatpush1.msra.mxu0 %v37856_v48  ;;  %16630 = vmatprep.subr.mxu1 %v37817_v58  ;;  %v39880_v58 = vld [vmem:[#allocation83_spill] sm:$0xff]  ;;  %v17288_v20 = vand.u32 4294901760, %v17287_v50 }
 0xc4a   : >> { %16886 = vmatprep.subr.mxu0 %v16803_v49  ;;  %16511 = vmatprep.mubr.f32.mxu1 %v39855_v1  ;;  %v17657_v49 = vsel %vm309_vm4, %v17654_v39, 0 }
 0xc4b   : >> { %16760 = vmatprep.mubr.f32.mxu0 %v39855_v1  ;;  %16515 = vmatmul.mubr.f32.vlgmr.msra.gmra.mxu1 %v39879_v17 }
 0xc4c   : >> { %16632 = vmatpush1.msra.mxu1 %v37827_v34  ;;  %16766 = vmatmul.mubr.f32.vlgmr.msra.gmra.mxu0 %v39880_v58  ;;  %v39881_v34 = vld [vmem:[#allocation78_spill] sm:$0xff] }
 0xc4d   : >> { %16889 = vmatpush1.msra.mxu0 %v16809_v23  ;;  %16807 = vmatprep.subr.mxu1 %v16806_v36  ;;  %v17694_v23 = vand.u32 4294901760, %v17657_v49  ;;  %v17774_v36 = vand.u32 4294901760, %v17773_v53 }
 0xc4e   : >> { %17040 = vmatprep.subr.mxu0 %v16804_v29  ;;  %16665 = vmatprep.mubr.f32.mxu1 %v39855_v1  ;;  %v39883_v29 = vld [vmem:[#allocation80_spill] sm:$0xff] }
 0xc4f   : >> { %16922 = vmatprep.mubr.f32.mxu0 %v39855_v1  ;;  %16667 = vmatmul.mubr.f32.vlgmr.msra.gmra.mxu1 %v39878_v31  ;;  %v17777_v37 = vsub.f32 %v17657_v49, %v17694_v23 }
 0xc50   : >> { %16813 = vmatpush1.msra.mxu1 %v16812_v52  ;;  %16925 = vmatmul.mubr.f32.vlgmr.msra.gmra.mxu0 %v39881_v34 }
 0xc51   : >> { %17044 = vmatpush1.msra.mxu0 %v16810_v2  ;;  %16962 = vmatprep.subr.mxu1 %v37847_v38  ;;  %v39884_v2 = vld [vmem:[#allocation87_spill] sm:$0xff] }
 0xc52   : >> { %17207 = vmatprep.subr.mxu0 %v37875_v8  ;;  %16846 = vmatprep.mubr.f32.mxu1 %v39855_v1 }
 0xc53   : >> { %17077 = vmatprep.mubr.f32.mxu0 %v39855_v1  ;;  %16848 = vmatmul.mubr.f32.vlgmr.msra.gmra.mxu1 %v39882_v57 }
 0xc54   : >> { %16964 = vmatpush1.msra.mxu1 %v37856_v48  ;;  %17079 = vmatmul.mubr.f32.vlgmr.msra.gmra.mxu0 %v39882_v57 }
 0xc55   : >> { %17209 = vmatpush1.msra.mxu0 %v37885_v59  ;;  %17116 = vmatprep.subr.mxu1 %v37847_v38  ;;  %v17294_v38 = vand.u32 4294901760, %v17293_v46 }
 0xc56   : >> { %17368 = vmatprep.subr.mxu0 %v17285_v19  ;;  %16997 = vmatprep.mubr.f32.mxu1 %v39855_v1  ;;  %v39887_v19 = vld [vmem:[#allocation84_spill] sm:$0xff] }
 0xc57   : >> { %17242 = vmatprep.mubr.f32.mxu0 %v39855_v1  ;;  %17001 = vmatmul.mubr.f32.vlgmr.msra.gmra.mxu1 %v39883_v29 }
 0xc58   : >> { %17118 = vmatpush1.msra.mxu1 %v37856_v48  ;;  %17248 = vmatmul.mubr.f32.vlgmr.msra.gmra.mxu0 %v39884_v2  ;;  %v17778_v48 = vand.u32 4294901760, %v17777_v37 }
 0xc59   : >> { %17371 = vmatpush1.msra.mxu0 %v17291_v10  ;;  %17289 = vmatprep.subr.mxu1 %v17288_v20  ;;  %v39891_v10 = vld [vmem:[#allocation88_spill] sm:$0xff] }
 0xc5a   : >> { %17522 = vmatprep.subr.mxu0 %v17286_v63  ;;  %17151 = vmatprep.mubr.f32.mxu1 %v39855_v1  ;;  %v17779_v51 = vsub.f32 %v17777_v37, %v17778_v48 }
 0xc5b   : >> { %17404 = vmatprep.mubr.f32.mxu0 %v39855_v1  ;;  %17153 = vmatmul.mubr.f32.vlgmr.msra.gmra.mxu1 %v39882_v57 }
 0xc5c   : >> { %17295 = vmatpush1.msra.mxu1 %v17294_v38  ;;  %17407 = vmatmul.mubr.f32.vlgmr.msra.gmra.mxu0 %v39885_v22  ;;  %v17780_v6 = vand.u32 4294901760, %v17779_v51 }
 0xc5d   : >> { %17526 = vmatpush1.msra.mxu0 %v17292_v35  ;;  %17444 = vmatprep.subr.mxu1 %v37875_v8 }
 0xc5e   : >> { %17693 = vmatprep.subr.mxu0 %v37905_v7  ;;  %17328 = vmatprep.mubr.f32.mxu1 %v39855_v1 }
 0xc5f   : >> { %17559 = vmatprep.mubr.f32.mxu0 %v39855_v1  ;;  %17330 = vmatmul.mubr.f32.vlgmr.msra.gmra.mxu1 %v39886_v21 }
 0xc60   : >> { %17446 = vmatpush1.msra.mxu1 %v37885_v59  ;;  %17561 = vmatmul.mubr.f32.vlgmr.msra.gmra.mxu0 %v39886_v21 }
 0xc61   : >> { %17695 = vmatpush1.msra.mxu0 %v17694_v23  ;;  %17598 = vmatprep.subr.mxu1 %v37875_v8  ;;  %v39889_v8 = vld [vmem:[#allocation86_spill] sm:$0xff] }
 0xc62   : >> { %17854 = vmatprep.subr.mxu0 %v17771_v14  ;;  %17479 = vmatprep.mubr.f32.mxu1 %v39855_v1 }
 0xc63   : >> { %17728 = vmatprep.mubr.f32.mxu0 %v39855_v1  ;;  %17483 = vmatmul.mubr.f32.vlgmr.msra.gmra.mxu1 %v39887_v19 }
 0xc64   : >> { %17600 = vmatpush1.msra.mxu1 %v37885_v59  ;;  %17734 = vmatmul.mubr.f32.vlgmr.msra.gmra.mxu0 %v39888_v24  ;;  %v39890_v59 = vld [vmem:[#allocation85_spill] sm:$0xff] }
 0xc65   : >> { %17857 = vmatpush1.msra.mxu0 %v17777_v37  ;;  %17775 = vmatprep.subr.mxu1 %v17774_v36 }
 0xc66   : >> { %18008 = vmatprep.subr.mxu0 %v17772_v26  ;;  %17633 = vmatprep.mubr.f32.mxu1 %v39855_v1 }
 0xc67   : >> { %17890 = vmatprep.mubr.f32.mxu0 %v39855_v1  ;;  %17635 = vmatmul.mubr.f32.vlgmr.msra.gmra.mxu1 %v39886_v21 }
 0xc68   : >> { %17781 = vmatpush1.msra.mxu1 %v17780_v6  ;;  %17893 = vmatmul.mubr.f32.vlgmr.msra.gmra.mxu0 %v39889_v8 }
 0xc69   : >> { %18012 = vmatpush1.msra.mxu0 %v17778_v48  ;;  %17930 = vmatprep.subr.mxu1 %v37905_v7 }
 0xc6a   : >> { %17814 = vmatprep.mubr.f32.mxu1 %v39855_v1  ;;  %18045 = vmatprep.mubr.f32.mxu0 %v39855_v1 }
 0xc6b   : >> { %17816 = vmatmul.mubr.f32.vlgmr.msra.gmra.mxu1 %v39890_v59 }
 0xc6c   : >> { %17932 = vmatpush1.msra.mxu1 %v17694_v23  ;;  %18047 = vmatmul.mubr.f32.vlgmr.msra.gmra.mxu0 %v39890_v59 }
 0xc6d   : >> { %18084 = vmatprep.subr.mxu1 %v37905_v7  ;;  %17965 = vmatprep.mubr.f32.mxu1 %v39855_v1 }
 0xc6e   : >> { %18305 = vmatprep.mubr.f32.mxu0 %v39855_v1 }
 0xc6f   : >> { %17969 = vmatmul.mubr.f32.vlgmr.msra.gmra.mxu1 %v39891_v10 }
 0xc70   : >> { %18086 = vmatpush1.msra.mxu1 %v17694_v23  ;;  %18119 = vmatprep.mubr.f32.mxu1 %v39855_v1 }
 0xc73   : >> { %18121 = vmatmul.mubr.f32.vlgmr.msra.gmra.mxu1 %v39890_v59 }
 0xc74   : >> { %18391 = vmatprep.mubr.f32.mxu1 %v39855_v1 }
 0xcc3   : >> { %v13867_v52 = vpop.f32.mrf.mxu0 }
 0xcc5   : >> { %v13869_v39 = vpop.f32.mrf.mxu0 }
 0xcc7   : >> { %v14026_v63 = vpop.f32.mrf.mxu0 }
 0xcc9   : >> { %v14028_v61 = vpop.f32.mrf.mxu0 }
 0xccb   : >> { %v13949_v35 = vpop.f32.mrf.mxu1 }
 0xccc   : >> { %v13950_v49 = vadd.f32 %v13949_v35, %v13867_v52  ;;  %v14180_v7 = vpop.f32.mrf.mxu0 }
 0xccd   : >> { %v13951_v50 = vpop.f32.mrf.mxu1 }
 0xcce   : >> { %v13952_v46 = vadd.f32 %v13951_v50, %v13869_v39  ;;  %v14182_v20 = vpop.f32.mrf.mxu0  ;;  %v14027_v14 = vadd.f32 %v14026_v63, %v13950_v49 }
 0xccf   : >> { %v14102_v37 = vpop.f32.mrf.mxu1 }
 0xcd0   : >> { %v14103_v38 = vadd.f32 %v14102_v37, %v14027_v14  ;;  %v14349_v23 = vpop.f32.mrf.mxu0  ;;  %v14029_v26 = vadd.f32 %v14028_v61, %v13952_v46 }
 0xcd1   : >> { %v14104_v48 = vpop.f32.mrf.mxu1 }
 0xcd2   : >> { %v14351_v53 = vpop.f32.mrf.mxu0  ;;  %v14181_v51 = vadd.f32 %v14180_v7, %v14103_v38  ;;  %v14105_v6 = vadd.f32 %v14104_v48, %v14029_v26  ;;  %v39892_v38 = vld [vmem:[#allocation5_spill] sm:$0xff]  ;;  %v39893_v26 = vld [vmem:[#allocation94_spill] sm:$0xff] }
 0xcd3   : >> { %v14254_v36 = vpop.f32.mrf.mxu1  ;;  %v13774_v48 = vmul.f32 %v39893_v26, %v39892_v38 }
 0xcd4   : >> { %v14255_v10 = vadd.f32 %v14254_v36, %v14181_v51  ;;  %v14508_v59 = vpop.f32.mrf.mxu0  ;;  %v14183_v52 = vadd.f32 %v14182_v20, %v14105_v6 }
 0xcd5   : >> { %v14256_v8 = vpop.f32.mrf.mxu1 }
 0xcd6   : >> { %v14510_v24 = vpop.f32.mrf.mxu0  ;;  %v14257_v37 = vadd.f32 %v14256_v8, %v14183_v52 }
 0xcd7   : >> { %v14431_v19 = vpop.f32.mrf.mxu1 }
 0xcd8   : >> { %v14432_v35 = vadd.f32 %v14431_v19, %v14349_v23  ;;  %v14662_v21 = vpop.f32.mrf.mxu0  ;;  %v14261_v20 = vcombine.low %v14255_v10, %v14257_v37 }
 0xcd9   : >> { %v14433_v39 = vpop.f32.mrf.mxu1 }
 0xcda   : >> { %v14434_v50 = vadd.f32 %v14433_v39, %v14351_v53  ;;  %v14664_v63 = vpop.f32.mrf.mxu0  ;;  %v14509_v49 = vadd.f32 %v14508_v59, %v14432_v35  ;;  %v39894_v39 = vld [vmem:[#allocation90_spill] sm:$0xff] }
 0xcdb   : >> { %v14584_v14 = vpop.f32.mrf.mxu1  ;;  %v37956_v59 = vadd.f32 %v13774_v48, %v39894_v39 }
 0xcdc   : >> { %v14585_v61 = vadd.f32 %v14584_v14, %v14509_v49  ;;  %v14835_v46 = vpop.f32.mrf.mxu0  ;;  %v14511_v22 = vadd.f32 %v14510_v24, %v14434_v50 }
 0xcdd   : >> { %v14586_v7 = vpop.f32.mrf.mxu1  ;;  %39895 = vst [vmem:[#allocation96_spill] sm:$0xff] %v37956_v59  ;;  %v14263_v24 = vadd.f32 %v14261_v20, %v37956_v59 }
 0xcde   : >> { %v14587_v51 = vadd.f32 %v14586_v7, %v14511_v22  ;;  %v14837_v36 = vpop.f32.mrf.mxu0  ;;  %v14663_v2 = vadd.f32 %v14662_v21, %v14585_v61 }
 0xcdf   : >> { %v14736_v29 = vpop.f32.mrf.mxu1 }
 0xce0   : >> { %v14737_v19 = vadd.f32 %v14736_v29, %v14663_v2  ;;  %v14994_v23 = vpop.f32.mrf.mxu0  ;;  %v14665_v6 = vadd.f32 %v14664_v63, %v14587_v51 }
 0xce1   : >> { %v14738_v53 = vpop.f32.mrf.mxu1 }
 0xce2   : >> { %v14739_v8 = vadd.f32 %v14738_v53, %v14665_v6  ;;  %v14996_v52 = vpop.f32.mrf.mxu0 }
 0xce3   : >> { %v14917_v35 = vpop.f32.mrf.mxu1 }
 0xce4   : >> { %v14743_v50 = vcombine.low %v14737_v19, %v14739_v8  ;;  %v14918_v49 = vadd.f32 %v14917_v35, %v14835_v46  ;;  %v15148_v14 = vpop.f32.mrf.mxu0 }
 0xce5   : >> { %v14919_v22 = vpop.f32.mrf.mxu1 }
 0xce6   : >> { %v14745_v7 = vadd.f32 %v14743_v50, %v14263_v24  ;;  %v14920_v21 = vadd.f32 %v14919_v22, %v14837_v36  ;;  %v15150_v61 = vpop.f32.mrf.mxu0  ;;  %v14995_v10 = vadd.f32 %v14994_v23, %v14918_v49 }
 0xce7   : >> { %v15070_v29 = vpop.f32.mrf.mxu1 }
 0xce8   : >> { %v15071_v2 = vadd.f32 %v15070_v29, %v14995_v10  ;;  %v15321_v63 = vpop.f32.mrf.mxu0  ;;  %v14997_v37 = vadd.f32 %v14996_v52, %v14920_v21 }
 0xce9   : >> { %v15072_v26 = vpop.f32.mrf.mxu1 }
 0xcea   : >> { %v15073_v48 = vadd.f32 %v15072_v26, %v14997_v37  ;;  %v15323_v51 = vpop.f32.mrf.mxu0  ;;  %v15149_v6 = vadd.f32 %v15148_v14, %v15071_v2 }
 0xceb   : >> { %v15222_v53 = vpop.f32.mrf.mxu1 }
 0xcec   : >> { %v15480_v39 = vpop.f32.mrf.mxu0  ;;  %v15151_v38 = vadd.f32 %v15150_v61, %v15073_v48  ;;  %v15223_v19 = vadd.f32 %v15222_v53, %v15149_v6 }
 0xced   : >> { %v15224_v20 = vpop.f32.mrf.mxu1 }
 0xcee   : >> { %v15225_v46 = vadd.f32 %v15224_v20, %v15151_v38  ;;  %v15482_v8 = vpop.f32.mrf.mxu0 }
 0xcef   : >> { %v15403_v35 = vpop.f32.mrf.mxu1 }
 0xcf0   : >> { %v15229_v24 = vcombine.low %v15223_v19, %v15225_v46  ;;  %v37959_v36 = vpop.f32.mrf.mxu0  ;;  %v15404_v18 = vadd.f32 %v15403_v35, %v15321_v63 }
 0xcf1   : >> { %v15405_v23 = vpop.f32.mrf.mxu1 }
 0xcf2   : >> { %v37961_v50 = vadd.f32 %v15229_v24, %v14745_v7  ;;  %v37963_v49 = vpop.f32.mrf.mxu0  ;;  %v15406_v27 = vadd.f32 %v15405_v23, %v15323_v51  ;;  %v15481_v41 = vadd.f32 %v15480_v39, %v15404_v18 }
 0xcf3   : >> { %v15556_v52 = vpop.f32.mrf.mxu1 }
 0xcf4   : >> { %39896 = vst [vmem:[#allocation94_spill] sm:$0xff] %v37961_v50  ;;  %v15795_v22 = vpop.f32.mrf.mxu0  ;;  %v15483_v3 = vadd.f32 %v15482_v8, %v15406_v27 }
 0xcf5   : >> { %v15558_v21 = vpop.f32.mrf.mxu1 }
 0xcf6   : >> { %v15797_v14 = vpop.f32.mrf.mxu0  ;;  %v15559_v42 = vadd.f32 %v15558_v21, %v15483_v3 }
 0xcf7   : >> { %v37965_v10 = vpop.f32.mrf.mxu1 }
 0xcf8   : >> { %v15954_v61 = vpop.f32.mrf.mxu0 }
 0xcf9   : >> { %v37967_v29 = vpop.f32.mrf.mxu1 }
 0xcfa   : >> { %v15956_v38 = vpop.f32.mrf.mxu0 }
 0xcfb   : >> { %v15877_v2 = vpop.f32.mrf.mxu1 }
 0xcfc   : >> { %v37969_v37 = vpop.f32.mrf.mxu0  ;;  %v15878_v40 = vadd.f32 %v15877_v2, %v15795_v22 }
 0xcfd   : >> { %v15879_v26 = vpop.f32.mrf.mxu1 }
 0xcfe   : >> { %v37971_v48 = vpop.f32.mrf.mxu0  ;;  %v15880_v33 = vadd.f32 %v15879_v26, %v15797_v14  ;;  %v15955_v51 = vadd.f32 %v15954_v61, %v15878_v40  ;;  %v15557_v14 = vadd.f32 %v15556_v52, %v15481_v41 }
 0xcff   : >> { %v16030_v7 = vpop.f32.mrf.mxu1 }
 0xd00   : >> { %v16281_v6 = vpop.f32.mrf.mxu0  ;;  %v15957_v55 = vadd.f32 %v15956_v38, %v15880_v33  ;;  %v15637_v33 = vadd.f32 %v37963_v49, %v15559_v42  ;;  %v16031_v18 = vadd.f32 %v16030_v7, %v15955_v51 }
 0xd01   : >> { %v16032_v53 = vpop.f32.mrf.mxu1 }
 0xd02   : >> { %v16283_v20 = vpop.f32.mrf.mxu0  ;;  %v16033_v26 = vadd.f32 %v16032_v53, %v15957_v55 }
 0xd03   : >> { %v37973_v19 = vpop.f32.mrf.mxu1 }
 0xd04   : >> { %v16440_v46 = vpop.f32.mrf.mxu0 }
 0xd05   : >> { %v37975_v24 = vpop.f32.mrf.mxu1 }
 0xd06   : >> { %v16442_v59 = vpop.f32.mrf.mxu0 }
 0xd07   : >> { %v16363_v57 = vpop.f32.mrf.mxu1 }
 0xd08   : >> { %v37977_v34 = vpop.f32.mrf.mxu0  ;;  %v16364_v15 = vadd.f32 %v16363_v57, %v16281_v6  ;;  %v39897_v6 = vld [vmem:[#allocation94_spill] sm:$0xff] }
 0xd09   : >> { %v16365_v58 = vpop.f32.mrf.mxu1 }
 0xd0a   : >> { %v16596_v17 = vpop.f32.mrf.mxu0  ;;  %v16366_v9 = vadd.f32 %v16365_v58, %v16283_v20  ;;  %v16441_v27 = vadd.f32 %v16440_v46, %v16364_v15 }
 0xd0b   : >> { %v16516_v31 = vpop.f32.mrf.mxu1 }
 0xd0c   : >> { %v16767_v16 = vpop.f32.mrf.mxu0  ;;  %v16443_v23 = vadd.f32 %v16442_v59, %v16366_v9  ;;  %v15635_v9 = vadd.f32 %v37959_v36, %v15557_v14  ;;  %v16517_v41 = vadd.f32 %v16516_v31, %v16441_v27 }
 0xd0d   : >> { %v16518_v44 = vpop.f32.mrf.mxu1 }
 0xd0e   : >> { %v16769_v62 = vpop.f32.mrf.mxu0  ;;  %v16519_v57 = vadd.f32 %v16518_v44, %v16443_v23  ;;  %v16595_v36 = vadd.f32 %v37977_v34, %v16517_v41 }
 0xd0f   : >> { %v37979_v43 = vpop.f32.mrf.mxu1 }
 0xd10   : >> { %v16926_v56 = vpop.f32.mrf.mxu0  ;;  %v16597_v42 = vadd.f32 %v16596_v17, %v16519_v57 }
 0xd11   : >> { %v37981_v5 = vpop.f32.mrf.mxu1 }
 0xd12   : >> { %v16928_v0 = vpop.f32.mrf.mxu0  ;;  %v16671_v52 = vadd.f32 %v37981_v5, %v16597_v42 }
 0xd13   : >> { %v16849_v47 = vpop.f32.mrf.mxu1 }
 0xd14   : >> { %v37983_v30 = vpop.f32.mrf.mxu0  ;;  %v16850_v63 = vadd.f32 %v16849_v47, %v16767_v16  ;;  %v16111_v47 = vadd.f32 %v37971_v48, %v16033_v26 }
 0xd15   : >> { %v16851_v4 = vpop.f32.mrf.mxu1 }
 0xd16   : >> { %v17082_v25 = vpop.f32.mrf.mxu0  ;;  %v16852_v45 = vadd.f32 %v16851_v4, %v16769_v62  ;;  %v16927_v62 = vadd.f32 %v16926_v56, %v16850_v63  ;;  %v16185_v59 = vadd.f32 %v37975_v24, %v16111_v47 }
 0xd17   : >> { %v17002_v32 = vpop.f32.mrf.mxu1 }
 0xd18   : >> { %v17249_v28 = vpop.f32.mrf.mxu0  ;;  %v16929_v58 = vadd.f32 %v16928_v0, %v16852_v45  ;;  %v17003_v44 = vadd.f32 %v17002_v32, %v16927_v62 }
 0xd19   : >> { %v17004_v60 = vpop.f32.mrf.mxu1 }
 0xd1a   : >> { %v17251_v11 = vpop.f32.mrf.mxu0  ;;  %v17005_v15 = vadd.f32 %v17004_v60, %v16929_v58  ;;  %v17081_v32 = vadd.f32 %v37983_v30, %v17003_v44 }
 0xd1b   : >> { %v37985_v13 = vpop.f32.mrf.mxu1 }
 0xd1c   : >> { %v17408_v12 = vpop.f32.mrf.mxu0  ;;  %v17155_v5 = vadd.f32 %v37985_v13, %v17081_v32 }
 0xd1d   : >> { %v17156_v1 = vpop.f32.mrf.mxu1 }
 0xd1e   : >> { %v17410_v54 = vpop.f32.mrf.mxu0 }
 0xd1f   : >> { %v17331_v50 = vpop.f32.mrf.mxu1 }
 0xd20   : >> { %v17562_v35 = vpop.f32.mrf.mxu0  ;;  %v17332_v22 = vadd.f32 %v17331_v50, %v17249_v28  ;;  %v16109_v28 = vadd.f32 %v37969_v37, %v16031_v18  ;;  %v17083_v50 = vadd.f32 %v17082_v25, %v17005_v15  ;;  %v39898_v15 = vld [vmem:[#allocation12_spill] sm:$0xff] }
 0xd21   : >> { %v17333_v8 = vpop.f32.mrf.mxu1 }
 0xd22   : >> { %v17334_v2 = vadd.f32 %v17333_v8, %v17251_v11  ;;  %v17564_v20 = vpop.f32.mrf.mxu0  ;;  %v17409_v16 = vadd.f32 %v17408_v12, %v17332_v22  ;;  %v15711_v11 = vadd.f32 %v37967_v29, %v15637_v33  ;;  %v16183_v49 = vadd.f32 %v37973_v19, %v16109_v28 }
 0xd23   : >> { %v17484_v4 = vpop.f32.mrf.mxu1  ;;  %v17157_v48 = vadd.f32 %v17156_v1, %v17083_v50  ;;  %v39899_v50 = vld [vmem:[#allocation91_spill] sm:$0xff] }
 0xd24   : >> { %v17735_v3 = vpop.f32.mrf.mxu0  ;;  %v17411_v40 = vadd.f32 %v17410_v54, %v17334_v2  ;;  %v15709_v54 = vadd.f32 %v37965_v10, %v15635_v9  ;;  %v17485_v60 = vadd.f32 %v17484_v4, %v17409_v16  ;;  %v16189_v38 = vcombine.low %v16183_v49, %v16185_v59 }
 0xd25   : >> { %v17486_v55 = vpop.f32.mrf.mxu1  ;;  %v16669_v10 = vadd.f32 %v37979_v43, %v16595_v36  ;;  %v17161_v26 = vcombine.low %v17155_v5, %v17157_v48 }
 0xd26   : >> { %v17737_v45 = vpop.f32.mrf.mxu0  ;;  %v17487_v39 = vadd.f32 %v17486_v55, %v17411_v40  ;;  %v15715_v12 = vcombine.low %v15709_v54, %v15711_v11  ;;  %v17563_v34 = vadd.f32 %v17562_v35, %v17485_v60 }
 0xd27   : >> { %v17636_v0 = vpop.f32.mrf.mxu1  ;;  %v16675_v46 = vcombine.low %v16669_v10, %v16671_v52 }
 0xd28   : >> { %v17894_v56 = vpop.f32.mrf.mxu0  ;;  %v17565_v61 = vadd.f32 %v17564_v20, %v17487_v39  ;;  %v15717_v53 = vadd.f32 %v15715_v12, %v39897_v6  ;;  %v17637_v27 = vadd.f32 %v17636_v0, %v17563_v34  ;;  %v39900_v12 = vld [vmem:[#allocation92_spill] sm:$0xff] }
 0xd29   : >> { %v17638_v31 = vpop.f32.mrf.mxu1 }
 0xd2a   : >> { %v17896_v21 = vpop.f32.mrf.mxu0  ;;  %v17639_v51 = vadd.f32 %v17638_v31, %v17565_v61  ;;  %v16191_v63 = vadd.f32 %v16189_v38, %v15717_v53 }
 0xd2b   : >> { %v17817_v17 = vpop.f32.mrf.mxu1 }
 0xd2c   : >> { %v17818_v29 = vadd.f32 %v17817_v17, %v17735_v3  ;;  %v18048_v19 = vpop.f32.mrf.mxu0  ;;  %v16677_v58 = vadd.f32 %v16675_v46, %v16191_v63  ;;  %v17643_v22 = vcombine.low %v17637_v27, %v17639_v51  ;;  %v39903_v63 = vld [vmem:[#allocation13_spill] sm:$0xff] }
 0xd2d   : >> { %v17819_v37 = vpop.f32.mrf.mxu1 }
 0xd2e   : >> { %v17820_v7 = vadd.f32 %v17819_v37, %v17737_v45  ;;  %v17895_v25 = vadd.f32 %v17894_v56, %v17818_v29  ;;  %v18050_v1 = vpop.f32.mrf.mxu0  ;;  %v17163_v33 = vadd.f32 %v17161_v26, %v16677_v58  ;;  %v39904_v26 = vld [vmem:[#allocation14_spill] sm:$0xff]  ;;  %v39905_v58 = vld [vmem:[#allocation7_spill] sm:$0xff] }
 0xd2f   : >> { %v17970_v24 = vpop.f32.mrf.mxu1 }
 0xd30   : >> { %v17971_v23 = vadd.f32 %v17970_v24, %v17895_v25  ;;  %v17897_v30 = vadd.f32 %v17896_v21, %v17820_v7  ;;  %v17645_v4 = vadd.f32 %v17643_v22, %v17163_v33  ;;  %v39902_v21 = vld [vmem:[#allocation11_spill] sm:$0xff] }
 0xd31   : >> { %v17972_v14 = vpop.f32.mrf.mxu1 }
 0xd32   : >> { %v17973_v43 = vadd.f32 %v17972_v14, %v17897_v30  ;;  %v18049_v8 = vadd.f32 %v18048_v19, %v17971_v23 }
 0xd33   : >> { %v18122_v35 = vpop.f32.mrf.mxu1 }
 0xd34   : >> { %v18051_v2 = vadd.f32 %v18050_v1, %v17973_v43  ;;  %v18123_v18 = vadd.f32 %v18122_v35, %v18049_v8 }
 0xd35   : >> { %v18124_v20 = vpop.f32.mrf.mxu1 }
 0xd36   : >> { %v18125_v57 = vadd.f32 %v18124_v20, %v18051_v2 }
 0xd38   : >> { %v18129_v13 = vcombine.low %v18123_v18, %v18125_v57  ;;  %v39906_v18 = vld [vmem:[#allocation9_spill] sm:$0xff] }
 0xd3a   : >> { %v18131_v62 = vadd.f32 %v18129_v13, %v17645_v4 }
 0xd3c   : >> { %v18133_v3 = vcombine.high %v18131_v62, %v18131_v62  ;;  %v18135_v40 = vsel %vm309_vm4, %v18131_v62, 0.0 }
 0xd3e   : >> { %v18136_v9 = vsel %vm309_vm4, %v18133_v3, 0.0 }
 0xd3f   : >> { %v18137_v47 = vadd.f32 %v18136_v9, %v18135_v40 }
 0xd41   : >> { %18138 = vadd.xlane.f32.xlu0 %v18137_v47 }
 0xdca   : >> { %v18139_v41 = vpop.xlane.xlu0 %18138 }
 0xdcb   : >> { %v18140_v55 = vmul.f32 0.00390625, %v18139_v41 }
 0xdcd   : >> { %v18148_v16 = vrot.slane %v18140_v55, %v39898_v15 }
 0xdcf   : >> { %v18150_v45 = vsub.f32 %v18131_v62, %v18148_v16 }
 0xdd1   : >> { %v18151_v11 = vmul.f32 %v18150_v45, %v18150_v45 }
 0xdd3   : >> { %v18153_v28 = vcombine.high %v18151_v11, %v18151_v11  ;;  %v18155_v42 = vsel %vm309_vm4, %v18151_v11, 0.0 }
 0xdd5   : >> { %v18156_v0 = vsel %vm309_vm4, %v18153_v28, 0.0 }
 0xdd6   : >> { %v18157_v44 = vadd.f32 %v18156_v0, %v18155_v42 }
 0xdd8   : >> { %18158 = vadd.xlane.f32.xlu1 %v18157_v44  ;;  %v39907_v44 = vld [vmem:[#allocation18_spill] sm:$0xff] }
 0xe61   : >> { %v18159_v39 = vpop.xlane.xlu1 %18158 }
 0xe62   : >> { %v18160_v56 = vmul.f32 0.00390625, %v18159_v39 }
 0xe64   : >> { %v18161_v54 = vadd.f32 1e-05, %v18160_v56 }
 0xe66   : >> { %36028 = vrsqrt.f32 %v18161_v54  ;;  %v39908_v54 = vmov 0.0  }
 0xe73   : >> { %v36029_v59 = vpop.eup %36028 }
 0xe74   : >> { %v18170_v36 = vrot.slane %v36029_v59, %v39898_v15 }
 0xe76   : >> { %v18172_v31 = vmul.f32 %v18170_v36, %v18150_v45 }
 0xe78   : >> { %v18173_v60 = vmul.f32 %v18172_v31, %v39899_v50 }
 0xe7a   : >> { %v38009_v49 = vadd.f32 %v18173_v60, %v39900_v12 }
 0xe7c   : >> { %39901 = vst [vmem:[#allocation94_spill] sm:$0xff] %v38009_v49  ;;  %v18175_v52 = vmul.f32 0.0625, %v38009_v49 }
 0xe7e   : >> { %v18176_v17 = vadd.f32 %v39902_v21, %v18175_v52  ;;  %v39909_v52 = vld [vmem:[#allocation10_spill] sm:$0xff] }
 0xe80   : >> { %v18178_v32 = vcombine.high %v18176_v17, %v18176_v17  ;;  %v18180_v61 = vsel %vm309_vm4, %v18176_v17, 0.0 }
 0xe82   : >> { %v18181_v29 = vsel %vm309_vm4, %v18178_v32, 0.0 }
 0xe83   : >> { %v18182_v38 = vadd.f32 %v18181_v29, %v18180_v61  ;;  %v39910_v29 = vld [vmem:[#allocation16_spill] sm:$0xff] }
 0xe85   : >> { %18183 = vadd.xlane.f32.xlu0 %v18182_v38  ;;  %v39911_v38 = vld [vmem:[#allocation8_spill] sm:$0xff] }
 0xf0e   : >> { %v18184_v10 = vpop.xlane.xlu0 %18183 }
 0xf0f   : >> { %v18185_v37 = vmul.f32 0.00390625, %v18184_v10 }
 0xf11   : >> { %v18193_v48 = vrot.slane %v18185_v37, %v39898_v15 }
 0xf13   : >> { %v18195_v34 = vsub.f32 %v18176_v17, %v18193_v48 }
 0xf15   : >> { %v18196_v7 = vmul.f32 %v18195_v34, %v18195_v34 }
 0xf17   : >> { %v18198_v25 = vcombine.high %v18196_v7, %v18196_v7  ;;  %v18200_v6 = vsel %vm309_vm4, %v18196_v7, 0.0 }
 0xf19   : >> { %v18201_v53 = vsel %vm309_vm4, %v18198_v25, 0.0 }
 0xf1a   : >> { %v18202_v46 = vadd.f32 %v18201_v53, %v18200_v6  ;;  %v39912_v53 = vld [vmem:[#allocation15_spill] sm:$0xff] }
 0xf1c   : >> { %18203 = vadd.xlane.f32.xlu0 %v18202_v46 }
 0xfa5   : >> { %v18204_v19 = vpop.xlane.xlu0 %18203 }
 0xfa6   : >> { %v18205_v24 = vmul.f32 0.00390625, %v18204_v19 }
 0xfa8   : >> { %v18206_v5 = vadd.f32 1e-05, %v18205_v24 }
 0xfaa   : >> { %36030 = vrsqrt.f32 %v18206_v5 }
 0xfb7   : >> { %v36031_v51 = vpop.eup %36030 }
 0xfb8   : >> { %v18215_v23 = vrot.slane %v36031_v51, %v39898_v15 }
 0xfba   : >> { %v18217_v30 = vmul.f32 %v18215_v23, %v18195_v34 }
 0xfbc   : >> { %v18218_v14 = vmul.f32 %v18217_v30, %v39903_v63 }
 0xfbe   : >> { %v18219_v27 = vadd.f32 %v18218_v14, %v39904_v26  ;;  %v39913_v14 = vld [vmem:[#allocation17_spill] sm:$0xff] }
 0xfc0   : >> { %v38021_v43 = vmax.f32 %v18219_v27, 0.0  ;;  %v39914_v27 = vld [vmem:[#allocation24_spill] sm:$0xff] }
 0xfc2   : >> { %18223 = vrot.lane.b32.xlu1 %v38021_v43, %s36071_s17  ;;  %v38027_v8 = vcombine.high %v38021_v43, %v38021_v43 }
 0xfc4   : >> { %18225 = vrot.lane.b32.xlu0 %v38027_v8, %s36071_s17 }
 0xfc6   : >> { %18709 = vrot.lane.b32.xlu1 %v38021_v43, %s36073_s19 }
 0xfc8   : >> { %19191 = vrot.lane.b32.xlu0 %v38021_v43, %s36078_s25 }
 0xfca   : >> { %18711 = vrot.lane.b32.xlu1 %v38027_v8, %s36073_s19 }
 0xfcc   : >> { %19677 = vrot.lane.b32.xlu0 %v38021_v43, %s36074_s20 }
 0xfce   : >> { %19193 = vrot.lane.b32.xlu1 %v38027_v8, %s36078_s25 }
 0xfd0   : >> { %20639 = vrot.lane.b32.xlu0 %v38027_v8, %s36077_s24 }
 0xfd2   : >> { %19679 = vrot.lane.b32.xlu1 %v38027_v8, %s36074_s20 }
 0xfd4   : >> { %21125 = vrot.lane.b32.xlu0 %v38027_v8, %s36079_s26 }
 0xfd6   : >> { %20637 = vrot.lane.b32.xlu1 %v38021_v43, %s36077_s24 }
 0xfd8   : >> { %21611 = vrot.lane.b32.xlu0 %v38027_v8, %s36075_s22 }
 0xfda   : >> { %21123 = vrot.lane.b32.xlu1 %v38021_v43, %s36079_s26 }
 0xfdc   : >> { %22093 = vrot.lane.b32.xlu0 %v38027_v8, %s36082_s29 }
 0xfde   : >> { %21609 = vrot.lane.b32.xlu1 %v38021_v43, %s36075_s22 }
 0xfe2   : >> { %22091 = vrot.lane.b32.xlu1 %v38021_v43, %s36082_s29 }
0x1034   : >> { %v18224_v1 = vpop.permute.xlu1 %18223 }
0x1035   : >> { %v18230_v35 = vsel %vm395_vm6, 0.0, %v18224_v1 }
0x1036   : >> { %v18231_v22 = vmul.f32 %v39905_v58, %v18230_v35  ;;  %v18226_v2 = vpop.permute.xlu0 %18225 }
0x1037   : >> { %v18227_v20 = vsel %vm395_vm6, %v18224_v1, %v18226_v2 }
0x1038   : >> { %v18234_v33 = vsel %vm309_vm4, %v18231_v22, 0  ;;  %v18232_v57 = vmul.f32 %v39906_v18, %v18227_v20  ;;  %v18710_v4 = vpop.permute.xlu1 %18709 }
0x1039   : >> { %v38064_v13 = vand.u32 4294901760, %v18234_v33  ;;  %v18715_v62 = vsel %vm886_vm7, 0.0, %v18710_v4 }
0x103a   : >> { %v18237_v3 = vsel %vm309_vm4, %v18232_v57, 0  ;;  %v18717_v47 = vsel %vm309_vm4, %v18715_v62, 0  ;;  %v19192_v11 = vpop.permute.xlu0 %19191 }
0x103b   : >> { %v18354_v40 = vsub.f32 %v18234_v33, %v38064_v13  ;;  %v18269_v9 = vand.u32 4294901760, %v18237_v3  ;;  %v38073_v42 = vand.u32 4294901760, %v18717_v47  ;;  %v19198_v59 = vsel %vm1373_vm8, 0.0, %v19192_v11 }
0x103c   : >> { %v18712_v41 = vpop.permute.xlu1 %18711  ;;  %v19199_v10 = vmul.f32 %v39911_v38, %v19198_v59  ;;  %v39919_v59 = vld [vmem:[#allocation23_spill] sm:$0xff] }
0x103d   : >> { %v18713_v55 = vsel %vm886_vm7, %v18710_v4, %v18712_v41  ;;  %18270 = vmatprep.subr.mxu0 %v18269_v9  ;;  %v18348_v16 = vsub.f32 %v18237_v3, %v18269_v9  ;;  %v18355_v45 = vand.u32 4294901760, %v18354_v40  ;;  %v18836_v61 = vsub.f32 %v18717_v47, %v38073_v42  ;;  %v39915_v4 = vld [vmem:[#allocation21_spill] sm:$0xff]  ;;  %v39916_v47 = vld [vmem:[#allocation19_spill] sm:$0xff] }
0x103e   : >> { %v18719_v28 = vsel %vm309_vm4, %v18713_v55, 0  ;;  %18272 = vmatpush1.msra.mxu0 %v38064_v13  ;;  %v19202_v46 = vsel %vm309_vm4, %v19199_v10, 0  ;;  %v19678_v5 = vpop.permute.xlu0 %19677 }
0x103f   : >> { %v38075_v0 = vand.u32 4294901760, %v18719_v28  ;;  %18311 = vmatmul.mubr.f32.vlgmr.msra.gmra.mxu0 %v39907_v44  ;;  %18431 = vmatprep.subr.mxu0 %v18348_v16  ;;  %v18349_v56 = vand.u32 4294901760, %v18348_v16  ;;  %v18356_v60 = vsub.f32 %v18354_v40, %v18355_v45  ;;  %v18837_v25 = vand.u32 4294901760, %v18836_v61 }
0x1040   : >> { %v19194_v39 = vpop.permute.xlu1 %19193  ;;  %18434 = vmatpush1.msra.mxu0 %v18354_v40  ;;  %18467 = vmatprep.mubr.f32.mxu0 %v39908_v54  ;;  %v38097_v23 = vand.u32 4294901760, %v19202_v46  ;;  %v19684_v22 = vsel %vm1864_vm9, 0.0, %v19678_v5 }
0x1041   : >> { %v18830_v36 = vsub.f32 %v18719_v28, %v38075_v0  ;;  %v19195_v31 = vsel %vm1373_vm8, %v19192_v11, %v19194_v39  ;;  %18585 = vmatprep.subr.mxu0 %v18349_v56  ;;  %v18350_v32 = vsub.f32 %v18348_v16, %v18349_v56  ;;  %v18357_v7 = vand.u32 4294901760, %v18356_v60  ;;  %v39918_v11 = vld [vmem:[#allocation28_spill] sm:$0xff] }
0x1042   : >> { %v19200_v17 = vmul.f32 %v39909_v52, %v19195_v31  ;;  %v18838_v30 = vsub.f32 %v18836_v61, %v18837_v25  ;;  %v19322_v20 = vsub.f32 %v19202_v46, %v38097_v23  ;;  %v19685_v57 = vmul.f32 %v39905_v58, %v19684_v22  ;;  %v20640_v60 = vpop.permute.xlu0 %20639 }
0x1043   : >> { %18470 = vmatmul.mubr.f32.vlgmr.msra.gmra.mxu0 %v39910_v29  ;;  %v18351_v37 = vand.u32 4294901760, %v18350_v32  ;;  %v18831_v48 = vand.u32 4294901760, %v18830_v36  ;;  %v20644_v10 = vsel %vm2833_vm10, %v20640_v60, 0.0 }
0x1044   : >> { %18589 = vmatpush1.msra.mxu0 %v18355_v45  ;;  %18622 = vmatprep.mubr.f32.mxu0 %v39908_v54  ;;  %v19205_v34 = vsel %vm309_vm4, %v19200_v17, 0  ;;  %v19680_v6 = vpop.permute.xlu1 %19679  ;;  %v18839_v33 = vand.u32 4294901760, %v18838_v30  ;;  %v19688_v40 = vsel %vm309_vm4, %v19685_v57, 0  ;;  %v39917_v45 = vld [vmem:[#allocation22_spill] sm:$0xff]  ;;  %v39920_v17 = vld [vmem:[#allocation20_spill] sm:$0xff]  ;;  %v20646_v46 = vmul.f32 %v39909_v52, %v20644_v10  ;;  %v39923_v30 = vld [vmem:[#allocation27_spill] sm:$0xff] }
0x1045   : >> { %18752 = vmatprep.subr.mxu0 %v38075_v0  ;;  %18352 = vmatprep.subr.mxu1 %v18351_v37  ;;  %v38091_v19 = vand.u32 4294901760, %v19205_v34  ;;  %v18832_v24 = vsub.f32 %v18830_v36, %v18831_v48  ;;  %v19681_v51 = vsel %vm1864_vm9, %v19678_v5, %v19680_v6  ;;  %v38126_v55 = vand.u32 4294901760, %v19688_v40 }
0x1046   : >> { %18358 = vmatpush1.msra.mxu1 %v18357_v7  ;;  %v19686_v2 = vmul.f32 %v39906_v18, %v19681_v51  ;;  %v39921_v7 = vld [vmem:[#allocation25_spill] sm:$0xff] }
0x1047   : >> { %18624 = vmatmul.mubr.f32.vlgmr.msra.gmra.mxu0 %v39912_v53  ;;  %18393 = vmatmul.mubr.f32.vlgmr.msra.gmra.mxu1 %v39912_v53  ;;  %v18833_v1 = vand.u32 4294901760, %v18832_v24  ;;  %v19316_v35 = vsub.f32 %v19205_v34, %v38091_v19 }
0x1048   : >> { %18507 = vmatprep.subr.mxu1 %v18269_v9  ;;  %18754 = vmatpush1.msra.mxu0 %v38073_v42  ;;  %v19691_v3 = vsel %vm309_vm4, %v19686_v2, 0  ;;  %v20638_v37 = vpop.permute.xlu1 %20637 }
0x1049   : >> { %18509 = vmatpush1.msra.mxu1 %v38064_v13  ;;  %18913 = vmatprep.subr.mxu0 %v18830_v36  ;;  %v19317_v62 = vand.u32 4294901760, %v19316_v35  ;;  %v20641_v24 = vsel %vm2833_vm10, %v20638_v37, %v20640_v60  ;;  %v39928_v37 = vld [vmem:[#allocation30_spill] sm:$0xff] }
0x104a   : >> { %18661 = vmatprep.subr.mxu1 %v18269_v9  ;;  %18542 = vmatprep.mubr.f32.mxu1 %v39908_v54  ;;  %v38119_v9 = vand.u32 4294901760, %v19691_v3  ;;  %v20645_v51 = vmul.f32 %v39911_v38, %v20641_v24  ;;  %v39929_v24 = vld [vmem:[#allocation33_spill] sm:$0xff] }
0x104b   : >> { %18787 = vmatprep.mubr.f32.mxu0 %v39908_v54  ;;  %18546 = vmatmul.mubr.f32.vlgmr.msra.gmra.mxu1 %v39913_v14  ;;  %v19318_v41 = vsub.f32 %v19316_v35, %v19317_v62 }
0x104c   : >> { %18793 = vmatmul.mubr.f32.vlgmr.msra.gmra.mxu0 %v39914_v27  ;;  %18663 = vmatpush1.msra.mxu1 %v38064_v13  ;;  %v19323_v13 = vand.u32 4294901760, %v19322_v20  ;;  %v19802_v39 = vsub.f32 %v19691_v3, %v38119_v9  ;;  %v21124_v3 = vpop.permute.xlu1 %21123 }
0x104d   : >> { %18916 = vmatpush1.msra.mxu0 %v18836_v61  ;;  %18834 = vmatprep.subr.mxu1 %v18833_v1  ;;  %v19319_v28 = vand.u32 4294901760, %v19318_v41  ;;  %v39925_v41 = vld [vmem:[#allocation29_spill] sm:$0xff] }
0x104e   : >> { %19067 = vmatprep.subr.mxu0 %v18831_v48  ;;  %18696 = vmatprep.mubr.f32.mxu1 %v39908_v54  ;;  %v19324_v16 = vsub.f32 %v19322_v20, %v19323_v13  ;;  %v19803_v36 = vand.u32 4294901760, %v19802_v39 }
0x104f   : >> { %18949 = vmatprep.mubr.f32.mxu0 %v39908_v54  ;;  %18698 = vmatmul.mubr.f32.vlgmr.msra.gmra.mxu1 %v39912_v53 }
0x1050   : >> { %18952 = vmatmul.mubr.f32.vlgmr.msra.gmra.mxu0 %v39915_v4  ;;  %18840 = vmatpush1.msra.mxu1 %v18839_v33  ;;  %v19325_v56 = vand.u32 4294901760, %v19324_v16  ;;  %v19804_v32 = vsub.f32 %v19802_v39, %v19803_v36  ;;  %v39924_v33 = vld [vmem:[#allocation26_spill] sm:$0xff]  ;;  %v39926_v16 = vld [vmem:[#allocation36_spill] sm:$0xff] }
0x1051   : >> { %19071 = vmatpush1.msra.mxu0 %v18837_v25  ;;  %18989 = vmatprep.subr.mxu1 %v38075_v0 }
0x1052   : >> { %19238 = vmatprep.subr.mxu0 %v38091_v19  ;;  %18873 = vmatprep.mubr.f32.mxu1 %v39908_v54  ;;  %v19805_v25 = vand.u32 4294901760, %v19804_v32 }
0x1053   : >> { %19104 = vmatprep.mubr.f32.mxu0 %v39908_v54  ;;  %18875 = vmatmul.mubr.f32.vlgmr.msra.gmra.mxu1 %v39916_v47 }
0x1054   : >> { %19106 = vmatmul.mubr.f32.vlgmr.msra.gmra.mxu0 %v39916_v47  ;;  %18991 = vmatpush1.msra.mxu1 %v38073_v42 }
0x1055   : >> { %19240 = vmatpush1.msra.mxu0 %v38097_v23  ;;  %19143 = vmatprep.subr.mxu1 %v38075_v0  ;;  %v19808_v0 = vsub.f32 %v19688_v40, %v38126_v55 }
0x1056   : >> { %19399 = vmatprep.subr.mxu0 %v19316_v35  ;;  %19024 = vmatprep.mubr.f32.mxu1 %v39908_v54  ;;  %v20651_v35 = vsel %vm309_vm4, %v20646_v46, 0 }
0x1057   : >> { %19273 = vmatprep.mubr.f32.mxu0 %v39908_v54  ;;  %19028 = vmatmul.mubr.f32.vlgmr.msra.gmra.mxu1 %v39917_v45  ;;  %v19809_v31 = vand.u32 4294901760, %v19808_v0  ;;  %v38176_v2 = vand.u32 4294901760, %v20651_v35 }
0x1058   : >> { %19279 = vmatmul.mubr.f32.vlgmr.msra.gmra.mxu0 %v39918_v11  ;;  %19145 = vmatpush1.msra.mxu1 %v38073_v42  ;;  %v20165_v42 = vsel %vm309_vm4, %v38027_v8, 0  ;;  %v20163_v8 = vsel %vm309_vm4, %v38021_v43, 0  ;;  %v39922_v43 = vld [vmem:[#allocation32_spill] sm:$0xff] }
0x1059   : >> { %19402 = vmatpush1.msra.mxu0 %v19322_v20  ;;  %19320 = vmatprep.subr.mxu1 %v19319_v28  ;;  %v38147_v61 = vand.u32 4294901760, %v20165_v42  ;;  %v19810_v48 = vsub.f32 %v19808_v0, %v19809_v31  ;;  %v38157_v34 = vand.u32 4294901760, %v20163_v8  ;;  %v20648_v20 = vsel %vm309_vm4, %v20645_v51, 0 }
0x105a   : >> { %19553 = vmatprep.subr.mxu0 %v19317_v62  ;;  %19178 = vmatprep.mubr.f32.mxu1 %v39908_v54 }
0x105b   : >> { %19435 = vmatprep.mubr.f32.mxu0 %v39908_v54  ;;  %19180 = vmatmul.mubr.f32.vlgmr.msra.gmra.mxu1 %v39916_v47  ;;  %v20276_v6 = vsub.f32 %v20165_v42, %v38147_v61  ;;  %v20282_v5 = vsub.f32 %v20163_v8, %v38157_v34 }
0x105c   : >> { %19438 = vmatmul.mubr.f32.vlgmr.msra.gmra.mxu0 %v39919_v59  ;;  %19326 = vmatpush1.msra.mxu1 %v19325_v56 }
0x105d   : >> { %19557 = vmatpush1.msra.mxu0 %v19323_v13  ;;  %19475 = vmatprep.subr.mxu1 %v38091_v19  ;;  %v20277_v1 = vand.u32 4294901760, %v20276_v6  ;;  %v20283_v22 = vand.u32 4294901760, %v20282_v5  ;;  %v38185_v13 = vand.u32 4294901760, %v20648_v20 }
0x105e   : >> { %19724 = vmatprep.subr.mxu0 %v38119_v9  ;;  %19359 = vmatprep.mubr.f32.mxu1 %v39908_v54 }
0x105f   : >> { %19590 = vmatprep.mubr.f32.mxu0 %v39908_v54  ;;  %19361 = vmatmul.mubr.f32.vlgmr.msra.gmra.mxu1 %v39920_v17  ;;  %v20278_v57 = vsub.f32 %v20276_v6, %v20277_v1  ;;  %v20284_v40 = vsub.f32 %v20282_v5, %v20283_v22 }
0x1060   : >> { %19592 = vmatmul.mubr.f32.vlgmr.msra.gmra.mxu0 %v39920_v17  ;;  %19477 = vmatpush1.msra.mxu1 %v38097_v23 }
0x1061   : >> { %19726 = vmatpush1.msra.mxu0 %v38126_v55  ;;  %19629 = vmatprep.subr.mxu1 %v38091_v19  ;;  %v19811_v19 = vand.u32 4294901760, %v19810_v48  ;;  %v20279_v28 = vand.u32 4294901760, %v20278_v57 }
0x1062   : >> { %19885 = vmatprep.subr.mxu0 %v19802_v39  ;;  %19510 = vmatprep.mubr.f32.mxu1 %v39908_v54  ;;  %v20762_v39 = vsub.f32 %v20651_v35, %v38176_v2 }
0x1063   : >> { %19759 = vmatprep.mubr.f32.mxu0 %v39908_v54  ;;  %19514 = vmatmul.mubr.f32.vlgmr.msra.gmra.mxu1 %v39921_v7 }
0x1064   : >> { %19765 = vmatmul.mubr.f32.vlgmr.msra.gmra.mxu0 %v39922_v43  ;;  %19631 = vmatpush1.msra.mxu1 %v38097_v23  ;;  %v21126_v23 = vpop.permute.xlu0 %21125  ;;  %v20763_v60 = vand.u32 4294901760, %v20762_v39 }
0x1065   : >> { %19888 = vmatpush1.msra.mxu0 %v19808_v0  ;;  %19806 = vmatprep.subr.mxu1 %v19805_v25  ;;  %v21130_v62 = vsel %vm3324_vm11, %v21126_v23, 0.0  ;;  %v21127_v56 = vsel %vm3324_vm11, %v21124_v3, %v21126_v23 }
0x1066   : >> { %20039 = vmatprep.subr.mxu0 %v19803_v36  ;;  %19664 = vmatprep.mubr.f32.mxu1 %v39908_v54  ;;  %v21132_v0 = vmul.f32 %v39906_v18, %v21130_v62  ;;  %v20285_v36 = vand.u32 4294901760, %v20284_v40  ;;  %v21131_v42 = vmul.f32 %v39905_v58, %v21127_v56  ;;  %v20764_v48 = vsub.f32 %v20762_v39, %v20763_v60 }
0x1067   : >> { %19921 = vmatprep.mubr.f32.mxu0 %v39908_v54  ;;  %19666 = vmatmul.mubr.f32.vlgmr.msra.gmra.mxu1 %v39920_v17 }
0x1068   : >> { %19924 = vmatmul.mubr.f32.vlgmr.msra.gmra.mxu0 %v39923_v30  ;;  %19812 = vmatpush1.msra.mxu1 %v19811_v19  ;;  %v21137_v32 = vsel %vm309_vm4, %v21132_v0, 0  ;;  %v21134_v10 = vsel %vm309_vm4, %v21131_v42, 0  ;;  %v21612_v25 = vpop.permute.xlu0 %21611  ;;  %v39930_v19 = vld [vmem:[#allocation40_spill] sm:$0xff] }
0x1069   : >> { %20043 = vmatpush1.msra.mxu0 %v19809_v31  ;;  %19961 = vmatprep.subr.mxu1 %v38119_v9  ;;  %v39927_v31 = vld [vmem:[#allocation31_spill] sm:$0xff]  ;;  %v38206_v8 = vand.u32 4294901760, %v21137_v32 }
0x106a   : >> { %20198 = vmatprep.subr.mxu0 %v38147_v61  ;;  %19845 = vmatprep.mubr.f32.mxu1 %v39908_v54 }
0x106b   : >> { %20076 = vmatprep.mubr.f32.mxu0 %v39908_v54  ;;  %19847 = vmatmul.mubr.f32.vlgmr.msra.gmra.mxu1 %v39924_v33  ;;  %v21248_v51 = vsub.f32 %v21137_v32, %v38206_v8  ;;  %v39933_v32 = vld [vmem:[#allocation37_spill] sm:$0xff] }
0x106c   : >> { %20078 = vmatmul.mubr.f32.vlgmr.msra.gmra.mxu0 %v39924_v33  ;;  %19963 = vmatpush1.msra.mxu1 %v38126_v55  ;;  %v22094_v3 = vpop.permute.xlu0 %22093 }
0x106d   : >> { %20200 = vmatpush1.msra.mxu0 %v38157_v34  ;;  %20115 = vmatprep.subr.mxu1 %v38119_v9  ;;  %v20768_v9 = vsub.f32 %v20648_v20, %v38185_v13  ;;  %v21249_v20 = vand.u32 4294901760, %v21248_v51  ;;  %v22098_v56 = vsel %vm4302_vm13, %v22094_v3, 0.0 }
0x106e   : >> { %20359 = vmatprep.subr.mxu0 %v20276_v6  ;;  %19996 = vmatprep.mubr.f32.mxu1 %v39908_v54  ;;  %v38214_v6 = vand.u32 4294901760, %v21134_v10 }
0x106f   : >> { %20233 = vmatprep.mubr.f32.mxu0 %v39908_v54  ;;  %20000 = vmatmul.mubr.f32.vlgmr.msra.gmra.mxu1 %v39925_v41  ;;  %v21250_v0 = vsub.f32 %v21248_v51, %v21249_v20 }
0x1070   : >> { %20239 = vmatmul.mubr.f32.vlgmr.msra.gmra.mxu0 %v39926_v16  ;;  %20117 = vmatpush1.msra.mxu1 %v38126_v55  ;;  %v20769_v55 = vand.u32 4294901760, %v20768_v9  ;;  %v21254_v35 = vsub.f32 %v21134_v10, %v38214_v6 }
0x1071   : >> { %20362 = vmatpush1.msra.mxu0 %v20282_v5  ;;  %20280 = vmatprep.subr.mxu1 %v20279_v28  ;;  %v20765_v5 = vand.u32 4294901760, %v20764_v48  ;;  %v21251_v10 = vand.u32 4294901760, %v21250_v0  ;;  %v22100_v48 = vmul.f32 %v39909_v52, %v22098_v56 }
0x1072   : >> { %20513 = vmatprep.subr.mxu0 %v20277_v1  ;;  %20150 = vmatprep.mubr.f32.mxu1 %v39908_v54  ;;  %v20770_v46 = vsub.f32 %v20768_v9, %v20769_v55  ;;  %v21610_v1 = vpop.permute.xlu1 %21609  ;;  %v21255_v62 = vand.u32 4294901760, %v21254_v35 }
0x1073   : >> { %20395 = vmatprep.mubr.f32.mxu0 %v39908_v54  ;;  %20152 = vmatmul.mubr.f32.vlgmr.msra.gmra.mxu1 %v39924_v33  ;;  %v21613_v57 = vsel %vm3815_vm12, %v21610_v1, %v21612_v25  ;;  %v22105_v1 = vsel %vm309_vm4, %v22100_v48, 0 }
0x1074   : >> { %20398 = vmatmul.mubr.f32.vlgmr.msra.gmra.mxu0 %v39927_v31  ;;  %20286 = vmatpush1.msra.mxu1 %v20285_v36  ;;  %v20771_v23 = vand.u32 4294901760, %v20770_v46  ;;  %v21616_v28 = vsel %vm309_vm4, %v21613_v57, 0  ;;  %v21256_v42 = vsub.f32 %v21254_v35, %v21255_v62 }
0x1075   : >> { %20517 = vmatpush1.msra.mxu0 %v20283_v22  ;;  %20435 = vmatprep.subr.mxu1 %v38147_v61  ;;  %v39931_v22 = vld [vmem:[#allocation35_spill] sm:$0xff]  ;;  %v38243_v36 = vand.u32 4294901760, %v21616_v28 }
0x1076   : >> { %20684 = vmatprep.subr.mxu0 %v38176_v2  ;;  %20319 = vmatprep.mubr.f32.mxu1 %v39908_v54  ;;  %v21257_v46 = vand.u32 4294901760, %v21256_v42  ;;  %v39939_v42 = vld [vmem:[#allocation43_spill] sm:$0xff] }
0x1077   : >> { %20550 = vmatprep.mubr.f32.mxu0 %v39908_v54  ;;  %20321 = vmatmul.mubr.f32.vlgmr.msra.gmra.mxu1 %v39928_v37 }
0x1078   : >> { %20552 = vmatmul.mubr.f32.vlgmr.msra.gmra.mxu0 %v39928_v37  ;;  %20437 = vmatpush1.msra.mxu1 %v38157_v34 }
0x1079   : >> { %20686 = vmatpush1.msra.mxu0 %v38185_v13  ;;  %20589 = vmatprep.subr.mxu1 %v38147_v61  ;;  %v21615_v61 = vsel %vm3815_vm12, %v21612_v25, 0.0 }
0x107a   : >> { %20845 = vmatprep.subr.mxu0 %v20762_v39  ;;  %20470 = vmatprep.mubr.f32.mxu1 %v39908_v54  ;;  %v39932_v39 = vld [vmem:[#allocation34_spill] sm:$0xff] }
0x107b   : >> { %20719 = vmatprep.mubr.f32.mxu0 %v39908_v54  ;;  %20474 = vmatmul.mubr.f32.vlgmr.msra.gmra.mxu1 %v39929_v24 }
0x107c   : >> { %20725 = vmatmul.mubr.f32.vlgmr.msra.gmra.mxu0 %v39930_v19  ;;  %20591 = vmatpush1.msra.mxu1 %v38157_v34  ;;  %v21619_v34 = vsel %vm309_vm4, %v21615_v61, 0 }
0x107d   : >> { %20848 = vmatpush1.msra.mxu0 %v20768_v9  ;;  %20766 = vmatprep.subr.mxu1 %v20765_v5  ;;  %v38234_v40 = vand.u32 4294901760, %v21619_v34  ;;  %v22092_v9 = vpop.permute.xlu1 %22091 }
0x107e   : >> { %20999 = vmatprep.subr.mxu0 %v20763_v60  ;;  %20624 = vmatprep.mubr.f32.mxu1 %v39908_v54  ;;  %v22095_v25 = vsel %vm4302_vm13, %v22092_v9, %v22094_v3  ;;  %v39937_v3 = vld [vmem:[#allocation41_spill] sm:$0xff] }
0x107f   : >> { %20881 = vmatprep.mubr.f32.mxu0 %v39908_v54  ;;  %20626 = vmatmul.mubr.f32.vlgmr.msra.gmra.mxu1 %v39928_v37  ;;  %v21730_v60 = vsub.f32 %v21619_v34, %v38234_v40  ;;  %v22099_v5 = vmul.f32 %v39911_v38, %v22095_v25 }
0x1080   : >> { %20884 = vmatmul.mubr.f32.vlgmr.msra.gmra.mxu0 %v39931_v22  ;;  %20772 = vmatpush1.msra.mxu1 %v20771_v23 }
0x1081   : >> { %21003 = vmatpush1.msra.mxu0 %v20769_v55  ;;  %20921 = vmatprep.subr.mxu1 %v38176_v2  ;;  %v39934_v55 = vld [vmem:[#allocation44_spill] sm:$0xff]  ;;  %v21731_v61 = vand.u32 4294901760, %v21730_v60  ;;  %v22102_v23 = vsel %vm309_vm4, %v22099_v5, 0 }
0x1082   : >> { %21170 = vmatprep.subr.mxu0 %v38206_v8  ;;  %20805 = vmatprep.mubr.f32.mxu1 %v39908_v54  ;;  %v22139_v57 = vand.u32 4294901760, %v22102_v23 }
0x1083   : >> { %21036 = vmatprep.mubr.f32.mxu0 %v39908_v54  ;;  %20807 = vmatmul.mubr.f32.vlgmr.msra.gmra.mxu1 %v39932_v39  ;;  %v21732_v34 = vsub.f32 %v21730_v60, %v21731_v61 }
0x1084   : >> { %21038 = vmatmul.mubr.f32.vlgmr.msra.gmra.mxu0 %v39932_v39  ;;  %20923 = vmatpush1.msra.mxu1 %v38185_v13 }
0x1085   : >> { %21172 = vmatpush1.msra.mxu0 %v38214_v6  ;;  %21075 = vmatprep.subr.mxu1 %v38176_v2  ;;  %v21736_v2 = vsub.f32 %v21616_v28, %v38243_v36  ;;  %v39938_v28 = vld [vmem:[#allocation48_spill] sm:$0xff]  ;;  %v21733_v0 = vand.u32 4294901760, %v21732_v34 }
0x1086   : >> { %21331 = vmatprep.subr.mxu0 %v21248_v51  ;;  %20956 = vmatprep.mubr.f32.mxu1 %v39908_v54  ;;  %v39935_v51 = vld [vmem:[#allocation39_spill] sm:$0xff] }
0x1087   : >> { %21205 = vmatprep.mubr.f32.mxu0 %v39908_v54  ;;  %20960 = vmatmul.mubr.f32.vlgmr.msra.gmra.mxu1 %v39933_v32 }
0x1088   : >> { %21211 = vmatmul.mubr.f32.vlgmr.msra.gmra.mxu0 %v39934_v55  ;;  %21077 = vmatpush1.msra.mxu1 %v38185_v13  ;;  %v21737_v13 = vand.u32 4294901760, %v21736_v2 }
0x1089   : >> { %21334 = vmatpush1.msra.mxu0 %v21254_v35  ;;  %21252 = vmatprep.subr.mxu1 %v21251_v10  ;;  %v38264_v35 = vand.u32 4294901760, %v22105_v1  ;;  %v39940_v10 = vld [vmem:[#allocation42_spill] sm:$0xff] }
0x108a   : >> { %21485 = vmatprep.subr.mxu0 %v21249_v20  ;;  %21110 = vmatprep.mubr.f32.mxu1 %v39908_v54  ;;  %v39936_v20 = vld [vmem:[#allocation38_spill] sm:$0xff] }
0x108b   : >> { %21367 = vmatprep.mubr.f32.mxu0 %v39908_v54  ;;  %21112 = vmatmul.mubr.f32.vlgmr.msra.gmra.mxu1 %v39932_v39  ;;  %v22216_v56 = vsub.f32 %v22105_v1, %v38264_v35  ;;  %v39945_v1 = vld [vmem:[#allocation49_spill] sm:$0xff] }
0x108c   : >> { %21370 = vmatmul.mubr.f32.vlgmr.msra.gmra.mxu0 %v39935_v51  ;;  %21258 = vmatpush1.msra.mxu1 %v21257_v46  ;;  %v39942_v46 = vld [vmem:[#allocation50_spill] sm:$0xff] }
0x108d   : >> { %21489 = vmatpush1.msra.mxu0 %v21255_v62  ;;  %21407 = vmatprep.subr.mxu1 %v38206_v8  ;;  %v21738_v62 = vsub.f32 %v21736_v2, %v21737_v13 }
0x108e   : >> { %21652 = vmatprep.subr.mxu0 %v38234_v40  ;;  %21291 = vmatprep.mubr.f32.mxu1 %v39908_v54 }
0x108f   : >> { %21522 = vmatprep.mubr.f32.mxu0 %v39908_v54  ;;  %21293 = vmatmul.mubr.f32.vlgmr.msra.gmra.mxu1 %v39936_v20  ;;  %v21739_v9 = vand.u32 4294901760, %v21738_v62 }
0x1090   : >> { %21524 = vmatmul.mubr.f32.vlgmr.msra.gmra.mxu0 %v39936_v20  ;;  %21409 = vmatpush1.msra.mxu1 %v38214_v6 }
0x1091   : >> { %21654 = vmatpush1.msra.mxu0 %v38243_v36  ;;  %21561 = vmatprep.subr.mxu1 %v38206_v8  ;;  %v22222_v8 = vsub.f32 %v22102_v23, %v22139_v57 }
0x1092   : >> { %21813 = vmatprep.subr.mxu0 %v21730_v60  ;;  %21442 = vmatprep.mubr.f32.mxu1 %v39908_v54  ;;  %v22217_v60 = vand.u32 4294901760, %v22216_v56 }
0x1093   : >> { %21687 = vmatprep.mubr.f32.mxu0 %v39908_v54  ;;  %21446 = vmatmul.mubr.f32.vlgmr.msra.gmra.mxu1 %v39937_v3 }
0x1094   : >> { %21693 = vmatmul.mubr.f32.vlgmr.msra.gmra.mxu0 %v39938_v28  ;;  %21563 = vmatpush1.msra.mxu1 %v38214_v6  ;;  %v22223_v6 = vand.u32 4294901760, %v22222_v8  ;;  %v22218_v48 = vsub.f32 %v22216_v56, %v22217_v60 }
0x1095   : >> { %21816 = vmatpush1.msra.mxu0 %v21736_v2  ;;  %21734 = vmatprep.subr.mxu1 %v21733_v0  ;;  %v39941_v2 = vld [vmem:[#allocation45_spill] sm:$0xff] }
0x1096   : >> { %21967 = vmatprep.subr.mxu0 %v21731_v61  ;;  %21596 = vmatprep.mubr.f32.mxu1 %v39908_v54  ;;  %v22224_v25 = vsub.f32 %v22222_v8, %v22223_v6  ;;  %v22219_v5 = vand.u32 4294901760, %v22218_v48  ;;  %v39943_v61 = vld [vmem:[#allocation47_spill] sm:$0xff] }
0x1097   : >> { %21849 = vmatprep.mubr.f32.mxu0 %v39908_v54  ;;  %21598 = vmatmul.mubr.f32.vlgmr.msra.gmra.mxu1 %v39936_v20 }
0x1098   : >> { %21852 = vmatmul.mubr.f32.vlgmr.msra.gmra.mxu0 %v39939_v42  ;;  %21740 = vmatpush1.msra.mxu1 %v21739_v9 }
0x1099   : >> { %21971 = vmatpush1.msra.mxu0 %v21737_v13  ;;  %21889 = vmatprep.subr.mxu1 %v38234_v40 }
0x109a   : >> { %22138 = vmatprep.subr.mxu0 %v38264_v35  ;;  %21773 = vmatprep.mubr.f32.mxu1 %v39908_v54 }
0x109b   : >> { %22004 = vmatprep.mubr.f32.mxu0 %v39908_v54  ;;  %21775 = vmatmul.mubr.f32.vlgmr.msra.gmra.mxu1 %v39940_v10 }
0x109c   : >> { %22006 = vmatmul.mubr.f32.vlgmr.msra.gmra.mxu0 %v39940_v10  ;;  %21891 = vmatpush1.msra.mxu1 %v38243_v36 }
0x109d   : >> { %22140 = vmatpush1.msra.mxu0 %v22139_v57  ;;  %22043 = vmatprep.subr.mxu1 %v38234_v40  ;;  %v22225_v40 = vand.u32 4294901760, %v22224_v25 }
0x109e   : >> { %22299 = vmatprep.subr.mxu0 %v22216_v56  ;;  %21924 = vmatprep.mubr.f32.mxu1 %v39908_v54 }
0x109f   : >> { %22173 = vmatprep.mubr.f32.mxu0 %v39908_v54  ;;  %21928 = vmatmul.mubr.f32.vlgmr.msra.gmra.mxu1 %v39941_v2 }
0x10a0   : >> { %22179 = vmatmul.mubr.f32.vlgmr.msra.gmra.mxu0 %v39942_v46  ;;  %22045 = vmatpush1.msra.mxu1 %v38243_v36  ;;  %v39944_v36 = vld [vmem:[#allocation46_spill] sm:$0xff] }
0x10a1   : >> { %22302 = vmatpush1.msra.mxu0 %v22222_v8  ;;  %22220 = vmatprep.subr.mxu1 %v22219_v5 }
0x10a2   : >> { %22453 = vmatprep.subr.mxu0 %v22217_v60  ;;  %22078 = vmatprep.mubr.f32.mxu1 %v39908_v54 }
0x10a3   : >> { %22335 = vmatprep.mubr.f32.mxu0 %v39908_v54  ;;  %22080 = vmatmul.mubr.f32.vlgmr.msra.gmra.mxu1 %v39940_v10 }
0x10a4   : >> { %22338 = vmatmul.mubr.f32.vlgmr.msra.gmra.mxu0 %v39943_v61  ;;  %22226 = vmatpush1.msra.mxu1 %v22225_v40 }
0x10a5   : >> { %22457 = vmatpush1.msra.mxu0 %v22223_v6  ;;  %22375 = vmatprep.subr.mxu1 %v38264_v35 }
0x10a6   : >> { %22259 = vmatprep.mubr.f32.mxu1 %v39908_v54  ;;  %22490 = vmatprep.mubr.f32.mxu0 %v39908_v54 }
0x10a7   : >> { %22261 = vmatmul.mubr.f32.vlgmr.msra.gmra.mxu1 %v39944_v36 }
0x10a8   : >> { %22492 = vmatmul.mubr.f32.vlgmr.msra.gmra.mxu0 %v39944_v36  ;;  %22377 = vmatpush1.msra.mxu1 %v22139_v57 }
0x10a9   : >> { %22410 = vmatprep.mubr.f32.mxu1 %v39908_v54  ;;  %22529 = vmatprep.subr.mxu1 %v38264_v35 }
0x10aa   : >> { %22705 = vmatprep.mubr.f32.mxu0 %v39908_v54 }
0x10ab   : >> { %22414 = vmatmul.mubr.f32.vlgmr.msra.gmra.mxu1 %v39945_v1 }
0x10ac   : >> { %22531 = vmatpush1.msra.mxu1 %v22139_v57  ;;  %22564 = vmatprep.mubr.f32.mxu1 %v39908_v54 }
0x10af   : >> { %22566 = vmatmul.mubr.f32.vlgmr.msra.gmra.mxu1 %v39944_v36 }
0x10b0   : >> { %22791 = vmatprep.mubr.f32.mxu1 %v39908_v54 }
0x10ff   : >> { %v18312_v13 = vpop.f32.mrf.mxu0 }
0x1101   : >> { %v18314_v23 = vpop.f32.mrf.mxu0 }
0x1103   : >> { %v18471_v34 = vpop.f32.mrf.mxu0 }
0x1105   : >> { %v18473_v62 = vpop.f32.mrf.mxu0 }
0x1107   : >> { %v18625_v0 = vpop.f32.mrf.mxu0  ;;  %v18394_v56 = vpop.f32.mrf.mxu1 }
0x1108   : >> { %v18395_v8 = vadd.f32 %v18394_v56, %v18312_v13 }
0x1109   : >> { %v18627_v9 = vpop.f32.mrf.mxu0  ;;  %v18396_v35 = vpop.f32.mrf.mxu1 }
0x110a   : >> { %v18397_v60 = vadd.f32 %v18396_v35, %v18314_v23  ;;  %v18472_v6 = vadd.f32 %v18471_v34, %v18395_v8 }
0x110b   : >> { %v18547_v48 = vpop.f32.mrf.mxu1 }
0x110c   : >> { %v18794_v25 = vpop.f32.mrf.mxu0  ;;  %v18548_v57 = vadd.f32 %v18547_v48, %v18472_v6  ;;  %v18474_v5 = vadd.f32 %v18473_v62, %v18397_v60 }
0x110d   : >> { %v18549_v40 = vpop.f32.mrf.mxu1 }
0x110e   : >> { %v18796_v1 = vpop.f32.mrf.mxu0  ;;  %v18626_v36 = vadd.f32 %v18625_v0, %v18548_v57  ;;  %v18550_v2 = vadd.f32 %v18549_v40, %v18474_v5 }
0x110f   : >> { %v18699_v61 = vpop.f32.mrf.mxu1 }
0x1110   : >> { %v18953_v46 = vpop.f32.mrf.mxu0  ;;  %v18700_v10 = vadd.f32 %v18699_v61, %v18626_v36  ;;  %v18628_v13 = vadd.f32 %v18627_v9, %v18550_v2 }
0x1111   : >> { %v18701_v42 = vpop.f32.mrf.mxu1 }
0x1112   : >> { %v18955_v28 = vpop.f32.mrf.mxu0  ;;  %v18702_v62 = vadd.f32 %v18701_v42, %v18628_v13 }
0x1113   : >> { %v18876_v3 = vpop.f32.mrf.mxu1 }
0x1114   : >> { %v19107_v20 = vpop.f32.mrf.mxu0  ;;  %v18877_v56 = vadd.f32 %v18876_v3, %v18794_v25  ;;  %v18706_v40 = vcombine.low %v18700_v10, %v18702_v62 }
0x1115   : >> { %v18878_v51 = vpop.f32.mrf.mxu1 }
0x1116   : >> { %v19109_v23 = vpop.f32.mrf.mxu0  ;;  %v18879_v34 = vadd.f32 %v18878_v51, %v18796_v1  ;;  %v18954_v8 = vadd.f32 %v18953_v46, %v18877_v56  ;;  %v39946_v46 = vld [vmem:[#allocation95_spill] sm:$0xff] }
0x1117   : >> { %v19029_v35 = vpop.f32.mrf.mxu1  ;;  %v18708_v1 = vadd.f32 %v18706_v40, %v39946_v46 }
0x1118   : >> { %v19280_v6 = vpop.f32.mrf.mxu0  ;;  %v19030_v60 = vadd.f32 %v19029_v35, %v18954_v8  ;;  %v18956_v48 = vadd.f32 %v18955_v28, %v18879_v34 }
0x1119   : >> { %v19031_v0 = vpop.f32.mrf.mxu1 }
0x111a   : >> { %v19282_v57 = vpop.f32.mrf.mxu0  ;;  %v19032_v55 = vadd.f32 %v19031_v0, %v18956_v48  ;;  %v19108_v5 = vadd.f32 %v19107_v20, %v19030_v60 }
0x111b   : >> { %v19181_v61 = vpop.f32.mrf.mxu1 }
0x111c   : >> { %v19439_v36 = vpop.f32.mrf.mxu0  ;;  %v19182_v32 = vadd.f32 %v19181_v61, %v19108_v5  ;;  %v19110_v39 = vadd.f32 %v19109_v23, %v19032_v55 }
0x111d   : >> { %v19183_v2 = vpop.f32.mrf.mxu1 }
0x111e   : >> { %v19441_v3 = vpop.f32.mrf.mxu0  ;;  %v19184_v9 = vadd.f32 %v19183_v2, %v19110_v39 }
0x111f   : >> { %v19362_v25 = vpop.f32.mrf.mxu1 }
0x1120   : >> { %v19593_v51 = vpop.f32.mrf.mxu0  ;;  %v19188_v56 = vcombine.low %v19182_v32, %v19184_v9  ;;  %v19363_v42 = vadd.f32 %v19362_v25, %v19280_v6 }
0x1121   : >> { %v19364_v13 = vpop.f32.mrf.mxu1 }
0x1122   : >> { %v19595_v28 = vpop.f32.mrf.mxu0  ;;  %v19190_v34 = vadd.f32 %v19188_v56, %v18708_v1  ;;  %v19365_v8 = vadd.f32 %v19364_v13, %v19282_v57  ;;  %v19440_v35 = vadd.f32 %v19439_v36, %v19363_v42 }
0x1123   : >> { %v19515_v20 = vpop.f32.mrf.mxu1 }
0x1124   : >> { %v19766_v60 = vpop.f32.mrf.mxu0  ;;  %v19516_v48 = vadd.f32 %v19515_v20, %v19440_v35  ;;  %v19442_v10 = vadd.f32 %v19441_v3, %v19365_v8 }
0x1125   : >> { %v19517_v62 = vpop.f32.mrf.mxu1 }
0x1126   : >> { %v19768_v55 = vpop.f32.mrf.mxu0  ;;  %v19518_v23 = vadd.f32 %v19517_v62, %v19442_v10  ;;  %v19594_v0 = vadd.f32 %v19593_v51, %v19516_v48 }
0x1127   : >> { %v19667_v39 = vpop.f32.mrf.mxu1 }
0x1128   : >> { %v19925_v5 = vpop.f32.mrf.mxu0  ;;  %v19596_v61 = vadd.f32 %v19595_v28, %v19518_v23  ;;  %v19668_v32 = vadd.f32 %v19667_v39, %v19594_v0 }
0x1129   : >> { %v19669_v2 = vpop.f32.mrf.mxu1 }
0x112a   : >> { %v19927_v40 = vpop.f32.mrf.mxu0  ;;  %v19670_v6 = vadd.f32 %v19669_v2, %v19596_v61 }
0x112b   : >> { %v19848_v9 = vpop.f32.mrf.mxu1 }
0x112c   : >> { %v38312_v25 = vpop.f32.mrf.mxu0  ;;  %v19674_v57 = vcombine.low %v19668_v32, %v19670_v6  ;;  %v19849_v14 = vadd.f32 %v19848_v9, %v19766_v60 }
0x112d   : >> { %v19850_v36 = vpop.f32.mrf.mxu1 }
0x112e   : >> { %v38314_v46 = vpop.f32.mrf.mxu0  ;;  %v38316_v1 = vadd.f32 %v19674_v57, %v19190_v34  ;;  %v19851_v47 = vadd.f32 %v19850_v36, %v19768_v55  ;;  %v19926_v49 = vadd.f32 %v19925_v5, %v19849_v14 }
0x112f   : >> { %v20001_v3 = vpop.f32.mrf.mxu1 }
0x1130   : >> { %39947 = vst [vmem:[#allocation95_spill] sm:$0xff] %v38316_v1  ;;  %v20240_v56 = vpop.f32.mrf.mxu0  ;;  %v19928_v26 = vadd.f32 %v19927_v40, %v19851_v47 }
0x1131   : >> { %v20003_v42 = vpop.f32.mrf.mxu1 }
0x1132   : >> { %v20242_v51 = vpop.f32.mrf.mxu0  ;;  %v20004_v15 = vadd.f32 %v20003_v42, %v19928_v26 }
0x1133   : >> { %v38318_v13 = vpop.f32.mrf.mxu1 }
0x1134   : >> { %v20399_v28 = vpop.f32.mrf.mxu0 }
0x1135   : >> { %v38320_v8 = vpop.f32.mrf.mxu1 }
0x1136   : >> { %v20401_v35 = vpop.f32.mrf.mxu0 }
0x1137   : >> { %v20322_v20 = vpop.f32.mrf.mxu1 }
0x1138   : >> { %v38322_v48 = vpop.f32.mrf.mxu0  ;;  %v20323_v63 = vadd.f32 %v20322_v20, %v20240_v56 }
0x1139   : >> { %v20324_v10 = vpop.f32.mrf.mxu1 }
0x113a   : >> { %v38324_v62 = vpop.f32.mrf.mxu0  ;;  %v20325_v53 = vadd.f32 %v20324_v10, %v20242_v51  ;;  %v20400_v55 = vadd.f32 %v20399_v28, %v20323_v63  ;;  %v20002_v51 = vadd.f32 %v20001_v3, %v19926_v49 }
0x113b   : >> { %v20475_v23 = vpop.f32.mrf.mxu1 }
0x113c   : >> { %v20726_v0 = vpop.f32.mrf.mxu0  ;;  %v20402_v38 = vadd.f32 %v20401_v35, %v20325_v53  ;;  %v20082_v53 = vadd.f32 %v38314_v46, %v20004_v15  ;;  %v20476_v14 = vadd.f32 %v20475_v23, %v20400_v55 }
0x113d   : >> { %v20477_v34 = vpop.f32.mrf.mxu1 }
0x113e   : >> { %v20728_v39 = vpop.f32.mrf.mxu0  ;;  %v20478_v10 = vadd.f32 %v20477_v34, %v20402_v38 }
0x113f   : >> { %v38326_v61 = vpop.f32.mrf.mxu1 }
0x1140   : >> { %v20885_v2 = vpop.f32.mrf.mxu0 }
0x1141   : >> { %v38328_v32 = vpop.f32.mrf.mxu1 }
0x1142   : >> { %v20887_v6 = vpop.f32.mrf.mxu0 }
0x1143   : >> { %v20808_v57 = vpop.f32.mrf.mxu1 }
0x1144   : >> { %v38330_v22 = vpop.f32.mrf.mxu0  ;;  %v20809_v54 = vadd.f32 %v20808_v57, %v20726_v0 }
0x1145   : >> { %v20810_v19 = vpop.f32.mrf.mxu1 }
0x1146   : >> { %v21041_v24 = vpop.f32.mrf.mxu0  ;;  %v20811_v21 = vadd.f32 %v20810_v19, %v20728_v39  ;;  %v20886_v47 = vadd.f32 %v20885_v2, %v20809_v54  ;;  %v39948_v2 = vld [vmem:[#allocation95_spill] sm:$0xff] }
0x1147   : >> { %v20961_v37 = vpop.f32.mrf.mxu1 }
0x1148   : >> { %v21212_v31 = vpop.f32.mrf.mxu0  ;;  %v20888_v36 = vadd.f32 %v20887_v6, %v20811_v21  ;;  %v20080_v21 = vadd.f32 %v38312_v25, %v20002_v51  ;;  %v20962_v49 = vadd.f32 %v20961_v37, %v20886_v47 }
0x1149   : >> { %v20963_v16 = vpop.f32.mrf.mxu1 }
0x114a   : >> { %v21214_v41 = vpop.f32.mrf.mxu0  ;;  %v20964_v5 = vadd.f32 %v20963_v16, %v20888_v36  ;;  %v21040_v25 = vadd.f32 %v38330_v22, %v20962_v49 }
0x114b   : >> { %v38332_v33 = vpop.f32.mrf.mxu1 }
0x114c   : >> { %v21371_v30 = vpop.f32.mrf.mxu0  ;;  %v21042_v15 = vadd.f32 %v21041_v24, %v20964_v5 }
0x114d   : >> { %v38334_v43 = vpop.f32.mrf.mxu1 }
0x114e   : >> { %v21373_v7 = vpop.f32.mrf.mxu0  ;;  %v21116_v42 = vadd.f32 %v38334_v43, %v21042_v15 }
0x114f   : >> { %v21294_v17 = vpop.f32.mrf.mxu1 }
0x1150   : >> { %v38336_v59 = vpop.f32.mrf.mxu0  ;;  %v21295_v9 = vadd.f32 %v21294_v17, %v21212_v31  ;;  %v20556_v17 = vadd.f32 %v38324_v62, %v20478_v10 }
0x1151   : >> { %v21296_v11 = vpop.f32.mrf.mxu1 }
0x1152   : >> { %v21527_v45 = vpop.f32.mrf.mxu0  ;;  %v21297_v58 = vadd.f32 %v21296_v11, %v21214_v41  ;;  %v21372_v26 = vadd.f32 %v21371_v30, %v21295_v9  ;;  %v20630_v30 = vadd.f32 %v38328_v32, %v20556_v17 }
0x1153   : >> { %v21447_v4 = vpop.f32.mrf.mxu1 }
0x1154   : >> { %v21694_v27 = vpop.f32.mrf.mxu0  ;;  %v21374_v56 = vadd.f32 %v21373_v7, %v21297_v58  ;;  %v20156_v58 = vadd.f32 %v38320_v8, %v20082_v53  ;;  %v21448_v16 = vadd.f32 %v21447_v4, %v21372_v26 }
0x1155   : >> { %v21449_v29 = vpop.f32.mrf.mxu1 }
0x1156   : >> { %v21696_v44 = vpop.f32.mrf.mxu0  ;;  %v21450_v41 = vadd.f32 %v21449_v29, %v21374_v56  ;;  %v21526_v8 = vadd.f32 %v38336_v59, %v21448_v16 }
0x1157   : >> { %v38338_v12 = vpop.f32.mrf.mxu1 }
0x1158   : >> { %v21853_v50 = vpop.f32.mrf.mxu0  ;;  %v21600_v43 = vadd.f32 %v38338_v12, %v21526_v8 }
0x1159   : >> { %v21601_v52 = vpop.f32.mrf.mxu1 }
0x115a   : >> { %v21855_v18 = vpop.f32.mrf.mxu0 }
0x115b   : >> { %v21776_v1 = vpop.f32.mrf.mxu1 }
0x115c   : >> { %v22007_v60 = vpop.f32.mrf.mxu0  ;;  %v21777_v20 = vadd.f32 %v21776_v1, %v21694_v27  ;;  %v21528_v1 = vadd.f32 %v21527_v45, %v21450_v41 }
0x115d   : >> { %v21778_v40 = vpop.f32.mrf.mxu1 }
0x115e   : >> { %v22009_v19 = vpop.f32.mrf.mxu0  ;;  %v21779_v39 = vadd.f32 %v21778_v40, %v21696_v44  ;;  %v21854_v31 = vadd.f32 %v21853_v50, %v21777_v20  ;;  %v20554_v44 = vadd.f32 %v38322_v48, %v20476_v14  ;;  %v21602_v0 = vadd.f32 %v21601_v52, %v21528_v1  ;;  %v39950_v1 = vld [vmem:[#allocation52_spill] sm:$0xff] }
0x115f   : >> { %v21929_v35 = vpop.f32.mrf.mxu1 }
0x1160   : >> { %v22180_v11 = vpop.f32.mrf.mxu0  ;;  %v21856_v63 = vadd.f32 %v21855_v18, %v21779_v39  ;;  %v20154_v18 = vadd.f32 %v38318_v13, %v20080_v21  ;;  %v21930_v3 = vadd.f32 %v21929_v35, %v21854_v31  ;;  %v20628_v50 = vadd.f32 %v38326_v61, %v20554_v44 }
0x1161   : >> { %v21931_v38 = vpop.f32.mrf.mxu1  ;;  %v21114_v13 = vadd.f32 %v38332_v33, %v21040_v25  ;;  %v21606_v10 = vcombine.low %v21600_v43, %v21602_v0  ;;  %v39953_v0 = vld [vmem:[#allocation9_spill] sm:$0xff] }
0x1162   : >> { %v22182_v54 = vpop.f32.mrf.mxu0  ;;  %v21932_v46 = vadd.f32 %v21931_v38, %v21856_v63  ;;  %v20160_v29 = vcombine.low %v20154_v18, %v20156_v58  ;;  %v20634_v62 = vcombine.low %v20628_v50, %v20630_v30  ;;  %v22008_v22 = vadd.f32 %v22007_v60, %v21930_v3 }
0x1163   : >> { %v22081_v27 = vpop.f32.mrf.mxu1  ;;  %v21120_v6 = vcombine.low %v21114_v13, %v21116_v42 }
0x1164   : >> { %v22339_v7 = vpop.f32.mrf.mxu0  ;;  %v22010_v4 = vadd.f32 %v22009_v19, %v21932_v46  ;;  %v20162_v32 = vadd.f32 %v20160_v29, %v39948_v2  ;;  %v22082_v47 = vadd.f32 %v22081_v27, %v22008_v22  ;;  %v39951_v29 = vld [vmem:[#allocation53_spill] sm:$0xff] }
0x1165   : >> { %v22083_v37 = vpop.f32.mrf.mxu1 }
0x1166   : >> { %v22341_v28 = vpop.f32.mrf.mxu0  ;;  %v22084_v55 = vadd.f32 %v22083_v37, %v22010_v4  ;;  %v20636_v9 = vadd.f32 %v20634_v62, %v20162_v32  ;;  %v39952_v4 = vld [vmem:[#allocation7_spill] sm:$0xff] }
0x1167   : >> { %v22262_v24 = vpop.f32.mrf.mxu1 }
0x1168   : >> { %v22263_v48 = vadd.f32 %v22262_v24, %v22180_v11  ;;  %v22493_v61 = vpop.f32.mrf.mxu0  ;;  %v21122_v19 = vadd.f32 %v21120_v6, %v20636_v9  ;;  %v22088_v56 = vcombine.low %v22082_v47, %v22084_v55 }
0x1169   : >> { %v22264_v23 = vpop.f32.mrf.mxu1 }
0x116a   : >> { %v22265_v34 = vadd.f32 %v22264_v23, %v22182_v54  ;;  %v22340_v45 = vadd.f32 %v22339_v7, %v22263_v48  ;;  %v22495_v52 = vpop.f32.mrf.mxu0  ;;  %v21608_v53 = vadd.f32 %v21606_v10, %v21122_v19  ;;  %v39949_v54 = vld [vmem:[#allocation12_spill] sm:$0xff] }
0x116b   : >> { %v22415_v57 = vpop.f32.mrf.mxu1 }
0x116c   : >> { %v22416_v36 = vadd.f32 %v22415_v57, %v22340_v45  ;;  %v22342_v59 = vadd.f32 %v22341_v28, %v22265_v34  ;;  %v22090_v35 = vadd.f32 %v22088_v56, %v21608_v53  ;;  %v39956_v53 = vmov 0.0  }
0x116d   : >> { %v22417_v51 = vpop.f32.mrf.mxu1 }
0x116e   : >> { %v22418_v33 = vadd.f32 %v22417_v51, %v22342_v59  ;;  %v22494_v40 = vadd.f32 %v22493_v61, %v22416_v36 }
0x116f   : >> { %v22567_v60 = vpop.f32.mrf.mxu1 }
0x1170   : >> { %v22496_v20 = vadd.f32 %v22495_v52, %v22418_v33  ;;  %v22568_v14 = vadd.f32 %v22567_v60, %v22494_v40  ;;  %v39954_v60 = vld [vmem:[#allocation57_spill] sm:$0xff] }
0x1171   : >> { %v22569_v39 = vpop.f32.mrf.mxu1 }
0x1172   : >> { %v22570_v5 = vadd.f32 %v22569_v39, %v22496_v20  ;;  %v39955_v20 = vld [vmem:[#allocation10_spill] sm:$0xff] }
0x1174   : >> { %v22574_v12 = vcombine.low %v22568_v14, %v22570_v5 }
0x1176   : >> { %v22576_v11 = vadd.f32 %v22574_v12, %v22090_v35  ;;  %v39957_v12 = vld [vmem:[#allocation8_spill] sm:$0xff] }
0x1178   : >> { %v22578_v26 = vcombine.high %v22576_v11, %v22576_v11  ;;  %v22580_v63 = vsel %vm309_vm4, %v22576_v11, 0.0 }
0x117a   : >> { %v22581_v21 = vsel %vm309_vm4, %v22578_v26, 0.0  ;;  %v39958_v26 = vld [vmem:[#allocation55_spill] sm:$0xff] }
0x117b   : >> { %v22582_v17 = vadd.f32 %v22581_v21, %v22580_v63 }
0x117d   : >> { %22583 = vadd.xlane.f32.xlu0 %v22582_v17 }
0x1206   : >> { %v22584_v49 = vpop.xlane.xlu0 %22583 }
0x1207   : >> { %v22585_v38 = vmul.f32 0.00390625, %v22584_v49 }
0x1209   : >> { %v22593_v41 = vrot.slane %v22585_v38, %v39949_v54 }
0x120b   : >> { %v22595_v31 = vsub.f32 %v22576_v11, %v22593_v41 }
0x120d   : >> { %v22596_v58 = vmul.f32 %v22595_v31, %v22595_v31 }
0x120f   : >> { %v22598_v44 = vcombine.high %v22596_v58, %v22596_v58  ;;  %v22600_v15 = vsel %vm309_vm4, %v22596_v58, 0.0 }
0x1211   : >> { %v22601_v27 = vsel %vm309_vm4, %v22598_v44, 0.0  ;;  %v39959_v44 = vld [vmem:[#allocation54_spill] sm:$0xff] }
0x1212   : >> { %v22602_v7 = vadd.f32 %v22601_v27, %v22600_v15 }
0x1214   : >> { %22603 = vadd.xlane.f32.xlu1 %v22602_v7 }
0x129d   : >> { %v22604_v16 = vpop.xlane.xlu1 %22603 }
0x129e   : >> { %v22605_v46 = vmul.f32 0.00390625, %v22604_v16 }
0x12a0   : >> { %v22606_v18 = vadd.f32 1e-05, %v22605_v46 }
0x12a2   : >> { %36032 = vrsqrt.f32 %v22606_v18  ;;  %v39960_v18 = vld [vmem:[#allocation56_spill] sm:$0xff] }
0x12af   : >> { %v36033_v30 = vpop.eup %36032 }
0x12b0   : >> { %v22615_v25 = vrot.slane %v36033_v30, %v39949_v54 }
0x12b2   : >> { %v22617_v37 = vmul.f32 %v22615_v25, %v22595_v31 }
0x12b4   : >> { %v22618_v3 = vmul.f32 %v22617_v37, %v39950_v1 }
0x12b6   : >> { %v22619_v50 = vadd.f32 %v22618_v3, %v39951_v29 }
0x12b8   : >> { %v38362_v42 = vmax.f32 %v22619_v50, 0.0  ;;  %v39961_v50 = vld [vmem:[#allocation63_spill] sm:$0xff] }
0x12ba   : >> { %22623 = vrot.lane.b32.xlu0 %v38362_v42, %s36071_s17  ;;  %v38368_v28 = vcombine.high %v38362_v42, %v38362_v42 }
0x12bc   : >> { %22625 = vrot.lane.b32.xlu1 %v38368_v28, %s36071_s17 }
0x12be   : >> { %23109 = vrot.lane.b32.xlu0 %v38362_v42, %s36073_s19 }
0x12c0   : >> { %23111 = vrot.lane.b32.xlu1 %v38368_v28, %s36073_s19 }
0x12c2   : >> { %23591 = vrot.lane.b32.xlu0 %v38362_v42, %s36078_s25 }
0x12c4   : >> { %23593 = vrot.lane.b32.xlu1 %v38368_v28, %s36078_s25 }
0x12c6   : >> { %24077 = vrot.lane.b32.xlu0 %v38362_v42, %s36074_s20 }
0x12c8   : >> { %24079 = vrot.lane.b32.xlu1 %v38368_v28, %s36074_s20 }
0x12ca   : >> { %25039 = vrot.lane.b32.xlu0 %v38368_v28, %s36077_s24 }
0x12cc   : >> { %25037 = vrot.lane.b32.xlu1 %v38362_v42, %s36077_s24 }
0x12ce   : >> { %25525 = vrot.lane.b32.xlu0 %v38368_v28, %s36079_s26 }
0x12d0   : >> { %25523 = vrot.lane.b32.xlu1 %v38362_v42, %s36079_s26 }
0x12d2   : >> { %26011 = vrot.lane.b32.xlu0 %v38368_v28, %s36075_s22 }
0x12d4   : >> { %26009 = vrot.lane.b32.xlu1 %v38362_v42, %s36075_s22 }
0x12d6   : >> { %26493 = vrot.lane.b32.xlu0 %v38368_v28, %s36082_s29 }
0x12d8   : >> { %26491 = vrot.lane.b32.xlu1 %v38362_v42, %s36082_s29 }
0x132c   : >> { %v22624_v24 = vpop.permute.xlu0 %22623 }
0x132d   : >> { %v22630_v8 = vsel %vm395_vm6, 0.0, %v22624_v24 }
0x132e   : >> { %v22631_v48 = vmul.f32 %v39952_v4, %v22630_v8  ;;  %v22626_v62 = vpop.permute.xlu1 %22625 }
0x132f   : >> { %v22627_v13 = vsel %vm395_vm6, %v22624_v24, %v22626_v62 }
0x1330   : >> { %v22634_v23 = vsel %vm309_vm4, %v22631_v48, 0  ;;  %v22632_v22 = vmul.f32 %v39953_v0, %v22627_v13  ;;  %v23110_v34 = vpop.permute.xlu0 %23109 }
0x1331   : >> { %v38405_v45 = vand.u32 4294901760, %v22634_v23  ;;  %v23115_v2 = vsel %vm886_vm7, 0.0, %v23110_v34 }
0x1332   : >> { %v22637_v32 = vsel %vm309_vm4, %v22632_v22, 0  ;;  %v23112_v6 = vpop.permute.xlu1 %23111  ;;  %v23117_v43 = vsel %vm309_vm4, %v23115_v2, 0  ;;  %v39963_v2 = vld [vmem:[#allocation58_spill] sm:$0xff] }
0x1333   : >> { %v22754_v61 = vsub.f32 %v22634_v23, %v38405_v45  ;;  %v22669_v57 = vand.u32 4294901760, %v22637_v32  ;;  %v23113_v55 = vsel %vm886_vm7, %v23110_v34, %v23112_v6  ;;  %v38415_v10 = vand.u32 4294901760, %v23117_v43  ;;  %v39962_v23 = vld [vmem:[#allocation60_spill] sm:$0xff] }
0x1334   : >> { %v23119_v36 = vsel %vm309_vm4, %v23113_v55, 0  ;;  %v23592_v9 = vpop.permute.xlu0 %23591 }
0x1335   : >> { %v38413_v59 = vand.u32 4294901760, %v23119_v36  ;;  %22670 = vmatprep.subr.mxu0 %v22669_v57  ;;  %v22748_v51 = vsub.f32 %v22637_v32, %v22669_v57  ;;  %v22755_v33 = vand.u32 4294901760, %v22754_v61  ;;  %v23598_v56 = vsel %vm1373_vm8, 0.0, %v23592_v9 }
0x1336   : >> { %22672 = vmatpush1.msra.mxu0 %v38405_v45  ;;  %v23594_v47 = vpop.permute.xlu1 %23593  ;;  %v23236_v35 = vsub.f32 %v23117_v43, %v38415_v10  ;;  %v23599_v11 = vmul.f32 %v39957_v12, %v23598_v56 }
0x1337   : >> { %v23230_v40 = vsub.f32 %v23119_v36, %v38413_v59  ;;  %v23595_v52 = vsel %vm1373_vm8, %v23592_v9, %v23594_v47  ;;  %22711 = vmatmul.mubr.f32.vlgmr.msra.gmra.mxu0 %v39954_v60  ;;  %22831 = vmatprep.subr.mxu0 %v22748_v51  ;;  %v22749_v19 = vand.u32 4294901760, %v22748_v51  ;;  %v22756_v14 = vsub.f32 %v22754_v61, %v22755_v33  ;;  %v39965_v36 = vld [vmem:[#allocation67_spill] sm:$0xff]  ;;  %v39966_v47 = vld [vmem:[#allocation62_spill] sm:$0xff] }
0x1338   : >> { %v23600_v39 = vmul.f32 %v39955_v20, %v23595_v52  ;;  %22834 = vmatpush1.msra.mxu0 %v22754_v61  ;;  %22867 = vmatprep.mubr.f32.mxu0 %v39956_v53  ;;  %v23237_v38 = vand.u32 4294901760, %v23236_v35  ;;  %v23602_v31 = vsel %vm309_vm4, %v23599_v11, 0  ;;  %v24078_v27 = vpop.permute.xlu0 %24077  ;;  %v39967_v52 = vld [vmem:[#allocation59_spill] sm:$0xff] }
0x1339   : >> { %22985 = vmatprep.subr.mxu0 %v22749_v19  ;;  %v22750_v5 = vsub.f32 %v22748_v51, %v22749_v19  ;;  %v23231_v21 = vand.u32 4294901760, %v23230_v40  ;;  %v22757_v49 = vand.u32 4294901760, %v22756_v14  ;;  %v38438_v16 = vand.u32 4294901760, %v23602_v31 }
0x133a   : >> { %v23605_v17 = vsel %vm309_vm4, %v23600_v39, 0  ;;  %v24080_v41 = vpop.permute.xlu1 %24079  ;;  %v23238_v46 = vsub.f32 %v23236_v35, %v23237_v38  ;;  %v24084_v37 = vsel %vm1864_vm9, 0.0, %v24078_v27  ;;  %v24563_v39 = vsel %vm309_vm4, %v38362_v42, 0  ;;  %v39968_v42 = vld [vmem:[#allocation64_spill] sm:$0xff] }
0x133b   : >> { %22870 = vmatmul.mubr.f32.vlgmr.msra.gmra.mxu0 %v39958_v26  ;;  %v22751_v63 = vand.u32 4294901760, %v22750_v5  ;;  %v38431_v58 = vand.u32 4294901760, %v23605_v17  ;;  %v23232_v15 = vsub.f32 %v23230_v40, %v23231_v21  ;;  %v24081_v7 = vsel %vm1864_vm9, %v24078_v27, %v24080_v41  ;;  %v39970_v27 = vld [vmem:[#allocation66_spill] sm:$0xff] }
0x133c   : >> { %22989 = vmatpush1.msra.mxu0 %v22755_v33  ;;  %23022 = vmatprep.mubr.f32.mxu0 %v39956_v53  ;;  %v24086_v3 = vmul.f32 %v39953_v0, %v24081_v7  ;;  %v23722_v24 = vsub.f32 %v23602_v31, %v38438_v16  ;;  %v23239_v8 = vand.u32 4294901760, %v23238_v46  ;;  %v24085_v48 = vmul.f32 %v39952_v4, %v24084_v37 }
0x133d   : >> { %23152 = vmatprep.subr.mxu0 %v38413_v59  ;;  %22752 = vmatprep.subr.mxu1 %v22751_v63  ;;  %v23233_v30 = vand.u32 4294901760, %v23232_v15  ;;  %v23716_v25 = vsub.f32 %v23605_v17, %v38431_v58 }
0x133e   : >> { %22758 = vmatpush1.msra.mxu1 %v22757_v49  ;;  %v24091_v13 = vsel %vm309_vm4, %v24086_v3, 0  ;;  %v23723_v22 = vand.u32 4294901760, %v23722_v24  ;;  %v24088_v34 = vsel %vm309_vm4, %v24085_v48, 0  ;;  %v25038_v14 = vpop.permute.xlu1 %25037  ;;  %v39969_v49 = vld [vmem:[#allocation71_spill] sm:$0xff] }
0x133f   : >> { %22793 = vmatmul.mubr.f32.vlgmr.msra.gmra.mxu1 %v39959_v44  ;;  %22907 = vmatprep.subr.mxu1 %v22669_v57  ;;  %v23717_v62 = vand.u32 4294901760, %v23716_v25  ;;  %v38467_v6 = vand.u32 4294901760, %v24088_v34 }
0x1340   : >> { %23024 = vmatmul.mubr.f32.vlgmr.msra.gmra.mxu0 %v39959_v44  ;;  %22909 = vmatpush1.msra.mxu1 %v38405_v45  ;;  %v23724_v61 = vsub.f32 %v23722_v24, %v23723_v22 }
0x1341   : >> { %23154 = vmatpush1.msra.mxu0 %v38415_v10  ;;  %23061 = vmatprep.subr.mxu1 %v22669_v57  ;;  %v23718_v32 = vsub.f32 %v23716_v25, %v23717_v62  ;;  %v39964_v57 = vld [vmem:[#allocation61_spill] sm:$0xff] }
0x1342   : >> { %23313 = vmatprep.subr.mxu0 %v23230_v40  ;;  %22942 = vmatprep.mubr.f32.mxu1 %v39956_v53  ;;  %v23725_v9 = vand.u32 4294901760, %v23724_v61  ;;  %v25040_v40 = vpop.permute.xlu0 %25039 }
0x1343   : >> { %23187 = vmatprep.mubr.f32.mxu0 %v39956_v53  ;;  %22946 = vmatmul.mubr.f32.vlgmr.msra.gmra.mxu1 %v39960_v18  ;;  %v23719_v43 = vand.u32 4294901760, %v23718_v32  ;;  %v25041_v17 = vsel %vm2833_vm10, %v25038_v14, %v25040_v40 }
0x1344   : >> { %23063 = vmatpush1.msra.mxu1 %v38405_v45  ;;  %23193 = vmatmul.mubr.f32.vlgmr.msra.gmra.mxu0 %v39961_v50  ;;  %v38459_v45 = vand.u32 4294901760, %v24091_v13  ;;  %v25045_v31 = vmul.f32 %v39957_v12, %v25041_v17 }
0x1345   : >> { %23316 = vmatpush1.msra.mxu0 %v23236_v35  ;;  %23234 = vmatprep.subr.mxu1 %v23233_v30  ;;  %v38497_v35 = vand.u32 4294901760, %v24563_v39 }
0x1346   : >> { %23467 = vmatprep.subr.mxu0 %v23231_v21  ;;  %23096 = vmatprep.mubr.f32.mxu1 %v39956_v53  ;;  %v24202_v55 = vsub.f32 %v24091_v13, %v38459_v45  ;;  %v25526_v7 = vpop.permute.xlu0 %25525  ;;  %v25048_v30 = vsel %vm309_vm4, %v25045_v31, 0 }
0x1347   : >> { %23349 = vmatprep.mubr.f32.mxu0 %v39956_v53  ;;  %23098 = vmatmul.mubr.f32.vlgmr.msra.gmra.mxu1 %v39959_v44  ;;  %v24682_v41 = vsub.f32 %v24563_v39, %v38497_v35  ;;  %v25530_v3 = vsel %vm3324_vm11, %v25526_v7, 0.0 }
0x1348   : >> { %23240 = vmatpush1.msra.mxu1 %v23239_v8  ;;  %23352 = vmatmul.mubr.f32.vlgmr.msra.gmra.mxu0 %v39962_v23  ;;  %v24203_v51 = vand.u32 4294901760, %v24202_v55  ;;  %v38526_v8 = vand.u32 4294901760, %v25048_v30 }
0x1349   : >> { %23471 = vmatpush1.msra.mxu0 %v23237_v38  ;;  %23389 = vmatprep.subr.mxu1 %v38413_v59 }
0x134a   : >> { %23638 = vmatprep.subr.mxu0 %v38431_v58  ;;  %23273 = vmatprep.mubr.f32.mxu1 %v39956_v53  ;;  %v24204_v19 = vsub.f32 %v24202_v55, %v24203_v51  ;;  %v25168_v61 = vsub.f32 %v25048_v30, %v38526_v8 }
0x134b   : >> { %23504 = vmatprep.mubr.f32.mxu0 %v39956_v53  ;;  %23275 = vmatmul.mubr.f32.vlgmr.msra.gmra.mxu1 %v39963_v2 }
0x134c   : >> { %23391 = vmatpush1.msra.mxu1 %v38415_v10  ;;  %23506 = vmatmul.mubr.f32.vlgmr.msra.gmra.mxu0 %v39963_v2  ;;  %v24205_v11 = vand.u32 4294901760, %v24204_v19 }
0x134d   : >> { %23640 = vmatpush1.msra.mxu0 %v38438_v16  ;;  %23543 = vmatprep.subr.mxu1 %v38413_v59  ;;  %v24208_v59 = vsub.f32 %v24088_v34, %v38467_v6  ;;  %v25532_v34 = vmul.f32 %v39953_v0, %v25530_v3  ;;  %v39979_v3 = vld [vmem:[#allocation73_spill] sm:$0xff] }
0x134e   : >> { %23799 = vmatprep.subr.mxu0 %v23716_v25  ;;  %23424 = vmatprep.mubr.f32.mxu1 %v39956_v53  ;;  %v39971_v25 = vld [vmem:[#allocation65_spill] sm:$0xff] }
0x134f   : >> { %23673 = vmatprep.mubr.f32.mxu0 %v39956_v53  ;;  %23428 = vmatmul.mubr.f32.vlgmr.msra.gmra.mxu1 %v39964_v57  ;;  %v24209_v33 = vand.u32 4294901760, %v24208_v59 }
0x1350   : >> { %23545 = vmatpush1.msra.mxu1 %v38415_v10  ;;  %23679 = vmatmul.mubr.f32.vlgmr.msra.gmra.mxu0 %v39965_v36  ;;  %v24565_v10 = vsel %vm309_vm4, %v38368_v28, 0  ;;  %v25044_v28 = vsel %vm2833_vm10, %v25040_v40, 0.0  ;;  %v39975_v40 = vld [vmem:[#allocation69_spill] sm:$0xff] }
0x1351   : >> { %23802 = vmatpush1.msra.mxu0 %v23722_v24  ;;  %23720 = vmatprep.subr.mxu1 %v23719_v43  ;;  %v38487_v56 = vand.u32 4294901760, %v24565_v10  ;;  %v24210_v5 = vsub.f32 %v24208_v59, %v24209_v33  ;;  %v25046_v21 = vmul.f32 %v39955_v20, %v25044_v28  ;;  %v25524_v24 = vpop.permute.xlu1 %25523  ;;  %v26012_v28 = vpop.permute.xlu0 %26011 }
0x1352   : >> { %23953 = vmatprep.subr.mxu0 %v23717_v62  ;;  %23578 = vmatprep.mubr.f32.mxu1 %v39956_v53  ;;  %v39972_v62 = vld [vmem:[#allocation68_spill] sm:$0xff]  ;;  %v25527_v32 = vsel %vm3324_vm11, %v25524_v24, %v25526_v7 }
0x1353   : >> { %23835 = vmatprep.mubr.f32.mxu0 %v39956_v53  ;;  %23580 = vmatmul.mubr.f32.vlgmr.msra.gmra.mxu1 %v39963_v2  ;;  %v24676_v63 = vsub.f32 %v24565_v10, %v38487_v56  ;;  %v24211_v38 = vand.u32 4294901760, %v24210_v5  ;;  %v25051_v15 = vsel %vm309_vm4, %v25046_v21, 0  ;;  %v39976_v5 = vld [vmem:[#allocation72_spill] sm:$0xff]  ;;  %v39977_v21 = vld [vmem:[#allocation79_spill] sm:$0xff] }
0x1354   : >> { %23726 = vmatpush1.msra.mxu1 %v23725_v9  ;;  %23838 = vmatmul.mubr.f32.vlgmr.msra.gmra.mxu0 %v39966_v47  ;;  %v38516_v46 = vand.u32 4294901760, %v25051_v15  ;;  %v25537_v9 = vsel %vm309_vm4, %v25532_v34, 0 }
0x1355   : >> { %23957 = vmatpush1.msra.mxu0 %v23723_v22  ;;  %23875 = vmatprep.subr.mxu1 %v38431_v58  ;;  %v38546_v10 = vand.u32 4294901760, %v25537_v9  ;;  %v26010_v17 = vpop.permute.xlu1 %26009 }
0x1356   : >> { %24124 = vmatprep.subr.mxu0 %v38459_v45  ;;  %23759 = vmatprep.mubr.f32.mxu1 %v39956_v53  ;;  %v25162_v22 = vsub.f32 %v25051_v15, %v38516_v46  ;;  %v39978_v15 = vld [vmem:[#allocation74_spill] sm:$0xff] }
0x1357   : >> { %23990 = vmatprep.mubr.f32.mxu0 %v39956_v53  ;;  %23761 = vmatmul.mubr.f32.vlgmr.msra.gmra.mxu1 %v39967_v52 }
0x1358   : >> { %23877 = vmatpush1.msra.mxu1 %v38438_v16  ;;  %23992 = vmatmul.mubr.f32.vlgmr.msra.gmra.mxu0 %v39967_v52 }
0x1359   : >> { %24126 = vmatpush1.msra.mxu0 %v38467_v6  ;;  %24029 = vmatprep.subr.mxu1 %v38431_v58  ;;  %v24677_v58 = vand.u32 4294901760, %v24676_v63 }
0x135a   : >> { %24285 = vmatprep.subr.mxu0 %v24202_v55  ;;  %23910 = vmatprep.mubr.f32.mxu1 %v39956_v53  ;;  %v25531_v55 = vmul.f32 %v39952_v4, %v25527_v32 }
0x135b   : >> { %24159 = vmatprep.mubr.f32.mxu0 %v39956_v53  ;;  %23914 = vmatmul.mubr.f32.vlgmr.msra.gmra.mxu1 %v39968_v42  ;;  %v24678_v37 = vsub.f32 %v24676_v63, %v24677_v58 }
0x135c   : >> { %24031 = vmatpush1.msra.mxu1 %v38438_v16  ;;  %24165 = vmatmul.mubr.f32.vlgmr.msra.gmra.mxu0 %v39969_v49  ;;  %v24683_v16 = vand.u32 4294901760, %v24682_v41 }
0x135d   : >> { %24288 = vmatpush1.msra.mxu0 %v24208_v59  ;;  %24206 = vmatprep.subr.mxu1 %v24205_v11  ;;  %v24679_v13 = vand.u32 4294901760, %v24678_v37  ;;  %v25163_v59 = vand.u32 4294901760, %v25162_v22 }
0x135e   : >> { %24439 = vmatprep.subr.mxu0 %v24203_v51  ;;  %24064 = vmatprep.mubr.f32.mxu1 %v39956_v53  ;;  %v24684_v48 = vsub.f32 %v24682_v41, %v24683_v16  ;;  %v25169_v51 = vand.u32 4294901760, %v25168_v61 }
0x135f   : >> { %24321 = vmatprep.mubr.f32.mxu0 %v39956_v53  ;;  %24066 = vmatmul.mubr.f32.vlgmr.msra.gmra.mxu1 %v39967_v52  ;;  %v25164_v19 = vsub.f32 %v25162_v22, %v25163_v59 }
0x1360   : >> { %24212 = vmatpush1.msra.mxu1 %v24211_v38  ;;  %24324 = vmatmul.mubr.f32.vlgmr.msra.gmra.mxu0 %v39970_v27  ;;  %v24685_v43 = vand.u32 4294901760, %v24684_v48  ;;  %v25170_v14 = vsub.f32 %v25168_v61, %v25169_v51 }
0x1361   : >> { %24443 = vmatpush1.msra.mxu0 %v24209_v33  ;;  %24361 = vmatprep.subr.mxu1 %v38459_v45  ;;  %v25534_v33 = vsel %vm309_vm4, %v25531_v55, 0  ;;  %v25165_v11 = vand.u32 4294901760, %v25164_v19 }
0x1362   : >> { %24598 = vmatprep.subr.mxu0 %v38487_v56  ;;  %24245 = vmatprep.mubr.f32.mxu1 %v39956_v53  ;;  %v38555_v39 = vand.u32 4294901760, %v25534_v33 }
0x1363   : >> { %24476 = vmatprep.mubr.f32.mxu0 %v39956_v53  ;;  %24247 = vmatmul.mubr.f32.vlgmr.msra.gmra.mxu1 %v39971_v25 }
0x1364   : >> { %24363 = vmatpush1.msra.mxu1 %v38467_v6  ;;  %24478 = vmatmul.mubr.f32.vlgmr.msra.gmra.mxu0 %v39971_v25  ;;  %v25654_v38 = vsub.f32 %v25534_v33, %v38555_v39 }
0x1365   : >> { %24600 = vmatpush1.msra.mxu0 %v38497_v35  ;;  %24515 = vmatprep.subr.mxu1 %v38459_v45  ;;  %v39973_v45 = vld [vmem:[#allocation75_spill] sm:$0xff] }
0x1366   : >> { %24759 = vmatprep.subr.mxu0 %v24676_v63  ;;  %24396 = vmatprep.mubr.f32.mxu1 %v39956_v53  ;;  %v25648_v63 = vsub.f32 %v25537_v9, %v38546_v10  ;;  %v25655_v7 = vand.u32 4294901760, %v25654_v38 }
0x1367   : >> { %24633 = vmatprep.mubr.f32.mxu0 %v39956_v53  ;;  %24400 = vmatmul.mubr.f32.vlgmr.msra.gmra.mxu1 %v39972_v62 }
0x1368   : >> { %24517 = vmatpush1.msra.mxu1 %v38467_v6  ;;  %24639 = vmatmul.mubr.f32.vlgmr.msra.gmra.mxu0 %v39973_v45  ;;  %v39974_v6 = vld [vmem:[#allocation70_spill] sm:$0xff]  ;;  %v25649_v31 = vand.u32 4294901760, %v25648_v63  ;;  %v25656_v34 = vsub.f32 %v25654_v38, %v25655_v7 }
0x1369   : >> { %24762 = vmatpush1.msra.mxu0 %v24682_v41  ;;  %24680 = vmatprep.subr.mxu1 %v24679_v13  ;;  %v25171_v41 = vand.u32 4294901760, %v25170_v14  ;;  %v26492_v13 = vpop.permute.xlu1 %26491 }
0x136a   : >> { %24913 = vmatprep.subr.mxu0 %v24677_v58  ;;  %24550 = vmatprep.mubr.f32.mxu1 %v39956_v53  ;;  %v26013_v58 = vsel %vm3815_vm12, %v26010_v17, %v26012_v28  ;;  %v25650_v24 = vsub.f32 %v25648_v63, %v25649_v31 }
0x136b   : >> { %24795 = vmatprep.mubr.f32.mxu0 %v39956_v53  ;;  %24552 = vmatmul.mubr.f32.vlgmr.msra.gmra.mxu1 %v39971_v25  ;;  %v26016_v37 = vsel %vm309_vm4, %v26013_v58, 0 }
0x136c   : >> { %24686 = vmatpush1.msra.mxu1 %v24685_v43  ;;  %24798 = vmatmul.mubr.f32.vlgmr.msra.gmra.mxu0 %v39974_v6  ;;  %v25651_v43 = vand.u32 4294901760, %v25650_v24  ;;  %v39986_v24 = vld [vmem:[#allocation82_spill] sm:$0xff] }
0x136d   : >> { %24917 = vmatpush1.msra.mxu0 %v24683_v16  ;;  %24835 = vmatprep.subr.mxu1 %v38487_v56  ;;  %v26494_v16 = vpop.permute.xlu0 %26493 }
0x136e   : >> { %25084 = vmatprep.subr.mxu0 %v38516_v46  ;;  %24719 = vmatprep.mubr.f32.mxu1 %v39956_v53  ;;  %v26498_v48 = vsel %vm4302_vm13, %v26494_v16, 0.0 }
0x136f   : >> { %24950 = vmatprep.mubr.f32.mxu0 %v39956_v53  ;;  %24721 = vmatmul.mubr.f32.vlgmr.msra.gmra.mxu1 %v39975_v40  ;;  %v26500_v55 = vmul.f32 %v39955_v20, %v26498_v48  ;;  %v39987_v48 = vld [vmem:[#allocation81_spill] sm:$0xff] }
0x1370   : >> { %24837 = vmatpush1.msra.mxu1 %v38497_v35  ;;  %24952 = vmatmul.mubr.f32.vlgmr.msra.gmra.mxu0 %v39975_v40 }
0x1371   : >> { %25086 = vmatpush1.msra.mxu0 %v38526_v8  ;;  %24989 = vmatprep.subr.mxu1 %v38487_v56  ;;  %v26015_v56 = vsel %vm3815_vm12, %v26012_v28, 0.0  ;;  %v26505_v28 = vsel %vm309_vm4, %v26500_v55, 0  ;;  %v39989_v55 = vld [vmem:[#allocation89_spill] sm:$0xff] }
0x1372   : >> { %25245 = vmatprep.subr.mxu0 %v25162_v22  ;;  %24870 = vmatprep.mubr.f32.mxu1 %v39956_v53  ;;  %v38584_v22 = vand.u32 4294901760, %v26016_v37 }
0x1373   : >> { %25119 = vmatprep.mubr.f32.mxu0 %v39956_v53  ;;  %24874 = vmatmul.mubr.f32.vlgmr.msra.gmra.mxu1 %v39976_v5 }
0x1374   : >> { %24991 = vmatpush1.msra.mxu1 %v38497_v35  ;;  %25125 = vmatmul.mubr.f32.vlgmr.msra.gmra.mxu0 %v39977_v21  ;;  %v26019_v35 = vsel %vm309_vm4, %v26015_v56, 0  ;;  %v26136_v9 = vsub.f32 %v26016_v37, %v38584_v22  ;;  %v39983_v56 = vld [vmem:[#allocation77_spill] sm:$0xff] }
0x1375   : >> { %25248 = vmatpush1.msra.mxu0 %v25168_v61  ;;  %25166 = vmatprep.subr.mxu1 %v25165_v11  ;;  %v38574_v30 = vand.u32 4294901760, %v26019_v35  ;;  %v39980_v61 = vld [vmem:[#allocation76_spill] sm:$0xff]  ;;  %v38604_v11 = vand.u32 4294901760, %v26505_v28 }
0x1376   : >> { %25399 = vmatprep.subr.mxu0 %v25163_v59  ;;  %25024 = vmatprep.mubr.f32.mxu1 %v39956_v53  ;;  %v26495_v59 = vsel %vm4302_vm13, %v26492_v13, %v26494_v16  ;;  %v26137_v14 = vand.u32 4294901760, %v26136_v9 }
0x1377   : >> { %25281 = vmatprep.mubr.f32.mxu0 %v39956_v53  ;;  %25026 = vmatmul.mubr.f32.vlgmr.msra.gmra.mxu1 %v39975_v40  ;;  %v26130_v32 = vsub.f32 %v26019_v35, %v38574_v30  ;;  %v26499_v33 = vmul.f32 %v39957_v12, %v26495_v59  ;;  %v26616_v58 = vsub.f32 %v26505_v28, %v38604_v11 }
0x1378   : >> { %25172 = vmatpush1.msra.mxu1 %v25171_v41  ;;  %25284 = vmatmul.mubr.f32.vlgmr.msra.gmra.mxu0 %v39978_v15  ;;  %v26138_v41 = vsub.f32 %v26136_v9, %v26137_v14 }
0x1379   : >> { %25403 = vmatpush1.msra.mxu0 %v25169_v51  ;;  %25321 = vmatprep.subr.mxu1 %v38516_v46  ;;  %v25657_v51 = vand.u32 4294901760, %v25656_v34  ;;  %v26131_v19 = vand.u32 4294901760, %v26130_v32  ;;  %v26617_v37 = vand.u32 4294901760, %v26616_v58 }
0x137a   : >> { %25570 = vmatprep.subr.mxu0 %v38546_v10  ;;  %25205 = vmatprep.mubr.f32.mxu1 %v39956_v53 }
0x137b   : >> { %25436 = vmatprep.mubr.f32.mxu0 %v39956_v53  ;;  %25207 = vmatmul.mubr.f32.vlgmr.msra.gmra.mxu1 %v39979_v3  ;;  %v26132_v17 = vsub.f32 %v26130_v32, %v26131_v19  ;;  %v26618_v13 = vsub.f32 %v26616_v58, %v26617_v37 }
0x137c   : >> { %25323 = vmatpush1.msra.mxu1 %v38526_v8  ;;  %25438 = vmatmul.mubr.f32.vlgmr.msra.gmra.mxu0 %v39979_v3 }
0x137d   : >> { %25572 = vmatpush1.msra.mxu0 %v38555_v39  ;;  %25475 = vmatprep.subr.mxu1 %v38516_v46  ;;  %v39981_v46 = vld [vmem:[#allocation83_spill] sm:$0xff]  ;;  %v26133_v35 = vand.u32 4294901760, %v26132_v17 }
0x137e   : >> { %25731 = vmatprep.subr.mxu0 %v25648_v63  ;;  %25356 = vmatprep.mubr.f32.mxu1 %v39956_v53  ;;  %v26502_v63 = vsel %vm309_vm4, %v26499_v33, 0 }
0x137f   : >> { %25605 = vmatprep.mubr.f32.mxu0 %v39956_v53  ;;  %25360 = vmatmul.mubr.f32.vlgmr.msra.gmra.mxu1 %v39980_v61 }
0x1380   : >> { %25477 = vmatpush1.msra.mxu1 %v38526_v8  ;;  %25611 = vmatmul.mubr.f32.vlgmr.msra.gmra.mxu0 %v39981_v46  ;;  %v39982_v8 = vld [vmem:[#allocation78_spill] sm:$0xff] }
0x1381   : >> { %25734 = vmatpush1.msra.mxu0 %v25654_v38  ;;  %25652 = vmatprep.subr.mxu1 %v25651_v43  ;;  %v26539_v38 = vand.u32 4294901760, %v26502_v63  ;;  %v26619_v43 = vand.u32 4294901760, %v26618_v13 }
0x1382   : >> { %25885 = vmatprep.subr.mxu0 %v25649_v31  ;;  %25510 = vmatprep.mubr.f32.mxu1 %v39956_v53  ;;  %v39984_v31 = vld [vmem:[#allocation80_spill] sm:$0xff] }
0x1383   : >> { %25767 = vmatprep.mubr.f32.mxu0 %v39956_v53  ;;  %25512 = vmatmul.mubr.f32.vlgmr.msra.gmra.mxu1 %v39979_v3  ;;  %v26622_v16 = vsub.f32 %v26502_v63, %v26539_v38 }
0x1384   : >> { %25658 = vmatpush1.msra.mxu1 %v25657_v51  ;;  %25770 = vmatmul.mubr.f32.vlgmr.msra.gmra.mxu0 %v39982_v8 }
0x1385   : >> { %25889 = vmatpush1.msra.mxu0 %v25655_v7  ;;  %25807 = vmatprep.subr.mxu1 %v38546_v10  ;;  %v39985_v7 = vld [vmem:[#allocation87_spill] sm:$0xff] }
0x1386   : >> { %26052 = vmatprep.subr.mxu0 %v38574_v30  ;;  %25691 = vmatprep.mubr.f32.mxu1 %v39956_v53 }
0x1387   : >> { %25922 = vmatprep.mubr.f32.mxu0 %v39956_v53  ;;  %25693 = vmatmul.mubr.f32.vlgmr.msra.gmra.mxu1 %v39983_v56 }
0x1388   : >> { %25809 = vmatpush1.msra.mxu1 %v38555_v39  ;;  %25924 = vmatmul.mubr.f32.vlgmr.msra.gmra.mxu0 %v39983_v56 }
0x1389   : >> { %26054 = vmatpush1.msra.mxu0 %v38584_v22  ;;  %25961 = vmatprep.subr.mxu1 %v38546_v10  ;;  %v26139_v10 = vand.u32 4294901760, %v26138_v41 }
0x138a   : >> { %26213 = vmatprep.subr.mxu0 %v26130_v32  ;;  %25842 = vmatprep.mubr.f32.mxu1 %v39956_v53  ;;  %v39988_v32 = vld [vmem:[#allocation84_spill] sm:$0xff] }
0x138b   : >> { %26087 = vmatprep.mubr.f32.mxu0 %v39956_v53  ;;  %25846 = vmatmul.mubr.f32.vlgmr.msra.gmra.mxu1 %v39984_v31 }
0x138c   : >> { %25963 = vmatpush1.msra.mxu1 %v38555_v39  ;;  %26093 = vmatmul.mubr.f32.vlgmr.msra.gmra.mxu0 %v39985_v7  ;;  %v26623_v39 = vand.u32 4294901760, %v26622_v16 }
0x138d   : >> { %26216 = vmatpush1.msra.mxu0 %v26136_v9  ;;  %26134 = vmatprep.subr.mxu1 %v26133_v35  ;;  %v39992_v9 = vld [vmem:[#allocation88_spill] sm:$0xff] }
0x138e   : >> { %26367 = vmatprep.subr.mxu0 %v26131_v19  ;;  %25996 = vmatprep.mubr.f32.mxu1 %v39956_v53  ;;  %v26624_v34 = vsub.f32 %v26622_v16, %v26623_v39 }
0x138f   : >> { %26249 = vmatprep.mubr.f32.mxu0 %v39956_v53  ;;  %25998 = vmatmul.mubr.f32.vlgmr.msra.gmra.mxu1 %v39983_v56 }
0x1390   : >> { %26140 = vmatpush1.msra.mxu1 %v26139_v10  ;;  %26252 = vmatmul.mubr.f32.vlgmr.msra.gmra.mxu0 %v39986_v24  ;;  %v26625_v59 = vand.u32 4294901760, %v26624_v34 }
0x1391   : >> { %26371 = vmatpush1.msra.mxu0 %v26137_v14  ;;  %26289 = vmatprep.subr.mxu1 %v38574_v30 }
0x1392   : >> { %26538 = vmatprep.subr.mxu0 %v38604_v11  ;;  %26173 = vmatprep.mubr.f32.mxu1 %v39956_v53 }
0x1393   : >> { %26404 = vmatprep.mubr.f32.mxu0 %v39956_v53  ;;  %26175 = vmatmul.mubr.f32.vlgmr.msra.gmra.mxu1 %v39987_v48 }
0x1394   : >> { %26291 = vmatpush1.msra.mxu1 %v38584_v22  ;;  %26406 = vmatmul.mubr.f32.vlgmr.msra.gmra.mxu0 %v39987_v48 }
0x1395   : >> { %26540 = vmatpush1.msra.mxu0 %v26539_v38  ;;  %26443 = vmatprep.subr.mxu1 %v38574_v30  ;;  %v39990_v30 = vld [vmem:[#allocation86_spill] sm:$0xff] }
0x1396   : >> { %26699 = vmatprep.subr.mxu0 %v26616_v58  ;;  %26324 = vmatprep.mubr.f32.mxu1 %v39956_v53 }
0x1397   : >> { %26573 = vmatprep.mubr.f32.mxu0 %v39956_v53  ;;  %26328 = vmatmul.mubr.f32.vlgmr.msra.gmra.mxu1 %v39988_v32 }
0x1398   : >> { %26445 = vmatpush1.msra.mxu1 %v38584_v22  ;;  %26579 = vmatmul.mubr.f32.vlgmr.msra.gmra.mxu0 %v39989_v55  ;;  %v39991_v22 = vld [vmem:[#allocation85_spill] sm:$0xff] }
0x1399   : >> { %26702 = vmatpush1.msra.mxu0 %v26622_v16  ;;  %26620 = vmatprep.subr.mxu1 %v26619_v43 }
0x139a   : >> { %26853 = vmatprep.subr.mxu0 %v26617_v37  ;;  %26478 = vmatprep.mubr.f32.mxu1 %v39956_v53 }
0x139b   : >> { %26735 = vmatprep.mubr.f32.mxu0 %v39956_v53  ;;  %26480 = vmatmul.mubr.f32.vlgmr.msra.gmra.mxu1 %v39987_v48 }
0x139c   : >> { %26626 = vmatpush1.msra.mxu1 %v26625_v59  ;;  %26738 = vmatmul.mubr.f32.vlgmr.msra.gmra.mxu0 %v39990_v30 }
0x139d   : >> { %26857 = vmatpush1.msra.mxu0 %v26623_v39  ;;  %26775 = vmatprep.subr.mxu1 %v38604_v11 }
0x139e   : >> { %26659 = vmatprep.mubr.f32.mxu1 %v39956_v53  ;;  %26890 = vmatprep.mubr.f32.mxu0 %v39956_v53 }
0x139f   : >> { %26661 = vmatmul.mubr.f32.vlgmr.msra.gmra.mxu1 %v39991_v22 }
0x13a0   : >> { %26777 = vmatpush1.msra.mxu1 %v26539_v38  ;;  %26892 = vmatmul.mubr.f32.vlgmr.msra.gmra.mxu0 %v39991_v22 }
0x13a1   : >> { %26929 = vmatprep.subr.mxu1 %v38604_v11  ;;  %26810 = vmatprep.mubr.f32.mxu1 %v39956_v53 }
0x13a2   : >> { %27154 = vmatprep.mubr.f32.mxu0 %v39956_v53 }
0x13a3   : >> { %26814 = vmatmul.mubr.f32.vlgmr.msra.gmra.mxu1 %v39992_v9 }
0x13a4   : >> { %26931 = vmatpush1.msra.mxu1 %v26539_v38  ;;  %26964 = vmatprep.mubr.f32.mxu1 %v39956_v53 }
0x13a7   : >> { %26966 = vmatmul.mubr.f32.vlgmr.msra.gmra.mxu1 %v39991_v22 }
0x13a8   : >> { %27240 = vmatprep.mubr.f32.mxu1 %v39956_v53 }
0x13f7   : >> { %v22712_v51 = vpop.f32.mrf.mxu0 }
0x13f9   : >> { %v22714_v33 = vpop.f32.mrf.mxu0 }
0x13fb   : >> { %v22871_v19 = vpop.f32.mrf.mxu0 }
0x13fd   : >> { %v22873_v28 = vpop.f32.mrf.mxu0 }
0x13ff   : >> { %v22794_v14 = vpop.f32.mrf.mxu1 }
0x1400   : >> { %v22795_v63 = vadd.f32 %v22794_v14, %v22712_v51  ;;  %v23025_v11 = vpop.f32.mrf.mxu0 }
0x1401   : >> { %v22796_v17 = vpop.f32.mrf.mxu1 }
0x1402   : >> { %v22797_v41 = vadd.f32 %v22796_v17, %v22714_v33  ;;  %v23027_v35 = vpop.f32.mrf.mxu0  ;;  %v22872_v58 = vadd.f32 %v22871_v19, %v22795_v63 }
0x1403   : >> { %v22947_v16 = vpop.f32.mrf.mxu1 }
0x1404   : >> { %v22948_v10 = vadd.f32 %v22947_v16, %v22872_v58  ;;  %v23194_v38 = vpop.f32.mrf.mxu0  ;;  %v22874_v37 = vadd.f32 %v22873_v28, %v22797_v41 }
0x1405   : >> { %v22949_v39 = vpop.f32.mrf.mxu1 }
0x1406   : >> { %v23196_v13 = vpop.f32.mrf.mxu0  ;;  %v23026_v34 = vadd.f32 %v23025_v11, %v22948_v10  ;;  %v22950_v59 = vadd.f32 %v22949_v39, %v22874_v37 }
0x1407   : >> { %v23099_v43 = vpop.f32.mrf.mxu1 }
0x1408   : >> { %v23100_v9 = vadd.f32 %v23099_v43, %v23026_v34  ;;  %v23353_v22 = vpop.f32.mrf.mxu0  ;;  %v23028_v51 = vadd.f32 %v23027_v35, %v22950_v59 }
0x1409   : >> { %v23101_v30 = vpop.f32.mrf.mxu1 }
0x140a   : >> { %v23355_v55 = vpop.f32.mrf.mxu0  ;;  %v23102_v16 = vadd.f32 %v23101_v30, %v23028_v51 }
0x140b   : >> { %v23276_v32 = vpop.f32.mrf.mxu1 }
0x140c   : >> { %v23277_v14 = vadd.f32 %v23276_v32, %v23194_v38  ;;  %v23507_v48 = vpop.f32.mrf.mxu0  ;;  %v23106_v43 = vcombine.low %v23100_v9, %v23102_v16 }
0x140d   : >> { %v23278_v33 = vpop.f32.mrf.mxu1 }
0x140e   : >> { %v23279_v17 = vadd.f32 %v23278_v33, %v23196_v13  ;;  %v23509_v19 = vpop.f32.mrf.mxu0  ;;  %v23354_v63 = vadd.f32 %v23353_v22, %v23277_v14  ;;  %v39993_v33 = vld [vmem:[#allocation96_spill] sm:$0xff] }
0x140f   : >> { %v23429_v58 = vpop.f32.mrf.mxu1  ;;  %v23108_v22 = vadd.f32 %v23106_v43, %v39993_v33 }
0x1410   : >> { %v23430_v28 = vadd.f32 %v23429_v58, %v23354_v63  ;;  %v23680_v41 = vpop.f32.mrf.mxu0  ;;  %v23356_v24 = vadd.f32 %v23355_v55, %v23279_v17 }
0x1411   : >> { %v23431_v11 = vpop.f32.mrf.mxu1 }
0x1412   : >> { %v23432_v10 = vadd.f32 %v23431_v11, %v23356_v24  ;;  %v23682_v37 = vpop.f32.mrf.mxu0  ;;  %v23508_v39 = vadd.f32 %v23507_v48, %v23430_v28 }
0x1413   : >> { %v23581_v34 = vpop.f32.mrf.mxu1 }
0x1414   : >> { %v23582_v7 = vadd.f32 %v23581_v34, %v23508_v39  ;;  %v23839_v31 = vpop.f32.mrf.mxu0  ;;  %v23510_v35 = vadd.f32 %v23509_v19, %v23432_v10 }
0x1415   : >> { %v23583_v32 = vpop.f32.mrf.mxu1 }
0x1416   : >> { %v23584_v38 = vadd.f32 %v23583_v32, %v23510_v35  ;;  %v23841_v59 = vpop.f32.mrf.mxu0 }
0x1417   : >> { %v23762_v13 = vpop.f32.mrf.mxu1 }
0x1418   : >> { %v23588_v14 = vcombine.low %v23582_v7, %v23584_v38  ;;  %v23763_v30 = vadd.f32 %v23762_v13, %v23680_v41  ;;  %v23993_v51 = vpop.f32.mrf.mxu0 }
0x1419   : >> { %v23764_v63 = vpop.f32.mrf.mxu1 }
0x141a   : >> { %v23590_v55 = vadd.f32 %v23588_v14, %v23108_v22  ;;  %v23765_v17 = vadd.f32 %v23764_v63, %v23682_v37  ;;  %v23995_v24 = vpop.f32.mrf.mxu0  ;;  %v23840_v58 = vadd.f32 %v23839_v31, %v23763_v30 }
0x141b   : >> { %v23915_v48 = vpop.f32.mrf.mxu1 }
0x141c   : >> { %v23916_v28 = vadd.f32 %v23915_v48, %v23840_v58  ;;  %v24166_v9 = vpop.f32.mrf.mxu0  ;;  %v23842_v16 = vadd.f32 %v23841_v59, %v23765_v17 }
0x141d   : >> { %v23917_v11 = vpop.f32.mrf.mxu1 }
0x141e   : >> { %v23918_v19 = vadd.f32 %v23917_v11, %v23842_v16  ;;  %v24168_v10 = vpop.f32.mrf.mxu0  ;;  %v23994_v39 = vadd.f32 %v23993_v51, %v23916_v28 }
0x141f   : >> { %v24067_v34 = vpop.f32.mrf.mxu1 }
0x1420   : >> { %v24325_v35 = vpop.f32.mrf.mxu0  ;;  %v23996_v32 = vadd.f32 %v23995_v24, %v23918_v19  ;;  %v24068_v7 = vadd.f32 %v24067_v34, %v23994_v39 }
0x1421   : >> { %v24069_v43 = vpop.f32.mrf.mxu1 }
0x1422   : >> { %v24070_v41 = vadd.f32 %v24069_v43, %v23996_v32  ;;  %v24327_v38 = vpop.f32.mrf.mxu0 }
0x1423   : >> { %v24248_v13 = vpop.f32.mrf.mxu1 }
0x1424   : >> { %v24074_v33 = vcombine.low %v24068_v7, %v24070_v41  ;;  %v38653_v37 = vpop.f32.mrf.mxu0  ;;  %v24249_v57 = vadd.f32 %v24248_v13, %v24166_v9 }
0x1425   : >> { %v24250_v31 = vpop.f32.mrf.mxu1 }
0x1426   : >> { %v38655_v22 = vadd.f32 %v24074_v33, %v23590_v55  ;;  %v38657_v14 = vpop.f32.mrf.mxu0  ;;  %v24251_v52 = vadd.f32 %v24250_v31, %v24168_v10  ;;  %v24326_v1 = vadd.f32 %v24325_v35, %v24249_v57 }
0x1427   : >> { %v24401_v59 = vpop.f32.mrf.mxu1 }
0x1428   : >> { %39994 = vst [vmem:[#allocation95_spill] sm:$0xff] %v38655_v22  ;;  %v24640_v30 = vpop.f32.mrf.mxu0  ;;  %v24328_v18 = vadd.f32 %v24327_v38, %v24251_v52 }
0x1429   : >> { %v24403_v63 = vpop.f32.mrf.mxu1 }
0x142a   : >> { %v24642_v51 = vpop.f32.mrf.mxu0  ;;  %v24404_v54 = vadd.f32 %v24403_v63, %v24328_v18 }
0x142b   : >> { %v38659_v17 = vpop.f32.mrf.mxu1 }
0x142c   : >> { %v24799_v24 = vpop.f32.mrf.mxu0 }
0x142d   : >> { %v38661_v58 = vpop.f32.mrf.mxu1 }
0x142e   : >> { %v24801_v48 = vpop.f32.mrf.mxu0 }
0x142f   : >> { %v24722_v28 = vpop.f32.mrf.mxu1 }
0x1430   : >> { %v38663_v16 = vpop.f32.mrf.mxu0  ;;  %v24723_v44 = vadd.f32 %v24722_v28, %v24640_v30 }
0x1431   : >> { %v24724_v11 = vpop.f32.mrf.mxu1 }
0x1432   : >> { %v38665_v19 = vpop.f32.mrf.mxu0  ;;  %v24725_v2 = vadd.f32 %v24724_v11, %v24642_v51  ;;  %v24800_v10 = vadd.f32 %v24799_v24, %v24723_v44  ;;  %v24402_v51 = vadd.f32 %v24401_v59, %v24326_v1 }
0x1433   : >> { %v24875_v55 = vpop.f32.mrf.mxu1 }
0x1434   : >> { %v25126_v39 = vpop.f32.mrf.mxu0  ;;  %v24802_v12 = vadd.f32 %v24801_v48, %v24725_v2  ;;  %v24482_v2 = vadd.f32 %v38657_v14, %v24404_v54  ;;  %v24876_v57 = vadd.f32 %v24875_v55, %v24800_v10 }
0x1435   : >> { %v24877_v34 = vpop.f32.mrf.mxu1 }
0x1436   : >> { %v25128_v32 = vpop.f32.mrf.mxu0  ;;  %v24878_v11 = vadd.f32 %v24877_v34, %v24802_v12  ;;  %v39995_v34 = vld [vmem:[#allocation95_spill] sm:$0xff] }
0x1437   : >> { %v38667_v43 = vpop.f32.mrf.mxu1 }
0x1438   : >> { %v25285_v7 = vpop.f32.mrf.mxu0 }
0x1439   : >> { %v38669_v41 = vpop.f32.mrf.mxu1 }
0x143a   : >> { %v25287_v33 = vpop.f32.mrf.mxu0 }
0x143b   : >> { %v25208_v56 = vpop.f32.mrf.mxu1 }
0x143c   : >> { %v38671_v8 = vpop.f32.mrf.mxu0  ;;  %v25209_v20 = vadd.f32 %v25208_v56, %v25126_v39 }
0x143d   : >> { %v25210_v46 = vpop.f32.mrf.mxu1 }
0x143e   : >> { %v25441_v61 = vpop.f32.mrf.mxu0  ;;  %v25211_v26 = vadd.f32 %v25210_v46, %v25128_v32  ;;  %v25286_v52 = vadd.f32 %v25285_v7, %v25209_v20 }
0x143f   : >> { %v25361_v3 = vpop.f32.mrf.mxu1 }
0x1440   : >> { %v25612_v15 = vpop.f32.mrf.mxu0  ;;  %v25288_v31 = vadd.f32 %v25287_v33, %v25211_v26  ;;  %v24480_v26 = vadd.f32 %v38653_v37, %v24402_v51  ;;  %v25362_v1 = vadd.f32 %v25361_v3, %v25286_v52 }
0x1441   : >> { %v25363_v21 = vpop.f32.mrf.mxu1 }
0x1442   : >> { %v25614_v5 = vpop.f32.mrf.mxu0  ;;  %v25364_v56 = vadd.f32 %v25363_v21, %v25288_v31 }
0x1443   : >> { %v38673_v40 = vpop.f32.mrf.mxu1 }
0x1444   : >> { %v25771_v6 = vpop.f32.mrf.mxu0  ;;  %v25442_v54 = vadd.f32 %v25441_v61, %v25364_v56 }
0x1445   : >> { %v38675_v45 = vpop.f32.mrf.mxu1 }
0x1446   : >> { %v25773_v62 = vpop.f32.mrf.mxu0  ;;  %v25516_v63 = vadd.f32 %v38675_v45, %v25442_v54 }
0x1447   : >> { %v25694_v25 = vpop.f32.mrf.mxu1 }
0x1448   : >> { %v38677_v27 = vpop.f32.mrf.mxu0  ;;  %v25695_v9 = vadd.f32 %v25694_v25, %v25612_v15  ;;  %v24956_v25 = vadd.f32 %v38665_v19, %v24878_v11 }
0x1449   : >> { %v25696_v49 = vpop.f32.mrf.mxu1 }
0x144a   : >> { %v25927_v42 = vpop.f32.mrf.mxu0  ;;  %v25697_v0 = vadd.f32 %v25696_v49, %v25614_v5  ;;  %v25772_v5 = vadd.f32 %v25771_v6, %v25695_v9  ;;  %v25030_v37 = vadd.f32 %v38669_v41, %v24956_v25 }
0x144b   : >> { %v25847_v47 = vpop.f32.mrf.mxu1 }
0x144c   : >> { %v26094_v36 = vpop.f32.mrf.mxu0  ;;  %v25774_v46 = vadd.f32 %v25773_v62, %v25697_v0  ;;  %v25848_v21 = vadd.f32 %v25847_v47, %v25772_v5 }
0x144d   : >> { %v25849_v23 = vpop.f32.mrf.mxu1 }
0x144e   : >> { %v26096_v50 = vpop.f32.mrf.mxu0  ;;  %v25850_v20 = vadd.f32 %v25849_v23, %v25774_v46  ;;  %v25926_v47 = vadd.f32 %v38677_v27, %v25848_v21 }
0x144f   : >> { %v38679_v60 = vpop.f32.mrf.mxu1 }
0x1450   : >> { %v26253_v29 = vpop.f32.mrf.mxu0  ;;  %v25928_v14 = vadd.f32 %v25927_v42, %v25850_v20  ;;  %v26000_v45 = vadd.f32 %v38679_v60, %v25926_v47  ;;  %v39996_v20 = vld [vmem:[#allocation12_spill] sm:$0xff] }
0x1451   : >> { %v26001_v53 = vpop.f32.mrf.mxu1 }
0x1452   : >> { %v26255_v4 = vpop.f32.mrf.mxu0  ;;  %v26002_v55 = vadd.f32 %v26001_v53, %v25928_v14  ;;  %v39997_v14 = vld [vmem:[#allocation94_spill] sm:$0xff] }
0x1453   : >> { %v26176_v22 = vpop.f32.mrf.mxu1 }
0x1454   : >> { %v26407_v13 = vpop.f32.mrf.mxu0  ;;  %v26177_v30 = vadd.f32 %v26176_v22, %v26094_v36  ;;  %v24954_v36 = vadd.f32 %v38663_v16, %v24876_v57  ;;  %v25440_v22 = vadd.f32 %v38671_v8, %v25362_v1  ;;  %v26006_v11 = vcombine.low %v26000_v45, %v26002_v55 }
0x1455   : >> { %v26178_v38 = vpop.f32.mrf.mxu1 }
0x1456   : >> { %v26179_v28 = vadd.f32 %v26178_v38, %v26096_v50  ;;  %v26409_v32 = vpop.f32.mrf.mxu0  ;;  %v26254_v15 = vadd.f32 %v26253_v29, %v26177_v30  ;;  %v24556_v50 = vadd.f32 %v38661_v58, %v24482_v2  ;;  %v25028_v59 = vadd.f32 %v38667_v43, %v24954_v36 }
0x1457   : >> { %v26329_v49 = vpop.f32.mrf.mxu1 }
0x1458   : >> { %v26580_v18 = vpop.f32.mrf.mxu0  ;;  %v26256_v44 = vadd.f32 %v26255_v4, %v26179_v28  ;;  %v24554_v4 = vadd.f32 %v38659_v17, %v24480_v26  ;;  %v26330_v23 = vadd.f32 %v26329_v49, %v26254_v15  ;;  %v25034_v16 = vcombine.low %v25028_v59, %v25030_v37 }
0x1459   : >> { %v26331_v12 = vpop.f32.mrf.mxu1  ;;  %v25514_v17 = vadd.f32 %v38673_v40, %v25440_v22 }
0x145a   : >> { %v26582_v0 = vpop.f32.mrf.mxu0  ;;  %v26332_v35 = vadd.f32 %v26331_v12, %v26256_v44  ;;  %v24560_v29 = vcombine.low %v24554_v4, %v24556_v50  ;;  %v26408_v8 = vadd.f32 %v26407_v13, %v26330_v23  ;;  %v35871_v23 = vmul.f32 2.0, %v39997_v14 }
0x145b   : >> { %v26481_v62 = vpop.f32.mrf.mxu1  ;;  %v25520_v41 = vcombine.low %v25514_v17, %v25516_v63  ;;  %v39999_v63 = vld [vmem:[#allocation92_spill] sm:$0xff] }
0x145c   : >> { %v26739_v6 = vpop.f32.mrf.mxu0  ;;  %v26410_v58 = vadd.f32 %v26409_v32, %v26332_v35  ;;  %v24562_v7 = vadd.f32 %v24560_v29, %v39995_v34  ;;  %v26482_v52 = vadd.f32 %v26481_v62, %v26408_v8  ;;  %v39998_v29 = vld [vmem:[#allocation91_spill] sm:$0xff] }
0x145d   : >> { %v26483_v3 = vpop.f32.mrf.mxu1 }
0x145e   : >> { %v26741_v24 = vpop.f32.mrf.mxu0  ;;  %v26484_v10 = vadd.f32 %v26483_v3, %v26410_v58  ;;  %v25036_v9 = vadd.f32 %v25034_v16, %v24562_v7  ;;  %v40001_v16 = vld [vmem:[#allocation11_spill] sm:$0xff] }
0x145f   : >> { %v26662_v61 = vpop.f32.mrf.mxu1 }
0x1460   : >> { %v26663_v48 = vadd.f32 %v26662_v61, %v26580_v18  ;;  %v26893_v43 = vpop.f32.mrf.mxu0  ;;  %v25522_v46 = vadd.f32 %v25520_v41, %v25036_v9  ;;  %v26488_v30 = vcombine.low %v26482_v52, %v26484_v10  ;;  %v40000_v61 = vld [vmem:[#allocation93_spill] sm:$0xff] }
0x1461   : >> { %v26664_v19 = vpop.f32.mrf.mxu1  ;;  %v35872_v47 = vadd.f32 %v35871_v23, %v40000_v61 }
0x1462   : >> { %v26665_v39 = vadd.f32 %v26664_v19, %v26582_v0  ;;  %v26740_v42 = vadd.f32 %v26739_v6, %v26663_v48  ;;  %v26895_v53 = vpop.f32.mrf.mxu0  ;;  %v26008_v2 = vadd.f32 %v26006_v11, %v25522_v46  ;;  %v40004_v46 = vld [vmem:[#allocation14_spill] sm:$0xff] }
0x1463   : >> { %v26815_v33 = vpop.f32.mrf.mxu1 }
0x1464   : >> { %v26816_v31 = vadd.f32 %v26815_v33, %v26740_v42  ;;  %v26742_v27 = vadd.f32 %v26741_v24, %v26665_v39  ;;  %v26490_v49 = vadd.f32 %v26488_v30, %v26008_v2 }
0x1465   : >> { %v26817_v51 = vpop.f32.mrf.mxu1 }
0x1466   : >> { %v26818_v40 = vadd.f32 %v26817_v51, %v26742_v27  ;;  %v26894_v38 = vadd.f32 %v26893_v43, %v26816_v31 }
0x1467   : >> { %v26967_v13 = vpop.f32.mrf.mxu1 }
0x1468   : >> { %v26896_v28 = vadd.f32 %v26895_v53, %v26818_v40  ;;  %v26968_v57 = vadd.f32 %v26967_v13, %v26894_v38  ;;  %v40003_v53 = vld [vmem:[#allocation13_spill] sm:$0xff] }
0x1469   : >> { %v26969_v32 = vpop.f32.mrf.mxu1 }
0x146a   : >> { %v26970_v56 = vadd.f32 %v26969_v32, %v26896_v28 }
0x146c   : >> { %v26974_v60 = vcombine.low %v26968_v57, %v26970_v56  ;;  %v40005_v56 = vld [vmem:[#allocation7_spill] sm:$0xff] }
0x146e   : >> { %v26976_v5 = vadd.f32 %v26974_v60, %v26490_v49 }
0x1470   : >> { %v26978_v18 = vcombine.high %v26976_v5, %v26976_v5  ;;  %v26980_v44 = vsel %vm309_vm4, %v26976_v5, 0.0 }
0x1472   : >> { %v26981_v26 = vsel %vm309_vm4, %v26978_v18, 0.0 }
0x1473   : >> { %v26982_v25 = vadd.f32 %v26981_v26, %v26980_v44  ;;  %v40006_v44 = vld [vmem:[#allocation9_spill] sm:$0xff] }
0x1475   : >> { %26983 = vadd.xlane.f32.xlu0 %v26982_v25 }
0x14fe   : >> { %v26984_v1 = vpop.xlane.xlu0 %26983 }
0x14ff   : >> { %v26985_v12 = vmul.f32 0.00390625, %v26984_v1 }
0x1501   : >> { %v26993_v15 = vrot.slane %v26985_v12, %v39996_v20 }
0x1503   : >> { %v26995_v0 = vsub.f32 %v26976_v5, %v26993_v15 }
0x1505   : >> { %v26996_v50 = vmul.f32 %v26995_v0, %v26995_v0 }
0x1507   : >> { %v26998_v36 = vcombine.high %v26996_v50, %v26996_v50  ;;  %v27000_v54 = vsel %vm309_vm4, %v26996_v50, 0.0 }
0x1509   : >> { %v27001_v62 = vsel %vm309_vm4, %v26998_v36, 0.0 }
0x150a   : >> { %v27002_v21 = vadd.f32 %v27001_v62, %v27000_v54 }
0x150c   : >> { %27003 = vadd.xlane.f32.xlu1 %v27002_v21 }
0x1595   : >> { %v27004_v35 = vpop.xlane.xlu1 %27003 }
0x1596   : >> { %v27005_v6 = vmul.f32 0.00390625, %v27004_v35 }
0x1598   : >> { %v27006_v4 = vadd.f32 1e-05, %v27005_v6 }
0x159a   : >> { %36034 = vrsqrt.f32 %v27006_v4 }
0x15a7   : >> { %v36035_v37 = vpop.eup %36034 }
0x15a8   : >> { %v27015_v22 = vrot.slane %v36035_v37, %v39996_v20 }
0x15aa   : >> { %v27017_v3 = vmul.f32 %v27015_v22, %v26995_v0 }
0x15ac   : >> { %v27018_v59 = vmul.f32 %v27017_v3, %v39998_v29  ;;  %v40007_v3 = vld [vmem:[#allocation18_spill] sm:$0xff] }
0x15ae   : >> { %v27019_v24 = vadd.f32 %v27018_v59, %v39999_v63  ;;  %v40008_v59 = vmov 0.0  }
0x15b0   : >> { %v27021_v58 = vmul.f32 0.125, %v27019_v24  ;;  %v35873_v48 = vmul.f32 2.0, %v27019_v24 }
0x15b2   : >> { %v27022_v17 = vadd.f32 %v40001_v16, %v27021_v58  ;;  %v38706_v19 = vadd.f32 %v35873_v48, %v35872_v47  ;;  %v40009_v48 = vld [vmem:[#allocation10_spill] sm:$0xff] }
0x15b4   : >> { %40002 = vst [vmem:[#allocation96_spill] sm:$0xff] %v38706_v19  ;;  %v27024_v55 = vcombine.high %v27022_v17, %v27022_v17  ;;  %v27026_v8 = vsel %vm309_vm4, %v27022_v17, 0.0 }
0x15b6   : >> { %v27027_v39 = vsel %vm309_vm4, %v27024_v55, 0.0 }
0x15b7   : >> { %v27028_v42 = vadd.f32 %v27027_v39, %v27026_v8  ;;  %v40010_v39 = vld [vmem:[#allocation16_spill] sm:$0xff] }
0x15b9   : >> { %27029 = vadd.xlane.f32.xlu0 %v27028_v42  ;;  %v40011_v42 = vld [vmem:[#allocation8_spill] sm:$0xff] }
0x1642   : >> { %v27030_v34 = vpop.xlane.xlu0 %27029 }
0x1643   : >> { %v27031_v7 = vmul.f32 0.00390625, %v27030_v34 }
0x1645   : >> { %v27039_v41 = vrot.slane %v27031_v7, %v39996_v20 }
0x1647   : >> { %v27041_v43 = vsub.f32 %v27022_v17, %v27039_v41 }
0x1649   : >> { %v27042_v33 = vmul.f32 %v27041_v43, %v27041_v43 }
0x164b   : >> { %v27044_v45 = vcombine.high %v27042_v33, %v27042_v33  ;;  %v27046_v10 = vsel %vm309_vm4, %v27042_v33, 0.0 }
0x164d   : >> { %v27047_v31 = vsel %vm309_vm4, %v27044_v45, 0.0 }
0x164e   : >> { %v27048_v27 = vadd.f32 %v27047_v31, %v27046_v10  ;;  %v40012_v31 = vld [vmem:[#allocation15_spill] sm:$0xff] }
0x1650   : >> { %27049 = vadd.xlane.f32.xlu0 %v27048_v27 }
0x16d9   : >> { %v27050_v9 = vpop.xlane.xlu0 %27049 }
0x16da   : >> { %v27051_v51 = vmul.f32 0.00390625, %v27050_v9 }
0x16dc   : >> { %v27052_v11 = vadd.f32 1e-05, %v27051_v51 }
0x16de   : >> { %36036 = vrsqrt.f32 %v27052_v11 }
0x16eb   : >> { %v36037_v52 = vpop.eup %36036 }
0x16ec   : >> { %v27061_v40 = vrot.slane %v36037_v52, %v39996_v20 }
0x16ee   : >> { %v27063_v38 = vmul.f32 %v27061_v40, %v27041_v43 }
0x16f0   : >> { %v27064_v13 = vmul.f32 %v27063_v38, %v40003_v53  ;;  %v40013_v53 = vld [vmem:[#allocation17_spill] sm:$0xff] }
0x16f2   : >> { %v27065_v30 = vadd.f32 %v27064_v13, %v40004_v46  ;;  %v40014_v13 = vld [vmem:[#allocation24_spill] sm:$0xff] }
0x16f4   : >> { %v38716_v28 = vmax.f32 %v27065_v30, 0.0 }
0x16f6   : >> { %27072 = vrot.lane.b32.xlu1 %v38716_v28, %s36071_s17  ;;  %v38722_v32 = vcombine.high %v38716_v28, %v38716_v28 }
0x16f8   : >> { %27074 = vrot.lane.b32.xlu0 %v38722_v32, %s36071_s17 }
0x16fa   : >> { %27558 = vrot.lane.b32.xlu1 %v38716_v28, %s36073_s19 }
0x16fc   : >> { %28040 = vrot.lane.b32.xlu0 %v38716_v28, %s36078_s25 }
0x16fe   : >> { %27560 = vrot.lane.b32.xlu1 %v38722_v32, %s36073_s19 }
0x1700   : >> { %28526 = vrot.lane.b32.xlu0 %v38716_v28, %s36074_s20 }
0x1702   : >> { %28042 = vrot.lane.b32.xlu1 %v38722_v32, %s36078_s25 }
0x1704   : >> { %29488 = vrot.lane.b32.xlu0 %v38722_v32, %s36077_s24 }
0x1706   : >> { %28528 = vrot.lane.b32.xlu1 %v38722_v32, %s36074_s20 }
0x1708   : >> { %29974 = vrot.lane.b32.xlu0 %v38722_v32, %s36079_s26 }
0x170a   : >> { %29486 = vrot.lane.b32.xlu1 %v38716_v28, %s36077_s24 }
0x170c   : >> { %30460 = vrot.lane.b32.xlu0 %v38722_v32, %s36075_s22 }
0x170e   : >> { %29972 = vrot.lane.b32.xlu1 %v38716_v28, %s36079_s26 }
0x1710   : >> { %30942 = vrot.lane.b32.xlu0 %v38722_v32, %s36082_s29 }
0x1712   : >> { %30458 = vrot.lane.b32.xlu1 %v38716_v28, %s36075_s22 }
0x1716   : >> { %30940 = vrot.lane.b32.xlu1 %v38716_v28, %s36082_s29 }
0x1768   : >> { %v27073_v2 = vpop.permute.xlu1 %27072 }
0x1769   : >> { %v27079_v57 = vsel %vm395_vm6, 0.0, %v27073_v2 }
0x176a   : >> { %v27080_v49 = vmul.f32 %v40005_v56, %v27079_v57  ;;  %v27075_v60 = vpop.permute.xlu0 %27074 }
0x176b   : >> { %v27076_v5 = vsel %vm395_vm6, %v27073_v2, %v27075_v60 }
0x176c   : >> { %v27083_v18 = vsel %vm309_vm4, %v27080_v49, 0  ;;  %v27081_v26 = vmul.f32 %v40006_v44, %v27076_v5  ;;  %v27559_v25 = vpop.permute.xlu1 %27558 }
0x176d   : >> { %v38759_v1 = vand.u32 4294901760, %v27083_v18  ;;  %v27564_v12 = vsel %vm886_vm7, 0.0, %v27559_v25 }
0x176e   : >> { %v27086_v15 = vsel %vm309_vm4, %v27081_v26, 0  ;;  %v27566_v36 = vsel %vm309_vm4, %v27564_v12, 0  ;;  %v28041_v6 = vpop.permute.xlu0 %28040 }
0x176f   : >> { %v27203_v0 = vsub.f32 %v27083_v18, %v38759_v1  ;;  %v27118_v50 = vand.u32 4294901760, %v27086_v15  ;;  %v38768_v37 = vand.u32 4294901760, %v27566_v36  ;;  %v28047_v24 = vsel %vm1373_vm8, 0.0, %v28041_v6  ;;  %v40015_v18 = vld [vmem:[#allocation21_spill] sm:$0xff] }
0x1770   : >> { %v27561_v54 = vpop.permute.xlu1 %27560  ;;  %v28048_v34 = vmul.f32 %v40011_v42, %v28047_v24 }
0x1771   : >> { %v27562_v62 = vsel %vm886_vm7, %v27559_v25, %v27561_v54  ;;  %27119 = vmatprep.subr.mxu0 %v27118_v50  ;;  %v27197_v21 = vsub.f32 %v27086_v15, %v27118_v50  ;;  %v27204_v35 = vand.u32 4294901760, %v27203_v0  ;;  %v27685_v8 = vsub.f32 %v27566_v36, %v38768_v37 }
0x1772   : >> { %v27568_v4 = vsel %vm309_vm4, %v27562_v62, 0  ;;  %27121 = vmatpush1.msra.mxu0 %v38759_v1  ;;  %v28051_v27 = vsel %vm309_vm4, %v28048_v34, 0  ;;  %v28527_v11 = vpop.permute.xlu0 %28526  ;;  %v40017_v62 = vld [vmem:[#allocation22_spill] sm:$0xff]  ;;  %v40021_v34 = vld [vmem:[#allocation25_spill] sm:$0xff] }
0x1773   : >> { %v38770_v22 = vand.u32 4294901760, %v27568_v4  ;;  %27160 = vmatmul.mubr.f32.vlgmr.msra.gmra.mxu0 %v40007_v3  ;;  %27280 = vmatprep.subr.mxu0 %v27197_v21  ;;  %v27198_v23 = vand.u32 4294901760, %v27197_v21  ;;  %v27205_v58 = vsub.f32 %v27203_v0, %v27204_v35  ;;  %v27686_v45 = vand.u32 4294901760, %v27685_v8  ;;  %v40019_v3 = vld [vmem:[#allocation23_spill] sm:$0xff] }
0x1774   : >> { %v28043_v14 = vpop.permute.xlu1 %28042  ;;  %27283 = vmatpush1.msra.mxu0 %v27203_v0  ;;  %27316 = vmatprep.mubr.f32.mxu0 %v40008_v59  ;;  %v38792_v40 = vand.u32 4294901760, %v28051_v27  ;;  %v28533_v2 = vsel %vm1864_vm9, 0.0, %v28527_v11  ;;  %v40016_v0 = vld [vmem:[#allocation19_spill] sm:$0xff] }
0x1775   : >> { %v27679_v61 = vsub.f32 %v27568_v4, %v38770_v22  ;;  %v28044_v47 = vsel %vm1373_vm8, %v28041_v6, %v28043_v14  ;;  %27434 = vmatprep.subr.mxu0 %v27198_v23  ;;  %v27199_v55 = vsub.f32 %v27197_v21, %v27198_v23  ;;  %v27206_v33 = vand.u32 4294901760, %v27205_v58  ;;  %v40018_v21 = vld [vmem:[#allocation28_spill] sm:$0xff] }
0x1776   : >> { %v28049_v17 = vmul.f32 %v40009_v48, %v28044_v47  ;;  %v27687_v38 = vsub.f32 %v27685_v8, %v27686_v45  ;;  %v28171_v49 = vsub.f32 %v28051_v27, %v38792_v40  ;;  %v28534_v5 = vmul.f32 %v40005_v56, %v28533_v2  ;;  %v29489_v24 = vpop.permute.xlu0 %29488  ;;  %v40023_v27 = vld [vmem:[#allocation27_spill] sm:$0xff] }
0x1777   : >> { %27319 = vmatmul.mubr.f32.vlgmr.msra.gmra.mxu0 %v40010_v39  ;;  %v27200_v7 = vand.u32 4294901760, %v27199_v55  ;;  %v27680_v41 = vand.u32 4294901760, %v27679_v61 }
0x1778   : >> { %27438 = vmatpush1.msra.mxu0 %v27204_v35  ;;  %27471 = vmatprep.mubr.f32.mxu0 %v40008_v59  ;;  %v28054_v43 = vsel %vm309_vm4, %v28049_v17, 0  ;;  %v28529_v10 = vpop.permute.xlu1 %28528  ;;  %v27688_v60 = vand.u32 4294901760, %v27687_v38  ;;  %v28537_v12 = vsel %vm309_vm4, %v28534_v5, 0  ;;  %v29493_v17 = vsel %vm2833_vm10, %v29489_v24, 0.0 }
0x1779   : >> { %27601 = vmatprep.subr.mxu0 %v38770_v22  ;;  %27201 = vmatprep.subr.mxu1 %v27200_v7  ;;  %v38786_v9 = vand.u32 4294901760, %v28054_v43  ;;  %v27681_v51 = vsub.f32 %v27679_v61, %v27680_v41  ;;  %v28530_v52 = vsel %vm1864_vm9, %v28527_v11, %v28529_v10  ;;  %v38821_v36 = vand.u32 4294901760, %v28537_v12 }
0x177a   : >> { %27207 = vmatpush1.msra.mxu1 %v27206_v33  ;;  %v28535_v57 = vmul.f32 %v40006_v44, %v28530_v52  ;;  %v29975_v11 = vpop.permute.xlu0 %29974 }
0x177b   : >> { %27473 = vmatmul.mubr.f32.vlgmr.msra.gmra.mxu0 %v40012_v31  ;;  %27242 = vmatmul.mubr.f32.vlgmr.msra.gmra.mxu1 %v40012_v31  ;;  %v27682_v46 = vand.u32 4294901760, %v27681_v51  ;;  %v28165_v30 = vsub.f32 %v28054_v43, %v38786_v9  ;;  %v28657_v4 = vsub.f32 %v28537_v12, %v38821_v36  ;;  %v29495_v43 = vmul.f32 %v40009_v48, %v29493_v17  ;;  %v40031_v17 = vld [vmem:[#allocation35_spill] sm:$0xff] }
0x177c   : >> { %27356 = vmatprep.subr.mxu1 %v27118_v50  ;;  %27603 = vmatpush1.msra.mxu0 %v38768_v37  ;;  %v28540_v25 = vsel %vm309_vm4, %v28535_v57, 0  ;;  %v29487_v55 = vpop.permute.xlu1 %29486 }
0x177d   : >> { %27358 = vmatpush1.msra.mxu1 %v38759_v1  ;;  %27762 = vmatprep.subr.mxu0 %v27679_v61  ;;  %v28166_v26 = vand.u32 4294901760, %v28165_v30  ;;  %v38814_v15 = vand.u32 4294901760, %v28540_v25  ;;  %v28658_v23 = vand.u32 4294901760, %v28657_v4  ;;  %v40020_v61 = vld [vmem:[#allocation20_spill] sm:$0xff]  ;;  %v29490_v33 = vsel %vm2833_vm10, %v29487_v55, %v29489_v24 }
0x177e   : >> { %27510 = vmatprep.subr.mxu1 %v27118_v50  ;;  %27391 = vmatprep.mubr.f32.mxu1 %v40008_v59  ;;  %v29500_v51 = vsel %vm309_vm4, %v29495_v43, 0  ;;  %v40032_v43 = vld [vmem:[#allocation34_spill] sm:$0xff] }
0x177f   : >> { %27636 = vmatprep.mubr.f32.mxu0 %v40008_v59  ;;  %27395 = vmatmul.mubr.f32.vlgmr.msra.gmra.mxu1 %v40013_v53  ;;  %v28167_v50 = vsub.f32 %v28165_v30, %v28166_v26  ;;  %v28651_v6 = vsub.f32 %v28540_v25, %v38814_v15  ;;  %v40024_v53 = vld [vmem:[#allocation26_spill] sm:$0xff] }
0x1780   : >> { %27642 = vmatmul.mubr.f32.vlgmr.msra.gmra.mxu0 %v40014_v13  ;;  %27512 = vmatpush1.msra.mxu1 %v38759_v1  ;;  %v28172_v1 = vand.u32 4294901760, %v28171_v49 }
0x1781   : >> { %27765 = vmatpush1.msra.mxu0 %v27685_v8  ;;  %27683 = vmatprep.subr.mxu1 %v27682_v46  ;;  %v28168_v35 = vand.u32 4294901760, %v28167_v50  ;;  %v28652_v14 = vand.u32 4294901760, %v28651_v6  ;;  %v28659_v8 = vsub.f32 %v28657_v4, %v28658_v23  ;;  %v29979_v46 = vsel %vm3324_vm11, %v29975_v11, 0.0 }
0x1782   : >> { %27916 = vmatprep.subr.mxu0 %v27680_v41  ;;  %27545 = vmatprep.mubr.f32.mxu1 %v40008_v59  ;;  %v28173_v54 = vsub.f32 %v28171_v49, %v28172_v1 }
0x1783   : >> { %27798 = vmatprep.mubr.f32.mxu0 %v40008_v59  ;;  %27547 = vmatmul.mubr.f32.vlgmr.msra.gmra.mxu1 %v40012_v31  ;;  %v28653_v47 = vsub.f32 %v28651_v6, %v28652_v14  ;;  %v29494_v31 = vmul.f32 %v40011_v42, %v29490_v33 }
0x1784   : >> { %27801 = vmatmul.mubr.f32.vlgmr.msra.gmra.mxu0 %v40015_v18  ;;  %27689 = vmatpush1.msra.mxu1 %v27688_v60  ;;  %v40026_v60 = vld [vmem:[#allocation36_spill] sm:$0xff] }
0x1785   : >> { %27920 = vmatpush1.msra.mxu0 %v27686_v45  ;;  %27838 = vmatprep.subr.mxu1 %v38770_v22  ;;  %v28654_v7 = vand.u32 4294901760, %v28653_v47  ;;  %v28660_v45 = vand.u32 4294901760, %v28659_v8  ;;  %v29497_v38 = vsel %vm309_vm4, %v29494_v31, 0 }
0x1786   : >> { %28087 = vmatprep.subr.mxu0 %v38786_v9  ;;  %27722 = vmatprep.mubr.f32.mxu1 %v40008_v59  ;;  %v38880_v2 = vand.u32 4294901760, %v29497_v38 }
0x1787   : >> { %27953 = vmatprep.mubr.f32.mxu0 %v40008_v59  ;;  %27724 = vmatmul.mubr.f32.vlgmr.msra.gmra.mxu1 %v40016_v0 }
0x1788   : >> { %27955 = vmatmul.mubr.f32.vlgmr.msra.gmra.mxu0 %v40016_v0  ;;  %27840 = vmatpush1.msra.mxu1 %v38768_v37 }
0x1789   : >> { %28089 = vmatpush1.msra.mxu0 %v38792_v40  ;;  %27992 = vmatprep.subr.mxu1 %v38770_v22  ;;  %v28174_v22 = vand.u32 4294901760, %v28173_v54 }
0x178a   : >> { %28248 = vmatprep.subr.mxu0 %v28165_v30  ;;  %27873 = vmatprep.mubr.f32.mxu1 %v40008_v59  ;;  %v29973_v30 = vpop.permute.xlu1 %29972 }
0x178b   : >> { %28122 = vmatprep.mubr.f32.mxu0 %v40008_v59  ;;  %27877 = vmatmul.mubr.f32.vlgmr.msra.gmra.mxu1 %v40017_v62  ;;  %v29976_v25 = vsel %vm3324_vm11, %v29973_v30, %v29975_v11  ;;  %v40034_v11 = vld [vmem:[#allocation44_spill] sm:$0xff]  ;;  %v40035_v30 = vld [vmem:[#allocation39_spill] sm:$0xff] }
0x178c   : >> { %28128 = vmatmul.mubr.f32.vlgmr.msra.gmra.mxu0 %v40018_v21  ;;  %27994 = vmatpush1.msra.mxu1 %v38768_v37  ;;  %v29014_v37 = vsel %vm309_vm4, %v38722_v32, 0  ;;  %v29012_v32 = vsel %vm309_vm4, %v38716_v28, 0  ;;  %v40022_v28 = vld [vmem:[#allocation32_spill] sm:$0xff] }
0x178d   : >> { %28251 = vmatpush1.msra.mxu0 %v28171_v49  ;;  %28169 = vmatprep.subr.mxu1 %v28168_v35  ;;  %v38842_v58 = vand.u32 4294901760, %v29014_v37  ;;  %v38852_v39 = vand.u32 4294901760, %v29012_v32  ;;  %v40025_v49 = vld [vmem:[#allocation29_spill] sm:$0xff]  ;;  %v40028_v35 = vld [vmem:[#allocation30_spill] sm:$0xff] }
0x178e   : >> { %28402 = vmatprep.subr.mxu0 %v28166_v26  ;;  %28027 = vmatprep.mubr.f32.mxu1 %v40008_v59  ;;  %v29981_v26 = vmul.f32 %v40006_v44, %v29979_v46  ;;  %v30459_v47 = vpop.permute.xlu1 %30458 }
0x178f   : >> { %28284 = vmatprep.mubr.f32.mxu0 %v40008_v59  ;;  %28029 = vmatmul.mubr.f32.vlgmr.msra.gmra.mxu1 %v40016_v0  ;;  %v29125_v41 = vsub.f32 %v29014_v37, %v38842_v58  ;;  %v29131_v10 = vsub.f32 %v29012_v32, %v38852_v39  ;;  %v40027_v0 = vld [vmem:[#allocation31_spill] sm:$0xff]  ;;  %v40030_v37 = vld [vmem:[#allocation40_spill] sm:$0xff] }
0x1790   : >> { %28287 = vmatmul.mubr.f32.vlgmr.msra.gmra.mxu0 %v40019_v3  ;;  %28175 = vmatpush1.msra.mxu1 %v28174_v22  ;;  %v29986_v54 = vsel %vm309_vm4, %v29981_v26, 0 }
0x1791   : >> { %28406 = vmatpush1.msra.mxu0 %v28172_v1  ;;  %28324 = vmatprep.subr.mxu1 %v38786_v9  ;;  %v29132_v52 = vand.u32 4294901760, %v29131_v10  ;;  %v29617_v1 = vsub.f32 %v29497_v38, %v38880_v2  ;;  %v38901_v62 = vand.u32 4294901760, %v29986_v54 }
0x1792   : >> { %28573 = vmatprep.subr.mxu0 %v38814_v15  ;;  %28208 = vmatprep.mubr.f32.mxu1 %v40008_v59 }
0x1793   : >> { %28439 = vmatprep.mubr.f32.mxu0 %v40008_v59  ;;  %28210 = vmatmul.mubr.f32.vlgmr.msra.gmra.mxu1 %v40020_v61  ;;  %v29133_v57 = vsub.f32 %v29131_v10, %v29132_v52  ;;  %v30097_v24 = vsub.f32 %v29986_v54, %v38901_v62 }
0x1794   : >> { %28441 = vmatmul.mubr.f32.vlgmr.msra.gmra.mxu0 %v40020_v61  ;;  %28326 = vmatpush1.msra.mxu1 %v38792_v40 }
0x1795   : >> { %28575 = vmatpush1.msra.mxu0 %v38821_v36  ;;  %28478 = vmatprep.subr.mxu1 %v38786_v9  ;;  %v29126_v9 = vand.u32 4294901760, %v29125_v41  ;;  %v29134_v12 = vand.u32 4294901760, %v29133_v57  ;;  %v30098_v55 = vand.u32 4294901760, %v30097_v24 }
0x1796   : >> { %28734 = vmatprep.subr.mxu0 %v28651_v6  ;;  %28359 = vmatprep.mubr.f32.mxu1 %v40008_v59 }
0x1797   : >> { %28608 = vmatprep.mubr.f32.mxu0 %v40008_v59  ;;  %28363 = vmatmul.mubr.f32.vlgmr.msra.gmra.mxu1 %v40021_v34  ;;  %v29127_v13 = vsub.f32 %v29125_v41, %v29126_v9  ;;  %v30099_v33 = vsub.f32 %v30097_v24, %v30098_v55 }
0x1798   : >> { %28614 = vmatmul.mubr.f32.vlgmr.msra.gmra.mxu0 %v40022_v28  ;;  %28480 = vmatpush1.msra.mxu1 %v38792_v40  ;;  %v38871_v40 = vand.u32 4294901760, %v29500_v51 }
0x1799   : >> { %28737 = vmatpush1.msra.mxu0 %v28657_v4  ;;  %28655 = vmatprep.subr.mxu1 %v28654_v7  ;;  %v29128_v5 = vand.u32 4294901760, %v29127_v13  ;;  %v30461_v4 = vpop.permute.xlu0 %30460 }
0x179a   : >> { %28888 = vmatprep.subr.mxu0 %v28652_v14  ;;  %28513 = vmatprep.mubr.f32.mxu1 %v40008_v59  ;;  %v29611_v18 = vsub.f32 %v29500_v51, %v38871_v40  ;;  %v40029_v14 = vld [vmem:[#allocation33_spill] sm:$0xff] }
0x179b   : >> { %28770 = vmatprep.mubr.f32.mxu0 %v40008_v59  ;;  %28515 = vmatmul.mubr.f32.vlgmr.msra.gmra.mxu1 %v40020_v61  ;;  %v30464_v61 = vsel %vm3815_vm12, %v30461_v4, 0.0  ;;  %v40033_v51 = vld [vmem:[#allocation37_spill] sm:$0xff] }
0x179c   : >> { %28773 = vmatmul.mubr.f32.vlgmr.msra.gmra.mxu0 %v40023_v27  ;;  %28661 = vmatpush1.msra.mxu1 %v28660_v45  ;;  %v29612_v50 = vand.u32 4294901760, %v29611_v18  ;;  %v30468_v8 = vsel %vm309_vm4, %v30464_v61, 0  ;;  %v40044_v61 = vld [vmem:[#allocation46_spill] sm:$0xff] }
0x179d   : >> { %28892 = vmatpush1.msra.mxu0 %v28658_v23  ;;  %28810 = vmatprep.subr.mxu1 %v38814_v15  ;;  %v30943_v28 = vpop.permute.xlu0 %30942  ;;  %v38929_v7 = vand.u32 4294901760, %v30468_v8 }
0x179e   : >> { %29047 = vmatprep.subr.mxu0 %v38842_v58  ;;  %28694 = vmatprep.mubr.f32.mxu1 %v40008_v59  ;;  %v29613_v6 = vsub.f32 %v29611_v18, %v29612_v50  ;;  %v30947_v45 = vsel %vm4302_vm13, %v30943_v28, 0.0 }
0x179f   : >> { %28925 = vmatprep.mubr.f32.mxu0 %v40008_v59  ;;  %28696 = vmatmul.mubr.f32.vlgmr.msra.gmra.mxu1 %v40024_v53  ;;  %v30949_v38 = vmul.f32 %v40009_v48, %v30947_v45 }
0x17a0   : >> { %28927 = vmatmul.mubr.f32.vlgmr.msra.gmra.mxu0 %v40024_v53  ;;  %28812 = vmatpush1.msra.mxu1 %v38821_v36  ;;  %v29614_v23 = vand.u32 4294901760, %v29613_v6  ;;  %v40040_v6 = vld [vmem:[#allocation42_spill] sm:$0xff] }
0x17a1   : >> { %29049 = vmatpush1.msra.mxu0 %v38852_v39  ;;  %28964 = vmatprep.subr.mxu1 %v38814_v15  ;;  %v29980_v15 = vmul.f32 %v40005_v56, %v29976_v25 }
0x17a2   : >> { %29208 = vmatprep.subr.mxu0 %v29125_v41  ;;  %28845 = vmatprep.mubr.f32.mxu1 %v40008_v59 }
0x17a3   : >> { %29082 = vmatprep.mubr.f32.mxu0 %v40008_v59  ;;  %28849 = vmatmul.mubr.f32.vlgmr.msra.gmra.mxu1 %v40025_v49  ;;  %v29983_v21 = vsel %vm309_vm4, %v29980_v15, 0  ;;  %v30954_v49 = vsel %vm309_vm4, %v30949_v38, 0  ;;  %v40038_v15 = vld [vmem:[#allocation48_spill] sm:$0xff] }
0x17a4   : >> { %29088 = vmatmul.mubr.f32.vlgmr.msra.gmra.mxu0 %v40026_v60  ;;  %28966 = vmatpush1.msra.mxu1 %v38821_v36  ;;  %v29618_v36 = vand.u32 4294901760, %v29617_v1  ;;  %v38909_v22 = vand.u32 4294901760, %v29983_v21  ;;  %v38959_v60 = vand.u32 4294901760, %v30954_v49 }
0x17a5   : >> { %29211 = vmatpush1.msra.mxu0 %v29131_v10  ;;  %29129 = vmatprep.subr.mxu1 %v29128_v5  ;;  %v30941_v10 = vpop.permute.xlu1 %30940 }
0x17a6   : >> { %29362 = vmatprep.subr.mxu0 %v29126_v9  ;;  %28999 = vmatprep.mubr.f32.mxu1 %v40008_v59  ;;  %v29619_v3 = vsub.f32 %v29617_v1, %v29618_v36  ;;  %v30579_v9 = vsub.f32 %v30468_v8, %v38929_v7 }
0x17a7   : >> { %29244 = vmatprep.mubr.f32.mxu0 %v40008_v59  ;;  %29001 = vmatmul.mubr.f32.vlgmr.msra.gmra.mxu1 %v40024_v53  ;;  %v30944_v53 = vsel %vm4302_vm13, %v30941_v10, %v30943_v28 }
0x17a8   : >> { %29247 = vmatmul.mubr.f32.vlgmr.msra.gmra.mxu0 %v40027_v0  ;;  %29135 = vmatpush1.msra.mxu1 %v29134_v12  ;;  %v29620_v32 = vand.u32 4294901760, %v29619_v3  ;;  %v30948_v46 = vmul.f32 %v40011_v42, %v30944_v53  ;;  %v30580_v57 = vand.u32 4294901760, %v30579_v9  ;;  %v40037_v12 = vld [vmem:[#allocation41_spill] sm:$0xff] }
0x17a9   : >> { %29366 = vmatpush1.msra.mxu0 %v29132_v52  ;;  %29284 = vmatprep.subr.mxu1 %v38842_v58  ;;  %v30100_v52 = vand.u32 4294901760, %v30099_v33  ;;  %v40041_v3 = vld [vmem:[#allocation45_spill] sm:$0xff] }
0x17aa   : >> { %29533 = vmatprep.subr.mxu0 %v38871_v40  ;;  %29168 = vmatprep.mubr.f32.mxu1 %v40008_v59  ;;  %v30951_v5 = vsel %vm309_vm4, %v30948_v46, 0  ;;  %v30581_v26 = vsub.f32 %v30579_v9, %v30580_v57 }
0x17ab   : >> { %29399 = vmatprep.mubr.f32.mxu0 %v40008_v59  ;;  %29170 = vmatmul.mubr.f32.vlgmr.msra.gmra.mxu1 %v40028_v35  ;;  %v30988_v25 = vand.u32 4294901760, %v30951_v5 }
0x17ac   : >> { %29401 = vmatmul.mubr.f32.vlgmr.msra.gmra.mxu0 %v40028_v35  ;;  %29286 = vmatpush1.msra.mxu1 %v38852_v39  ;;  %v30582_v0 = vand.u32 4294901760, %v30581_v26 }
0x17ad   : >> { %29535 = vmatpush1.msra.mxu0 %v38880_v2  ;;  %29438 = vmatprep.subr.mxu1 %v38842_v58  ;;  %v30103_v58 = vsub.f32 %v29983_v21, %v38909_v22  ;;  %v31071_v54 = vsub.f32 %v30951_v5, %v30988_v25 }
0x17ae   : >> { %29694 = vmatprep.subr.mxu0 %v29611_v18  ;;  %29319 = vmatprep.mubr.f32.mxu1 %v40008_v59  ;;  %v40036_v18 = vld [vmem:[#allocation38_spill] sm:$0xff] }
0x17af   : >> { %29568 = vmatprep.mubr.f32.mxu0 %v40008_v59  ;;  %29323 = vmatmul.mubr.f32.vlgmr.msra.gmra.mxu1 %v40029_v14  ;;  %v30104_v34 = vand.u32 4294901760, %v30103_v58  ;;  %v40042_v14 = vld [vmem:[#allocation50_spill] sm:$0xff] }
0x17b0   : >> { %29574 = vmatmul.mubr.f32.vlgmr.msra.gmra.mxu0 %v40030_v37  ;;  %29440 = vmatpush1.msra.mxu1 %v38852_v39  ;;  %v30462_v39 = vsel %vm3815_vm12, %v30459_v47, %v30461_v4  ;;  %v40045_v47 = vld [vmem:[#allocation49_spill] sm:$0xff] }
0x17b1   : >> { %29697 = vmatpush1.msra.mxu0 %v29617_v1  ;;  %29615 = vmatprep.subr.mxu1 %v29614_v23  ;;  %v30465_v41 = vsel %vm309_vm4, %v30462_v39, 0  ;;  %v30105_v27 = vsub.f32 %v30103_v58, %v30104_v34 }
0x17b2   : >> { %29848 = vmatprep.subr.mxu0 %v29612_v50  ;;  %29473 = vmatprep.mubr.f32.mxu1 %v40008_v59  ;;  %v38938_v31 = vand.u32 4294901760, %v30465_v41  ;;  %v31065_v50 = vsub.f32 %v30954_v49, %v38959_v60 }
0x17b3   : >> { %29730 = vmatprep.mubr.f32.mxu0 %v40008_v59  ;;  %29475 = vmatmul.mubr.f32.vlgmr.msra.gmra.mxu1 %v40028_v35  ;;  %v30106_v13 = vand.u32 4294901760, %v30105_v27  ;;  %v31072_v35 = vand.u32 4294901760, %v31071_v54  ;;  %v39007_v27 = vstv %s27020_s12 }
0x17b4   : >> { %29733 = vmatmul.mubr.f32.vlgmr.msra.gmra.mxu0 %v40031_v17  ;;  %29621 = vmatpush1.msra.mxu1 %v29620_v32  ;;  %v31066_v21 = vand.u32 4294901760, %v31065_v50  ;;  %40046 = vst [vmem:[#allocation95_spill] sm:$0xff] %v39007_v27 }
0x17b5   : >> { %29852 = vmatpush1.msra.mxu0 %v29618_v36  ;;  %29770 = vmatprep.subr.mxu1 %v38871_v40 }
0x17b6   : >> { %30019 = vmatprep.subr.mxu0 %v38901_v62  ;;  %29654 = vmatprep.mubr.f32.mxu1 %v40008_v59  ;;  %v31067_v4 = vsub.f32 %v31065_v50, %v31066_v21 }
0x17b7   : >> { %29885 = vmatprep.mubr.f32.mxu0 %v40008_v59  ;;  %29656 = vmatmul.mubr.f32.vlgmr.msra.gmra.mxu1 %v40032_v43 }
0x17b8   : >> { %29887 = vmatmul.mubr.f32.vlgmr.msra.gmra.mxu0 %v40032_v43  ;;  %29772 = vmatpush1.msra.mxu1 %v38880_v2  ;;  %v31068_v37 = vand.u32 4294901760, %v31067_v4 }
0x17b9   : >> { %30021 = vmatpush1.msra.mxu0 %v38909_v22  ;;  %29924 = vmatprep.subr.mxu1 %v38871_v40  ;;  %v30585_v40 = vsub.f32 %v30465_v41, %v38938_v31 }
0x17ba   : >> { %30180 = vmatprep.subr.mxu0 %v30097_v24  ;;  %29805 = vmatprep.mubr.f32.mxu1 %v40008_v59  ;;  %v40043_v24 = vld [vmem:[#allocation47_spill] sm:$0xff] }
0x17bb   : >> { %30054 = vmatprep.mubr.f32.mxu0 %v40008_v59  ;;  %29809 = vmatmul.mubr.f32.vlgmr.msra.gmra.mxu1 %v40033_v51 }
0x17bc   : >> { %30060 = vmatmul.mubr.f32.vlgmr.msra.gmra.mxu0 %v40034_v11  ;;  %29926 = vmatpush1.msra.mxu1 %v38880_v2  ;;  %v30586_v2 = vand.u32 4294901760, %v30585_v40 }
0x17bd   : >> { %30183 = vmatpush1.msra.mxu0 %v30103_v58  ;;  %30101 = vmatprep.subr.mxu1 %v30100_v52 }
0x17be   : >> { %30334 = vmatprep.subr.mxu0 %v30098_v55  ;;  %29959 = vmatprep.mubr.f32.mxu1 %v40008_v59  ;;  %v30587_v1 = vsub.f32 %v30585_v40, %v30586_v2 }
0x17bf   : >> { %30216 = vmatprep.mubr.f32.mxu0 %v40008_v59  ;;  %29961 = vmatmul.mubr.f32.vlgmr.msra.gmra.mxu1 %v40032_v43 }
0x17c0   : >> { %30219 = vmatmul.mubr.f32.vlgmr.msra.gmra.mxu0 %v40035_v30  ;;  %30107 = vmatpush1.msra.mxu1 %v30106_v13  ;;  %v30588_v36 = vand.u32 4294901760, %v30587_v1 }
0x17c1   : >> { %30338 = vmatpush1.msra.mxu0 %v30104_v34  ;;  %30256 = vmatprep.subr.mxu1 %v38901_v62 }
0x17c2   : >> { %30501 = vmatprep.subr.mxu0 %v38929_v7  ;;  %30140 = vmatprep.mubr.f32.mxu1 %v40008_v59 }
0x17c3   : >> { %30371 = vmatprep.mubr.f32.mxu0 %v40008_v59  ;;  %30142 = vmatmul.mubr.f32.vlgmr.msra.gmra.mxu1 %v40036_v18 }
0x17c4   : >> { %30373 = vmatmul.mubr.f32.vlgmr.msra.gmra.mxu0 %v40036_v18  ;;  %30258 = vmatpush1.msra.mxu1 %v38909_v22 }
0x17c5   : >> { %30503 = vmatpush1.msra.mxu0 %v38938_v31  ;;  %30410 = vmatprep.subr.mxu1 %v38901_v62  ;;  %v40039_v62 = vld [vmem:[#allocation43_spill] sm:$0xff] }
0x17c6   : >> { %30662 = vmatprep.subr.mxu0 %v30579_v9  ;;  %30291 = vmatprep.mubr.f32.mxu1 %v40008_v59 }
0x17c7   : >> { %30536 = vmatprep.mubr.f32.mxu0 %v40008_v59  ;;  %30295 = vmatmul.mubr.f32.vlgmr.msra.gmra.mxu1 %v40037_v12 }
0x17c8   : >> { %30542 = vmatmul.mubr.f32.vlgmr.msra.gmra.mxu0 %v40038_v15  ;;  %30412 = vmatpush1.msra.mxu1 %v38909_v22  ;;  %v31073_v22 = vsub.f32 %v31071_v54, %v31072_v35 }
0x17c9   : >> { %30665 = vmatpush1.msra.mxu0 %v30585_v40  ;;  %30583 = vmatprep.subr.mxu1 %v30582_v0  ;;  %v40047_v40 = vld [vmem:[#allocation4_spill] sm:$0xff] }
0x17ca   : >> { %30816 = vmatprep.subr.mxu0 %v30580_v57  ;;  %30445 = vmatprep.mubr.f32.mxu1 %v40008_v59  ;;  %v31074_v23 = vand.u32 4294901760, %v31073_v22  ;;  %v27068_v13 = vmul.f32 %v39007_v27, %v40047_v40 }
0x17cb   : >> { %30698 = vmatprep.mubr.f32.mxu0 %v40008_v59  ;;  %30447 = vmatmul.mubr.f32.vlgmr.msra.gmra.mxu1 %v40036_v18  ;;  %v40048_v18 = vld [vmem:[#allocation51_spill] sm:$0xff] }
0x17cc   : >> { %30701 = vmatmul.mubr.f32.vlgmr.msra.gmra.mxu0 %v40039_v62  ;;  %30589 = vmatpush1.msra.mxu1 %v30588_v36  ;;  %v27069_v26 = vadd.f32 %v27068_v13, %v40048_v18 }
0x17cd   : >> { %30820 = vmatpush1.msra.mxu0 %v30586_v2  ;;  %30738 = vmatprep.subr.mxu1 %v38929_v7 }
0x17ce   : >> { %30987 = vmatprep.subr.mxu0 %v38959_v60  ;;  %30622 = vmatprep.mubr.f32.mxu1 %v40008_v59 }
0x17cf   : >> { %30853 = vmatprep.mubr.f32.mxu0 %v40008_v59  ;;  %30624 = vmatmul.mubr.f32.vlgmr.msra.gmra.mxu1 %v40040_v6 }
0x17d0   : >> { %30855 = vmatmul.mubr.f32.vlgmr.msra.gmra.mxu0 %v40040_v6  ;;  %30740 = vmatpush1.msra.mxu1 %v38938_v31 }
0x17d1   : >> { %30989 = vmatpush1.msra.mxu0 %v30988_v25  ;;  %30892 = vmatprep.subr.mxu1 %v38929_v7 }
0x17d2   : >> { %31148 = vmatprep.subr.mxu0 %v31065_v50  ;;  %30773 = vmatprep.mubr.f32.mxu1 %v40008_v59 }
0x17d3   : >> { %31022 = vmatprep.mubr.f32.mxu0 %v40008_v59  ;;  %30777 = vmatmul.mubr.f32.vlgmr.msra.gmra.mxu1 %v40041_v3 }
0x17d4   : >> { %31028 = vmatmul.mubr.f32.vlgmr.msra.gmra.mxu0 %v40042_v14  ;;  %30894 = vmatpush1.msra.mxu1 %v38938_v31 }
0x17d5   : >> { %31151 = vmatpush1.msra.mxu0 %v31071_v54  ;;  %31069 = vmatprep.subr.mxu1 %v31068_v37 }
0x17d6   : >> { %31302 = vmatprep.subr.mxu0 %v31066_v21  ;;  %30927 = vmatprep.mubr.f32.mxu1 %v40008_v59 }
0x17d7   : >> { %31184 = vmatprep.mubr.f32.mxu0 %v40008_v59  ;;  %30929 = vmatmul.mubr.f32.vlgmr.msra.gmra.mxu1 %v40040_v6 }
0x17d8   : >> { %31187 = vmatmul.mubr.f32.vlgmr.msra.gmra.mxu0 %v40043_v24  ;;  %31075 = vmatpush1.msra.mxu1 %v31074_v23 }
0x17d9   : >> { %31306 = vmatpush1.msra.mxu0 %v31072_v35  ;;  %31224 = vmatprep.subr.mxu1 %v38959_v60 }
0x17da   : >> { %31108 = vmatprep.mubr.f32.mxu1 %v40008_v59  ;;  %31339 = vmatprep.mubr.f32.mxu0 %v40008_v59 }
0x17db   : >> { %31110 = vmatmul.mubr.f32.vlgmr.msra.gmra.mxu1 %v40044_v61 }
0x17dc   : >> { %31341 = vmatmul.mubr.f32.vlgmr.msra.gmra.mxu0 %v40044_v61  ;;  %31226 = vmatpush1.msra.mxu1 %v30988_v25 }
0x17dd   : >> { %31259 = vmatprep.mubr.f32.mxu1 %v40008_v59  ;;  %31378 = vmatprep.subr.mxu1 %v38959_v60 }
0x17de   : >> { %31556 = vmatprep.mubr.f32.mxu0 %v40008_v59 }
0x17df   : >> { %31263 = vmatmul.mubr.f32.vlgmr.msra.gmra.mxu1 %v40045_v47 }
0x17e0   : >> { %31380 = vmatpush1.msra.mxu1 %v30988_v25  ;;  %31413 = vmatprep.mubr.f32.mxu1 %v40008_v59 }
0x17e3   : >> { %31415 = vmatmul.mubr.f32.vlgmr.msra.gmra.mxu1 %v40044_v61 }
0x17e4   : >> { %31642 = vmatprep.mubr.f32.mxu1 %v40008_v59 }
0x1833   : >> { %v27161_v58 = vpop.f32.mrf.mxu0 }
0x1835   : >> { %v27163_v32 = vpop.f32.mrf.mxu0 }
0x1837   : >> { %v27320_v17 = vpop.f32.mrf.mxu0 }
0x1839   : >> { %v27322_v55 = vpop.f32.mrf.mxu0 }
0x183b   : >> { %v27474_v8 = vpop.f32.mrf.mxu0  ;;  %v27243_v39 = vpop.f32.mrf.mxu1 }
0x183c   : >> { %v27244_v34 = vadd.f32 %v27243_v39, %v27161_v58 }
0x183d   : >> { %v27476_v28 = vpop.f32.mrf.mxu0  ;;  %v27245_v7 = vpop.f32.mrf.mxu1 }
0x183e   : >> { %v27246_v41 = vadd.f32 %v27245_v7, %v27163_v32  ;;  %v27321_v43 = vadd.f32 %v27320_v17, %v27244_v34 }
0x183f   : >> { %v27396_v33 = vpop.f32.mrf.mxu1 }
0x1840   : >> { %v27643_v45 = vpop.f32.mrf.mxu0  ;;  %v27397_v10 = vadd.f32 %v27396_v33, %v27321_v43  ;;  %v27323_v31 = vadd.f32 %v27322_v55, %v27246_v41 }
0x1841   : >> { %v27398_v9 = vpop.f32.mrf.mxu1 }
0x1842   : >> { %v27645_v51 = vpop.f32.mrf.mxu0  ;;  %v27399_v11 = vadd.f32 %v27398_v9, %v27323_v31  ;;  %v27475_v52 = vadd.f32 %v27474_v8, %v27397_v10 }
0x1843   : >> { %v27548_v38 = vpop.f32.mrf.mxu1 }
0x1844   : >> { %v27802_v53 = vpop.f32.mrf.mxu0  ;;  %v27549_v46 = vadd.f32 %v27548_v38, %v27475_v52  ;;  %v27477_v30 = vadd.f32 %v27476_v28, %v27399_v11 }
0x1845   : >> { %v27550_v57 = vpop.f32.mrf.mxu1 }
0x1846   : >> { %v27804_v49 = vpop.f32.mrf.mxu0  ;;  %v27551_v2 = vadd.f32 %v27550_v57, %v27477_v30 }
0x1847   : >> { %v27725_v60 = vpop.f32.mrf.mxu1 }
0x1848   : >> { %v27956_v5 = vpop.f32.mrf.mxu0  ;;  %v27555_v25 = vcombine.low %v27549_v46, %v27551_v2  ;;  %v27726_v1 = vadd.f32 %v27725_v60, %v27643_v45 }
0x1849   : >> { %v27727_v12 = vpop.f32.mrf.mxu1 }
0x184a   : >> { %v27958_v15 = vpop.f32.mrf.mxu0  ;;  %v27557_v0 = vadd.f32 %v27555_v25, %v27069_v26  ;;  %v27728_v50 = vadd.f32 %v27727_v12, %v27645_v51  ;;  %v27803_v54 = vadd.f32 %v27802_v53, %v27726_v1 }
0x184b   : >> { %v27878_v36 = vpop.f32.mrf.mxu1 }
0x184c   : >> { %v28129_v62 = vpop.f32.mrf.mxu0  ;;  %v27879_v21 = vadd.f32 %v27878_v36, %v27803_v54  ;;  %v27805_v35 = vadd.f32 %v27804_v49, %v27728_v50 }
0x184d   : >> { %v27880_v6 = vpop.f32.mrf.mxu1 }
0x184e   : >> { %v28131_v4 = vpop.f32.mrf.mxu0  ;;  %v27881_v22 = vadd.f32 %v27880_v6, %v27805_v35  ;;  %v27957_v3 = vadd.f32 %v27956_v5, %v27879_v21 }
0x184f   : >> { %v28030_v14 = vpop.f32.mrf.mxu1 }
0x1850   : >> { %v28288_v37 = vpop.f32.mrf.mxu0  ;;  %v28031_v23 = vadd.f32 %v28030_v14, %v27957_v3  ;;  %v27959_v24 = vadd.f32 %v27958_v15, %v27881_v22 }
0x1851   : >> { %v28032_v61 = vpop.f32.mrf.mxu1 }
0x1852   : >> { %v28290_v47 = vpop.f32.mrf.mxu0  ;;  %v28033_v58 = vadd.f32 %v28032_v61, %v27959_v24 }
0x1853   : >> { %v28211_v32 = vpop.f32.mrf.mxu1 }
0x1854   : >> { %v28442_v17 = vpop.f32.mrf.mxu0  ;;  %v28037_v55 = vcombine.low %v28031_v23, %v28033_v58  ;;  %v28212_v8 = vadd.f32 %v28211_v32, %v28129_v62 }
0x1855   : >> { %v28213_v39 = vpop.f32.mrf.mxu1 }
0x1856   : >> { %v28444_v34 = vpop.f32.mrf.mxu0  ;;  %v28039_v28 = vadd.f32 %v28037_v55, %v27557_v0  ;;  %v28214_v7 = vadd.f32 %v28213_v39, %v28131_v4  ;;  %v28289_v41 = vadd.f32 %v28288_v37, %v28212_v8 }
0x1857   : >> { %v28364_v43 = vpop.f32.mrf.mxu1 }
0x1858   : >> { %v28615_v33 = vpop.f32.mrf.mxu0  ;;  %v28365_v45 = vadd.f32 %v28364_v43, %v28289_v41  ;;  %v28291_v10 = vadd.f32 %v28290_v47, %v28214_v7 }
0x1859   : >> { %v28366_v31 = vpop.f32.mrf.mxu1 }
0x185a   : >> { %v28617_v9 = vpop.f32.mrf.mxu0  ;;  %v28367_v51 = vadd.f32 %v28366_v31, %v28291_v10  ;;  %v28443_v11 = vadd.f32 %v28442_v17, %v28365_v45 }
0x185b   : >> { %v28516_v52 = vpop.f32.mrf.mxu1 }
0x185c   : >> { %v28774_v38 = vpop.f32.mrf.mxu0  ;;  %v28445_v53 = vadd.f32 %v28444_v34, %v28367_v51  ;;  %v28517_v46 = vadd.f32 %v28516_v52, %v28443_v11 }
0x185d   : >> { %v28518_v40 = vpop.f32.mrf.mxu1 }
0x185e   : >> { %v28776_v13 = vpop.f32.mrf.mxu0  ;;  %v28519_v30 = vadd.f32 %v28518_v40, %v28445_v53 }
0x185f   : >> { %v28697_v57 = vpop.f32.mrf.mxu1 }
0x1860   : >> { %v39012_v49 = vpop.f32.mrf.mxu0  ;;  %v28523_v2 = vcombine.low %v28517_v46, %v28519_v30  ;;  %v28698_v53 = vadd.f32 %v28697_v57, %v28615_v33 }
0x1861   : >> { %v28699_v60 = vpop.f32.mrf.mxu1 }
0x1862   : >> { %v39014_v5 = vpop.f32.mrf.mxu0  ;;  %v39016_v18 = vadd.f32 %v28523_v2, %v28039_v28  ;;  %v28700_v51 = vadd.f32 %v28699_v60, %v28617_v9  ;;  %v28775_v27 = vadd.f32 %v28774_v38, %v28698_v53 }
0x1863   : >> { %v28850_v26 = vpop.f32.mrf.mxu1 }
0x1864   : >> { %40049 = vst [vmem:[#allocation94_spill] sm:$0xff] %v39016_v18  ;;  %v29089_v25 = vpop.f32.mrf.mxu0  ;;  %v28777_v2 = vadd.f32 %v28776_v13, %v28700_v51 }
0x1865   : >> { %v28852_v1 = vpop.f32.mrf.mxu1 }
0x1866   : >> { %v29091_v12 = vpop.f32.mrf.mxu0  ;;  %v28853_v20 = vadd.f32 %v28852_v1, %v28777_v2 }
0x1867   : >> { %v39018_v15 = vpop.f32.mrf.mxu1 }
0x1868   : >> { %v29248_v0 = vpop.f32.mrf.mxu0  ;;  %v28931_v38 = vadd.f32 %v39014_v5, %v28853_v20 }
0x1869   : >> { %v39020_v50 = vpop.f32.mrf.mxu1 }
0x186a   : >> { %v29250_v54 = vpop.f32.mrf.mxu0 }
0x186b   : >> { %v29171_v36 = vpop.f32.mrf.mxu1 }
0x186c   : >> { %v39022_v62 = vpop.f32.mrf.mxu0  ;;  %v29172_v16 = vadd.f32 %v29171_v36, %v29089_v25 }
0x186d   : >> { %v29173_v21 = vpop.f32.mrf.mxu1 }
0x186e   : >> { %v39024_v35 = vpop.f32.mrf.mxu0  ;;  %v29174_v40 = vadd.f32 %v29173_v21, %v29091_v12  ;;  %v29249_v9 = vadd.f32 %v29248_v0, %v29172_v16  ;;  %v28851_v12 = vadd.f32 %v28850_v26, %v28775_v27 }
0x186f   : >> { %v29324_v6 = vpop.f32.mrf.mxu1 }
0x1870   : >> { %v29575_v4 = vpop.f32.mrf.mxu0  ;;  %v29251_v42 = vadd.f32 %v29250_v54, %v29174_v40  ;;  %v29325_v54 = vadd.f32 %v29324_v6, %v29249_v9  ;;  %v40050_v40 = vld [vmem:[#allocation94_spill] sm:$0xff] }
0x1871   : >> { %v29326_v22 = vpop.f32.mrf.mxu1 }
0x1872   : >> { %v29577_v3 = vpop.f32.mrf.mxu0  ;;  %v29327_v21 = vadd.f32 %v29326_v22, %v29251_v42 }
0x1873   : >> { %v39026_v14 = vpop.f32.mrf.mxu1 }
0x1874   : >> { %v29734_v37 = vpop.f32.mrf.mxu0  ;;  %v29405_v0 = vadd.f32 %v39024_v35, %v29327_v21 }
0x1875   : >> { %v39028_v23 = vpop.f32.mrf.mxu1 }
0x1876   : >> { %v29736_v24 = vpop.f32.mrf.mxu0 }
0x1877   : >> { %v29657_v61 = vpop.f32.mrf.mxu1 }
0x1878   : >> { %v39030_v47 = vpop.f32.mrf.mxu0  ;;  %v29658_v59 = vadd.f32 %v29657_v61, %v29575_v4 }
0x1879   : >> { %v29659_v58 = vpop.f32.mrf.mxu1 }
0x187a   : >> { %v29890_v32 = vpop.f32.mrf.mxu0  ;;  %v29660_v19 = vadd.f32 %v29659_v58, %v29577_v3  ;;  %v29735_v13 = vadd.f32 %v29734_v37, %v29658_v59 }
0x187b   : >> { %v29810_v17 = vpop.f32.mrf.mxu1 }
0x187c   : >> { %v30061_v55 = vpop.f32.mrf.mxu0  ;;  %v29737_v60 = vadd.f32 %v29736_v24, %v29660_v19  ;;  %v28929_v19 = vadd.f32 %v39012_v49, %v28851_v12  ;;  %v29811_v27 = vadd.f32 %v29810_v17, %v29735_v13  ;;  %v29479_v49 = vadd.f32 %v39028_v23, %v29405_v0 }
0x187d   : >> { %v29812_v8 = vpop.f32.mrf.mxu1 }
0x187e   : >> { %v30063_v39 = vpop.f32.mrf.mxu0  ;;  %v29813_v4 = vadd.f32 %v29812_v8, %v29737_v60  ;;  %v29889_v35 = vadd.f32 %v39030_v47, %v29811_v27 }
0x187f   : >> { %v39032_v34 = vpop.f32.mrf.mxu1 }
0x1880   : >> { %v30220_v28 = vpop.f32.mrf.mxu0  ;;  %v29891_v20 = vadd.f32 %v29890_v32, %v29813_v4 }
0x1881   : >> { %v39034_v7 = vpop.f32.mrf.mxu1 }
0x1882   : >> { %v30222_v41 = vpop.f32.mrf.mxu0 }
0x1883   : >> { %v30143_v43 = vpop.f32.mrf.mxu1 }
0x1884   : >> { %v39036_v45 = vpop.f32.mrf.mxu0  ;;  %v30144_v57 = vadd.f32 %v30143_v43, %v30061_v55 }
0x1885   : >> { %v30145_v10 = vpop.f32.mrf.mxu1 }
0x1886   : >> { %v30376_v31 = vpop.f32.mrf.mxu0  ;;  %v30146_v56 = vadd.f32 %v30145_v10, %v30063_v39  ;;  %v30221_v1 = vadd.f32 %v30220_v28, %v30144_v57 }
0x1887   : >> { %v30296_v11 = vpop.f32.mrf.mxu1 }
0x1888   : >> { %v30543_v52 = vpop.f32.mrf.mxu0  ;;  %v30223_v3 = vadd.f32 %v30222_v41, %v30146_v56  ;;  %v29005_v56 = vadd.f32 %v39020_v50, %v28931_v38  ;;  %v30297_v37 = vadd.f32 %v30296_v11, %v30221_v1  ;;  %v29965_v50 = vadd.f32 %v39034_v7, %v29891_v20 }
0x1889   : >> { %v30298_v46 = vpop.f32.mrf.mxu1 }
0x188a   : >> { %v30545_v30 = vpop.f32.mrf.mxu0  ;;  %v30299_v26 = vadd.f32 %v30298_v46, %v30223_v3  ;;  %v30375_v41 = vadd.f32 %v39036_v45, %v30297_v37 }
0x188b   : >> { %v39038_v63 = vpop.f32.mrf.mxu1 }
0x188c   : >> { %v30702_v29 = vpop.f32.mrf.mxu0  ;;  %v30377_v55 = vadd.f32 %v30376_v31, %v30299_v26  ;;  %v30449_v7 = vadd.f32 %v39038_v63, %v30375_v41 }
0x188d   : >> { %v30450_v48 = vpop.f32.mrf.mxu1 }
0x188e   : >> { %v30704_v44 = vpop.f32.mrf.mxu0 }
0x188f   : >> { %v30625_v18 = vpop.f32.mrf.mxu1 }
0x1890   : >> { %v30856_v33 = vpop.f32.mrf.mxu0  ;;  %v30626_v58 = vadd.f32 %v30625_v18, %v30543_v52  ;;  %v29403_v18 = vadd.f32 %v39022_v62, %v29325_v54  ;;  %v30451_v52 = vadd.f32 %v30450_v48, %v30377_v55  ;;  %v40052_v55 = vld [vmem:[#allocation52_spill] sm:$0xff] }
0x1891   : >> { %v30627_v25 = vpop.f32.mrf.mxu1 }
0x1892   : >> { %v30858_v36 = vpop.f32.mrf.mxu0  ;;  %v30628_v51 = vadd.f32 %v30627_v25, %v30545_v30  ;;  %v30703_v22 = vadd.f32 %v30702_v29, %v30626_v58  ;;  %v29477_v29 = vadd.f32 %v39026_v14, %v29403_v18  ;;  %v30455_v21 = vcombine.low %v30449_v7, %v30451_v52  ;;  %v40055_v52 = vld [vmem:[#allocation9_spill] sm:$0xff] }
0x1893   : >> { %v30778_v61 = vpop.f32.mrf.mxu1 }
0x1894   : >> { %v31029_v39 = vpop.f32.mrf.mxu0  ;;  %v30705_v16 = vadd.f32 %v30704_v44, %v30628_v51  ;;  %v29003_v44 = vadd.f32 %v39018_v15, %v28929_v19  ;;  %v30779_v8 = vadd.f32 %v30778_v61, %v30703_v22  ;;  %v29483_v11 = vcombine.low %v29477_v29, %v29479_v49 }
0x1895   : >> { %v30780_v42 = vpop.f32.mrf.mxu1  ;;  %v29963_v15 = vadd.f32 %v39032_v34, %v29889_v35 }
0x1896   : >> { %v31031_v59 = vpop.f32.mrf.mxu0  ;;  %v30781_v24 = vadd.f32 %v30780_v42, %v30705_v16  ;;  %v29009_v28 = vcombine.low %v29003_v44, %v29005_v56  ;;  %v30857_v47 = vadd.f32 %v30856_v33, %v30779_v8 }
0x1897   : >> { %v30930_v5 = vpop.f32.mrf.mxu1  ;;  %v29969_v30 = vcombine.low %v29963_v15, %v29965_v50 }
0x1898   : >> { %v31188_v6 = vpop.f32.mrf.mxu0  ;;  %v30859_v43 = vadd.f32 %v30858_v36, %v30781_v24  ;;  %v29011_v46 = vadd.f32 %v29009_v28, %v40050_v40  ;;  %v30931_v13 = vadd.f32 %v30930_v5, %v30857_v47  ;;  %v40053_v28 = vld [vmem:[#allocation53_spill] sm:$0xff] }
0x1899   : >> { %v30932_v17 = vpop.f32.mrf.mxu1 }
0x189a   : >> { %v31190_v62 = vpop.f32.mrf.mxu0  ;;  %v30933_v9 = vadd.f32 %v30932_v17, %v30859_v43  ;;  %v29485_v57 = vadd.f32 %v29483_v11, %v29011_v46  ;;  %v40054_v43 = vld [vmem:[#allocation7_spill] sm:$0xff] }
0x189b   : >> { %v31111_v32 = vpop.f32.mrf.mxu1 }
0x189c   : >> { %v31112_v10 = vadd.f32 %v31111_v32, %v31029_v39  ;;  %v31342_v14 = vpop.f32.mrf.mxu0  ;;  %v29971_v36 = vadd.f32 %v29969_v30, %v29485_v57  ;;  %v30937_v3 = vcombine.low %v30931_v13, %v30933_v9 }
0x189d   : >> { %v31113_v23 = vpop.f32.mrf.mxu1 }
0x189e   : >> { %v31114_v53 = vadd.f32 %v31113_v23, %v31031_v59  ;;  %v31189_v31 = vadd.f32 %v31188_v6, %v31112_v10  ;;  %v31344_v48 = vpop.f32.mrf.mxu0  ;;  %v30457_v38 = vadd.f32 %v30455_v21, %v29971_v36  ;;  %v40051_v59 = vld [vmem:[#allocation12_spill] sm:$0xff] }
0x189f   : >> { %v31264_v2 = vpop.f32.mrf.mxu1 }
0x18a0   : >> { %v31265_v60 = vadd.f32 %v31264_v2, %v31189_v31  ;;  %v31191_v45 = vadd.f32 %v31190_v62, %v31114_v53  ;;  %v30939_v61 = vadd.f32 %v30937_v3, %v30457_v38  ;;  %v40058_v38 = vmov 0.0  }
0x18a1   : >> { %v31266_v12 = vpop.f32.mrf.mxu1 }
0x18a2   : >> { %v31267_v34 = vadd.f32 %v31266_v12, %v31191_v45  ;;  %v31343_v25 = vadd.f32 %v31342_v14, %v31265_v60 }
0x18a3   : >> { %v31416_v33 = vpop.f32.mrf.mxu1 }
0x18a4   : >> { %v31345_v58 = vadd.f32 %v31344_v48, %v31267_v34  ;;  %v31417_v54 = vadd.f32 %v31416_v33, %v31343_v25  ;;  %v40056_v33 = vld [vmem:[#allocation57_spill] sm:$0xff] }
0x18a5   : >> { %v31418_v51 = vpop.f32.mrf.mxu1 }
0x18a6   : >> { %v31419_v4 = vadd.f32 %v31418_v51, %v31345_v58  ;;  %v40057_v58 = vld [vmem:[#allocation10_spill] sm:$0xff] }
0x18a8   : >> { %v31423_v63 = vcombine.low %v31417_v54, %v31419_v4 }
0x18aa   : >> { %v31425_v39 = vadd.f32 %v31423_v63, %v30939_v61  ;;  %v40059_v63 = vld [vmem:[#allocation8_spill] sm:$0xff] }
0x18ac   : >> { %v31427_v1 = vcombine.high %v31425_v39, %v31425_v39  ;;  %v31429_v16 = vsel %vm309_vm4, %v31425_v39, 0.0 }
0x18ae   : >> { %v31430_v19 = vsel %vm309_vm4, %v31427_v1, 0.0  ;;  %v40060_v1 = vld [vmem:[#allocation55_spill] sm:$0xff] }
0x18af   : >> { %v31431_v0 = vadd.f32 %v31430_v19, %v31429_v16 }
0x18b1   : >> { %31432 = vadd.xlane.f32.xlu0 %v31431_v0 }
0x193a   : >> { %v31433_v27 = vpop.xlane.xlu0 %31432 }
0x193b   : >> { %v31434_v42 = vmul.f32 0.00390625, %v31433_v27 }
0x193d   : >> { %v31442_v26 = vrot.slane %v31434_v42, %v40051_v59 }
0x193f   : >> { %v31444_v22 = vsub.f32 %v31425_v39, %v31442_v26 }
0x1941   : >> { %v31445_v56 = vmul.f32 %v31444_v22, %v31444_v22 }
0x1943   : >> { %v31447_v18 = vcombine.high %v31445_v56, %v31445_v56  ;;  %v31449_v20 = vsel %vm309_vm4, %v31445_v56, 0.0 }
0x1945   : >> { %v31450_v5 = vsel %vm309_vm4, %v31447_v18, 0.0  ;;  %v40061_v18 = vld [vmem:[#allocation54_spill] sm:$0xff] }
0x1946   : >> { %v31451_v6 = vadd.f32 %v31450_v5, %v31449_v20 }
0x1948   : >> { %31452 = vadd.xlane.f32.xlu1 %v31451_v6 }
0x19d1   : >> { %v31453_v37 = vpop.xlane.xlu1 %31452 }
0x19d2   : >> { %v31454_v24 = vmul.f32 0.00390625, %v31453_v37 }
0x19d4   : >> { %v31455_v44 = vadd.f32 1e-05, %v31454_v24 }
0x19d6   : >> { %36038 = vrsqrt.f32 %v31455_v44  ;;  %v40062_v44 = vld [vmem:[#allocation56_spill] sm:$0xff] }
0x19e3   : >> { %v36039_v49 = vpop.eup %36038 }
0x19e4   : >> { %v31464_v35 = vrot.slane %v36039_v49, %v40051_v59 }
0x19e6   : >> { %v31466_v17 = vmul.f32 %v31464_v35, %v31444_v22 }
0x19e8   : >> { %v31467_v8 = vmul.f32 %v31466_v17, %v40052_v55 }
0x19ea   : >> { %v31468_v29 = vadd.f32 %v31467_v8, %v40053_v28  ;;  %v40063_v8 = vld [vmem:[#allocation63_spill] sm:$0xff] }
0x19ec   : >> { %v39062_v50 = vmax.f32 %v31468_v29, 0.0 }
0x19ee   : >> { %31474 = vrot.lane.b32.xlu0 %v39062_v50, %s36071_s17  ;;  %v39068_v62 = vcombine.high %v39062_v50, %v39062_v50 }
0x19f0   : >> { %31476 = vrot.lane.b32.xlu1 %v39068_v62, %s36071_s17 }
0x19f2   : >> { %31960 = vrot.lane.b32.xlu0 %v39062_v50, %s36073_s19 }
0x19f4   : >> { %31962 = vrot.lane.b32.xlu1 %v39068_v62, %s36073_s19 }
0x19f6   : >> { %32442 = vrot.lane.b32.xlu0 %v39062_v50, %s36078_s25 }
0x19f8   : >> { %32444 = vrot.lane.b32.xlu1 %v39068_v62, %s36078_s25 }
0x19fa   : >> { %32928 = vrot.lane.b32.xlu0 %v39062_v50, %s36074_s20 }
0x19fc   : >> { %32930 = vrot.lane.b32.xlu1 %v39068_v62, %s36074_s20 }
0x19fe   : >> { %33890 = vrot.lane.b32.xlu0 %v39068_v62, %s36077_s24 }
0x1a00   : >> { %33888 = vrot.lane.b32.xlu1 %v39062_v50, %s36077_s24 }
0x1a02   : >> { %34376 = vrot.lane.b32.xlu0 %v39068_v62, %s36079_s26 }
0x1a04   : >> { %34374 = vrot.lane.b32.xlu1 %v39062_v50, %s36079_s26 }
0x1a06   : >> { %34862 = vrot.lane.b32.xlu0 %v39068_v62, %s36075_s22 }
0x1a08   : >> { %34860 = vrot.lane.b32.xlu1 %v39062_v50, %s36075_s22 }
0x1a0a   : >> { %35344 = vrot.lane.b32.xlu0 %v39068_v62, %s36082_s29 }
0x1a0c   : >> { %35342 = vrot.lane.b32.xlu1 %v39062_v50, %s36082_s29 }
0x1a60   : >> { %v31475_v32 = vpop.permute.xlu0 %31474 }
0x1a61   : >> { %v31481_v41 = vsel %vm395_vm6, 0.0, %v31475_v32 }
0x1a62   : >> { %v31482_v10 = vmul.f32 %v40054_v43, %v31481_v41  ;;  %v31477_v11 = vpop.permute.xlu1 %31476 }
0x1a63   : >> { %v31478_v15 = vsel %vm395_vm6, %v31475_v32, %v31477_v11  ;;  %v40064_v11 = vld [vmem:[#allocation60_spill] sm:$0xff] }
0x1a64   : >> { %v31485_v23 = vsel %vm309_vm4, %v31482_v10, 0  ;;  %v31483_v47 = vmul.f32 %v40055_v52, %v31478_v15  ;;  %v31961_v53 = vpop.permute.xlu0 %31960 }
0x1a65   : >> { %v39105_v31 = vand.u32 4294901760, %v31485_v23  ;;  %v31966_v40 = vsel %vm886_vm7, 0.0, %v31961_v53 }
0x1a66   : >> { %v31488_v46 = vsel %vm309_vm4, %v31483_v47, 0  ;;  %v31963_v30 = vpop.permute.xlu1 %31962  ;;  %v31968_v7 = vsel %vm309_vm4, %v31966_v40, 0 }
0x1a67   : >> { %v31605_v14 = vsub.f32 %v31485_v23, %v39105_v31  ;;  %v31520_v2 = vand.u32 4294901760, %v31488_v46  ;;  %v31964_v9 = vsel %vm886_vm7, %v31961_v53, %v31963_v30  ;;  %v39115_v21 = vand.u32 4294901760, %v31968_v7  ;;  %v40065_v53 = vld [vmem:[#allocation58_spill] sm:$0xff]  ;;  %v40066_v30 = vld [vmem:[#allocation61_spill] sm:$0xff] }
0x1a68   : >> { %v31970_v60 = vsel %vm309_vm4, %v31964_v9, 0  ;;  %v32443_v57 = vpop.permute.xlu0 %32442 }
0x1a69   : >> { %v39113_v45 = vand.u32 4294901760, %v31970_v60  ;;  %31521 = vmatprep.subr.mxu0 %v31520_v2  ;;  %v31599_v12 = vsub.f32 %v31488_v46, %v31520_v2  ;;  %v31606_v34 = vand.u32 4294901760, %v31605_v14  ;;  %v32449_v3 = vsel %vm1373_vm8, 0.0, %v32443_v57 }
0x1a6a   : >> { %31523 = vmatpush1.msra.mxu0 %v39105_v31  ;;  %v32445_v13 = vpop.permute.xlu1 %32444  ;;  %v32087_v61 = vsub.f32 %v31968_v7, %v39115_v21  ;;  %v32450_v39 = vmul.f32 %v40059_v63, %v32449_v3  ;;  %v40067_v7 = vld [vmem:[#allocation67_spill] sm:$0xff] }
0x1a6b   : >> { %v32081_v25 = vsub.f32 %v31970_v60, %v39113_v45  ;;  %v32446_v48 = vsel %vm1373_vm8, %v32443_v57, %v32445_v13  ;;  %31562 = vmatmul.mubr.f32.vlgmr.msra.gmra.mxu0 %v40056_v33  ;;  %31682 = vmatprep.subr.mxu0 %v31599_v12  ;;  %v31600_v36 = vand.u32 4294901760, %v31599_v12  ;;  %v31607_v54 = vsub.f32 %v31605_v14, %v31606_v34  ;;  %v40068_v57 = vld [vmem:[#allocation62_spill] sm:$0xff] }
0x1a6c   : >> { %v32451_v51 = vmul.f32 %v40057_v58, %v32446_v48  ;;  %31685 = vmatpush1.msra.mxu0 %v31605_v14  ;;  %31718 = vmatprep.mubr.f32.mxu0 %v40058_v38  ;;  %v32088_v42 = vand.u32 4294901760, %v32087_v61  ;;  %v32453_v22 = vsel %vm309_vm4, %v32450_v39, 0  ;;  %v32929_v5 = vpop.permute.xlu0 %32928  ;;  %v33414_v33 = vsel %vm309_vm4, %v39062_v50, 0  ;;  %v40070_v50 = vld [vmem:[#allocation64_spill] sm:$0xff] }
0x1a6d   : >> { %31836 = vmatprep.subr.mxu0 %v31600_v36  ;;  %v31601_v4 = vsub.f32 %v31599_v12, %v31600_v36  ;;  %v32082_v19 = vand.u32 4294901760, %v32081_v25  ;;  %v31608_v27 = vand.u32 4294901760, %v31607_v54  ;;  %v39138_v37 = vand.u32 4294901760, %v32453_v22 }
0x1a6e   : >> { %v32456_v0 = vsel %vm309_vm4, %v32451_v51, 0  ;;  %v32931_v26 = vpop.permute.xlu1 %32930  ;;  %v32089_v24 = vsub.f32 %v32087_v61, %v32088_v42  ;;  %v32935_v17 = vsel %vm1864_vm9, 0.0, %v32929_v5  ;;  %v33416_v12 = vsel %vm309_vm4, %v39068_v62, 0 }
0x1a6f   : >> { %31721 = vmatmul.mubr.f32.vlgmr.msra.gmra.mxu0 %v40060_v1  ;;  %v31602_v16 = vand.u32 4294901760, %v31601_v4  ;;  %v39131_v56 = vand.u32 4294901760, %v32456_v0  ;;  %v32083_v20 = vsub.f32 %v32081_v25, %v32082_v19  ;;  %v32932_v6 = vsel %vm1864_vm9, %v32929_v5, %v32931_v26  ;;  %v40071_v1 = vld [vmem:[#allocation71_spill] sm:$0xff]  ;;  %v40072_v26 = vld [vmem:[#allocation66_spill] sm:$0xff]  ;;  %v40073_v5 = vld [vmem:[#allocation65_spill] sm:$0xff] }
0x1a70   : >> { %31840 = vmatpush1.msra.mxu0 %v31606_v34  ;;  %31873 = vmatprep.mubr.f32.mxu0 %v40058_v38  ;;  %v32937_v55 = vmul.f32 %v40055_v52, %v32932_v6  ;;  %v32573_v28 = vsub.f32 %v32453_v22, %v39138_v37  ;;  %v32090_v29 = vand.u32 4294901760, %v32089_v24  ;;  %v32936_v32 = vmul.f32 %v40054_v43, %v32935_v17  ;;  %v33891_v13 = vpop.permute.xlu0 %33890  ;;  %v40069_v34 = vld [vmem:[#allocation59_spill] sm:$0xff] }
0x1a71   : >> { %32003 = vmatprep.subr.mxu0 %v39113_v45  ;;  %31603 = vmatprep.subr.mxu1 %v31602_v16  ;;  %v32084_v49 = vand.u32 4294901760, %v32083_v20  ;;  %v32567_v35 = vsub.f32 %v32456_v0, %v39131_v56  ;;  %v39187_v48 = vand.u32 4294901760, %v33416_v12  ;;  %v33895_v62 = vsel %vm2833_vm10, %v33891_v13, 0.0 }
0x1a72   : >> { %31609 = vmatpush1.msra.mxu1 %v31608_v27  ;;  %v32942_v10 = vsel %vm309_vm4, %v32937_v55, 0  ;;  %v32574_v15 = vand.u32 4294901760, %v32573_v28  ;;  %v32939_v23 = vsel %vm309_vm4, %v32936_v32, 0  ;;  %v33889_v36 = vpop.permute.xlu1 %33888  ;;  %v39197_v51 = vand.u32 4294901760, %v33414_v33 }
0x1a73   : >> { %31644 = vmatmul.mubr.f32.vlgmr.msra.gmra.mxu1 %v40061_v18  ;;  %31758 = vmatprep.subr.mxu1 %v31520_v2  ;;  %v32568_v41 = vand.u32 4294901760, %v32567_v35  ;;  %v39159_v47 = vand.u32 4294901760, %v32942_v10  ;;  %v39167_v40 = vand.u32 4294901760, %v32939_v23  ;;  %v33527_v4 = vsub.f32 %v33416_v12, %v39187_v48 }
0x1a74   : >> { %31875 = vmatmul.mubr.f32.vlgmr.msra.gmra.mxu0 %v40061_v18  ;;  %31760 = vmatpush1.msra.mxu1 %v39105_v31  ;;  %v32575_v46 = vsub.f32 %v32573_v28, %v32574_v15  ;;  %v33892_v39 = vsel %vm2833_vm10, %v33889_v36, %v33891_v13  ;;  %v34377_v22 = vpop.permute.xlu0 %34376 }
0x1a75   : >> { %32005 = vmatpush1.msra.mxu0 %v39115_v21  ;;  %31912 = vmatprep.subr.mxu1 %v31520_v2  ;;  %v33053_v2 = vsub.f32 %v32942_v10, %v39159_v47  ;;  %v33059_v9 = vsub.f32 %v32939_v23, %v39167_v40  ;;  %v33896_v0 = vmul.f32 %v40059_v63, %v33892_v39  ;;  %v33528_v27 = vand.u32 4294901760, %v33527_v4 }
0x1a76   : >> { %32164 = vmatprep.subr.mxu0 %v32081_v25  ;;  %31793 = vmatprep.mubr.f32.mxu1 %v40058_v38  ;;  %v32576_v60 = vand.u32 4294901760, %v32575_v46  ;;  %v34375_v24 = vpop.permute.xlu1 %34374 }
0x1a77   : >> { %32038 = vmatprep.mubr.f32.mxu0 %v40058_v38  ;;  %31797 = vmatmul.mubr.f32.vlgmr.msra.gmra.mxu1 %v40062_v44  ;;  %v33899_v20 = vsel %vm309_vm4, %v33896_v0, 0  ;;  %v33529_v6 = vsub.f32 %v33527_v4, %v33528_v27 }
0x1a78   : >> { %31914 = vmatpush1.msra.mxu1 %v39105_v31  ;;  %32044 = vmatmul.mubr.f32.vlgmr.msra.gmra.mxu0 %v40063_v8  ;;  %v32569_v31 = vsub.f32 %v32567_v35, %v32568_v41  ;;  %v39226_v44 = vand.u32 4294901760, %v33899_v20  ;;  %v34863_v46 = vpop.permute.xlu0 %34862 }
0x1a79   : >> { %32167 = vmatpush1.msra.mxu0 %v32087_v61  ;;  %32085 = vmatprep.subr.mxu1 %v32084_v49  ;;  %v33897_v61 = vmul.f32 %v40057_v58, %v33895_v62  ;;  %v33530_v17 = vand.u32 4294901760, %v33529_v6  ;;  %v40085_v6 = vld [vmem:[#allocation77_spill] sm:$0xff] }
0x1a7a   : >> { %32318 = vmatprep.subr.mxu0 %v32082_v19  ;;  %31947 = vmatprep.mubr.f32.mxu1 %v40058_v38  ;;  %v32570_v14 = vand.u32 4294901760, %v32569_v31  ;;  %v33533_v19 = vsub.f32 %v33414_v33, %v39197_v51  ;;  %v34019_v32 = vsub.f32 %v33899_v20, %v39226_v44 }
0x1a7b   : >> { %32200 = vmatprep.mubr.f32.mxu0 %v40058_v38  ;;  %31949 = vmatmul.mubr.f32.vlgmr.msra.gmra.mxu1 %v40061_v18 }
0x1a7c   : >> { %32091 = vmatpush1.msra.mxu1 %v32090_v29  ;;  %32203 = vmatmul.mubr.f32.vlgmr.msra.gmra.mxu0 %v40064_v11  ;;  %v40075_v29 = vld [vmem:[#allocation75_spill] sm:$0xff]  ;;  %v34020_v23 = vand.u32 4294901760, %v34019_v32  ;;  %v35345_v33 = vpop.permute.xlu0 %35344 }
0x1a7d   : >> { %32322 = vmatpush1.msra.mxu0 %v32088_v42  ;;  %32240 = vmatprep.subr.mxu1 %v39113_v45  ;;  %v33902_v42 = vsel %vm309_vm4, %v33897_v61, 0 }
0x1a7e   : >> { %32489 = vmatprep.subr.mxu0 %v39131_v56  ;;  %32124 = vmatprep.mubr.f32.mxu1 %v40058_v38  ;;  %v39216_v18 = vand.u32 4294901760, %v33902_v42 }
0x1a7f   : >> { %32355 = vmatprep.mubr.f32.mxu0 %v40058_v38  ;;  %32126 = vmatmul.mubr.f32.vlgmr.msra.gmra.mxu1 %v40065_v53 }
0x1a80   : >> { %32242 = vmatpush1.msra.mxu1 %v39115_v21  ;;  %32357 = vmatmul.mubr.f32.vlgmr.msra.gmra.mxu0 %v40065_v53  ;;  %v34013_v55 = vsub.f32 %v33902_v42, %v39216_v18 }
0x1a81   : >> { %32491 = vmatpush1.msra.mxu0 %v39138_v37  ;;  %32394 = vmatprep.subr.mxu1 %v39113_v45  ;;  %v33054_v45 = vand.u32 4294901760, %v33053_v2 }
0x1a82   : >> { %32650 = vmatprep.subr.mxu0 %v32567_v35  ;;  %32275 = vmatprep.mubr.f32.mxu1 %v40058_v38  ;;  %v40074_v35 = vld [vmem:[#allocation68_spill] sm:$0xff] }
0x1a83   : >> { %32524 = vmatprep.mubr.f32.mxu0 %v40058_v38  ;;  %32279 = vmatmul.mubr.f32.vlgmr.msra.gmra.mxu1 %v40066_v30  ;;  %v33055_v25 = vsub.f32 %v33053_v2, %v33054_v45  ;;  %v34021_v30 = vsub.f32 %v34019_v32, %v34020_v23 }
0x1a84   : >> { %32396 = vmatpush1.msra.mxu1 %v39115_v21  ;;  %32530 = vmatmul.mubr.f32.vlgmr.msra.gmra.mxu0 %v40067_v7  ;;  %v33060_v21 = vand.u32 4294901760, %v33059_v9 }
0x1a85   : >> { %32653 = vmatpush1.msra.mxu0 %v32573_v28  ;;  %32571 = vmatprep.subr.mxu1 %v32570_v14  ;;  %v33056_v54 = vand.u32 4294901760, %v33055_v25  ;;  %v34378_v28 = vsel %vm3324_vm11, %v34375_v24, %v34377_v22  ;;  %v40078_v14 = vld [vmem:[#allocation72_spill] sm:$0xff]  ;;  %v34022_v12 = vand.u32 4294901760, %v34021_v30  ;;  %v40080_v25 = vld [vmem:[#allocation74_spill] sm:$0xff] }
0x1a86   : >> { %32804 = vmatprep.subr.mxu0 %v32568_v41  ;;  %32429 = vmatprep.mubr.f32.mxu1 %v40058_v38  ;;  %v33061_v3 = vsub.f32 %v33059_v9, %v33060_v21  ;;  %v34382_v10 = vmul.f32 %v40054_v43, %v34378_v28 }
0x1a87   : >> { %32686 = vmatprep.mubr.f32.mxu0 %v40058_v38  ;;  %32431 = vmatmul.mubr.f32.vlgmr.msra.gmra.mxu1 %v40065_v53  ;;  %v40077_v53 = vld [vmem:[#allocation69_spill] sm:$0xff] }
0x1a88   : >> { %32577 = vmatpush1.msra.mxu1 %v32576_v60  ;;  %32689 = vmatmul.mubr.f32.vlgmr.msra.gmra.mxu0 %v40068_v57  ;;  %v33062_v16 = vand.u32 4294901760, %v33061_v3  ;;  %v34385_v43 = vsel %vm309_vm4, %v34382_v10, 0  ;;  %v34866_v60 = vsel %vm3815_vm12, %v34863_v46, 0.0  ;;  %v40081_v3 = vld [vmem:[#allocation73_spill] sm:$0xff] }
0x1a89   : >> { %32808 = vmatpush1.msra.mxu0 %v32574_v15  ;;  %32726 = vmatprep.subr.mxu1 %v39131_v56  ;;  %v40076_v15 = vld [vmem:[#allocation70_spill] sm:$0xff]  ;;  %v34870_v13 = vsel %vm309_vm4, %v34866_v60, 0  ;;  %v40089_v10 = vld [vmem:[#allocation81_spill] sm:$0xff] }
0x1a8a   : >> { %32975 = vmatprep.subr.mxu0 %v39159_v47  ;;  %32610 = vmatprep.mubr.f32.mxu1 %v40058_v38  ;;  %v39274_v62 = vand.u32 4294901760, %v34870_v13 }
0x1a8b   : >> { %32841 = vmatprep.mubr.f32.mxu0 %v40058_v38  ;;  %32612 = vmatmul.mubr.f32.vlgmr.msra.gmra.mxu1 %v40069_v34 }
0x1a8c   : >> { %32728 = vmatpush1.msra.mxu1 %v39138_v37  ;;  %32843 = vmatmul.mubr.f32.vlgmr.msra.gmra.mxu0 %v40069_v34  ;;  %v34981_v39 = vsub.f32 %v34870_v13, %v39274_v62 }
0x1a8d   : >> { %32977 = vmatpush1.msra.mxu0 %v39167_v40  ;;  %32880 = vmatprep.subr.mxu1 %v39131_v56  ;;  %v33534_v56 = vand.u32 4294901760, %v33533_v19 }
0x1a8e   : >> { %33136 = vmatprep.subr.mxu0 %v33053_v2  ;;  %32761 = vmatprep.mubr.f32.mxu1 %v40058_v38 }
0x1a8f   : >> { %33010 = vmatprep.mubr.f32.mxu0 %v40058_v38  ;;  %32765 = vmatmul.mubr.f32.vlgmr.msra.gmra.mxu1 %v40070_v50  ;;  %v33535_v49 = vsub.f32 %v33533_v19, %v33534_v56  ;;  %v35349_v50 = vsel %vm4302_vm13, %v35345_v33, 0.0 }
0x1a90   : >> { %32882 = vmatpush1.msra.mxu1 %v39138_v37  ;;  %33016 = vmatmul.mubr.f32.vlgmr.msra.gmra.mxu0 %v40071_v1  ;;  %v34381_v37 = vsel %vm3324_vm11, %v34377_v22, 0.0  ;;  %v40082_v1 = vld [vmem:[#allocation76_spill] sm:$0xff] }
0x1a91   : >> { %33139 = vmatpush1.msra.mxu0 %v33059_v9  ;;  %33057 = vmatprep.subr.mxu1 %v33056_v54  ;;  %v34383_v8 = vmul.f32 %v40055_v52, %v34381_v37  ;;  %v33536_v41 = vand.u32 4294901760, %v33535_v49  ;;  %v34014_v52 = vand.u32 4294901760, %v34013_v55  ;;  %v40079_v9 = vld [vmem:[#allocation79_spill] sm:$0xff]  ;;  %v40086_v49 = vld [vmem:[#allocation80_spill] sm:$0xff] }
0x1a92   : >> { %33290 = vmatprep.subr.mxu0 %v33054_v45  ;;  %32915 = vmatprep.mubr.f32.mxu1 %v40058_v38  ;;  %v34861_v45 = vpop.permute.xlu1 %34860 }
0x1a93   : >> { %33172 = vmatprep.mubr.f32.mxu0 %v40058_v38  ;;  %32917 = vmatmul.mubr.f32.vlgmr.msra.gmra.mxu1 %v40069_v34  ;;  %v34388_v11 = vsel %vm309_vm4, %v34383_v8, 0  ;;  %v34015_v31 = vsub.f32 %v34013_v55, %v34014_v52  ;;  %v34864_v34 = vsel %vm3815_vm12, %v34861_v45, %v34863_v46 }
0x1a94   : >> { %33063 = vmatpush1.msra.mxu1 %v33062_v16  ;;  %33175 = vmatmul.mubr.f32.vlgmr.msra.gmra.mxu0 %v40072_v26  ;;  %v34867_v36 = vsel %vm309_vm4, %v34864_v34, 0 }
0x1a95   : >> { %33294 = vmatpush1.msra.mxu0 %v33060_v21  ;;  %33212 = vmatprep.subr.mxu1 %v39159_v47  ;;  %v34016_v2 = vand.u32 4294901760, %v34015_v31  ;;  %v40093_v31 = vld [vmem:[#allocation85_spill] sm:$0xff] }
0x1a96   : >> { %33449 = vmatprep.subr.mxu0 %v39187_v48  ;;  %33096 = vmatprep.mubr.f32.mxu1 %v40058_v38  ;;  %v35343_v54 = vpop.permute.xlu1 %35342 }
0x1a97   : >> { %33327 = vmatprep.mubr.f32.mxu0 %v40058_v38  ;;  %33098 = vmatmul.mubr.f32.vlgmr.msra.gmra.mxu1 %v40073_v5  ;;  %v35346_v0 = vsel %vm4302_vm13, %v35343_v54, %v35345_v33 }
0x1a98   : >> { %33214 = vmatpush1.msra.mxu1 %v39167_v40  ;;  %33329 = vmatmul.mubr.f32.vlgmr.msra.gmra.mxu0 %v40073_v5  ;;  %v35350_v22 = vmul.f32 %v40059_v63, %v35346_v0 }
0x1a99   : >> { %33451 = vmatpush1.msra.mxu0 %v39197_v51  ;;  %33366 = vmatprep.subr.mxu1 %v39159_v47  ;;  %v39246_v47 = vand.u32 4294901760, %v34388_v11 }
0x1a9a   : >> { %33610 = vmatprep.subr.mxu0 %v33527_v4  ;;  %33247 = vmatprep.mubr.f32.mxu1 %v40058_v38  ;;  %v39284_v4 = vand.u32 4294901760, %v34867_v36  ;;  %v35353_v63 = vsel %vm309_vm4, %v35350_v22, 0 }
0x1a9b   : >> { %33484 = vmatprep.mubr.f32.mxu0 %v40058_v38  ;;  %33251 = vmatmul.mubr.f32.vlgmr.msra.gmra.mxu1 %v40074_v35  ;;  %v34499_v7 = vsub.f32 %v34388_v11, %v39246_v47  ;;  %v35390_v24 = vand.u32 4294901760, %v35353_v63 }
0x1a9c   : >> { %33368 = vmatpush1.msra.mxu1 %v39167_v40  ;;  %33490 = vmatmul.mubr.f32.vlgmr.msra.gmra.mxu0 %v40075_v29  ;;  %v39255_v40 = vand.u32 4294901760, %v34385_v43  ;;  %v34987_v42 = vsub.f32 %v34867_v36, %v39284_v4 }
0x1a9d   : >> { %33613 = vmatpush1.msra.mxu0 %v33533_v19  ;;  %33531 = vmatprep.subr.mxu1 %v33530_v17  ;;  %v34500_v21 = vand.u32 4294901760, %v34499_v7  ;;  %v35351_v19 = vmul.f32 %v40057_v58, %v35349_v50  ;;  %v34982_v58 = vand.u32 4294901760, %v34981_v39  ;;  %v35473_v8 = vsub.f32 %v35353_v63, %v35390_v24  ;;  %v40096_v50 = vld [vmem:[#allocation95_spill] sm:$0xff] }
0x1a9e   : >> { %33764 = vmatprep.subr.mxu0 %v33528_v27  ;;  %33401 = vmatprep.mubr.f32.mxu1 %v40058_v38  ;;  %v34505_v57 = vsub.f32 %v34385_v43, %v39255_v40  ;;  %v40083_v27 = vld [vmem:[#allocation83_spill] sm:$0xff]  ;;  %v34988_v20 = vand.u32 4294901760, %v34987_v42 }
0x1a9f   : >> { %33646 = vmatprep.mubr.f32.mxu0 %v40058_v38  ;;  %33403 = vmatmul.mubr.f32.vlgmr.msra.gmra.mxu1 %v40073_v5  ;;  %v34983_v37 = vsub.f32 %v34981_v39, %v34982_v58 }
0x1aa0   : >> { %33537 = vmatpush1.msra.mxu1 %v33536_v41  ;;  %33649 = vmatmul.mubr.f32.vlgmr.msra.gmra.mxu0 %v40076_v15  ;;  %v35474_v41 = vand.u32 4294901760, %v35473_v8  ;;  %v40090_v15 = vld [vmem:[#allocation84_spill] sm:$0xff] }
0x1aa1   : >> { %33768 = vmatpush1.msra.mxu0 %v33534_v56  ;;  %33686 = vmatprep.subr.mxu1 %v39187_v48  ;;  %v35356_v56 = vsel %vm309_vm4, %v35351_v19, 0  ;;  %v34984_v35 = vand.u32 4294901760, %v34983_v37 }
0x1aa2   : >> { %33935 = vmatprep.subr.mxu0 %v39216_v18  ;;  %33570 = vmatprep.mubr.f32.mxu1 %v40058_v38  ;;  %v39304_v5 = vand.u32 4294901760, %v35356_v56  ;;  %v35475_v11 = vsub.f32 %v35473_v8, %v35474_v41 }
0x1aa3   : >> { %33801 = vmatprep.mubr.f32.mxu0 %v40058_v38  ;;  %33572 = vmatmul.mubr.f32.vlgmr.msra.gmra.mxu1 %v40077_v53 }
0x1aa4   : >> { %33688 = vmatpush1.msra.mxu1 %v39197_v51  ;;  %33803 = vmatmul.mubr.f32.vlgmr.msra.gmra.mxu0 %v40077_v53  ;;  %v35467_v17 = vsub.f32 %v35356_v56, %v39304_v5  ;;  %v35476_v43 = vand.u32 4294901760, %v35475_v11 }
0x1aa5   : >> { %33937 = vmatpush1.msra.mxu0 %v39226_v44  ;;  %33840 = vmatprep.subr.mxu1 %v39187_v48  ;;  %v34506_v48 = vand.u32 4294901760, %v34505_v57 }
0x1aa6   : >> { %34096 = vmatprep.subr.mxu0 %v34013_v55  ;;  %33721 = vmatprep.mubr.f32.mxu1 %v40058_v38  ;;  %v40087_v55 = vld [vmem:[#allocation87_spill] sm:$0xff]  ;;  %v35468_v29 = vand.u32 4294901760, %v35467_v17 }
0x1aa7   : >> { %33970 = vmatprep.mubr.f32.mxu0 %v40058_v38  ;;  %33725 = vmatmul.mubr.f32.vlgmr.msra.gmra.mxu1 %v40078_v14  ;;  %v34507_v61 = vsub.f32 %v34505_v57, %v34506_v48 }
0x1aa8   : >> { %33842 = vmatpush1.msra.mxu1 %v39197_v51  ;;  %33976 = vmatmul.mubr.f32.vlgmr.msra.gmra.mxu0 %v40079_v9  ;;  %v34501_v51 = vsub.f32 %v34499_v7, %v34500_v21 }
0x1aa9   : >> { %34099 = vmatpush1.msra.mxu0 %v34019_v32  ;;  %34017 = vmatprep.subr.mxu1 %v34016_v2  ;;  %v34508_v26 = vand.u32 4294901760, %v34507_v61  ;;  %v40088_v32 = vld [vmem:[#allocation82_spill] sm:$0xff] }
0x1aaa   : >> { %34250 = vmatprep.subr.mxu0 %v34014_v52  ;;  %33875 = vmatprep.mubr.f32.mxu1 %v40058_v38  ;;  %v34502_v16 = vand.u32 4294901760, %v34501_v51  ;;  %v35469_v52 = vsub.f32 %v35467_v17, %v35468_v29  ;;  %v40095_v51 = vld [vmem:[#allocation5_spill] sm:$0xff] }
0x1aab   : >> { %34132 = vmatprep.mubr.f32.mxu0 %v40058_v38  ;;  %33877 = vmatmul.mubr.f32.vlgmr.msra.gmra.mxu1 %v40077_v53  ;;  %v40092_v53 = vld [vmem:[#allocation86_spill] sm:$0xff]  ;;  %v31470_v54 = vmul.f32 %v40096_v50, %v40095_v51 }
0x1aac   : >> { %34023 = vmatpush1.msra.mxu1 %v34022_v12  ;;  %34135 = vmatmul.mubr.f32.vlgmr.msra.gmra.mxu0 %v40080_v25 }
0x1aad   : >> { %34254 = vmatpush1.msra.mxu0 %v34020_v23  ;;  %34172 = vmatprep.subr.mxu1 %v39216_v18  ;;  %v35470_v23 = vand.u32 4294901760, %v35469_v52 }
0x1aae   : >> { %34421 = vmatprep.subr.mxu0 %v39246_v47  ;;  %34056 = vmatprep.mubr.f32.mxu1 %v40058_v38 }
0x1aaf   : >> { %34287 = vmatprep.mubr.f32.mxu0 %v40058_v38  ;;  %34058 = vmatmul.mubr.f32.vlgmr.msra.gmra.mxu1 %v40081_v3 }
0x1ab0   : >> { %34174 = vmatpush1.msra.mxu1 %v39226_v44  ;;  %34289 = vmatmul.mubr.f32.vlgmr.msra.gmra.mxu0 %v40081_v3 }
0x1ab1   : >> { %34423 = vmatpush1.msra.mxu0 %v39255_v40  ;;  %34326 = vmatprep.subr.mxu1 %v39216_v18  ;;  %v40084_v18 = vld [vmem:[#allocation78_spill] sm:$0xff] }
0x1ab2   : >> { %34582 = vmatprep.subr.mxu0 %v34499_v7  ;;  %34207 = vmatprep.mubr.f32.mxu1 %v40058_v38 }
0x1ab3   : >> { %34456 = vmatprep.mubr.f32.mxu0 %v40058_v38  ;;  %34211 = vmatmul.mubr.f32.vlgmr.msra.gmra.mxu1 %v40082_v1 }
0x1ab4   : >> { %34328 = vmatpush1.msra.mxu1 %v39226_v44  ;;  %34462 = vmatmul.mubr.f32.vlgmr.msra.gmra.mxu0 %v40083_v27  ;;  %v34989_v44 = vsub.f32 %v34987_v42, %v34988_v20  ;;  %v40097_v27 = vld [vmem:[#allocation90_spill] sm:$0xff] }
0x1ab5   : >> { %34585 = vmatpush1.msra.mxu0 %v34505_v57  ;;  %34503 = vmatprep.subr.mxu1 %v34502_v16 }
0x1ab6   : >> { %34736 = vmatprep.subr.mxu0 %v34500_v21  ;;  %34361 = vmatprep.mubr.f32.mxu1 %v40058_v38  ;;  %v34990_v28 = vand.u32 4294901760, %v34989_v44 }
0x1ab7   : >> { %34618 = vmatprep.mubr.f32.mxu0 %v40058_v38  ;;  %34363 = vmatmul.mubr.f32.vlgmr.msra.gmra.mxu1 %v40081_v3 }
0x1ab8   : >> { %34509 = vmatpush1.msra.mxu1 %v34508_v26  ;;  %34621 = vmatmul.mubr.f32.vlgmr.msra.gmra.mxu0 %v40084_v18 }
0x1ab9   : >> { %34740 = vmatpush1.msra.mxu0 %v34506_v48  ;;  %34658 = vmatprep.subr.mxu1 %v39246_v47 }
0x1aba   : >> { %34903 = vmatprep.subr.mxu0 %v39274_v62  ;;  %34542 = vmatprep.mubr.f32.mxu1 %v40058_v38 }
0x1abb   : >> { %34773 = vmatprep.mubr.f32.mxu0 %v40058_v38  ;;  %34544 = vmatmul.mubr.f32.vlgmr.msra.gmra.mxu1 %v40085_v6 }
0x1abc   : >> { %34660 = vmatpush1.msra.mxu1 %v39255_v40  ;;  %34775 = vmatmul.mubr.f32.vlgmr.msra.gmra.mxu0 %v40085_v6 }
0x1abd   : >> { %34905 = vmatpush1.msra.mxu0 %v39284_v4  ;;  %34812 = vmatprep.subr.mxu1 %v39246_v47  ;;  %v40091_v47 = vld [vmem:[#allocation89_spill] sm:$0xff] }
0x1abe   : >> { %35064 = vmatprep.subr.mxu0 %v34981_v39  ;;  %34693 = vmatprep.mubr.f32.mxu1 %v40058_v38 }
0x1abf   : >> { %34938 = vmatprep.mubr.f32.mxu0 %v40058_v38  ;;  %34697 = vmatmul.mubr.f32.vlgmr.msra.gmra.mxu1 %v40086_v49 }
0x1ac0   : >> { %34814 = vmatpush1.msra.mxu1 %v39255_v40  ;;  %34944 = vmatmul.mubr.f32.vlgmr.msra.gmra.mxu0 %v40087_v55  ;;  %v40094_v40 = vld [vmem:[#allocation88_spill] sm:$0xff] }
0x1ac1   : >> { %35067 = vmatpush1.msra.mxu0 %v34987_v42  ;;  %34985 = vmatprep.subr.mxu1 %v34984_v35  ;;  %v31471_v42 = vadd.f32 %v31470_v54, %v40097_v27 }
0x1ac2   : >> { %35218 = vmatprep.subr.mxu0 %v34982_v58  ;;  %34847 = vmatprep.mubr.f32.mxu1 %v40058_v38 }
0x1ac3   : >> { %35100 = vmatprep.mubr.f32.mxu0 %v40058_v38  ;;  %34849 = vmatmul.mubr.f32.vlgmr.msra.gmra.mxu1 %v40085_v6 }
0x1ac4   : >> { %34991 = vmatpush1.msra.mxu1 %v34990_v28  ;;  %35103 = vmatmul.mubr.f32.vlgmr.msra.gmra.mxu0 %v40088_v32 }
0x1ac5   : >> { %35222 = vmatpush1.msra.mxu0 %v34988_v20  ;;  %35140 = vmatprep.subr.mxu1 %v39274_v62 }
0x1ac6   : >> { %35389 = vmatprep.subr.mxu0 %v39304_v5  ;;  %35024 = vmatprep.mubr.f32.mxu1 %v40058_v38 }
0x1ac7   : >> { %35255 = vmatprep.mubr.f32.mxu0 %v40058_v38  ;;  %35026 = vmatmul.mubr.f32.vlgmr.msra.gmra.mxu1 %v40089_v10 }
0x1ac8   : >> { %35142 = vmatpush1.msra.mxu1 %v39284_v4  ;;  %35257 = vmatmul.mubr.f32.vlgmr.msra.gmra.mxu0 %v40089_v10 }
0x1ac9   : >> { %35391 = vmatpush1.msra.mxu0 %v35390_v24  ;;  %35294 = vmatprep.subr.mxu1 %v39274_v62 }
0x1aca   : >> { %35550 = vmatprep.subr.mxu0 %v35467_v17  ;;  %35175 = vmatprep.mubr.f32.mxu1 %v40058_v38 }
0x1acb   : >> { %35424 = vmatprep.mubr.f32.mxu0 %v40058_v38  ;;  %35179 = vmatmul.mubr.f32.vlgmr.msra.gmra.mxu1 %v40090_v15 }
0x1acc   : >> { %35296 = vmatpush1.msra.mxu1 %v39284_v4  ;;  %35430 = vmatmul.mubr.f32.vlgmr.msra.gmra.mxu0 %v40091_v47 }
0x1acd   : >> { %35553 = vmatpush1.msra.mxu0 %v35473_v8  ;;  %35471 = vmatprep.subr.mxu1 %v35470_v23 }
0x1ace   : >> { %35704 = vmatprep.subr.mxu0 %v35468_v29  ;;  %35329 = vmatprep.mubr.f32.mxu1 %v40058_v38 }
0x1acf   : >> { %35586 = vmatprep.mubr.f32.mxu0 %v40058_v38  ;;  %35331 = vmatmul.mubr.f32.vlgmr.msra.gmra.mxu1 %v40089_v10 }
0x1ad0   : >> { %35477 = vmatpush1.msra.mxu1 %v35476_v43  ;;  %35589 = vmatmul.mubr.f32.vlgmr.msra.gmra.mxu0 %v40092_v53 }
0x1ad1   : >> { %35708 = vmatpush1.msra.mxu0 %v35474_v41  ;;  %35626 = vmatprep.subr.mxu1 %v39304_v5 }
0x1ad2   : >> { %35510 = vmatprep.mubr.f32.mxu1 %v40058_v38  ;;  %35741 = vmatprep.mubr.f32.mxu0 %v40058_v38 }
0x1ad3   : >> { %35512 = vmatmul.mubr.f32.vlgmr.msra.gmra.mxu1 %v40093_v31 }
0x1ad4   : >> { %35628 = vmatpush1.msra.mxu1 %v35390_v24  ;;  %35743 = vmatmul.mubr.f32.vlgmr.msra.gmra.mxu0 %v40093_v31 }
0x1ad5   : >> { %35780 = vmatprep.subr.mxu1 %v39304_v5  ;;  %35661 = vmatprep.mubr.f32.mxu1 %v40058_v38 }
0x1ad7   : >> { %35665 = vmatmul.mubr.f32.vlgmr.msra.gmra.mxu1 %v40094_v40 }
0x1ad8   : >> { %35782 = vmatpush1.msra.mxu1 %v35390_v24  ;;  %35815 = vmatprep.mubr.f32.mxu1 %v40058_v38 }
0x1adb   : >> { %35817 = vmatmul.mubr.f32.vlgmr.msra.gmra.mxu1 %v40093_v31 }
0x1b2b   : >> { %v31563_v46 = vpop.f32.mrf.mxu0 }
0x1b2d   : >> { %v31565_v30 = vpop.f32.mrf.mxu0 }
0x1b2f   : >> { %v31722_v14 = vpop.f32.mrf.mxu0 }
0x1b31   : >> { %v31724_v2 = vpop.f32.mrf.mxu0 }
0x1b33   : >> { %v31645_v7 = vpop.f32.mrf.mxu1 }
0x1b34   : >> { %v31646_v9 = vadd.f32 %v31645_v7, %v31563_v46  ;;  %v31876_v60 = vpop.f32.mrf.mxu0 }
0x1b35   : >> { %v31647_v45 = vpop.f32.mrf.mxu1 }
0x1b36   : >> { %v31648_v57 = vadd.f32 %v31647_v45, %v31565_v30  ;;  %v31878_v12 = vpop.f32.mrf.mxu0  ;;  %v31723_v21 = vadd.f32 %v31722_v14, %v31646_v9 }
0x1b37   : >> { %v31798_v13 = vpop.f32.mrf.mxu1 }
0x1b38   : >> { %v31799_v34 = vadd.f32 %v31798_v13, %v31723_v21  ;;  %v32045_v25 = vpop.f32.mrf.mxu0  ;;  %v31725_v48 = vadd.f32 %v31724_v2, %v31648_v57 }
0x1b39   : >> { %v31800_v33 = vpop.f32.mrf.mxu1 }
0x1b3a   : >> { %v31801_v62 = vadd.f32 %v31800_v33, %v31725_v48  ;;  %v32047_v38 = vpop.f32.mrf.mxu0  ;;  %v31877_v36 = vadd.f32 %v31876_v60, %v31799_v34 }
0x1b3b   : >> { %v31950_v3 = vpop.f32.mrf.mxu1 }
0x1b3c   : >> { %v31951_v4 = vadd.f32 %v31950_v3, %v31877_v36  ;;  %v32204_v61 = vpop.f32.mrf.mxu0  ;;  %v31879_v39 = vadd.f32 %v31878_v12, %v31801_v62 }
0x1b3d   : >> { %v31952_v1 = vpop.f32.mrf.mxu1 }
0x1b3e   : >> { %v31953_v16 = vadd.f32 %v31952_v1, %v31879_v39  ;;  %v32206_v19 = vpop.f32.mrf.mxu0 }
0x1b3f   : >> { %v32127_v0 = vpop.f32.mrf.mxu1 }
0x1b40   : >> { %v31957_v26 = vcombine.low %v31951_v4, %v31953_v16  ;;  %v32128_v22 = vadd.f32 %v32127_v0, %v32045_v25  ;;  %v32358_v58 = vpop.f32.mrf.mxu0 }
0x1b41   : >> { %v32129_v56 = vpop.f32.mrf.mxu1 }
0x1b42   : >> { %v31959_v18 = vadd.f32 %v31957_v26, %v31471_v42  ;;  %v32130_v20 = vadd.f32 %v32129_v56, %v32047_v38  ;;  %v32360_v5 = vpop.f32.mrf.mxu0  ;;  %v32205_v63 = vadd.f32 %v32204_v61, %v32128_v22 }
0x1b43   : >> { %v32280_v6 = vpop.f32.mrf.mxu1 }
0x1b44   : >> { %v32281_v37 = vadd.f32 %v32280_v6, %v32205_v63  ;;  %v32531_v24 = vpop.f32.mrf.mxu0  ;;  %v32207_v44 = vadd.f32 %v32206_v19, %v32130_v20 }
0x1b45   : >> { %v32282_v49 = vpop.f32.mrf.mxu1 }
0x1b46   : >> { %v32283_v35 = vadd.f32 %v32282_v49, %v32207_v44  ;;  %v32533_v17 = vpop.f32.mrf.mxu0  ;;  %v32359_v55 = vadd.f32 %v32358_v58, %v32281_v37 }
0x1b47   : >> { %v32432_v8 = vpop.f32.mrf.mxu1 }
0x1b48   : >> { %v32433_v28 = vadd.f32 %v32432_v8, %v32359_v55  ;;  %v32690_v29 = vpop.f32.mrf.mxu0  ;;  %v32361_v32 = vadd.f32 %v32360_v5, %v32283_v35 }
0x1b49   : >> { %v32434_v41 = vpop.f32.mrf.mxu1 }
0x1b4a   : >> { %v32435_v10 = vadd.f32 %v32434_v41, %v32361_v32  ;;  %v32692_v52 = vpop.f32.mrf.mxu0 }
0x1b4b   : >> { %v32613_v11 = vpop.f32.mrf.mxu1 }
0x1b4c   : >> { %v32439_v15 = vcombine.low %v32433_v28, %v32435_v10  ;;  %v32614_v23 = vadd.f32 %v32613_v11, %v32531_v24  ;;  %v32844_v47 = vpop.f32.mrf.mxu0 }
0x1b4d   : >> { %v32615_v43 = vpop.f32.mrf.mxu1 }
0x1b4e   : >> { %v32441_v53 = vadd.f32 %v32439_v15, %v31959_v18  ;;  %v32616_v31 = vadd.f32 %v32615_v43, %v32533_v17  ;;  %v32846_v40 = vpop.f32.mrf.mxu0  ;;  %v32691_v46 = vadd.f32 %v32690_v29, %v32614_v23 }
0x1b4f   : >> { %v32766_v30 = vpop.f32.mrf.mxu1 }
0x1b50   : >> { %v32767_v14 = vadd.f32 %v32766_v30, %v32691_v46  ;;  %v33017_v2 = vpop.f32.mrf.mxu0  ;;  %v32693_v7 = vadd.f32 %v32692_v52, %v32616_v31 }
0x1b51   : >> { %v32768_v9 = vpop.f32.mrf.mxu1 }
0x1b52   : >> { %v32769_v60 = vadd.f32 %v32768_v9, %v32693_v7  ;;  %v33019_v45 = vpop.f32.mrf.mxu0  ;;  %v32845_v57 = vadd.f32 %v32844_v47, %v32767_v14 }
0x1b53   : >> { %v32918_v12 = vpop.f32.mrf.mxu1 }
0x1b54   : >> { %v33176_v21 = vpop.f32.mrf.mxu0  ;;  %v32847_v13 = vadd.f32 %v32846_v40, %v32769_v60  ;;  %v32919_v25 = vadd.f32 %v32918_v12, %v32845_v57 }
0x1b55   : >> { %v32920_v34 = vpop.f32.mrf.mxu1 }
0x1b56   : >> { %v32921_v48 = vadd.f32 %v32920_v34, %v32847_v13  ;;  %v33178_v33 = vpop.f32.mrf.mxu0 }
0x1b57   : >> { %v33099_v62 = vpop.f32.mrf.mxu1 }
0x1b58   : >> { %v32925_v38 = vcombine.low %v32919_v25, %v32921_v48  ;;  %v39353_v36 = vpop.f32.mrf.mxu0  ;;  %v33100_v31 = vadd.f32 %v33099_v62, %v33017_v2 }
0x1b59   : >> { %v33101_v3 = vpop.f32.mrf.mxu1 }
0x1b5a   : >> { %v39355_v51 = vadd.f32 %v32925_v38, %v32441_v53  ;;  %v39357_v50 = vpop.f32.mrf.mxu0  ;;  %v33102_v47 = vadd.f32 %v33101_v3, %v33019_v45  ;;  %v33177_v12 = vadd.f32 %v33176_v21, %v33100_v31 }
0x1b5b   : >> { %v33252_v54 = vpop.f32.mrf.mxu1 }
0x1b5c   : >> { %40098 = vst [vmem:[#allocation93_spill] sm:$0xff] %v39355_v51  ;;  %v33491_v4 = vpop.f32.mrf.mxu0  ;;  %v33179_v14 = vadd.f32 %v33178_v33, %v33102_v47 }
0x1b5d   : >> { %v33254_v61 = vpop.f32.mrf.mxu1 }
0x1b5e   : >> { %v33493_v39 = vpop.f32.mrf.mxu0  ;;  %v33255_v59 = vadd.f32 %v33254_v61, %v33179_v14 }
0x1b5f   : >> { %v39359_v1 = vpop.f32.mrf.mxu1 }
0x1b60   : >> { %v33650_v16 = vpop.f32.mrf.mxu0  ;;  %v33333_v21 = vadd.f32 %v39357_v50, %v33255_v59 }
0x1b61   : >> { %v39361_v19 = vpop.f32.mrf.mxu1 }
0x1b62   : >> { %v33652_v0 = vpop.f32.mrf.mxu0 }
0x1b63   : >> { %v33573_v27 = vpop.f32.mrf.mxu1 }
0x1b64   : >> { %v39363_v42 = vpop.f32.mrf.mxu0  ;;  %v33574_v7 = vadd.f32 %v33573_v27, %v33491_v4 }
0x1b65   : >> { %v33575_v26 = vpop.f32.mrf.mxu1 }
0x1b66   : >> { %v39365_v22 = vpop.f32.mrf.mxu0  ;;  %v33576_v40 = vadd.f32 %v33575_v26, %v33493_v39  ;;  %v33651_v45 = vadd.f32 %v33650_v16, %v33574_v7  ;;  %v33253_v39 = vadd.f32 %v33252_v54, %v33177_v12 }
0x1b67   : >> { %v33726_v58 = vpop.f32.mrf.mxu1 }
0x1b68   : >> { %v33977_v56 = vpop.f32.mrf.mxu0  ;;  %v33653_v13 = vadd.f32 %v33652_v0, %v33576_v40  ;;  %v33727_v0 = vadd.f32 %v33726_v58, %v33651_v45 }
0x1b69   : >> { %v33728_v18 = vpop.f32.mrf.mxu1 }
0x1b6a   : >> { %v33979_v20 = vpop.f32.mrf.mxu0  ;;  %v33729_v26 = vadd.f32 %v33728_v18, %v33653_v13  ;;  %v40099_v13 = vld [vmem:[#allocation93_spill] sm:$0xff] }
0x1b6b   : >> { %v39367_v5 = vpop.f32.mrf.mxu1 }
0x1b6c   : >> { %v34136_v63 = vpop.f32.mrf.mxu0 }
0x1b6d   : >> { %v39369_v6 = vpop.f32.mrf.mxu1 }
0x1b6e   : >> { %v34138_v37 = vpop.f32.mrf.mxu0 }
0x1b6f   : >> { %v34059_v24 = vpop.f32.mrf.mxu1 }
0x1b70   : >> { %v39371_v44 = vpop.f32.mrf.mxu0  ;;  %v34060_v34 = vadd.f32 %v34059_v24, %v33977_v56 }
0x1b71   : >> { %v34061_v49 = vpop.f32.mrf.mxu1 }
0x1b72   : >> { %v34292_v35 = vpop.f32.mrf.mxu0  ;;  %v34062_v9 = vadd.f32 %v34061_v49, %v33979_v20  ;;  %v34137_v33 = vadd.f32 %v34136_v63, %v34060_v34 }
0x1b73   : >> { %v34212_v17 = vpop.f32.mrf.mxu1 }
0x1b74   : >> { %v34463_v55 = vpop.f32.mrf.mxu0  ;;  %v34139_v3 = vadd.f32 %v34138_v37, %v34062_v9  ;;  %v33331_v37 = vadd.f32 %v39353_v36, %v33253_v39  ;;  %v34213_v54 = vadd.f32 %v34212_v17, %v34137_v33 }
0x1b75   : >> { %v34214_v8 = vpop.f32.mrf.mxu1 }
0x1b76   : >> { %v34465_v28 = vpop.f32.mrf.mxu0  ;;  %v34215_v56 = vadd.f32 %v34214_v8, %v34139_v3 }
0x1b77   : >> { %v39373_v29 = vpop.f32.mrf.mxu1 }
0x1b78   : >> { %v34622_v32 = vpop.f32.mrf.mxu0  ;;  %v34293_v59 = vadd.f32 %v34292_v35, %v34215_v56 }
0x1b79   : >> { %v39375_v41 = vpop.f32.mrf.mxu1 }
0x1b7a   : >> { %v34624_v10 = vpop.f32.mrf.mxu0 }
0x1b7b   : >> { %v34545_v52 = vpop.f32.mrf.mxu1 }
0x1b7c   : >> { %v39377_v11 = vpop.f32.mrf.mxu0  ;;  %v34546_v2 = vadd.f32 %v34545_v52, %v34463_v55  ;;  %v33807_v55 = vadd.f32 %v39365_v22, %v33729_v26  ;;  %v34291_v22 = vadd.f32 %v39371_v44, %v34213_v54 }
0x1b7d   : >> { %v34547_v15 = vpop.f32.mrf.mxu1 }
0x1b7e   : >> { %v34778_v23 = vpop.f32.mrf.mxu0  ;;  %v34548_v48 = vadd.f32 %v34547_v15, %v34465_v28  ;;  %v34623_v28 = vadd.f32 %v34622_v32, %v34546_v2  ;;  %v33805_v15 = vadd.f32 %v39363_v42, %v33727_v0  ;;  %v33881_v36 = vadd.f32 %v39369_v6, %v33807_v55 }
0x1b7f   : >> { %v34698_v43 = vpop.f32.mrf.mxu1 }
0x1b80   : >> { %v34945_v53 = vpop.f32.mrf.mxu0  ;;  %v34625_v27 = vadd.f32 %v34624_v10, %v34548_v48  ;;  %v34699_v58 = vadd.f32 %v34698_v43, %v34623_v28 }
0x1b81   : >> { %v34700_v46 = vpop.f32.mrf.mxu1 }
0x1b82   : >> { %v34947_v30 = vpop.f32.mrf.mxu0  ;;  %v34701_v63 = vadd.f32 %v34700_v46, %v34625_v27  ;;  %v34777_v43 = vadd.f32 %v39377_v11, %v34699_v58 }
0x1b83   : >> { %v39379_v60 = vpop.f32.mrf.mxu1 }
0x1b84   : >> { %v35104_v57 = vpop.f32.mrf.mxu0  ;;  %v34779_v31 = vadd.f32 %v34778_v23, %v34701_v63  ;;  %v40100_v63 = vld [vmem:[#allocation12_spill] sm:$0xff] }
0x1b85   : >> { %v34852_v25 = vpop.f32.mrf.mxu1 }
0x1b86   : >> { %v35106_v38 = vpop.f32.mrf.mxu0 }
0x1b87   : >> { %v35027_v51 = vpop.f32.mrf.mxu1 }
0x1b88   : >> { %v35258_v62 = vpop.f32.mrf.mxu0  ;;  %v35028_v20 = vadd.f32 %v35027_v51, %v34945_v53  ;;  %v33407_v51 = vadd.f32 %v39361_v19, %v33333_v21  ;;  %v33405_v53 = vadd.f32 %v39359_v1, %v33331_v37  ;;  %v34367_v19 = vadd.f32 %v39375_v41, %v34293_v59 }
0x1b89   : >> { %v35029_v4 = vpop.f32.mrf.mxu1  ;;  %v34365_v1 = vadd.f32 %v39373_v29, %v34291_v22  ;;  %v34851_v41 = vadd.f32 %v39379_v60, %v34777_v43  ;;  %v40104_v43 = vld [vmem:[#allocation11_spill] sm:$0xff] }
0x1b8a   : >> { %v35030_v49 = vadd.f32 %v35029_v4, %v34947_v30  ;;  %v35260_v47 = vpop.f32.mrf.mxu0  ;;  %v35105_v52 = vadd.f32 %v35104_v57, %v35028_v20  ;;  %v33411_v46 = vcombine.low %v33405_v53, %v33407_v51  ;;  %v33879_v30 = vadd.f32 %v39367_v5, %v33805_v15 }
0x1b8b   : >> { %v35180_v24 = vpop.f32.mrf.mxu1  ;;  %v34853_v57 = vadd.f32 %v34852_v25, %v34779_v31  ;;  %v34371_v48 = vcombine.low %v34365_v1, %v34367_v19  ;;  %v40101_v31 = vld [vmem:[#allocation91_spill] sm:$0xff]  ;;  %v40103_v19 = vld [vmem:[#allocation96_spill] sm:$0xff] }
0x1b8c   : >> { %v35431_v61 = vpop.f32.mrf.mxu0  ;;  %v35107_v16 = vadd.f32 %v35106_v38, %v35030_v49  ;;  %v35181_v40 = vadd.f32 %v35180_v24, %v35105_v52  ;;  %v33885_v9 = vcombine.low %v33879_v30, %v33881_v36  ;;  %v33413_v34 = vadd.f32 %v33411_v46, %v40099_v13  ;;  %v40102_v46 = vld [vmem:[#allocation92_spill] sm:$0xff] }
0x1b8d   : >> { %v35182_v18 = vpop.f32.mrf.mxu1  ;;  %v34857_v26 = vcombine.low %v34851_v41, %v34853_v57 }
0x1b8e   : >> { %v35433_v10 = vpop.f32.mrf.mxu0  ;;  %v35183_v8 = vadd.f32 %v35182_v18, %v35107_v16  ;;  %v35259_v44 = vadd.f32 %v35258_v62, %v35181_v40  ;;  %v33887_v2 = vadd.f32 %v33885_v9, %v33413_v34 }
0x1b8f   : >> { %v35332_v50 = vpop.f32.mrf.mxu1 }
0x1b90   : >> { %v35590_v32 = vpop.f32.mrf.mxu0  ;;  %v35261_v14 = vadd.f32 %v35260_v47, %v35183_v8  ;;  %v35333_v33 = vadd.f32 %v35332_v50, %v35259_v44  ;;  %v34373_v27 = vadd.f32 %v34371_v48, %v33887_v2 }
0x1b91   : >> { %v35334_v17 = vpop.f32.mrf.mxu1 }
0x1b92   : >> { %v35592_v42 = vpop.f32.mrf.mxu0  ;;  %v35335_v45 = vadd.f32 %v35334_v17, %v35261_v14  ;;  %v34859_v21 = vadd.f32 %v34857_v26, %v34373_v27 }
0x1b93   : >> { %v35513_v35 = vpop.f32.mrf.mxu1 }
0x1b94   : >> { %v35514_v7 = vadd.f32 %v35513_v35, %v35431_v61  ;;  %v35744_v5 = vpop.f32.mrf.mxu0  ;;  %v35339_v20 = vcombine.low %v35333_v33, %v35335_v45 }
0x1b95   : >> { %v35515_v6 = vpop.f32.mrf.mxu1 }
0x1b96   : >> { %v35516_v12 = vadd.f32 %v35515_v6, %v35433_v10  ;;  %v35591_v23 = vadd.f32 %v35590_v32, %v35514_v7  ;;  %v35746_v25 = vpop.f32.mrf.mxu0  ;;  %v35341_v24 = vadd.f32 %v35339_v20, %v34859_v21 }
0x1b97   : >> { %v35666_v38 = vpop.f32.mrf.mxu1 }
0x1b98   : >> { %v35667_v3 = vadd.f32 %v35666_v38, %v35591_v23  ;;  %v35593_v11 = vadd.f32 %v35592_v42, %v35516_v12 }
0x1b99   : >> { %v35668_v39 = vpop.f32.mrf.mxu1 }
0x1b9a   : >> { %v35669_v29 = vadd.f32 %v35668_v39, %v35593_v11  ;;  %v35745_v4 = vadd.f32 %v35744_v5, %v35667_v3 }
0x1b9b   : >> { %v35818_v62 = vpop.f32.mrf.mxu1 }
0x1b9c   : >> { %v35747_v49 = vadd.f32 %v35746_v25, %v35669_v29  ;;  %v35819_v0 = vadd.f32 %v35818_v62, %v35745_v4 }
0x1b9d   : >> { %v35820_v47 = vpop.f32.mrf.mxu1 }
0x1b9e   : >> { %v35821_v56 = vadd.f32 %v35820_v47, %v35747_v49 }
0x1ba0   : >> { %v35825_v60 = vcombine.low %v35819_v0, %v35821_v56 }
0x1ba2   : >> { %v35827_v28 = vadd.f32 %v35825_v60, %v35341_v24 }
0x1ba4   : >> { %v35829_v61 = vcombine.high %v35827_v28, %v35827_v28  ;;  %v35831_v16 = vsel %vm309_vm4, %v35827_v28, 0.0 }
0x1ba6   : >> { %v35832_v37 = vsel %vm309_vm4, %v35829_v61, 0.0 }
0x1ba7   : >> { %v35833_v55 = vadd.f32 %v35832_v37, %v35831_v16 }
0x1ba9   : >> { %35834 = vadd.xlane.f32.xlu0 %v35833_v55 }
0x1c32   : >> { %v35835_v54 = vpop.xlane.xlu0 %35834 }
0x1c33   : >> { %v35836_v18 = vmul.f32 0.00390625, %v35835_v54 }
0x1c35   : >> { %v35844_v52 = vrot.slane %v35836_v18, %v40100_v63 }
0x1c37   : >> { %v35846_v10 = vsub.f32 %v35827_v28, %v35844_v52 }
0x1c39   : >> { %v35847_v51 = vmul.f32 %v35846_v10, %v35846_v10 }
0x1c3b   : >> { %v35849_v15 = vcombine.high %v35847_v51, %v35847_v51  ;;  %v35851_v59 = vsel %vm309_vm4, %v35847_v51, 0.0 }
0x1c3d   : >> { %v35852_v50 = vsel %vm309_vm4, %v35849_v15, 0.0 }
0x1c3e   : >> { %v35853_v58 = vadd.f32 %v35852_v50, %v35851_v59 }
0x1c40   : >> { %35854 = vadd.xlane.f32.xlu1 %v35853_v58 }
0x1cc9   : >> { %v35855_v8 = vpop.xlane.xlu1 %35854 }
0x1cca   : >> { %v35856_v32 = vmul.f32 0.00390625, %v35855_v8 }
0x1ccc   : >> { %v35857_v53 = vadd.f32 1e-05, %v35856_v32 }
0x1cce   : >> { %36040 = vrsqrt.f32 %v35857_v53 }
0x1cdb   : >> { %v36041_v36 = vpop.eup %36040 }
0x1cdc   : >> { %v35866_v22 = vrot.slane %v36041_v36, %v40100_v63 }
0x1cde   : >> { %v35868_v17 = vmul.f32 %v35866_v22, %v35846_v10 }
0x1ce0   : >> { %v35869_v40 = vmul.f32 %v35868_v17, %v40101_v31 }
0x1ce2   : >> { %v35870_v30 = vadd.f32 %v35869_v40, %v40102_v46 }
0x1ce4   : >> { %v35875_v42 = vadd.f32 %v40103_v19, %v35870_v30 }
0x1ce6   : >> { %v35876_v35 = vmul.f32 0.020833334, %v35875_v42  ;;  %301 = sbr.rel (!%p299_p4) target bundleno = 22 (0x16), region = 81 }
0x1ce8   : >> { %v35877_v14 = vadd.f32 %v40104_v43, %v35876_v35  }
0x1cea   : >> { %v40105_v10 = vmov %v35877_v14  ;;  %35878 = vst [vmem:[%s36167_s15] sm:$0xff] (%p299_p4), %v35877_v14 }
0x1ceb PF: > { %s16_s21 = sadd.s32 1, %s36056_s21  }
0x1cec   : > { %p13_p5 = scmp.ge.s32.totalorder %s16_s21, 4  }
0x1cee   :  { %15 = sbr.rel (!%p13_p5) target bundleno = 1 (0x1), region = 92 }

</bundles_post_ra>
